<compile_context>
chip_gen: v5e
topology: v5e:2x2
jax: 0.10.0
libtpu: 0.0.40
codegen_flags: <defaults>
</compile_context>

<pallas_src>
import functools
import math

import numpy as np

import jax
import jax.numpy as jnp
from jax import lax
from jax.experimental import pallas as pl
from jax.experimental.pallas import tpu as pltpu

LRELU_SLOPE = 0.2
INV_SQRT2 = 1.0 / math.sqrt(2.0)
VMEM_LIMIT = 32 * 1024 * 1024


# --------------------------------------------------------------------------
# In-kernel helpers
# --------------------------------------------------------------------------
def _accumulate_taps(xf, w_ref, b_ref, *, M, W):
    """3x3 conv as 9 accumulated matmuls on a flat spatial layout.

    xf:    (Mp, Cin) f32 — flat activation, H-padded by one row each side plus
           one extra leading/trailing element (Mp = M + 2*W + 2).
    w_ref: (9, Cin, Cout) bf16 ref, tap index t = kh*3 + kw.
    b_ref: (1, Cout) f32 ref.
    Returns (M, Cout) f32 = conv3x3(x) + bias.
    """
    # column index of every output pixel (for masking the width wrap-around)
    col = lax.broadcasted_iota(jnp.int32, (M, 1), 0) % W
    not_left = (col != 0).astype(jnp.float32)
    not_right = (col != (W - 1)).astype(jnp.float32)

    acc = None
    for kh in range(3):
        for kw in range(3):
            start = kh * W + kw                     # shift of this tap
            xt = xf[start:start + M, :]             # (M, Cin) static slice
            if kw == 0:                             # left neighbour of col 0
                xt = xt * not_left
            elif kw == 2:                           # right neighbour of col W-1
                xt = xt * not_right
            wt = w_ref[kh * 3 + kw]                 # (Cin, Cout) bf16
            part = jnp.dot(xt.astype(jnp.bfloat16), wt,
                           preferred_element_type=jnp.float32)
            acc = part if acc is None else acc + part
    return acc + b_ref[...]


def _lrelu(x):
    return jnp.where(x > 0, x, LRELU_SLOPE * x)


# --------------------------------------------------------------------------
# Pallas kernels
# --------------------------------------------------------------------------
def _conv_kernel(*refs, M, W, pre_act, scale, has_shortcut):
    """[lrelu ->] conv3x3 + bias [+ shortcut] [* scale] (flat layout)."""
    if has_shortcut:
        x_ref, w_ref, b_ref, s_ref, o_ref = refs
    else:
        x_ref, w_ref, b_ref, o_ref = refs
        s_ref = None
    xf = x_ref[0].astype(jnp.float32)
    if pre_act:
        xf = _lrelu(xf)
    acc = _accumulate_taps(xf, w_ref, b_ref, M=M, W=W)
    if has_shortcut:                                # fused (s + r) epilogue
        acc = acc + s_ref[0].astype(jnp.float32)
    if scale != 1.0:
        acc = acc * scale
    o_ref[0] = acc.astype(o_ref.dtype)


def _conv_pool_kernel(*refs, M, W, learned_sc):
    """lrelu -> conv3x3 -> avgpool2 (residual) + pooled [1x1] shortcut."""
    if learned_sc:
        x_ref, w_ref, b_ref, p_ref, wsc_ref, r_ref, s_ref = refs
    else:
        x_ref, w_ref, b_ref, p_ref, r_ref, s_ref = refs
        wsc_ref = None
    xraw = x_ref[0].astype(jnp.float32)             # (Mp, Cin)
    xact = _lrelu(xraw)                             # residual pre-activation
    acc = _accumulate_taps(xact, w_ref, b_ref, M=M, W=W)   # (M, Cmid) f32

    P = p_ref[...]                                  # (M//4, M) bf16 pool matrix
    r_pool = jnp.dot(P, acc.astype(jnp.bfloat16),
                     preferred_element_type=jnp.float32)
    r_ref[0] = r_pool.astype(r_ref.dtype)

    # shortcut: avg-pool the RAW input, then (optionally) the 1x1 projection.
    x_int = xraw[W + 1:W + 1 + M, :]                # un-padded interior
    s_pool = jnp.dot(P, x_int.astype(jnp.bfloat16),
                     preferred_element_type=jnp.float32)
    if learned_sc:
        s_pool = jnp.dot(s_pool.astype(jnp.bfloat16), wsc_ref[...],
                         preferred_element_type=jnp.float32)
    s_ref[0] = s_pool.astype(s_ref.dtype)


def _head_kernel(x_ref, w4_ref, b4_ref, w1_ref, b1_ref, o_ref):
    """lrelu -> Conv2d(d,d,4,1,0) -> lrelu -> Conv2d(d,1,1,1,0) (fused)."""
    x = _lrelu(x_ref[...].astype(jnp.float32))
    h = jnp.dot(x.astype(jnp.bfloat16), w4_ref[...],
                preferred_element_type=jnp.float32) + b4_ref[...]
    h = _lrelu(h)
    o = jnp.dot(h.astype(jnp.bfloat16), w1_ref[...],
                preferred_element_type=jnp.float32) + b1_ref[...]
    o_ref[...] = o.astype(o_ref.dtype)


# --------------------------------------------------------------------------
# pallas_call wrappers
# --------------------------------------------------------------------------
def _compiler_params():
    return pltpu.CompilerParams(dimension_semantics=("parallel",),
                                vmem_limit_bytes=VMEM_LIMIT)


def _conv_call(xpf, w, b, shortcut, *, H, W, pre_act, scale):
    """xpf: (B, Mp, Cin) bf16 flat padded input; returns (B, H*W, Cout) bf16."""
    B, Mp, Cin = xpf.shape
    Cout = w.shape[-1]
    M = H * W
    has_sc = shortcut is not None
    kernel = functools.partial(_conv_kernel, M=M, W=W, pre_act=pre_act,
                               scale=scale, has_shortcut=has_sc)
    in_specs = [
        pl.BlockSpec((1, Mp, Cin), lambda i: (i, 0, 0)),
        pl.BlockSpec((9, Cin, Cout), lambda i: (0, 0, 0)),
        pl.BlockSpec((1, Cout), lambda i: (0, 0)),
    ]
    args = [xpf, w, b.reshape(1, Cout).astype(jnp.float32)]
    if has_sc:
        in_specs.append(pl.BlockSpec((1, M, Cout), lambda i: (i, 0, 0)))
        args.append(shortcut)

    flops = 2 * B * M * 9 * Cin * Cout
    bytes_accessed = 2 * (xpf.size + w.size + B * M * Cout) + 4 * Cout
    return pl.pallas_call(
        kernel,
        out_shape=jax.ShapeDtypeStruct((B, M, Cout), jnp.bfloat16),
        grid=(B,),
        in_specs=in_specs,
        out_specs=pl.BlockSpec((1, M, Cout), lambda i: (i, 0, 0)),
        compiler_params=_compiler_params(),
        cost_estimate=pl.CostEstimate(flops=flops, transcendentals=0,
                                      bytes_accessed=bytes_accessed),
    )(*args)


def _conv_pool_call(xpf, w, b, pool_mat, wsc, *, H, W):
    """Fused conv1-of-ResBlk: returns (pooled residual, pooled shortcut)."""
    B, Mp, Cin = xpf.shape
    Cmid = w.shape[-1]                       # conv1: Cmid == Cin
    M = H * W
    M4 = (H // 2) * (W // 2)
    learned = wsc is not None
    Csc = wsc.shape[-1] if learned else Cin
    kernel = functools.partial(_conv_pool_kernel, M=M, W=W, learned_sc=learned)

    in_specs = [
        pl.BlockSpec((1, Mp, Cin), lambda i: (i, 0, 0)),
        pl.BlockSpec((9, Cin, Cmid), lambda i: (0, 0, 0)),
        pl.BlockSpec((1, Cmid), lambda i: (0, 0)),
        pl.BlockSpec((M4, M), lambda i: (0, 0)),
    ]
    args = [xpf, w, b.reshape(1, Cmid).astype(jnp.float32), pool_mat]
    if learned:
        in_specs.append(pl.BlockSpec((Cin, Csc), lambda i: (0, 0)))
        args.append(wsc)

    flops = 2 * B * M * 9 * Cin * Cmid + 2 * B * M4 * M * (Cmid + Cin)
    if learned:
        flops += 2 * B * M4 * Cin * Csc
    bytes_accessed = 2 * (xpf.size + w.size + M4 * M + B * M4 * (Cmid + Csc))

    out_shape = (jax.ShapeDtypeStruct((B, M4, Cmid), jnp.bfloat16),
                 jax.ShapeDtypeStruct((B, M4, Csc), jnp.bfloat16))
    out_specs = (pl.BlockSpec((1, M4, Cmid), lambda i: (i, 0, 0)),
                 pl.BlockSpec((1, M4, Csc), lambda i: (i, 0, 0)))
    return pl.pallas_call(
        kernel,
        out_shape=out_shape,
        grid=(B,),
        in_specs=in_specs,
        out_specs=out_specs,
        compiler_params=_compiler_params(),
        cost_estimate=pl.CostEstimate(flops=flops, transcendentals=0,
                                      bytes_accessed=bytes_accessed),
    )(*args)


def _head_call(x, w4, b4, w1, b1):
    B, K = x.shape
    C = w4.shape[-1]
    in_specs = [
        pl.BlockSpec((B, K), lambda i: (0, 0)),
        pl.BlockSpec((K, C), lambda i: (0, 0)),
        pl.BlockSpec((1, C), lambda i: (0, 0)),
        pl.BlockSpec((C, 1), lambda i: (0, 0)),
        pl.BlockSpec((1, 1), lambda i: (0, 0)),
    ]
    return pl.pallas_call(
        _head_kernel,
        out_shape=jax.ShapeDtypeStruct((B, 1), jnp.float32),
        grid=(1,),
        in_specs=in_specs,
        out_specs=pl.BlockSpec((B, 1), lambda i: (0, 0)),
        compiler_params=pltpu.CompilerParams(
            dimension_semantics=("arbitrary",),
            vmem_limit_bytes=VMEM_LIMIT),
        cost_estimate=pl.CostEstimate(
            flops=2 * B * K * C + 2 * B * C, transcendentals=0,
            bytes_accessed=2 * (x.size + w4.size + w1.size) + 4 * B),
    )(x, w4, b4.reshape(1, C).astype(jnp.float32),
      w1, b1.reshape(1, 1).astype(jnp.float32))


# --------------------------------------------------------------------------
# XLA-side glue (cheap, single-pass): flat padding + constant pool matrix
# --------------------------------------------------------------------------
def _pad_flat(x_flat, W):
    """Zero-pad a flat (B, H*W, C) activation for a pad-1 3x3 conv:
    one image row (W) of zeros on each side + one extra shift element."""
    return jnp.pad(x_flat, ((0, 0), (W + 1, W + 1), (0, 0)))


def _pool_matrix(H, W):
    """(H*W/4, H*W) avg-pool-2x2 operator in flat layout (constant)."""
    M = H * W
    M4 = (H // 2) * (W // 2)
    P = np.zeros((M4, M), np.float32)
    m = np.arange(M)
    r = (m // W // 2) * (W // 2) + (m % W) // 2
    P[r, m] = 0.25
    return jnp.asarray(P, dtype=jnp.bfloat16)


# --------------------------------------------------------------------------
# Parameter construction (deterministic, synthetic, kernel-ready layouts)
# --------------------------------------------------------------------------
def init_params(key, img_size=16, max_conv_dim=64, base_dim=None):
    """Shapes follow StarDiscriminator.__init__; base_dim overrides the
    2**14 // img_size formula so the synthetic demo stays small.
    Conv weights are stored as (9, Cin, Cout) bf16 (tap t = kh*3 + kw)."""
    dim_in = (2 ** 14 // img_size) if base_dim is None else base_dim
    repeat_num = int(math.log2(img_size)) - 2
    keys = iter(jax.random.split(key, 64))

    def dense_w(shape, fan_in):
        w = jax.random.normal(next(keys), shape, jnp.float32) / math.sqrt(fan_in)
        return w.astype(jnp.bfloat16)

    def b_init(n):
        return 0.01 * jax.random.normal(next(keys), (n,), jnp.float32)

    params = {
        "stem_w": dense_w((9, 3, dim_in), 9 * 3),     # Conv2d(3, dim_in, 3,1,1)
        "stem_b": b_init(dim_in),
        "blocks": [],
    }
    d_in = dim_in
    for _ in range(repeat_num):
        d_out = min(d_in * 2, max_conv_dim)
        blk = {
            "conv1_w": dense_w((9, d_in, d_in), 9 * d_in),
            "conv1_b": b_init(d_in),
            "conv2_w": dense_w((9, d_in, d_out), 9 * d_in),
            "conv2_b": b_init(d_out),
        }
        if d_in != d_out:                              # learned 1x1 shortcut
            blk["sc_w"] = dense_w((d_in, d_out), d_in)
        params["blocks"].append(blk)
        d_in = d_out
    params["head4_w"] = dense_w((16 * d_in, d_in), 16 * d_in)  # Conv2d(d,d,4,1,0)
    params["head4_b"] = b_init(d_in)
    params["head1_w"] = dense_w((d_in, 1), d_in)               # Conv2d(d,1,1,1,0)
    params["head1_b"] = b_init(1)
    return params


# --------------------------------------------------------------------------
# Forward pass (semantics of StarDiscriminator.forward, normalize=False)
# --------------------------------------------------------------------------
def star_discriminator_forward(params, x_nchw):
    B, _, H, W = x_nchw.shape
    # NCHW (PyTorch) -> flat NHWC (kernel layout), bf16 activations
    x = jnp.transpose(x_nchw, (0, 2, 3, 1)).reshape(B, H * W, 3)
    x = x.astype(jnp.bfloat16)

    # stem conv (no activation)
    x = _conv_call(_pad_flat(x, W), params["stem_w"], params["stem_b"], None,
                   H=H, W=W, pre_act=False, scale=1.0)

    # ResBlk(dim_in, dim_out, downsample=True), normalize=False
    for blk in params["blocks"]:
        pool_mat = _pool_matrix(H, W)
        # kernel 1: lrelu -> conv1 -> avgpool (residual) + pooled [1x1] shortcut
        r, s = _conv_pool_call(_pad_flat(x, W), blk["conv1_w"], blk["conv1_b"],
                               pool_mat, blk.get("sc_w"), H=H, W=W)
        H, W = H // 2, W // 2
        # kernel 2: lrelu -> conv2, fused (shortcut + residual) / sqrt(2)
        x = _conv_call(_pad_flat(r, W), blk["conv2_w"], blk["conv2_b"], s,
                       H=H, W=W, pre_act=True, scale=INV_SQRT2)

    # head: lrelu -> Conv2d(d,d,4,1,0) -> lrelu -> Conv2d(d,1,1,1,0)
    assert H == 4 and W == 4
    C = x.shape[-1]
    xh = x.reshape(B, H * W * C)
    out = _head_call(xh, params["head4_w"], params["head4_b"],
                     params["head1_w"], params["head1_b"])
    return out  # (B, 1), equivalent to out.view(out.size(0), -1)


# --------------------------------------------------------------------------
if __name__ == "__main__":
    key = jax.random.PRNGKey(0)
    pkey, xkey = jax.random.split(key)

    img_size = 16   # -> 2 ResBlks, spatial 16 -> 8 -> 4 -> head -> (B, 1)
    params = init_params(pkey, img_size=img_size, max_conv_dim=64, base_dim=32)

    # PyTorch-convention NCHW input
    x = jax.random.normal(xkey, (2, 3, img_size, img_size), jnp.float32)

    fwd = jax.jit(star_discriminator_forward)
    out = jax.block_until_ready(fwd(params, x))

    assert out.shape == (2, 1), out.shape
    assert bool(jnp.all(jnp.isfinite(out)))
    print("KERNEL_OK")
</pallas_src>

<mosaic_0001>
module attributes {stable_mosaic.version = 11 : i64} {
  func.func @_conv_kernel(%arg0: i32, %arg1: memref<1x290x3xbf16, #tpu.memory_space<vmem>>, %arg2: memref<9x3x32xbf16, #tpu.memory_space<vmem>>, %arg3: memref<1x32xf32, #tpu.memory_space<vmem>>, %arg4: memref<1x256x32xbf16, #tpu.memory_space<vmem>>) attributes {dimension_semantics = [#tpu.dimension_semantics<parallel>], iteration_bounds = array<i64: 2>, scalar_prefetch = 0 : i64, scratch_operands = 0 : i64, tpu.core_type = #tpu.core_type<tc>, window_params = [{transform_indices = @transform_0, window_bounds = array<i64: 1, 290, 3>}, {pipeline_mode = #tpu.pipeline_mode<synchronous>, transform_indices = @transform_1, window_bounds = array<i64: 9, 3, 32>}, {pipeline_mode = #tpu.pipeline_mode<synchronous>, transform_indices = @transform_2, window_bounds = array<i64: 1, 32>}, {transform_indices = @transform_3, window_bounds = array<i64: 1, 256, 32>}]} {
    %c0 = arith.constant 0 : index
    %c0_0 = arith.constant 0 : index
    %c0_1 = arith.constant 0 : index
    %0 = vector.load %arg1[%c0, %c0_0, %c0_1] : memref<1x290x3xbf16, #tpu.memory_space<vmem>>, vector<1x290x3xbf16>
    %1 = vector.shape_cast %0 : vector<1x290x3xbf16> to vector<290x3xbf16>
    %2 = arith.extf %1 : vector<290x3xbf16> to vector<290x3xf32>
    %3 = tpu.iota {dimensions = array<i32: 0>} : vector<256x1xi32>
    %c16_i32 = arith.constant 16 : i32
    %c0_i32 = arith.constant 0 : i32
    %4 = arith.cmpi eq, %c16_i32, %c0_i32 : i32
    %c1_i32 = arith.constant 1 : i32
    %5 = arith.select %4, %c1_i32, %c16_i32 : i32
    %6 = vector.broadcast %5 : i32 to vector<256x1xi32>
    %7 = arith.remsi %3, %6 : vector<256x1xi32>
    %c0_i32_2 = arith.constant 0 : i32
    %8 = vector.broadcast %c0_i32_2 : i32 to vector<256x1xi32>
    %9 = arith.cmpi ne, %7, %8 : vector<256x1xi32>
    %c0_i32_3 = arith.constant 0 : i32
    %10 = vector.broadcast %c0_i32_3 : i32 to vector<256x1xi32>
    %11 = arith.cmpi slt, %7, %10 : vector<256x1xi32>
    %c0_i32_4 = arith.constant 0 : i32
    %12 = arith.cmpi slt, %5, %c0_i32_4 : i32
    %13 = vector.broadcast %12 : i1 to vector<256x1xi1>
    %14 = vector.broadcast %13 : vector<256x1xi1> to vector<256x1xi1>
    %15 = arith.xori %11, %14 : vector<256x1xi1>
    %16 = arith.andi %15, %9 : vector<256x1xi1>
    %17 = vector.broadcast %5 : i32 to vector<256x1xi32>
    %18 = arith.addi %7, %17 : vector<256x1xi32>
    %19 = arith.select %16, %18, %7 : vector<256x1xi1>, vector<256x1xi32>
    %c0_i32_5 = arith.constant 0 : i32
    %20 = vector.broadcast %c0_i32_5 : i32 to vector<256x1xi32>
    %21 = arith.cmpi ne, %19, %20 : vector<256x1xi32>
    %22 = arith.extui %21 : vector<256x1xi1> to vector<256x1xi32>
    %23 = arith.sitofp %22 : vector<256x1xi32> to vector<256x1xf32>
    %c15_i32 = arith.constant 15 : i32
    %24 = vector.broadcast %c15_i32 : i32 to vector<256x1xi32>
    %25 = arith.cmpi ne, %19, %24 : vector<256x1xi32>
    %26 = arith.extui %25 : vector<256x1xi1> to vector<256x1xi32>
    %27 = arith.sitofp %26 : vector<256x1xi32> to vector<256x1xf32>
    %28 = vector.extract_strided_slice %2 {offsets = [0, 0], sizes = [256, 3], strides = [1, 1]} : vector<290x3xf32> to vector<256x3xf32>
    %29 = vector.broadcast %23 : vector<256x1xf32> to vector<256x3xf32>
    %30 = arith.mulf %28, %29 : vector<256x3xf32>
    %c0_6 = arith.constant 0 : index
    %c0_7 = arith.constant 0 : index
    %c0_8 = arith.constant 0 : index
    %31 = vector.load %arg2[%c0_6, %c0_7, %c0_8] : memref<9x3x32xbf16, #tpu.memory_space<vmem>>, vector<1x3x32xbf16>
    %32 = vector.shape_cast %31 : vector<1x3x32xbf16> to vector<3x32xbf16>
    %33 = arith.truncf %30 : vector<256x3xf32> to vector<256x3xbf16>
    %cst = arith.constant dense<0.000000e+00> : vector<256x32xf32>
    %34 = tpu.matmul %33, %32, %cst {dimension_numbers = #tpu.dot_dimension_numbers<[1], [0], [0], [1], [0, 0, 1, 1], [], []>} : vector<256x3xbf16>, vector<3x32xbf16>, vector<256x32xf32> -> vector<256x32xf32>
    %35 = vector.extract_strided_slice %2 {offsets = [1, 0], sizes = [256, 3], strides = [1, 1]} : vector<290x3xf32> to vector<256x3xf32>
    %c1 = arith.constant 1 : index
    %c0_9 = arith.constant 0 : index
    %c0_10 = arith.constant 0 : index
    %36 = vector.load %arg2[%c1, %c0_9, %c0_10] : memref<9x3x32xbf16, #tpu.memory_space<vmem>>, vector<1x3x32xbf16>
    %37 = vector.shape_cast %36 : vector<1x3x32xbf16> to vector<3x32xbf16>
    %38 = arith.truncf %35 : vector<256x3xf32> to vector<256x3xbf16>
    %cst_11 = arith.constant dense<0.000000e+00> : vector<256x32xf32>
    %39 = tpu.matmul %38, %37, %cst_11 {dimension_numbers = #tpu.dot_dimension_numbers<[1], [0], [0], [1], [0, 0, 1, 1], [], []>} : vector<256x3xbf16>, vector<3x32xbf16>, vector<256x32xf32> -> vector<256x32xf32>
    %40 = arith.addf %34, %39 : vector<256x32xf32>
    %41 = vector.extract_strided_slice %2 {offsets = [2, 0], sizes = [256, 3], strides = [1, 1]} : vector<290x3xf32> to vector<256x3xf32>
    %42 = vector.broadcast %27 : vector<256x1xf32> to vector<256x3xf32>
    %43 = arith.mulf %41, %42 : vector<256x3xf32>
    %c2 = arith.constant 2 : index
    %c0_12 = arith.constant 0 : index
    %c0_13 = arith.constant 0 : index
    %44 = vector.load %arg2[%c2, %c0_12, %c0_13] : memref<9x3x32xbf16, #tpu.memory_space<vmem>>, vector<1x3x32xbf16>
    %45 = vector.shape_cast %44 : vector<1x3x32xbf16> to vector<3x32xbf16>
    %46 = arith.truncf %43 : vector<256x3xf32> to vector<256x3xbf16>
    %cst_14 = arith.constant dense<0.000000e+00> : vector<256x32xf32>
    %47 = tpu.matmul %46, %45, %cst_14 {dimension_numbers = #tpu.dot_dimension_numbers<[1], [0], [0], [1], [0, 0, 1, 1], [], []>} : vector<256x3xbf16>, vector<3x32xbf16>, vector<256x32xf32> -> vector<256x32xf32>
    %48 = arith.addf %40, %47 : vector<256x32xf32>
    %49 = vector.extract_strided_slice %2 {offsets = [16, 0], sizes = [256, 3], strides = [1, 1]} : vector<290x3xf32> to vector<256x3xf32>
    %50 = vector.broadcast %23 : vector<256x1xf32> to vector<256x3xf32>
    %51 = arith.mulf %49, %50 : vector<256x3xf32>
    %c3 = arith.constant 3 : index
    %c0_15 = arith.constant 0 : index
    %c0_16 = arith.constant 0 : index
    %52 = vector.load %arg2[%c3, %c0_15, %c0_16] : memref<9x3x32xbf16, #tpu.memory_space<vmem>>, vector<1x3x32xbf16>
    %53 = vector.shape_cast %52 : vector<1x3x32xbf16> to vector<3x32xbf16>
    %54 = arith.truncf %51 : vector<256x3xf32> to vector<256x3xbf16>
    %cst_17 = arith.constant dense<0.000000e+00> : vector<256x32xf32>
    %55 = tpu.matmul %54, %53, %cst_17 {dimension_numbers = #tpu.dot_dimension_numbers<[1], [0], [0], [1], [0, 0, 1, 1], [], []>} : vector<256x3xbf16>, vector<3x32xbf16>, vector<256x32xf32> -> vector<256x32xf32>
    %56 = arith.addf %48, %55 : vector<256x32xf32>
    %57 = vector.extract_strided_slice %2 {offsets = [17, 0], sizes = [256, 3], strides = [1, 1]} : vector<290x3xf32> to vector<256x3xf32>
    %c4 = arith.constant 4 : index
    %c0_18 = arith.constant 0 : index
    %c0_19 = arith.constant 0 : index
    %58 = vector.load %arg2[%c4, %c0_18, %c0_19] : memref<9x3x32xbf16, #tpu.memory_space<vmem>>, vector<1x3x32xbf16>
    %59 = vector.shape_cast %58 : vector<1x3x32xbf16> to vector<3x32xbf16>
    %60 = arith.truncf %57 : vector<256x3xf32> to vector<256x3xbf16>
    %cst_20 = arith.constant dense<0.000000e+00> : vector<256x32xf32>
    %61 = tpu.matmul %60, %59, %cst_20 {dimension_numbers = #tpu.dot_dimension_numbers<[1], [0], [0], [1], [0, 0, 1, 1], [], []>} : vector<256x3xbf16>, vector<3x32xbf16>, vector<256x32xf32> -> vector<256x32xf32>
    %62 = arith.addf %56, %61 : vector<256x32xf32>
    %63 = vector.extract_strided_slice %2 {offsets = [18, 0], sizes = [256, 3], strides = [1, 1]} : vector<290x3xf32> to vector<256x3xf32>
    %64 = vector.broadcast %27 : vector<256x1xf32> to vector<256x3xf32>
    %65 = arith.mulf %63, %64 : vector<256x3xf32>
    %c5 = arith.constant 5 : index
    %c0_21 = arith.constant 0 : index
    %c0_22 = arith.constant 0 : index
    %66 = vector.load %arg2[%c5, %c0_21, %c0_22] : memref<9x3x32xbf16, #tpu.memory_space<vmem>>, vector<1x3x32xbf16>
    %67 = vector.shape_cast %66 : vector<1x3x32xbf16> to vector<3x32xbf16>
    %68 = arith.truncf %65 : vector<256x3xf32> to vector<256x3xbf16>
    %cst_23 = arith.constant dense<0.000000e+00> : vector<256x32xf32>
    %69 = tpu.matmul %68, %67, %cst_23 {dimension_numbers = #tpu.dot_dimension_numbers<[1], [0], [0], [1], [0, 0, 1, 1], [], []>} : vector<256x3xbf16>, vector<3x32xbf16>, vector<256x32xf32> -> vector<256x32xf32>
    %70 = arith.addf %62, %69 : vector<256x32xf32>
    %71 = vector.extract_strided_slice %2 {offsets = [32, 0], sizes = [256, 3], strides = [1, 1]} : vector<290x3xf32> to vector<256x3xf32>
    %72 = vector.broadcast %23 : vector<256x1xf32> to vector<256x3xf32>
    %73 = arith.mulf %71, %72 : vector<256x3xf32>
    %c6 = arith.constant 6 : index
    %c0_24 = arith.constant 0 : index
    %c0_25 = arith.constant 0 : index
    %74 = vector.load %arg2[%c6, %c0_24, %c0_25] : memref<9x3x32xbf16, #tpu.memory_space<vmem>>, vector<1x3x32xbf16>
    %75 = vector.shape_cast %74 : vector<1x3x32xbf16> to vector<3x32xbf16>
    %76 = arith.truncf %73 : vector<256x3xf32> to vector<256x3xbf16>
    %cst_26 = arith.constant dense<0.000000e+00> : vector<256x32xf32>
    %77 = tpu.matmul %76, %75, %cst_26 {dimension_numbers = #tpu.dot_dimension_numbers<[1], [0], [0], [1], [0, 0, 1, 1], [], []>} : vector<256x3xbf16>, vector<3x32xbf16>, vector<256x32xf32> -> vector<256x32xf32>
    %78 = arith.addf %70, %77 : vector<256x32xf32>
    %79 = vector.extract_strided_slice %2 {offsets = [33, 0], sizes = [256, 3], strides = [1, 1]} : vector<290x3xf32> to vector<256x3xf32>
    %c7 = arith.constant 7 : index
    %c0_27 = arith.constant 0 : index
    %c0_28 = arith.constant 0 : index
    %80 = vector.load %arg2[%c7, %c0_27, %c0_28] : memref<9x3x32xbf16, #tpu.memory_space<vmem>>, vector<1x3x32xbf16>
    %81 = vector.shape_cast %80 : vector<1x3x32xbf16> to vector<3x32xbf16>
    %82 = arith.truncf %79 : vector<256x3xf32> to vector<256x3xbf16>
    %cst_29 = arith.constant dense<0.000000e+00> : vector<256x32xf32>
    %83 = tpu.matmul %82, %81, %cst_29 {dimension_numbers = #tpu.dot_dimension_numbers<[1], [0], [0], [1], [0, 0, 1, 1], [], []>} : vector<256x3xbf16>, vector<3x32xbf16>, vector<256x32xf32> -> vector<256x32xf32>
    %84 = arith.addf %78, %83 : vector<256x32xf32>
    %85 = vector.extract_strided_slice %2 {offsets = [34, 0], sizes = [256, 3], strides = [1, 1]} : vector<290x3xf32> to vector<256x3xf32>
    %86 = vector.broadcast %27 : vector<256x1xf32> to vector<256x3xf32>
    %87 = arith.mulf %85, %86 : vector<256x3xf32>
    %c8 = arith.constant 8 : index
    %c0_30 = arith.constant 0 : index
    %c0_31 = arith.constant 0 : index
    %88 = vector.load %arg2[%c8, %c0_30, %c0_31] : memref<9x3x32xbf16, #tpu.memory_space<vmem>>, vector<1x3x32xbf16>
    %89 = vector.shape_cast %88 : vector<1x3x32xbf16> to vector<3x32xbf16>
    %90 = arith.truncf %87 : vector<256x3xf32> to vector<256x3xbf16>
    %cst_32 = arith.constant dense<0.000000e+00> : vector<256x32xf32>
    %91 = tpu.matmul %90, %89, %cst_32 {dimension_numbers = #tpu.dot_dimension_numbers<[1], [0], [0], [1], [0, 0, 1, 1], [], []>} : vector<256x3xbf16>, vector<3x32xbf16>, vector<256x32xf32> -> vector<256x32xf32>
    %92 = arith.addf %84, %91 : vector<256x32xf32>
    %c0_33 = arith.constant 0 : index
    %c0_34 = arith.constant 0 : index
    %93 = vector.load %arg3[%c0_33, %c0_34] : memref<1x32xf32, #tpu.memory_space<vmem>>, vector<1x32xf32>
    %94 = vector.broadcast %93 : vector<1x32xf32> to vector<256x32xf32>
    %95 = arith.addf %92, %94 : vector<256x32xf32>
    %96 = arith.truncf %95 : vector<256x32xf32> to vector<256x32xbf16>
    %c0_35 = arith.constant 0 : index
    %c0_36 = arith.constant 0 : index
    %c0_37 = arith.constant 0 : index
    %97 = vector.load %arg4[%c0_35, %c0_36, %c0_37] : memref<1x256x32xbf16, #tpu.memory_space<vmem>>, vector<1x256x32xbf16>
    %98 = vector.shape_cast %97 : vector<1x256x32xbf16> to vector<256x32xbf16>
    %99 = vector.shape_cast %96 : vector<256x32xbf16> to vector<1x256x32xbf16>
    tpu.vector_store %arg4[%c0_35, %c0_36, %c0_37], %99 {strides = array<i32>} : memref<1x256x32xbf16, #tpu.memory_space<vmem>>, vector<1x256x32xbf16>,
    return
  }
  func.func @transform_0(%arg0: i32) -> (i32, i32, i32) {
    %c0_i32 = arith.constant 0 : i32
    %c0_i32_0 = arith.constant 0 : i32
    %c0_i32_1 = arith.constant 0 : i32
    return %arg0, %c0_i32, %c0_i32_0 : i32, i32, i32
  }
  func.func @transform_1(%arg0: i32) -> (i32, i32, i32) {
    %c0_i32 = arith.constant 0 : i32
    %c0_i32_0 = arith.constant 0 : i32
    %c0_i32_1 = arith.constant 0 : i32
    %c0_i32_2 = arith.constant 0 : i32
    return %c0_i32, %c0_i32_0, %c0_i32_1 : i32, i32, i32
  }
  func.func @transform_2(%arg0: i32) -> (i32, i32) {
    %c0_i32 = arith.constant 0 : i32
    %c0_i32_0 = arith.constant 0 : i32
    %c0_i32_1 = arith.constant 0 : i32
    return %c0_i32, %c0_i32_0 : i32, i32
  }
  func.func @transform_3(%arg0: i32) -> (i32, i32, i32) {
    %c0_i32 = arith.constant 0 : i32
    %c0_i32_0 = arith.constant 0 : i32
    %c0_i32_1 = arith.constant 0 : i32
    return %arg0, %c0_i32, %c0_i32_0 : i32, i32, i32
  }
}

module attributes {stable_mosaic.version = 11 : i64} {
  func.func @_conv_pool_kernel(%arg0: i32, %arg1: memref<1x290x32xbf16, #tpu.memory_space<vmem>>, %arg2: memref<9x32x32xbf16, #tpu.memory_space<vmem>>, %arg3: memref<1x32xf32, #tpu.memory_space<vmem>>, %arg4: memref<64x256xbf16, #tpu.memory_space<vmem>>, %arg5: memref<32x64xbf16, #tpu.memory_space<vmem>>, %arg6: memref<1x64x32xbf16, #tpu.memory_space<vmem>>, %arg7: memref<1x64x64xbf16, #tpu.memory_space<vmem>>) attributes {dimension_semantics = [#tpu.dimension_semantics<parallel>], iteration_bounds = array<i64: 2>, scalar_prefetch = 0 : i64, scratch_operands = 0 : i64, tpu.core_type = #tpu.core_type<tc>, window_params = [{transform_indices = @transform_0, window_bounds = array<i64: 1, 290, 32>}, {pipeline_mode = #tpu.pipeline_mode<synchronous>, transform_indices = @transform_1, window_bounds = array<i64: 9, 32, 32>}, {pipeline_mode = #tpu.pipeline_mode<synchronous>, transform_indices = @transform_2, window_bounds = array<i64: 1, 32>}, {pipeline_mode = #tpu.pipeline_mode<synchronous>, transform_indices = @transform_3, window_bounds = array<i64: 64, 256>}, {pipeline_mode = #tpu.pipeline_mode<synchronous>, transform_indices = @transform_4, window_bounds = array<i64: 32, 64>}, {transform_indices = @transform_5, window_bounds = array<i64: 1, 64, 32>}, {transform_indices = @transform_6, window_bounds = array<i64: 1, 64, 64>}]} {
    %c0 = arith.constant 0 : index
    %c0_0 = arith.constant 0 : index
    %c0_1 = arith.constant 0 : index
    %0 = vector.load %arg1[%c0, %c0_0, %c0_1] : memref<1x290x32xbf16, #tpu.memory_space<vmem>>, vector<1x290x32xbf16>
    %1 = vector.shape_cast %0 : vector<1x290x32xbf16> to vector<290x32xbf16>
    %2 = arith.extf %1 : vector<290x32xbf16> to vector<290x32xf32>
    %cst = arith.constant 0.000000e+00 : f32
    %3 = vector.broadcast %cst : f32 to vector<290x32xf32>
    %4 = arith.cmpf ogt, %2, %3 : vector<290x32xf32>
    %cst_2 = arith.constant 2.000000e-01 : f32
    %5 = vector.broadcast %cst_2 : f32 to vector<290x32xf32>
    %6 = arith.mulf %5, %2 : vector<290x32xf32>
    %7 = arith.select %4, %2, %6 : vector<290x32xi1>, vector<290x32xf32>
    %8 = tpu.iota {dimensions = array<i32: 0>} : vector<256x1xi32>
    %c16_i32 = arith.constant 16 : i32
    %c0_i32 = arith.constant 0 : i32
    %9 = arith.cmpi eq, %c16_i32, %c0_i32 : i32
    %c1_i32 = arith.constant 1 : i32
    %10 = arith.select %9, %c1_i32, %c16_i32 : i32
    %11 = vector.broadcast %10 : i32 to vector<256x1xi32>
    %12 = arith.remsi %8, %11 : vector<256x1xi32>
    %c0_i32_3 = arith.constant 0 : i32
    %13 = vector.broadcast %c0_i32_3 : i32 to vector<256x1xi32>
    %14 = arith.cmpi ne, %12, %13 : vector<256x1xi32>
    %c0_i32_4 = arith.constant 0 : i32
    %15 = vector.broadcast %c0_i32_4 : i32 to vector<256x1xi32>
    %16 = arith.cmpi slt, %12, %15 : vector<256x1xi32>
    %c0_i32_5 = arith.constant 0 : i32
    %17 = arith.cmpi slt, %10, %c0_i32_5 : i32
    %18 = vector.broadcast %17 : i1 to vector<256x1xi1>
    %19 = vector.broadcast %18 : vector<256x1xi1> to vector<256x1xi1>
    %20 = arith.xori %16, %19 : vector<256x1xi1>
    %21 = arith.andi %20, %14 : vector<256x1xi1>
    %22 = vector.broadcast %10 : i32 to vector<256x1xi32>
    %23 = arith.addi %12, %22 : vector<256x1xi32>
    %24 = arith.select %21, %23, %12 : vector<256x1xi1>, vector<256x1xi32>
    %c0_i32_6 = arith.constant 0 : i32
    %25 = vector.broadcast %c0_i32_6 : i32 to vector<256x1xi32>
    %26 = arith.cmpi ne, %24, %25 : vector<256x1xi32>
    %27 = arith.extui %26 : vector<256x1xi1> to vector<256x1xi32>
    %28 = arith.sitofp %27 : vector<256x1xi32> to vector<256x1xf32>
    %c15_i32 = arith.constant 15 : i32
    %29 = vector.broadcast %c15_i32 : i32 to vector<256x1xi32>
    %30 = arith.cmpi ne, %24, %29 : vector<256x1xi32>
    %31 = arith.extui %30 : vector<256x1xi1> to vector<256x1xi32>
    %32 = arith.sitofp %31 : vector<256x1xi32> to vector<256x1xf32>
    %33 = vector.extract_strided_slice %7 {offsets = [0, 0], sizes = [256, 32], strides = [1, 1]} : vector<290x32xf32> to vector<256x32xf32>
    %34 = vector.broadcast %28 : vector<256x1xf32> to vector<256x32xf32>
    %35 = arith.mulf %33, %34 : vector<256x32xf32>
    %c0_7 = arith.constant 0 : index
    %c0_8 = arith.constant 0 : index
    %c0_9 = arith.constant 0 : index
    %36 = vector.load %arg2[%c0_7, %c0_8, %c0_9] : memref<9x32x32xbf16, #tpu.memory_space<vmem>>, vector<1x32x32xbf16>
    %37 = vector.shape_cast %36 : vector<1x32x32xbf16> to vector<32x32xbf16>
    %38 = arith.truncf %35 : vector<256x32xf32> to vector<256x32xbf16>
    %cst_10 = arith.constant dense<0.000000e+00> : vector<256x32xf32>
    %39 = tpu.matmul %38, %37, %cst_10 {dimension_numbers = #tpu.dot_dimension_numbers<[1], [0], [0], [1], [0, 0, 1, 1], [], []>} : vector<256x32xbf16>, vector<32x32xbf16>, vector<256x32xf32> -> vector<256x32xf32>
    %40 = vector.extract_strided_slice %7 {offsets = [1, 0], sizes = [256, 32], strides = [1, 1]} : vector<290x32xf32> to vector<256x32xf32>
    %c1 = arith.constant 1 : index
    %c0_11 = arith.constant 0 : index
    %c0_12 = arith.constant 0 : index
    %41 = vector.load %arg2[%c1, %c0_11, %c0_12] : memref<9x32x32xbf16, #tpu.memory_space<vmem>>, vector<1x32x32xbf16>
    %42 = vector.shape_cast %41 : vector<1x32x32xbf16> to vector<32x32xbf16>
    %43 = arith.truncf %40 : vector<256x32xf32> to vector<256x32xbf16>
    %cst_13 = arith.constant dense<0.000000e+00> : vector<256x32xf32>
    %44 = tpu.matmul %43, %42, %cst_13 {dimension_numbers = #tpu.dot_dimension_numbers<[1], [0], [0], [1], [0, 0, 1, 1], [], []>} : vector<256x32xbf16>, vector<32x32xbf16>, vector<256x32xf32> -> vector<256x32xf32>
    %45 = arith.addf %39, %44 : vector<256x32xf32>
    %46 = vector.extract_strided_slice %7 {offsets = [2, 0], sizes = [256, 32], strides = [1, 1]} : vector<290x32xf32> to vector<256x32xf32>
    %47 = vector.broadcast %32 : vector<256x1xf32> to vector<256x32xf32>
    %48 = arith.mulf %46, %47 : vector<256x32xf32>
    %c2 = arith.constant 2 : index
    %c0_14 = arith.constant 0 : index
    %c0_15 = arith.constant 0 : index
    %49 = vector.load %arg2[%c2, %c0_14, %c0_15] : memref<9x32x32xbf16, #tpu.memory_space<vmem>>, vector<1x32x32xbf16>
    %50 = vector.shape_cast %49 : vector<1x32x32xbf16> to vector<32x32xbf16>
    %51 = arith.truncf %48 : vector<256x32xf32> to vector<256x32xbf16>
    %cst_16 = arith.constant dense<0.000000e+00> : vector<256x32xf32>
    %52 = tpu.matmul %51, %50, %cst_16 {dimension_numbers = #tpu.dot_dimension_numbers<[1], [0], [0], [1], [0, 0, 1, 1], [], []>} : vector<256x32xbf16>, vector<32x32xbf16>, vector<256x32xf32> -> vector<256x32xf32>
    %53 = arith.addf %45, %52 : vector<256x32xf32>
    %54 = vector.extract_strided_slice %7 {offsets = [16, 0], sizes = [256, 32], strides = [1, 1]} : vector<290x32xf32> to vector<256x32xf32>
    %55 = vector.broadcast %28 : vector<256x1xf32> to vector<256x32xf32>
    %56 = arith.mulf %54, %55 : vector<256x32xf32>
    %c3 = arith.constant 3 : index
    %c0_17 = arith.constant 0 : index
    %c0_18 = arith.constant 0 : index
    %57 = vector.load %arg2[%c3, %c0_17, %c0_18] : memref<9x32x32xbf16, #tpu.memory_space<vmem>>, vector<1x32x32xbf16>
    %58 = vector.shape_cast %57 : vector<1x32x32xbf16> to vector<32x32xbf16>
    %59 = arith.truncf %56 : vector<256x32xf32> to vector<256x32xbf16>
    %cst_19 = arith.constant dense<0.000000e+00> : vector<256x32xf32>
    %60 = tpu.matmul %59, %58, %cst_19 {dimension_numbers = #tpu.dot_dimension_numbers<[1], [0], [0], [1], [0, 0, 1, 1], [], []>} : vector<256x32xbf16>, vector<32x32xbf16>, vector<256x32xf32> -> vector<256x32xf32>
    %61 = arith.addf %53, %60 : vector<256x32xf32>
    %62 = vector.extract_strided_slice %7 {offsets = [17, 0], sizes = [256, 32], strides = [1, 1]} : vector<290x32xf32> to vector<256x32xf32>
    %c4 = arith.constant 4 : index
    %c0_20 = arith.constant 0 : index
    %c0_21 = arith.constant 0 : index
    %63 = vector.load %arg2[%c4, %c0_20, %c0_21] : memref<9x32x32xbf16, #tpu.memory_space<vmem>>, vector<1x32x32xbf16>
    %64 = vector.shape_cast %63 : vector<1x32x32xbf16> to vector<32x32xbf16>
    %65 = arith.truncf %62 : vector<256x32xf32> to vector<256x32xbf16>
    %cst_22 = arith.constant dense<0.000000e+00> : vector<256x32xf32>
    %66 = tpu.matmul %65, %64, %cst_22 {dimension_numbers = #tpu.dot_dimension_numbers<[1], [0], [0], [1], [0, 0, 1, 1], [], []>} : vector<256x32xbf16>, vector<32x32xbf16>, vector<256x32xf32> -> vector<256x32xf32>
    %67 = arith.addf %61, %66 : vector<256x32xf32>
    %68 = vector.extract_strided_slice %7 {offsets = [18, 0], sizes = [256, 32], strides = [1, 1]} : vector<290x32xf32> to vector<256x32xf32>
    %69 = vector.broadcast %32 : vector<256x1xf32> to vector<256x32xf32>
    %70 = arith.mulf %68, %69 : vector<256x32xf32>
    %c5 = arith.constant 5 : index
    %c0_23 = arith.constant 0 : index
    %c0_24 = arith.constant 0 : index
    %71 = vector.load %arg2[%c5, %c0_23, %c0_24] : memref<9x32x32xbf16, #tpu.memory_space<vmem>>, vector<1x32x32xbf16>
    %72 = vector.shape_cast %71 : vector<1x32x32xbf16> to vector<32x32xbf16>
    %73 = arith.truncf %70 : vector<256x32xf32> to vector<256x32xbf16>
    %cst_25 = arith.constant dense<0.000000e+00> : vector<256x32xf32>
    %74 = tpu.matmul %73, %72, %cst_25 {dimension_numbers = #tpu.dot_dimension_numbers<[1], [0], [0], [1], [0, 0, 1, 1], [], []>} : vector<256x32xbf16>, vector<32x32xbf16>, vector<256x32xf32> -> vector<256x32xf32>
    %75 = arith.addf %67, %74 : vector<256x32xf32>
    %76 = vector.extract_strided_slice %7 {offsets = [32, 0], sizes = [256, 32], strides = [1, 1]} : vector<290x32xf32> to vector<256x32xf32>
    %77 = vector.broadcast %28 : vector<256x1xf32> to vector<256x32xf32>
    %78 = arith.mulf %76, %77 : vector<256x32xf32>
    %c6 = arith.constant 6 : index
    %c0_26 = arith.constant 0 : index
    %c0_27 = arith.constant 0 : index
    %79 = vector.load %arg2[%c6, %c0_26, %c0_27] : memref<9x32x32xbf16, #tpu.memory_space<vmem>>, vector<1x32x32xbf16>
    %80 = vector.shape_cast %79 : vector<1x32x32xbf16> to vector<32x32xbf16>
    %81 = arith.truncf %78 : vector<256x32xf32> to vector<256x32xbf16>
    %cst_28 = arith.constant dense<0.000000e+00> : vector<256x32xf32>
    %82 = tpu.matmul %81, %80, %cst_28 {dimension_numbers = #tpu.dot_dimension_numbers<[1], [0], [0], [1], [0, 0, 1, 1], [], []>} : vector<256x32xbf16>, vector<32x32xbf16>, vector<256x32xf32> -> vector<256x32xf32>
    %83 = arith.addf %75, %82 : vector<256x32xf32>
    %84 = vector.extract_strided_slice %7 {offsets = [33, 0], sizes = [256, 32], strides = [1, 1]} : vector<290x32xf32> to vector<256x32xf32>
    %c7 = arith.constant 7 : index
    %c0_29 = arith.constant 0 : index
    %c0_30 = arith.constant 0 : index
    %85 = vector.load %arg2[%c7, %c0_29, %c0_30] : memref<9x32x32xbf16, #tpu.memory_space<vmem>>, vector<1x32x32xbf16>
    %86 = vector.shape_cast %85 : vector<1x32x32xbf16> to vector<32x32xbf16>
    %87 = arith.truncf %84 : vector<256x32xf32> to vector<256x32xbf16>
    %cst_31 = arith.constant dense<0.000000e+00> : vector<256x32xf32>
    %88 = tpu.matmul %87, %86, %cst_31 {dimension_numbers = #tpu.dot_dimension_numbers<[1], [0], [0], [1], [0, 0, 1, 1], [], []>} : vector<256x32xbf16>, vector<32x32xbf16>, vector<256x32xf32> -> vector<256x32xf32>
    %89 = arith.addf %83, %88 : vector<256x32xf32>
    %90 = vector.extract_strided_slice %7 {offsets = [34, 0], sizes = [256, 32], strides = [1, 1]} : vector<290x32xf32> to vector<256x32xf32>
    %91 = vector.broadcast %32 : vector<256x1xf32> to vector<256x32xf32>
    %92 = arith.mulf %90, %91 : vector<256x32xf32>
    %c8 = arith.constant 8 : index
    %c0_32 = arith.constant 0 : index
    %c0_33 = arith.constant 0 : index
    %93 = vector.load %arg2[%c8, %c0_32, %c0_33] : memref<9x32x32xbf16, #tpu.memory_space<vmem>>, vector<1x32x32xbf16>
    %94 = vector.shape_cast %93 : vector<1x32x32xbf16> to vector<32x32xbf16>
    %95 = arith.truncf %92 : vector<256x32xf32> to vector<256x32xbf16>
    %cst_34 = arith.constant dense<0.000000e+00> : vector<256x32xf32>
    %96 = tpu.matmul %95, %94, %cst_34 {dimension_numbers = #tpu.dot_dimension_numbers<[1], [0], [0], [1], [0, 0, 1, 1], [], []>} : vector<256x32xbf16>, vector<32x32xbf16>, vector<256x32xf32> -> vector<256x32xf32>
    %97 = arith.addf %89, %96 : vector<256x32xf32>
    %c0_35 = arith.constant 0 : index
    %c0_36 = arith.constant 0 : index
    %98 = vector.load %arg3[%c0_35, %c0_36] : memref<1x32xf32, #tpu.memory_space<vmem>>, vector<1x32xf32>
    %99 = vector.broadcast %98 : vector<1x32xf32> to vector<256x32xf32>
    %100 = arith.addf %97, %99 : vector<256x32xf32>
    %c0_37 = arith.constant 0 : index
    %c0_38 = arith.constant 0 : index
    %101 = vector.load %arg4[%c0_37, %c0_38] : memref<64x256xbf16, #tpu.memory_space<vmem>>, vector<64x256xbf16>
    %102 = arith.truncf %100 : vector<256x32xf32> to vector<256x32xbf16>
    %cst_39 = arith.constant dense<0.000000e+00> : vector<64x32xf32>
    %103 = tpu.matmul %101, %102, %cst_39 {dimension_numbers = #tpu.dot_dimension_numbers<[1], [0], [0], [1], [0, 0, 1, 1], [], []>} : vector<64x256xbf16>, vector<256x32xbf16>, vector<64x32xf32> -> vector<64x32xf32>
    %104 = arith.truncf %103 : vector<64x32xf32> to vector<64x32xbf16>
    %c0_40 = arith.constant 0 : index
    %c0_41 = arith.constant 0 : index
    %c0_42 = arith.constant 0 : index
    %105 = vector.load %arg6[%c0_40, %c0_41, %c0_42] : memref<1x64x32xbf16, #tpu.memory_space<vmem>>, vector<1x64x32xbf16>
    %106 = vector.shape_cast %105 : vector<1x64x32xbf16> to vector<64x32xbf16>
    %107 = vector.shape_cast %104 : vector<64x32xbf16> to vector<1x64x32xbf16>
    tpu.vector_store %arg6[%c0_40, %c0_41, %c0_42], %107 {strides = array<i32>} : memref<1x64x32xbf16, #tpu.memory_space<vmem>>, vector<1x64x32xbf16>,
    %108 = vector.extract_strided_slice %2 {offsets = [17, 0], sizes = [256, 32], strides = [1, 1]} : vector<290x32xf32> to vector<256x32xf32>
    %109 = arith.truncf %108 : vector<256x32xf32> to vector<256x32xbf16>
    %cst_43 = arith.constant dense<0.000000e+00> : vector<64x32xf32>
    %110 = tpu.matmul %101, %109, %cst_43 {dimension_numbers = #tpu.dot_dimension_numbers<[1], [0], [0], [1], [0, 0, 1, 1], [], []>} : vector<64x256xbf16>, vector<256x32xbf16>, vector<64x32xf32> -> vector<64x32xf32>
    %111 = arith.truncf %110 : vector<64x32xf32> to vector<64x32xbf16>
    %c0_44 = arith.constant 0 : index
    %c0_45 = arith.constant 0 : index
    %112 = vector.load %arg5[%c0_44, %c0_45] : memref<32x64xbf16, #tpu.memory_space<vmem>>, vector<32x64xbf16>
    %cst_46 = arith.constant dense<0.000000e+00> : vector<64x64xf32>
    %113 = tpu.matmul %111, %112, %cst_46 {dimension_numbers = #tpu.dot_dimension_numbers<[1], [0], [0], [1], [0, 0, 1, 1], [], []>} : vector<64x32xbf16>, vector<32x64xbf16>, vector<64x64xf32> -> vector<64x64xf32>
    %114 = arith.truncf %113 : vector<64x64xf32> to vector<64x64xbf16>
    %c0_47 = arith.constant 0 : index
    %c0_48 = arith.constant 0 : index
    %c0_49 = arith.constant 0 : index
    %115 = vector.load %arg7[%c0_47, %c0_48, %c0_49] : memref<1x64x64xbf16, #tpu.memory_space<vmem>>, vector<1x64x64xbf16>
    %116 = vector.shape_cast %115 : vector<1x64x64xbf16> to vector<64x64xbf16>
    %117 = vector.shape_cast %114 : vector<64x64xbf16> to vector<1x64x64xbf16>
    tpu.vector_store %arg7[%c0_47, %c0_48, %c0_49], %117 {strides = array<i32>} : memref<1x64x64xbf16, #tpu.memory_space<vmem>>, vector<1x64x64xbf16>,
    return
  }
  func.func @transform_0(%arg0: i32) -> (i32, i32, i32) {
    %c0_i32 = arith.constant 0 : i32
    %c0_i32_0 = arith.constant 0 : i32
    %c0_i32_1 = arith.constant 0 : i32
    return %arg0, %c0_i32, %c0_i32_0 : i32, i32, i32
  }
  func.func @transform_1(%arg0: i32) -> (i32, i32, i32) {
    %c0_i32 = arith.constant 0 : i32
    %c0_i32_0 = arith.constant 0 : i32
    %c0_i32_1 = arith.constant 0 : i32
    %c0_i32_2 = arith.constant 0 : i32
    return %c0_i32, %c0_i32_0, %c0_i32_1 : i32, i32, i32
  }
  func.func @transform_2(%arg0: i32) -> (i32, i32) {
    %c0_i32 = arith.constant 0 : i32
    %c0_i32_0 = arith.constant 0 : i32
    %c0_i32_1 = arith.constant 0 : i32
    return %c0_i32, %c0_i32_0 : i32, i32
  }
  func.func @transform_3(%arg0: i32) -> (i32, i32) {
    %c0_i32 = arith.constant 0 : i32
    %c0_i32_0 = arith.constant 0 : i32
    %c0_i32_1 = arith.constant 0 : i32
    return %c0_i32, %c0_i32_0 : i32, i32
  }
  func.func @transform_4(%arg0: i32) -> (i32, i32) {
    %c0_i32 = arith.constant 0 : i32
    %c0_i32_0 = arith.constant 0 : i32
    %c0_i32_1 = arith.constant 0 : i32
    return %c0_i32, %c0_i32_0 : i32, i32
  }
  func.func @transform_5(%arg0: i32) -> (i32, i32, i32) {
    %c0_i32 = arith.constant 0 : i32
    %c0_i32_0 = arith.constant 0 : i32
    %c0_i32_1 = arith.constant 0 : i32
    return %arg0, %c0_i32, %c0_i32_0 : i32, i32, i32
  }
  func.func @transform_6(%arg0: i32) -> (i32, i32, i32) {
    %c0_i32 = arith.constant 0 : i32
    %c0_i32_0 = arith.constant 0 : i32
    %c0_i32_1 = arith.constant 0 : i32
    return %arg0, %c0_i32, %c0_i32_0 : i32, i32, i32
  }
}

module attributes {stable_mosaic.version = 11 : i64} {
  func.func @_conv_kernel(%arg0: i32, %arg1: memref<1x82x32xbf16, #tpu.memory_space<vmem>>, %arg2: memref<9x32x64xbf16, #tpu.memory_space<vmem>>, %arg3: memref<1x64xf32, #tpu.memory_space<vmem>>, %arg4: memref<1x64x64xbf16, #tpu.memory_space<vmem>>, %arg5: memref<1x64x64xbf16, #tpu.memory_space<vmem>>) attributes {dimension_semantics = [#tpu.dimension_semantics<parallel>], iteration_bounds = array<i64: 2>, scalar_prefetch = 0 : i64, scratch_operands = 0 : i64, tpu.core_type = #tpu.core_type<tc>, window_params = [{transform_indices = @transform_0, window_bounds = array<i64: 1, 82, 32>}, {pipeline_mode = #tpu.pipeline_mode<synchronous>, transform_indices = @transform_1, window_bounds = array<i64: 9, 32, 64>}, {pipeline_mode = #tpu.pipeline_mode<synchronous>, transform_indices = @transform_2, window_bounds = array<i64: 1, 64>}, {transform_indices = @transform_3, window_bounds = array<i64: 1, 64, 64>}, {transform_indices = @transform_4, window_bounds = array<i64: 1, 64, 64>}]} {
    %c0 = arith.constant 0 : index
    %c0_0 = arith.constant 0 : index
    %c0_1 = arith.constant 0 : index
    %0 = vector.load %arg1[%c0, %c0_0, %c0_1] : memref<1x82x32xbf16, #tpu.memory_space<vmem>>, vector<1x82x32xbf16>
    %1 = vector.shape_cast %0 : vector<1x82x32xbf16> to vector<82x32xbf16>
    %2 = arith.extf %1 : vector<82x32xbf16> to vector<82x32xf32>
    %cst = arith.constant 0.000000e+00 : f32
    %3 = vector.broadcast %cst : f32 to vector<82x32xf32>
    %4 = arith.cmpf ogt, %2, %3 : vector<82x32xf32>
    %cst_2 = arith.constant 2.000000e-01 : f32
    %5 = vector.broadcast %cst_2 : f32 to vector<82x32xf32>
    %6 = arith.mulf %5, %2 : vector<82x32xf32>
    %7 = arith.select %4, %2, %6 : vector<82x32xi1>, vector<82x32xf32>
    %8 = tpu.iota {dimensions = array<i32: 0>} : vector<64x1xi32>
    %c8_i32 = arith.constant 8 : i32
    %c0_i32 = arith.constant 0 : i32
    %9 = arith.cmpi eq, %c8_i32, %c0_i32 : i32
    %c1_i32 = arith.constant 1 : i32
    %10 = arith.select %9, %c1_i32, %c8_i32 : i32
    %11 = vector.broadcast %10 : i32 to vector<64x1xi32>
    %12 = arith.remsi %8, %11 : vector<64x1xi32>
    %c0_i32_3 = arith.constant 0 : i32
    %13 = vector.broadcast %c0_i32_3 : i32 to vector<64x1xi32>
    %14 = arith.cmpi ne, %12, %13 : vector<64x1xi32>
    %c0_i32_4 = arith.constant 0 : i32
    %15 = vector.broadcast %c0_i32_4 : i32 to vector<64x1xi32>
    %16 = arith.cmpi slt, %12, %15 : vector<64x1xi32>
    %c0_i32_5 = arith.constant 0 : i32
    %17 = arith.cmpi slt, %10, %c0_i32_5 : i32
    %18 = vector.broadcast %17 : i1 to vector<64x1xi1>
    %19 = vector.broadcast %18 : vector<64x1xi1> to vector<64x1xi1>
    %20 = arith.xori %16, %19 : vector<64x1xi1>
    %21 = arith.andi %20, %14 : vector<64x1xi1>
    %22 = vector.broadcast %10 : i32 to vector<64x1xi32>
    %23 = arith.addi %12, %22 : vector<64x1xi32>
    %24 = arith.select %21, %23, %12 : vector<64x1xi1>, vector<64x1xi32>
    %c0_i32_6 = arith.constant 0 : i32
    %25 = vector.broadcast %c0_i32_6 : i32 to vector<64x1xi32>
    %26 = arith.cmpi ne, %24, %25 : vector<64x1xi32>
    %27 = arith.extui %26 : vector<64x1xi1> to vector<64x1xi32>
    %28 = arith.sitofp %27 : vector<64x1xi32> to vector<64x1xf32>
    %c7_i32 = arith.constant 7 : i32
    %29 = vector.broadcast %c7_i32 : i32 to vector<64x1xi32>
    %30 = arith.cmpi ne, %24, %29 : vector<64x1xi32>
    %31 = arith.extui %30 : vector<64x1xi1> to vector<64x1xi32>
    %32 = arith.sitofp %31 : vector<64x1xi32> to vector<64x1xf32>
    %33 = vector.extract_strided_slice %7 {offsets = [0, 0], sizes = [64, 32], strides = [1, 1]} : vector<82x32xf32> to vector<64x32xf32>
    %34 = vector.broadcast %28 : vector<64x1xf32> to vector<64x32xf32>
    %35 = arith.mulf %33, %34 : vector<64x32xf32>
    %c0_7 = arith.constant 0 : index
    %c0_8 = arith.constant 0 : index
    %c0_9 = arith.constant 0 : index
    %36 = vector.load %arg2[%c0_7, %c0_8, %c0_9] : memref<9x32x64xbf16, #tpu.memory_space<vmem>>, vector<1x32x64xbf16>
    %37 = vector.shape_cast %36 : vector<1x32x64xbf16> to vector<32x64xbf16>
    %38 = arith.truncf %35 : vector<64x32xf32> to vector<64x32xbf16>
    %cst_10 = arith.constant dense<0.000000e+00> : vector<64x64xf32>
    %39 = tpu.matmul %38, %37, %cst_10 {dimension_numbers = #tpu.dot_dimension_numbers<[1], [0], [0], [1], [0, 0, 1, 1], [], []>} : vector<64x32xbf16>, vector<32x64xbf16>, vector<64x64xf32> -> vector<64x64xf32>
    %40 = vector.extract_strided_slice %7 {offsets = [1, 0], sizes = [64, 32], strides = [1, 1]} : vector<82x32xf32> to vector<64x32xf32>
    %c1 = arith.constant 1 : index
    %c0_11 = arith.constant 0 : index
    %c0_12 = arith.constant 0 : index
    %41 = vector.load %arg2[%c1, %c0_11, %c0_12] : memref<9x32x64xbf16, #tpu.memory_space<vmem>>, vector<1x32x64xbf16>
    %42 = vector.shape_cast %41 : vector<1x32x64xbf16> to vector<32x64xbf16>
    %43 = arith.truncf %40 : vector<64x32xf32> to vector<64x32xbf16>
    %cst_13 = arith.constant dense<0.000000e+00> : vector<64x64xf32>
    %44 = tpu.matmul %43, %42, %cst_13 {dimension_numbers = #tpu.dot_dimension_numbers<[1], [0], [0], [1], [0, 0, 1, 1], [], []>} : vector<64x32xbf16>, vector<32x64xbf16>, vector<64x64xf32> -> vector<64x64xf32>
    %45 = arith.addf %39, %44 : vector<64x64xf32>
    %46 = vector.extract_strided_slice %7 {offsets = [2, 0], sizes = [64, 32], strides = [1, 1]} : vector<82x32xf32> to vector<64x32xf32>
    %47 = vector.broadcast %32 : vector<64x1xf32> to vector<64x32xf32>
    %48 = arith.mulf %46, %47 : vector<64x32xf32>
    %c2 = arith.constant 2 : index
    %c0_14 = arith.constant 0 : index
    %c0_15 = arith.constant 0 : index
    %49 = vector.load %arg2[%c2, %c0_14, %c0_15] : memref<9x32x64xbf16, #tpu.memory_space<vmem>>, vector<1x32x64xbf16>
    %50 = vector.shape_cast %49 : vector<1x32x64xbf16> to vector<32x64xbf16>
    %51 = arith.truncf %48 : vector<64x32xf32> to vector<64x32xbf16>
    %cst_16 = arith.constant dense<0.000000e+00> : vector<64x64xf32>
    %52 = tpu.matmul %51, %50, %cst_16 {dimension_numbers = #tpu.dot_dimension_numbers<[1], [0], [0], [1], [0, 0, 1, 1], [], []>} : vector<64x32xbf16>, vector<32x64xbf16>, vector<64x64xf32> -> vector<64x64xf32>
    %53 = arith.addf %45, %52 : vector<64x64xf32>
    %54 = vector.extract_strided_slice %7 {offsets = [8, 0], sizes = [64, 32], strides = [1, 1]} : vector<82x32xf32> to vector<64x32xf32>
    %55 = vector.broadcast %28 : vector<64x1xf32> to vector<64x32xf32>
    %56 = arith.mulf %54, %55 : vector<64x32xf32>
    %c3 = arith.constant 3 : index
    %c0_17 = arith.constant 0 : index
    %c0_18 = arith.constant 0 : index
    %57 = vector.load %arg2[%c3, %c0_17, %c0_18] : memref<9x32x64xbf16, #tpu.memory_space<vmem>>, vector<1x32x64xbf16>
    %58 = vector.shape_cast %57 : vector<1x32x64xbf16> to vector<32x64xbf16>
    %59 = arith.truncf %56 : vector<64x32xf32> to vector<64x32xbf16>
    %cst_19 = arith.constant dense<0.000000e+00> : vector<64x64xf32>
    %60 = tpu.matmul %59, %58, %cst_19 {dimension_numbers = #tpu.dot_dimension_numbers<[1], [0], [0], [1], [0, 0, 1, 1], [], []>} : vector<64x32xbf16>, vector<32x64xbf16>, vector<64x64xf32> -> vector<64x64xf32>
    %61 = arith.addf %53, %60 : vector<64x64xf32>
    %62 = vector.extract_strided_slice %7 {offsets = [9, 0], sizes = [64, 32], strides = [1, 1]} : vector<82x32xf32> to vector<64x32xf32>
    %c4 = arith.constant 4 : index
    %c0_20 = arith.constant 0 : index
    %c0_21 = arith.constant 0 : index
    %63 = vector.load %arg2[%c4, %c0_20, %c0_21] : memref<9x32x64xbf16, #tpu.memory_space<vmem>>, vector<1x32x64xbf16>
    %64 = vector.shape_cast %63 : vector<1x32x64xbf16> to vector<32x64xbf16>
    %65 = arith.truncf %62 : vector<64x32xf32> to vector<64x32xbf16>
    %cst_22 = arith.constant dense<0.000000e+00> : vector<64x64xf32>
    %66 = tpu.matmul %65, %64, %cst_22 {dimension_numbers = #tpu.dot_dimension_numbers<[1], [0], [0], [1], [0, 0, 1, 1], [], []>} : vector<64x32xbf16>, vector<32x64xbf16>, vector<64x64xf32> -> vector<64x64xf32>
    %67 = arith.addf %61, %66 : vector<64x64xf32>
    %68 = vector.extract_strided_slice %7 {offsets = [10, 0], sizes = [64, 32], strides = [1, 1]} : vector<82x32xf32> to vector<64x32xf32>
    %69 = vector.broadcast %32 : vector<64x1xf32> to vector<64x32xf32>
    %70 = arith.mulf %68, %69 : vector<64x32xf32>
    %c5 = arith.constant 5 : index
    %c0_23 = arith.constant 0 : index
    %c0_24 = arith.constant 0 : index
    %71 = vector.load %arg2[%c5, %c0_23, %c0_24] : memref<9x32x64xbf16, #tpu.memory_space<vmem>>, vector<1x32x64xbf16>
    %72 = vector.shape_cast %71 : vector<1x32x64xbf16> to vector<32x64xbf16>
    %73 = arith.truncf %70 : vector<64x32xf32> to vector<64x32xbf16>
    %cst_25 = arith.constant dense<0.000000e+00> : vector<64x64xf32>
    %74 = tpu.matmul %73, %72, %cst_25 {dimension_numbers = #tpu.dot_dimension_numbers<[1], [0], [0], [1], [0, 0, 1, 1], [], []>} : vector<64x32xbf16>, vector<32x64xbf16>, vector<64x64xf32> -> vector<64x64xf32>
    %75 = arith.addf %67, %74 : vector<64x64xf32>
    %76 = vector.extract_strided_slice %7 {offsets = [16, 0], sizes = [64, 32], strides = [1, 1]} : vector<82x32xf32> to vector<64x32xf32>
    %77 = vector.broadcast %28 : vector<64x1xf32> to vector<64x32xf32>
    %78 = arith.mulf %76, %77 : vector<64x32xf32>
    %c6 = arith.constant 6 : index
    %c0_26 = arith.constant 0 : index
    %c0_27 = arith.constant 0 : index
    %79 = vector.load %arg2[%c6, %c0_26, %c0_27] : memref<9x32x64xbf16, #tpu.memory_space<vmem>>, vector<1x32x64xbf16>
    %80 = vector.shape_cast %79 : vector<1x32x64xbf16> to vector<32x64xbf16>
    %81 = arith.truncf %78 : vector<64x32xf32> to vector<64x32xbf16>
    %cst_28 = arith.constant dense<0.000000e+00> : vector<64x64xf32>
    %82 = tpu.matmul %81, %80, %cst_28 {dimension_numbers = #tpu.dot_dimension_numbers<[1], [0], [0], [1], [0, 0, 1, 1], [], []>} : vector<64x32xbf16>, vector<32x64xbf16>, vector<64x64xf32> -> vector<64x64xf32>
    %83 = arith.addf %75, %82 : vector<64x64xf32>
    %84 = vector.extract_strided_slice %7 {offsets = [17, 0], sizes = [64, 32], strides = [1, 1]} : vector<82x32xf32> to vector<64x32xf32>
    %c7 = arith.constant 7 : index
    %c0_29 = arith.constant 0 : index
    %c0_30 = arith.constant 0 : index
    %85 = vector.load %arg2[%c7, %c0_29, %c0_30] : memref<9x32x64xbf16, #tpu.memory_space<vmem>>, vector<1x32x64xbf16>
    %86 = vector.shape_cast %85 : vector<1x32x64xbf16> to vector<32x64xbf16>
    %87 = arith.truncf %84 : vector<64x32xf32> to vector<64x32xbf16>
    %cst_31 = arith.constant dense<0.000000e+00> : vector<64x64xf32>
    %88 = tpu.matmul %87, %86, %cst_31 {dimension_numbers = #tpu.dot_dimension_numbers<[1], [0], [0], [1], [0, 0, 1, 1], [], []>} : vector<64x32xbf16>, vector<32x64xbf16>, vector<64x64xf32> -> vector<64x64xf32>
    %89 = arith.addf %83, %88 : vector<64x64xf32>
    %90 = vector.extract_strided_slice %7 {offsets = [18, 0], sizes = [64, 32], strides = [1, 1]} : vector<82x32xf32> to vector<64x32xf32>
    %91 = vector.broadcast %32 : vector<64x1xf32> to vector<64x32xf32>
    %92 = arith.mulf %90, %91 : vector<64x32xf32>
    %c8 = arith.constant 8 : index
    %c0_32 = arith.constant 0 : index
    %c0_33 = arith.constant 0 : index
    %93 = vector.load %arg2[%c8, %c0_32, %c0_33] : memref<9x32x64xbf16, #tpu.memory_space<vmem>>, vector<1x32x64xbf16>
    %94 = vector.shape_cast %93 : vector<1x32x64xbf16> to vector<32x64xbf16>
    %95 = arith.truncf %92 : vector<64x32xf32> to vector<64x32xbf16>
    %cst_34 = arith.constant dense<0.000000e+00> : vector<64x64xf32>
    %96 = tpu.matmul %95, %94, %cst_34 {dimension_numbers = #tpu.dot_dimension_numbers<[1], [0], [0], [1], [0, 0, 1, 1], [], []>} : vector<64x32xbf16>, vector<32x64xbf16>, vector<64x64xf32> -> vector<64x64xf32>
    %97 = arith.addf %89, %96 : vector<64x64xf32>
    %c0_35 = arith.constant 0 : index
    %c0_36 = arith.constant 0 : index
    %98 = vector.load %arg3[%c0_35, %c0_36] : memref<1x64xf32, #tpu.memory_space<vmem>>, vector<1x64xf32>
    %99 = vector.broadcast %98 : vector<1x64xf32> to vector<64x64xf32>
    %100 = arith.addf %97, %99 : vector<64x64xf32>
    %c0_37 = arith.constant 0 : index
    %c0_38 = arith.constant 0 : index
    %c0_39 = arith.constant 0 : index
    %101 = vector.load %arg4[%c0_37, %c0_38, %c0_39] : memref<1x64x64xbf16, #tpu.memory_space<vmem>>, vector<1x64x64xbf16>
    %102 = vector.shape_cast %101 : vector<1x64x64xbf16> to vector<64x64xbf16>
    %103 = arith.extf %102 : vector<64x64xbf16> to vector<64x64xf32>
    %104 = arith.addf %100, %103 : vector<64x64xf32>
    %cst_40 = arith.constant 0.707106769 : f32
    %105 = vector.broadcast %cst_40 : f32 to vector<64x64xf32>
    %106 = arith.mulf %104, %105 : vector<64x64xf32>
    %107 = arith.truncf %106 : vector<64x64xf32> to vector<64x64xbf16>
    %c0_41 = arith.constant 0 : index
    %c0_42 = arith.constant 0 : index
    %c0_43 = arith.constant 0 : index
    %108 = vector.load %arg5[%c0_41, %c0_42, %c0_43] : memref<1x64x64xbf16, #tpu.memory_space<vmem>>, vector<1x64x64xbf16>
    %109 = vector.shape_cast %108 : vector<1x64x64xbf16> to vector<64x64xbf16>
    %110 = vector.shape_cast %107 : vector<64x64xbf16> to vector<1x64x64xbf16>
    tpu.vector_store %arg5[%c0_41, %c0_42, %c0_43], %110 {strides = array<i32>} : memref<1x64x64xbf16, #tpu.memory_space<vmem>>, vector<1x64x64xbf16>,
    return
  }
  func.func @transform_0(%arg0: i32) -> (i32, i32, i32) {
    %c0_i32 = arith.constant 0 : i32
    %c0_i32_0 = arith.constant 0 : i32
    %c0_i32_1 = arith.constant 0 : i32
    return %arg0, %c0_i32, %c0_i32_0 : i32, i32, i32
  }
  func.func @transform_1(%arg0: i32) -> (i32, i32, i32) {
    %c0_i32 = arith.constant 0 : i32
    %c0_i32_0 = arith.constant 0 : i32
    %c0_i32_1 = arith.constant 0 : i32
    %c0_i32_2 = arith.constant 0 : i32
    return %c0_i32, %c0_i32_0, %c0_i32_1 : i32, i32, i32
  }
  func.func @transform_2(%arg0: i32) -> (i32, i32) {
    %c0_i32 = arith.constant 0 : i32
    %c0_i32_0 = arith.constant 0 : i32
    %c0_i32_1 = arith.constant 0 : i32
    return %c0_i32, %c0_i32_0 : i32, i32
  }
  func.func @transform_3(%arg0: i32) -> (i32, i32, i32) {
    %c0_i32 = arith.constant 0 : i32
    %c0_i32_0 = arith.constant 0 : i32
    %c0_i32_1 = arith.constant 0 : i32
    return %arg0, %c0_i32, %c0_i32_0 : i32, i32, i32
  }
  func.func @transform_4(%arg0: i32) -> (i32, i32, i32) {
    %c0_i32 = arith.constant 0 : i32
    %c0_i32_0 = arith.constant 0 : i32
    %c0_i32_1 = arith.constant 0 : i32
    return %arg0, %c0_i32, %c0_i32_0 : i32, i32, i32
  }
}

module attributes {stable_mosaic.version = 11 : i64} {
  func.func @_conv_pool_kernel(%arg0: i32, %arg1: memref<1x82x64xbf16, #tpu.memory_space<vmem>>, %arg2: memref<9x64x64xbf16, #tpu.memory_space<vmem>>, %arg3: memref<1x64xf32, #tpu.memory_space<vmem>>, %arg4: memref<16x64xbf16, #tpu.memory_space<vmem>>, %arg5: memref<1x16x64xbf16, #tpu.memory_space<vmem>>, %arg6: memref<1x16x64xbf16, #tpu.memory_space<vmem>>) attributes {dimension_semantics = [#tpu.dimension_semantics<parallel>], iteration_bounds = array<i64: 2>, scalar_prefetch = 0 : i64, scratch_operands = 0 : i64, tpu.core_type = #tpu.core_type<tc>, window_params = [{transform_indices = @transform_0, window_bounds = array<i64: 1, 82, 64>}, {pipeline_mode = #tpu.pipeline_mode<synchronous>, transform_indices = @transform_1, window_bounds = array<i64: 9, 64, 64>}, {pipeline_mode = #tpu.pipeline_mode<synchronous>, transform_indices = @transform_2, window_bounds = array<i64: 1, 64>}, {pipeline_mode = #tpu.pipeline_mode<synchronous>, transform_indices = @transform_3, window_bounds = array<i64: 16, 64>}, {transform_indices = @transform_4, window_bounds = array<i64: 1, 16, 64>}, {transform_indices = @transform_5, window_bounds = array<i64: 1, 16, 64>}]} {
    %c0 = arith.constant 0 : index
    %c0_0 = arith.constant 0 : index
    %c0_1 = arith.constant 0 : index
    %0 = vector.load %arg1[%c0, %c0_0, %c0_1] : memref<1x82x64xbf16, #tpu.memory_space<vmem>>, vector<1x82x64xbf16>
    %1 = vector.shape_cast %0 : vector<1x82x64xbf16> to vector<82x64xbf16>
    %2 = arith.extf %1 : vector<82x64xbf16> to vector<82x64xf32>
    %cst = arith.constant 0.000000e+00 : f32
    %3 = vector.broadcast %cst : f32 to vector<82x64xf32>
    %4 = arith.cmpf ogt, %2, %3 : vector<82x64xf32>
    %cst_2 = arith.constant 2.000000e-01 : f32
    %5 = vector.broadcast %cst_2 : f32 to vector<82x64xf32>
    %6 = arith.mulf %5, %2 : vector<82x64xf32>
    %7 = arith.select %4, %2, %6 : vector<82x64xi1>, vector<82x64xf32>
    %8 = tpu.iota {dimensions = array<i32: 0>} : vector<64x1xi32>
    %c8_i32 = arith.constant 8 : i32
    %c0_i32 = arith.constant 0 : i32
    %9 = arith.cmpi eq, %c8_i32, %c0_i32 : i32
    %c1_i32 = arith.constant 1 : i32
    %10 = arith.select %9, %c1_i32, %c8_i32 : i32
    %11 = vector.broadcast %10 : i32 to vector<64x1xi32>
    %12 = arith.remsi %8, %11 : vector<64x1xi32>
    %c0_i32_3 = arith.constant 0 : i32
    %13 = vector.broadcast %c0_i32_3 : i32 to vector<64x1xi32>
    %14 = arith.cmpi ne, %12, %13 : vector<64x1xi32>
    %c0_i32_4 = arith.constant 0 : i32
    %15 = vector.broadcast %c0_i32_4 : i32 to vector<64x1xi32>
    %16 = arith.cmpi slt, %12, %15 : vector<64x1xi32>
    %c0_i32_5 = arith.constant 0 : i32
    %17 = arith.cmpi slt, %10, %c0_i32_5 : i32
    %18 = vector.broadcast %17 : i1 to vector<64x1xi1>
    %19 = vector.broadcast %18 : vector<64x1xi1> to vector<64x1xi1>
    %20 = arith.xori %16, %19 : vector<64x1xi1>
    %21 = arith.andi %20, %14 : vector<64x1xi1>
    %22 = vector.broadcast %10 : i32 to vector<64x1xi32>
    %23 = arith.addi %12, %22 : vector<64x1xi32>
    %24 = arith.select %21, %23, %12 : vector<64x1xi1>, vector<64x1xi32>
    %c0_i32_6 = arith.constant 0 : i32
    %25 = vector.broadcast %c0_i32_6 : i32 to vector<64x1xi32>
    %26 = arith.cmpi ne, %24, %25 : vector<64x1xi32>
    %27 = arith.extui %26 : vector<64x1xi1> to vector<64x1xi32>
    %28 = arith.sitofp %27 : vector<64x1xi32> to vector<64x1xf32>
    %c7_i32 = arith.constant 7 : i32
    %29 = vector.broadcast %c7_i32 : i32 to vector<64x1xi32>
    %30 = arith.cmpi ne, %24, %29 : vector<64x1xi32>
    %31 = arith.extui %30 : vector<64x1xi1> to vector<64x1xi32>
    %32 = arith.sitofp %31 : vector<64x1xi32> to vector<64x1xf32>
    %33 = vector.extract_strided_slice %7 {offsets = [0, 0], sizes = [64, 64], strides = [1, 1]} : vector<82x64xf32> to vector<64x64xf32>
    %34 = vector.broadcast %28 : vector<64x1xf32> to vector<64x64xf32>
    %35 = arith.mulf %33, %34 : vector<64x64xf32>
    %c0_7 = arith.constant 0 : index
    %c0_8 = arith.constant 0 : index
    %c0_9 = arith.constant 0 : index
    %36 = vector.load %arg2[%c0_7, %c0_8, %c0_9] : memref<9x64x64xbf16, #tpu.memory_space<vmem>>, vector<1x64x64xbf16>
    %37 = vector.shape_cast %36 : vector<1x64x64xbf16> to vector<64x64xbf16>
    %38 = arith.truncf %35 : vector<64x64xf32> to vector<64x64xbf16>
    %cst_10 = arith.constant dense<0.000000e+00> : vector<64x64xf32>
    %39 = tpu.matmul %38, %37, %cst_10 {dimension_numbers = #tpu.dot_dimension_numbers<[1], [0], [0], [1], [0, 0, 1, 1], [], []>} : vector<64x64xbf16>, vector<64x64xbf16>, vector<64x64xf32> -> vector<64x64xf32>
    %40 = vector.extract_strided_slice %7 {offsets = [1, 0], sizes = [64, 64], strides = [1, 1]} : vector<82x64xf32> to vector<64x64xf32>
    %c1 = arith.constant 1 : index
    %c0_11 = arith.constant 0 : index
    %c0_12 = arith.constant 0 : index
    %41 = vector.load %arg2[%c1, %c0_11, %c0_12] : memref<9x64x64xbf16, #tpu.memory_space<vmem>>, vector<1x64x64xbf16>
    %42 = vector.shape_cast %41 : vector<1x64x64xbf16> to vector<64x64xbf16>
    %43 = arith.truncf %40 : vector<64x64xf32> to vector<64x64xbf16>
    %cst_13 = arith.constant dense<0.000000e+00> : vector<64x64xf32>
    %44 = tpu.matmul %43, %42, %cst_13 {dimension_numbers = #tpu.dot_dimension_numbers<[1], [0], [0], [1], [0, 0, 1, 1], [], []>} : vector<64x64xbf16>, vector<64x64xbf16>, vector<64x64xf32> -> vector<64x64xf32>
    %45 = arith.addf %39, %44 : vector<64x64xf32>
    %46 = vector.extract_strided_slice %7 {offsets = [2, 0], sizes = [64, 64], strides = [1, 1]} : vector<82x64xf32> to vector<64x64xf32>
    %47 = vector.broadcast %32 : vector<64x1xf32> to vector<64x64xf32>
    %48 = arith.mulf %46, %47 : vector<64x64xf32>
    %c2 = arith.constant 2 : index
    %c0_14 = arith.constant 0 : index
    %c0_15 = arith.constant 0 : index
    %49 = vector.load %arg2[%c2, %c0_14, %c0_15] : memref<9x64x64xbf16, #tpu.memory_space<vmem>>, vector<1x64x64xbf16>
    %50 = vector.shape_cast %49 : vector<1x64x64xbf16> to vector<64x64xbf16>
    %51 = arith.truncf %48 : vector<64x64xf32> to vector<64x64xbf16>
    %cst_16 = arith.constant dense<0.000000e+00> : vector<64x64xf32>
    %52 = tpu.matmul %51, %50, %cst_16 {dimension_numbers = #tpu.dot_dimension_numbers<[1], [0], [0], [1], [0, 0, 1, 1], [], []>} : vector<64x64xbf16>, vector<64x64xbf16>, vector<64x64xf32> -> vector<64x64xf32>
    %53 = arith.addf %45, %52 : vector<64x64xf32>
    %54 = vector.extract_strided_slice %7 {offsets = [8, 0], sizes = [64, 64], strides = [1, 1]} : vector<82x64xf32> to vector<64x64xf32>
    %55 = vector.broadcast %28 : vector<64x1xf32> to vector<64x64xf32>
    %56 = arith.mulf %54, %55 : vector<64x64xf32>
    %c3 = arith.constant 3 : index
    %c0_17 = arith.constant 0 : index
    %c0_18 = arith.constant 0 : index
    %57 = vector.load %arg2[%c3, %c0_17, %c0_18] : memref<9x64x64xbf16, #tpu.memory_space<vmem>>, vector<1x64x64xbf16>
    %58 = vector.shape_cast %57 : vector<1x64x64xbf16> to vector<64x64xbf16>
    %59 = arith.truncf %56 : vector<64x64xf32> to vector<64x64xbf16>
    %cst_19 = arith.constant dense<0.000000e+00> : vector<64x64xf32>
    %60 = tpu.matmul %59, %58, %cst_19 {dimension_numbers = #tpu.dot_dimension_numbers<[1], [0], [0], [1], [0, 0, 1, 1], [], []>} : vector<64x64xbf16>, vector<64x64xbf16>, vector<64x64xf32> -> vector<64x64xf32>
    %61 = arith.addf %53, %60 : vector<64x64xf32>
    %62 = vector.extract_strided_slice %7 {offsets = [9, 0], sizes = [64, 64], strides = [1, 1]} : vector<82x64xf32> to vector<64x64xf32>
    %c4 = arith.constant 4 : index
    %c0_20 = arith.constant 0 : index
    %c0_21 = arith.constant 0 : index
    %63 = vector.load %arg2[%c4, %c0_20, %c0_21] : memref<9x64x64xbf16, #tpu.memory_space<vmem>>, vector<1x64x64xbf16>
    %64 = vector.shape_cast %63 : vector<1x64x64xbf16> to vector<64x64xbf16>
    %65 = arith.truncf %62 : vector<64x64xf32> to vector<64x64xbf16>
    %cst_22 = arith.constant dense<0.000000e+00> : vector<64x64xf32>
    %66 = tpu.matmul %65, %64, %cst_22 {dimension_numbers = #tpu.dot_dimension_numbers<[1], [0], [0], [1], [0, 0, 1, 1], [], []>} : vector<64x64xbf16>, vector<64x64xbf16>, vector<64x64xf32> -> vector<64x64xf32>
    %67 = arith.addf %61, %66 : vector<64x64xf32>
    %68 = vector.extract_strided_slice %7 {offsets = [10, 0], sizes = [64, 64], strides = [1, 1]} : vector<82x64xf32> to vector<64x64xf32>
    %69 = vector.broadcast %32 : vector<64x1xf32> to vector<64x64xf32>
    %70 = arith.mulf %68, %69 : vector<64x64xf32>
    %c5 = arith.constant 5 : index
    %c0_23 = arith.constant 0 : index
    %c0_24 = arith.constant 0 : index
    %71 = vector.load %arg2[%c5, %c0_23, %c0_24] : memref<9x64x64xbf16, #tpu.memory_space<vmem>>, vector<1x64x64xbf16>
    %72 = vector.shape_cast %71 : vector<1x64x64xbf16> to vector<64x64xbf16>
    %73 = arith.truncf %70 : vector<64x64xf32> to vector<64x64xbf16>
    %cst_25 = arith.constant dense<0.000000e+00> : vector<64x64xf32>
    %74 = tpu.matmul %73, %72, %cst_25 {dimension_numbers = #tpu.dot_dimension_numbers<[1], [0], [0], [1], [0, 0, 1, 1], [], []>} : vector<64x64xbf16>, vector<64x64xbf16>, vector<64x64xf32> -> vector<64x64xf32>
    %75 = arith.addf %67, %74 : vector<64x64xf32>
    %76 = vector.extract_strided_slice %7 {offsets = [16, 0], sizes = [64, 64], strides = [1, 1]} : vector<82x64xf32> to vector<64x64xf32>
    %77 = vector.broadcast %28 : vector<64x1xf32> to vector<64x64xf32>
    %78 = arith.mulf %76, %77 : vector<64x64xf32>
    %c6 = arith.constant 6 : index
    %c0_26 = arith.constant 0 : index
    %c0_27 = arith.constant 0 : index
    %79 = vector.load %arg2[%c6, %c0_26, %c0_27] : memref<9x64x64xbf16, #tpu.memory_space<vmem>>, vector<1x64x64xbf16>
    %80 = vector.shape_cast %79 : vector<1x64x64xbf16> to vector<64x64xbf16>
    %81 = arith.truncf %78 : vector<64x64xf32> to vector<64x64xbf16>
    %cst_28 = arith.constant dense<0.000000e+00> : vector<64x64xf32>
    %82 = tpu.matmul %81, %80, %cst_28 {dimension_numbers = #tpu.dot_dimension_numbers<[1], [0], [0], [1], [0, 0, 1, 1], [], []>} : vector<64x64xbf16>, vector<64x64xbf16>, vector<64x64xf32> -> vector<64x64xf32>
    %83 = arith.addf %75, %82 : vector<64x64xf32>
    %84 = vector.extract_strided_slice %7 {offsets = [17, 0], sizes = [64, 64], strides = [1, 1]} : vector<82x64xf32> to vector<64x64xf32>
    %c7 = arith.constant 7 : index
    %c0_29 = arith.constant 0 : index
    %c0_30 = arith.constant 0 : index
    %85 = vector.load %arg2[%c7, %c0_29, %c0_30] : memref<9x64x64xbf16, #tpu.memory_space<vmem>>, vector<1x64x64xbf16>
    %86 = vector.shape_cast %85 : vector<1x64x64xbf16> to vector<64x64xbf16>
    %87 = arith.truncf %84 : vector<64x64xf32> to vector<64x64xbf16>
    %cst_31 = arith.constant dense<0.000000e+00> : vector<64x64xf32>
    %88 = tpu.matmul %87, %86, %cst_31 {dimension_numbers = #tpu.dot_dimension_numbers<[1], [0], [0], [1], [0, 0, 1, 1], [], []>} : vector<64x64xbf16>, vector<64x64xbf16>, vector<64x64xf32> -> vector<64x64xf32>
    %89 = arith.addf %83, %88 : vector<64x64xf32>
    %90 = vector.extract_strided_slice %7 {offsets = [18, 0], sizes = [64, 64], strides = [1, 1]} : vector<82x64xf32> to vector<64x64xf32>
    %91 = vector.broadcast %32 : vector<64x1xf32> to vector<64x64xf32>
    %92 = arith.mulf %90, %91 : vector<64x64xf32>
    %c8 = arith.constant 8 : index
    %c0_32 = arith.constant 0 : index
    %c0_33 = arith.constant 0 : index
    %93 = vector.load %arg2[%c8, %c0_32, %c0_33] : memref<9x64x64xbf16, #tpu.memory_space<vmem>>, vector<1x64x64xbf16>
    %94 = vector.shape_cast %93 : vector<1x64x64xbf16> to vector<64x64xbf16>
    %95 = arith.truncf %92 : vector<64x64xf32> to vector<64x64xbf16>
    %cst_34 = arith.constant dense<0.000000e+00> : vector<64x64xf32>
    %96 = tpu.matmul %95, %94, %cst_34 {dimension_numbers = #tpu.dot_dimension_numbers<[1], [0], [0], [1], [0, 0, 1, 1], [], []>} : vector<64x64xbf16>, vector<64x64xbf16>, vector<64x64xf32> -> vector<64x64xf32>
    %97 = arith.addf %89, %96 : vector<64x64xf32>
    %c0_35 = arith.constant 0 : index
    %c0_36 = arith.constant 0 : index
    %98 = vector.load %arg3[%c0_35, %c0_36] : memref<1x64xf32, #tpu.memory_space<vmem>>, vector<1x64xf32>
    %99 = vector.broadcast %98 : vector<1x64xf32> to vector<64x64xf32>
    %100 = arith.addf %97, %99 : vector<64x64xf32>
    %c0_37 = arith.constant 0 : index
    %c0_38 = arith.constant 0 : index
    %101 = vector.load %arg4[%c0_37, %c0_38] : memref<16x64xbf16, #tpu.memory_space<vmem>>, vector<16x64xbf16>
    %102 = arith.truncf %100 : vector<64x64xf32> to vector<64x64xbf16>
    %cst_39 = arith.constant dense<0.000000e+00> : vector<16x64xf32>
    %103 = tpu.matmul %101, %102, %cst_39 {dimension_numbers = #tpu.dot_dimension_numbers<[1], [0], [0], [1], [0, 0, 1, 1], [], []>} : vector<16x64xbf16>, vector<64x64xbf16>, vector<16x64xf32> -> vector<16x64xf32>
    %104 = arith.truncf %103 : vector<16x64xf32> to vector<16x64xbf16>
    %c0_40 = arith.constant 0 : index
    %c0_41 = arith.constant 0 : index
    %c0_42 = arith.constant 0 : index
    %105 = vector.load %arg5[%c0_40, %c0_41, %c0_42] : memref<1x16x64xbf16, #tpu.memory_space<vmem>>, vector<1x16x64xbf16>
    %106 = vector.shape_cast %105 : vector<1x16x64xbf16> to vector<16x64xbf16>
    %107 = vector.shape_cast %104 : vector<16x64xbf16> to vector<1x16x64xbf16>
    tpu.vector_store %arg5[%c0_40, %c0_41, %c0_42], %107 {strides = array<i32>} : memref<1x16x64xbf16, #tpu.memory_space<vmem>>, vector<1x16x64xbf16>,
    %108 = vector.extract_strided_slice %2 {offsets = [9, 0], sizes = [64, 64], strides = [1, 1]} : vector<82x64xf32> to vector<64x64xf32>
    %109 = arith.truncf %108 : vector<64x64xf32> to vector<64x64xbf16>
    %cst_43 = arith.constant dense<0.000000e+00> : vector<16x64xf32>
    %110 = tpu.matmul %101, %109, %cst_43 {dimension_numbers = #tpu.dot_dimension_numbers<[1], [0], [0], [1], [0, 0, 1, 1], [], []>} : vector<16x64xbf16>, vector<64x64xbf16>, vector<16x64xf32> -> vector<16x64xf32>
    %111 = arith.truncf %110 : vector<16x64xf32> to vector<16x64xbf16>
    %c0_44 = arith.constant 0 : index
    %c0_45 = arith.constant 0 : index
    %c0_46 = arith.constant 0 : index
    %112 = vector.load %arg6[%c0_44, %c0_45, %c0_46] : memref<1x16x64xbf16, #tpu.memory_space<vmem>>, vector<1x16x64xbf16>
    %113 = vector.shape_cast %112 : vector<1x16x64xbf16> to vector<16x64xbf16>
    %114 = vector.shape_cast %111 : vector<16x64xbf16> to vector<1x16x64xbf16>
    tpu.vector_store %arg6[%c0_44, %c0_45, %c0_46], %114 {strides = array<i32>} : memref<1x16x64xbf16, #tpu.memory_space<vmem>>, vector<1x16x64xbf16>,
    return
  }
  func.func @transform_0(%arg0: i32) -> (i32, i32, i32) {
    %c0_i32 = arith.constant 0 : i32
    %c0_i32_0 = arith.constant 0 : i32
    %c0_i32_1 = arith.constant 0 : i32
    return %arg0, %c0_i32, %c0_i32_0 : i32, i32, i32
  }
  func.func @transform_1(%arg0: i32) -> (i32, i32, i32) {
    %c0_i32 = arith.constant 0 : i32
    %c0_i32_0 = arith.constant 0 : i32
    %c0_i32_1 = arith.constant 0 : i32
    %c0_i32_2 = arith.constant 0 : i32
    return %c0_i32, %c0_i32_0, %c0_i32_1 : i32, i32, i32
  }
  func.func @transform_2(%arg0: i32) -> (i32, i32) {
    %c0_i32 = arith.constant 0 : i32
    %c0_i32_0 = arith.constant 0 : i32
    %c0_i32_1 = arith.constant 0 : i32
    return %c0_i32, %c0_i32_0 : i32, i32
  }
  func.func @transform_3(%arg0: i32) -> (i32, i32) {
    %c0_i32 = arith.constant 0 : i32
    %c0_i32_0 = arith.constant 0 : i32
    %c0_i32_1 = arith.constant 0 : i32
    return %c0_i32, %c0_i32_0 : i32, i32
  }
  func.func @transform_4(%arg0: i32) -> (i32, i32, i32) {
    %c0_i32 = arith.constant 0 : i32
    %c0_i32_0 = arith.constant 0 : i32
    %c0_i32_1 = arith.constant 0 : i32
    return %arg0, %c0_i32, %c0_i32_0 : i32, i32, i32
  }
  func.func @transform_5(%arg0: i32) -> (i32, i32, i32) {
    %c0_i32 = arith.constant 0 : i32
    %c0_i32_0 = arith.constant 0 : i32
    %c0_i32_1 = arith.constant 0 : i32
    return %arg0, %c0_i32, %c0_i32_0 : i32, i32, i32
  }
}

module attributes {stable_mosaic.version = 11 : i64} {
  func.func @_conv_kernel(%arg0: i32, %arg1: memref<1x26x64xbf16, #tpu.memory_space<vmem>>, %arg2: memref<9x64x64xbf16, #tpu.memory_space<vmem>>, %arg3: memref<1x64xf32, #tpu.memory_space<vmem>>, %arg4: memref<1x16x64xbf16, #tpu.memory_space<vmem>>, %arg5: memref<1x16x64xbf16, #tpu.memory_space<vmem>>) attributes {dimension_semantics = [#tpu.dimension_semantics<parallel>], iteration_bounds = array<i64: 2>, scalar_prefetch = 0 : i64, scratch_operands = 0 : i64, tpu.core_type = #tpu.core_type<tc>, window_params = [{transform_indices = @transform_0, window_bounds = array<i64: 1, 26, 64>}, {pipeline_mode = #tpu.pipeline_mode<synchronous>, transform_indices = @transform_1, window_bounds = array<i64: 9, 64, 64>}, {pipeline_mode = #tpu.pipeline_mode<synchronous>, transform_indices = @transform_2, window_bounds = array<i64: 1, 64>}, {transform_indices = @transform_3, window_bounds = array<i64: 1, 16, 64>}, {transform_indices = @transform_4, window_bounds = array<i64: 1, 16, 64>}]} {
    %c0 = arith.constant 0 : index
    %c0_0 = arith.constant 0 : index
    %c0_1 = arith.constant 0 : index
    %0 = vector.load %arg1[%c0, %c0_0, %c0_1] : memref<1x26x64xbf16, #tpu.memory_space<vmem>>, vector<1x26x64xbf16>
    %1 = vector.shape_cast %0 : vector<1x26x64xbf16> to vector<26x64xbf16>
    %2 = arith.extf %1 : vector<26x64xbf16> to vector<26x64xf32>
    %cst = arith.constant 0.000000e+00 : f32
    %3 = vector.broadcast %cst : f32 to vector<26x64xf32>
    %4 = arith.cmpf ogt, %2, %3 : vector<26x64xf32>
    %cst_2 = arith.constant 2.000000e-01 : f32
    %5 = vector.broadcast %cst_2 : f32 to vector<26x64xf32>
    %6 = arith.mulf %5, %2 : vector<26x64xf32>
    %7 = arith.select %4, %2, %6 : vector<26x64xi1>, vector<26x64xf32>
    %8 = tpu.iota {dimensions = array<i32: 0>} : vector<16x1xi32>
    %c4_i32 = arith.constant 4 : i32
    %c0_i32 = arith.constant 0 : i32
    %9 = arith.cmpi eq, %c4_i32, %c0_i32 : i32
    %c1_i32 = arith.constant 1 : i32
    %10 = arith.select %9, %c1_i32, %c4_i32 : i32
    %11 = vector.broadcast %10 : i32 to vector<16x1xi32>
    %12 = arith.remsi %8, %11 : vector<16x1xi32>
    %c0_i32_3 = arith.constant 0 : i32
    %13 = vector.broadcast %c0_i32_3 : i32 to vector<16x1xi32>
    %14 = arith.cmpi ne, %12, %13 : vector<16x1xi32>
    %c0_i32_4 = arith.constant 0 : i32
    %15 = vector.broadcast %c0_i32_4 : i32 to vector<16x1xi32>
    %16 = arith.cmpi slt, %12, %15 : vector<16x1xi32>
    %c0_i32_5 = arith.constant 0 : i32
    %17 = arith.cmpi slt, %10, %c0_i32_5 : i32
    %18 = vector.broadcast %17 : i1 to vector<16x1xi1>
    %19 = vector.broadcast %18 : vector<16x1xi1> to vector<16x1xi1>
    %20 = arith.xori %16, %19 : vector<16x1xi1>
    %21 = arith.andi %20, %14 : vector<16x1xi1>
    %22 = vector.broadcast %10 : i32 to vector<16x1xi32>
    %23 = arith.addi %12, %22 : vector<16x1xi32>
    %24 = arith.select %21, %23, %12 : vector<16x1xi1>, vector<16x1xi32>
    %c0_i32_6 = arith.constant 0 : i32
    %25 = vector.broadcast %c0_i32_6 : i32 to vector<16x1xi32>
    %26 = arith.cmpi ne, %24, %25 : vector<16x1xi32>
    %27 = arith.extui %26 : vector<16x1xi1> to vector<16x1xi32>
    %28 = arith.sitofp %27 : vector<16x1xi32> to vector<16x1xf32>
    %c3_i32 = arith.constant 3 : i32
    %29 = vector.broadcast %c3_i32 : i32 to vector<16x1xi32>
    %30 = arith.cmpi ne, %24, %29 : vector<16x1xi32>
    %31 = arith.extui %30 : vector<16x1xi1> to vector<16x1xi32>
    %32 = arith.sitofp %31 : vector<16x1xi32> to vector<16x1xf32>
    %33 = vector.extract_strided_slice %7 {offsets = [0, 0], sizes = [16, 64], strides = [1, 1]} : vector<26x64xf32> to vector<16x64xf32>
    %34 = vector.broadcast %28 : vector<16x1xf32> to vector<16x64xf32>
    %35 = arith.mulf %33, %34 : vector<16x64xf32>
    %c0_7 = arith.constant 0 : index
    %c0_8 = arith.constant 0 : index
    %c0_9 = arith.constant 0 : index
    %36 = vector.load %arg2[%c0_7, %c0_8, %c0_9] : memref<9x64x64xbf16, #tpu.memory_space<vmem>>, vector<1x64x64xbf16>
    %37 = vector.shape_cast %36 : vector<1x64x64xbf16> to vector<64x64xbf16>
    %38 = arith.truncf %35 : vector<16x64xf32> to vector<16x64xbf16>
    %cst_10 = arith.constant dense<0.000000e+00> : vector<16x64xf32>
    %39 = tpu.matmul %38, %37, %cst_10 {dimension_numbers = #tpu.dot_dimension_numbers<[1], [0], [0], [1], [0, 0, 1, 1], [], []>} : vector<16x64xbf16>, vector<64x64xbf16>, vector<16x64xf32> -> vector<16x64xf32>
    %40 = vector.extract_strided_slice %7 {offsets = [1, 0], sizes = [16, 64], strides = [1, 1]} : vector<26x64xf32> to vector<16x64xf32>
    %c1 = arith.constant 1 : index
    %c0_11 = arith.constant 0 : index
    %c0_12 = arith.constant 0 : index
    %41 = vector.load %arg2[%c1, %c0_11, %c0_12] : memref<9x64x64xbf16, #tpu.memory_space<vmem>>, vector<1x64x64xbf16>
    %42 = vector.shape_cast %41 : vector<1x64x64xbf16> to vector<64x64xbf16>
    %43 = arith.truncf %40 : vector<16x64xf32> to vector<16x64xbf16>
    %cst_13 = arith.constant dense<0.000000e+00> : vector<16x64xf32>
    %44 = tpu.matmul %43, %42, %cst_13 {dimension_numbers = #tpu.dot_dimension_numbers<[1], [0], [0], [1], [0, 0, 1, 1], [], []>} : vector<16x64xbf16>, vector<64x64xbf16>, vector<16x64xf32> -> vector<16x64xf32>
    %45 = arith.addf %39, %44 : vector<16x64xf32>
    %46 = vector.extract_strided_slice %7 {offsets = [2, 0], sizes = [16, 64], strides = [1, 1]} : vector<26x64xf32> to vector<16x64xf32>
    %47 = vector.broadcast %32 : vector<16x1xf32> to vector<16x64xf32>
    %48 = arith.mulf %46, %47 : vector<16x64xf32>
    %c2 = arith.constant 2 : index
    %c0_14 = arith.constant 0 : index
    %c0_15 = arith.constant 0 : index
    %49 = vector.load %arg2[%c2, %c0_14, %c0_15] : memref<9x64x64xbf16, #tpu.memory_space<vmem>>, vector<1x64x64xbf16>
    %50 = vector.shape_cast %49 : vector<1x64x64xbf16> to vector<64x64xbf16>
    %51 = arith.truncf %48 : vector<16x64xf32> to vector<16x64xbf16>
    %cst_16 = arith.constant dense<0.000000e+00> : vector<16x64xf32>
    %52 = tpu.matmul %51, %50, %cst_16 {dimension_numbers = #tpu.dot_dimension_numbers<[1], [0], [0], [1], [0, 0, 1, 1], [], []>} : vector<16x64xbf16>, vector<64x64xbf16>, vector<16x64xf32> -> vector<16x64xf32>
    %53 = arith.addf %45, %52 : vector<16x64xf32>
    %54 = vector.extract_strided_slice %7 {offsets = [4, 0], sizes = [16, 64], strides = [1, 1]} : vector<26x64xf32> to vector<16x64xf32>
    %55 = vector.broadcast %28 : vector<16x1xf32> to vector<16x64xf32>
    %56 = arith.mulf %54, %55 : vector<16x64xf32>
    %c3 = arith.constant 3 : index
    %c0_17 = arith.constant 0 : index
    %c0_18 = arith.constant 0 : index
    %57 = vector.load %arg2[%c3, %c0_17, %c0_18] : memref<9x64x64xbf16, #tpu.memory_space<vmem>>, vector<1x64x64xbf16>
    %58 = vector.shape_cast %57 : vector<1x64x64xbf16> to vector<64x64xbf16>
    %59 = arith.truncf %56 : vector<16x64xf32> to vector<16x64xbf16>
    %cst_19 = arith.constant dense<0.000000e+00> : vector<16x64xf32>
    %60 = tpu.matmul %59, %58, %cst_19 {dimension_numbers = #tpu.dot_dimension_numbers<[1], [0], [0], [1], [0, 0, 1, 1], [], []>} : vector<16x64xbf16>, vector<64x64xbf16>, vector<16x64xf32> -> vector<16x64xf32>
    %61 = arith.addf %53, %60 : vector<16x64xf32>
    %62 = vector.extract_strided_slice %7 {offsets = [5, 0], sizes = [16, 64], strides = [1, 1]} : vector<26x64xf32> to vector<16x64xf32>
    %c4 = arith.constant 4 : index
    %c0_20 = arith.constant 0 : index
    %c0_21 = arith.constant 0 : index
    %63 = vector.load %arg2[%c4, %c0_20, %c0_21] : memref<9x64x64xbf16, #tpu.memory_space<vmem>>, vector<1x64x64xbf16>
    %64 = vector.shape_cast %63 : vector<1x64x64xbf16> to vector<64x64xbf16>
    %65 = arith.truncf %62 : vector<16x64xf32> to vector<16x64xbf16>
    %cst_22 = arith.constant dense<0.000000e+00> : vector<16x64xf32>
    %66 = tpu.matmul %65, %64, %cst_22 {dimension_numbers = #tpu.dot_dimension_numbers<[1], [0], [0], [1], [0, 0, 1, 1], [], []>} : vector<16x64xbf16>, vector<64x64xbf16>, vector<16x64xf32> -> vector<16x64xf32>
    %67 = arith.addf %61, %66 : vector<16x64xf32>
    %68 = vector.extract_strided_slice %7 {offsets = [6, 0], sizes = [16, 64], strides = [1, 1]} : vector<26x64xf32> to vector<16x64xf32>
    %69 = vector.broadcast %32 : vector<16x1xf32> to vector<16x64xf32>
    %70 = arith.mulf %68, %69 : vector<16x64xf32>
    %c5 = arith.constant 5 : index
    %c0_23 = arith.constant 0 : index
    %c0_24 = arith.constant 0 : index
    %71 = vector.load %arg2[%c5, %c0_23, %c0_24] : memref<9x64x64xbf16, #tpu.memory_space<vmem>>, vector<1x64x64xbf16>
    %72 = vector.shape_cast %71 : vector<1x64x64xbf16> to vector<64x64xbf16>
    %73 = arith.truncf %70 : vector<16x64xf32> to vector<16x64xbf16>
    %cst_25 = arith.constant dense<0.000000e+00> : vector<16x64xf32>
    %74 = tpu.matmul %73, %72, %cst_25 {dimension_numbers = #tpu.dot_dimension_numbers<[1], [0], [0], [1], [0, 0, 1, 1], [], []>} : vector<16x64xbf16>, vector<64x64xbf16>, vector<16x64xf32> -> vector<16x64xf32>
    %75 = arith.addf %67, %74 : vector<16x64xf32>
    %76 = vector.extract_strided_slice %7 {offsets = [8, 0], sizes = [16, 64], strides = [1, 1]} : vector<26x64xf32> to vector<16x64xf32>
    %77 = vector.broadcast %28 : vector<16x1xf32> to vector<16x64xf32>
    %78 = arith.mulf %76, %77 : vector<16x64xf32>
    %c6 = arith.constant 6 : index
    %c0_26 = arith.constant 0 : index
    %c0_27 = arith.constant 0 : index
    %79 = vector.load %arg2[%c6, %c0_26, %c0_27] : memref<9x64x64xbf16, #tpu.memory_space<vmem>>, vector<1x64x64xbf16>
    %80 = vector.shape_cast %79 : vector<1x64x64xbf16> to vector<64x64xbf16>
    %81 = arith.truncf %78 : vector<16x64xf32> to vector<16x64xbf16>
    %cst_28 = arith.constant dense<0.000000e+00> : vector<16x64xf32>
    %82 = tpu.matmul %81, %80, %cst_28 {dimension_numbers = #tpu.dot_dimension_numbers<[1], [0], [0], [1], [0, 0, 1, 1], [], []>} : vector<16x64xbf16>, vector<64x64xbf16>, vector<16x64xf32> -> vector<16x64xf32>
    %83 = arith.addf %75, %82 : vector<16x64xf32>
    %84 = vector.extract_strided_slice %7 {offsets = [9, 0], sizes = [16, 64], strides = [1, 1]} : vector<26x64xf32> to vector<16x64xf32>
    %c7 = arith.constant 7 : index
    %c0_29 = arith.constant 0 : index
    %c0_30 = arith.constant 0 : index
    %85 = vector.load %arg2[%c7, %c0_29, %c0_30] : memref<9x64x64xbf16, #tpu.memory_space<vmem>>, vector<1x64x64xbf16>
    %86 = vector.shape_cast %85 : vector<1x64x64xbf16> to vector<64x64xbf16>
    %87 = arith.truncf %84 : vector<16x64xf32> to vector<16x64xbf16>
    %cst_31 = arith.constant dense<0.000000e+00> : vector<16x64xf32>
    %88 = tpu.matmul %87, %86, %cst_31 {dimension_numbers = #tpu.dot_dimension_numbers<[1], [0], [0], [1], [0, 0, 1, 1], [], []>} : vector<16x64xbf16>, vector<64x64xbf16>, vector<16x64xf32> -> vector<16x64xf32>
    %89 = arith.addf %83, %88 : vector<16x64xf32>
    %90 = vector.extract_strided_slice %7 {offsets = [10, 0], sizes = [16, 64], strides = [1, 1]} : vector<26x64xf32> to vector<16x64xf32>
    %91 = vector.broadcast %32 : vector<16x1xf32> to vector<16x64xf32>
    %92 = arith.mulf %90, %91 : vector<16x64xf32>
    %c8 = arith.constant 8 : index
    %c0_32 = arith.constant 0 : index
    %c0_33 = arith.constant 0 : index
    %93 = vector.load %arg2[%c8, %c0_32, %c0_33] : memref<9x64x64xbf16, #tpu.memory_space<vmem>>, vector<1x64x64xbf16>
    %94 = vector.shape_cast %93 : vector<1x64x64xbf16> to vector<64x64xbf16>
    %95 = arith.truncf %92 : vector<16x64xf32> to vector<16x64xbf16>
    %cst_34 = arith.constant dense<0.000000e+00> : vector<16x64xf32>
    %96 = tpu.matmul %95, %94, %cst_34 {dimension_numbers = #tpu.dot_dimension_numbers<[1], [0], [0], [1], [0, 0, 1, 1], [], []>} : vector<16x64xbf16>, vector<64x64xbf16>, vector<16x64xf32> -> vector<16x64xf32>
    %97 = arith.addf %89, %96 : vector<16x64xf32>
    %c0_35 = arith.constant 0 : index
    %c0_36 = arith.constant 0 : index
    %98 = vector.load %arg3[%c0_35, %c0_36] : memref<1x64xf32, #tpu.memory_space<vmem>>, vector<1x64xf32>
    %99 = vector.broadcast %98 : vector<1x64xf32> to vector<16x64xf32>
    %100 = arith.addf %97, %99 : vector<16x64xf32>
    %c0_37 = arith.constant 0 : index
    %c0_38 = arith.constant 0 : index
    %c0_39 = arith.constant 0 : index
    %101 = vector.load %arg4[%c0_37, %c0_38, %c0_39] : memref<1x16x64xbf16, #tpu.memory_space<vmem>>, vector<1x16x64xbf16>
    %102 = vector.shape_cast %101 : vector<1x16x64xbf16> to vector<16x64xbf16>
    %103 = arith.extf %102 : vector<16x64xbf16> to vector<16x64xf32>
    %104 = arith.addf %100, %103 : vector<16x64xf32>
    %cst_40 = arith.constant 0.707106769 : f32
    %105 = vector.broadcast %cst_40 : f32 to vector<16x64xf32>
    %106 = arith.mulf %104, %105 : vector<16x64xf32>
    %107 = arith.truncf %106 : vector<16x64xf32> to vector<16x64xbf16>
    %c0_41 = arith.constant 0 : index
    %c0_42 = arith.constant 0 : index
    %c0_43 = arith.constant 0 : index
    %108 = vector.load %arg5[%c0_41, %c0_42, %c0_43] : memref<1x16x64xbf16, #tpu.memory_space<vmem>>, vector<1x16x64xbf16>
    %109 = vector.shape_cast %108 : vector<1x16x64xbf16> to vector<16x64xbf16>
    %110 = vector.shape_cast %107 : vector<16x64xbf16> to vector<1x16x64xbf16>
    tpu.vector_store %arg5[%c0_41, %c0_42, %c0_43], %110 {strides = array<i32>} : memref<1x16x64xbf16, #tpu.memory_space<vmem>>, vector<1x16x64xbf16>,
    return
  }
  func.func @transform_0(%arg0: i32) -> (i32, i32, i32) {
    %c0_i32 = arith.constant 0 : i32
    %c0_i32_0 = arith.constant 0 : i32
    %c0_i32_1 = arith.constant 0 : i32
    return %arg0, %c0_i32, %c0_i32_0 : i32, i32, i32
  }
  func.func @transform_1(%arg0: i32) -> (i32, i32, i32) {
    %c0_i32 = arith.constant 0 : i32
    %c0_i32_0 = arith.constant 0 : i32
    %c0_i32_1 = arith.constant 0 : i32
    %c0_i32_2 = arith.constant 0 : i32
    return %c0_i32, %c0_i32_0, %c0_i32_1 : i32, i32, i32
  }
  func.func @transform_2(%arg0: i32) -> (i32, i32) {
    %c0_i32 = arith.constant 0 : i32
    %c0_i32_0 = arith.constant 0 : i32
    %c0_i32_1 = arith.constant 0 : i32
    return %c0_i32, %c0_i32_0 : i32, i32
  }
  func.func @transform_3(%arg0: i32) -> (i32, i32, i32) {
    %c0_i32 = arith.constant 0 : i32
    %c0_i32_0 = arith.constant 0 : i32
    %c0_i32_1 = arith.constant 0 : i32
    return %arg0, %c0_i32, %c0_i32_0 : i32, i32, i32
  }
  func.func @transform_4(%arg0: i32) -> (i32, i32, i32) {
    %c0_i32 = arith.constant 0 : i32
    %c0_i32_0 = arith.constant 0 : i32
    %c0_i32_1 = arith.constant 0 : i32
    return %arg0, %c0_i32, %c0_i32_0 : i32, i32, i32
  }
}

module attributes {stable_mosaic.version = 11 : i64} {
  func.func @_head_kernel(%arg0: i32, %arg1: memref<2x1024xbf16, #tpu.memory_space<vmem>>, %arg2: memref<1024x64xbf16, #tpu.memory_space<vmem>>, %arg3: memref<1x64xf32, #tpu.memory_space<vmem>>, %arg4: memref<64x1xbf16, #tpu.memory_space<vmem>>, %arg5: memref<1x1xf32, #tpu.memory_space<vmem>>, %arg6: memref<2x1xf32, #tpu.memory_space<vmem>>) attributes {dimension_semantics = [#tpu.dimension_semantics<arbitrary>], iteration_bounds = array<i64: 1>, scalar_prefetch = 0 : i64, scratch_operands = 0 : i64, tpu.core_type = #tpu.core_type<tc>, window_params = [{pipeline_mode = #tpu.pipeline_mode<synchronous>, transform_indices = @transform_0, window_bounds = array<i64: 2, 1024>}, {pipeline_mode = #tpu.pipeline_mode<synchronous>, transform_indices = @transform_1, window_bounds = array<i64: 1024, 64>}, {pipeline_mode = #tpu.pipeline_mode<synchronous>, transform_indices = @transform_2, window_bounds = array<i64: 1, 64>}, {pipeline_mode = #tpu.pipeline_mode<synchronous>, transform_indices = @transform_3, window_bounds = array<i64: 64, 1>}, {pipeline_mode = #tpu.pipeline_mode<synchronous>, transform_indices = @transform_4, window_bounds = array<i64: 1, 1>}, {pipeline_mode = #tpu.pipeline_mode<synchronous>, transform_indices = @transform_5, window_bounds = array<i64: 2, 1>}]} {
    %c0 = arith.constant 0 : index
    %c0_0 = arith.constant 0 : index
    %0 = vector.load %arg1[%c0, %c0_0] : memref<2x1024xbf16, #tpu.memory_space<vmem>>, vector<2x1024xbf16>
    %1 = arith.extf %0 : vector<2x1024xbf16> to vector<2x1024xf32>
    %cst = arith.constant 0.000000e+00 : f32
    %2 = vector.broadcast %cst : f32 to vector<2x1024xf32>
    %3 = arith.cmpf ogt, %1, %2 : vector<2x1024xf32>
    %cst_1 = arith.constant 2.000000e-01 : f32
    %4 = vector.broadcast %cst_1 : f32 to vector<2x1024xf32>
    %5 = arith.mulf %4, %1 : vector<2x1024xf32>
    %6 = arith.select %3, %1, %5 : vector<2x1024xi1>, vector<2x1024xf32>
    %7 = arith.truncf %6 : vector<2x1024xf32> to vector<2x1024xbf16>
    %c0_2 = arith.constant 0 : index
    %c0_3 = arith.constant 0 : index
    %8 = vector.load %arg2[%c0_2, %c0_3] : memref<1024x64xbf16, #tpu.memory_space<vmem>>, vector<1024x64xbf16>
    %cst_4 = arith.constant dense<0.000000e+00> : vector<2x64xf32>
    %9 = tpu.matmul %7, %8, %cst_4 {dimension_numbers = #tpu.dot_dimension_numbers<[1], [0], [0], [1], [0, 0, 1, 1], [], []>} : vector<2x1024xbf16>, vector<1024x64xbf16>, vector<2x64xf32> -> vector<2x64xf32>
    %c0_5 = arith.constant 0 : index
    %c0_6 = arith.constant 0 : index
    %10 = vector.load %arg3[%c0_5, %c0_6] : memref<1x64xf32, #tpu.memory_space<vmem>>, vector<1x64xf32>
    %11 = vector.broadcast %10 : vector<1x64xf32> to vector<2x64xf32>
    %12 = arith.addf %9, %11 : vector<2x64xf32>
    %cst_7 = arith.constant 0.000000e+00 : f32
    %13 = vector.broadcast %cst_7 : f32 to vector<2x64xf32>
    %14 = arith.cmpf ogt, %12, %13 : vector<2x64xf32>
    %cst_8 = arith.constant 2.000000e-01 : f32
    %15 = vector.broadcast %cst_8 : f32 to vector<2x64xf32>
    %16 = arith.mulf %15, %12 : vector<2x64xf32>
    %17 = arith.select %14, %12, %16 : vector<2x64xi1>, vector<2x64xf32>
    %18 = arith.truncf %17 : vector<2x64xf32> to vector<2x64xbf16>
    %c0_9 = arith.constant 0 : index
    %c0_10 = arith.constant 0 : index
    %19 = vector.load %arg4[%c0_9, %c0_10] : memref<64x1xbf16, #tpu.memory_space<vmem>>, vector<64x1xbf16>
    %cst_11 = arith.constant dense<0.000000e+00> : vector<2x1xf32>
    %20 = tpu.matmul %18, %19, %cst_11 {dimension_numbers = #tpu.dot_dimension_numbers<[1], [0], [0], [1], [0, 0, 1, 1], [], []>} : vector<2x64xbf16>, vector<64x1xbf16>, vector<2x1xf32> -> vector<2x1xf32>
    %c0_12 = arith.constant 0 : index
    %c0_13 = arith.constant 0 : index
    %21 = vector.load %arg5[%c0_12, %c0_13] : memref<1x1xf32, #tpu.memory_space<vmem>>, vector<1x1xf32>
    %22 = vector.broadcast %21 : vector<1x1xf32> to vector<2x1xf32>
    %23 = arith.addf %20, %22 : vector<2x1xf32>
    %c0_14 = arith.constant 0 : index
    %c0_15 = arith.constant 0 : index
    %24 = vector.load %arg6[%c0_14, %c0_15] : memref<2x1xf32, #tpu.memory_space<vmem>>, vector<2x1xf32>
    tpu.vector_store %arg6[%c0_14, %c0_15], %23 {strides = array<i32>} : memref<2x1xf32, #tpu.memory_space<vmem>>, vector<2x1xf32>,
    return
  }
  func.func @transform_0(%arg0: i32) -> (i32, i32) {
    %c0_i32 = arith.constant 0 : i32
    %c0_i32_0 = arith.constant 0 : i32
    %c0_i32_1 = arith.constant 0 : i32
    return %c0_i32, %c0_i32_0 : i32, i32
  }
  func.func @transform_1(%arg0: i32) -> (i32, i32) {
    %c0_i32 = arith.constant 0 : i32
    %c0_i32_0 = arith.constant 0 : i32
    %c0_i32_1 = arith.constant 0 : i32
    return %c0_i32, %c0_i32_0 : i32, i32
  }
  func.func @transform_2(%arg0: i32) -> (i32, i32) {
    %c0_i32 = arith.constant 0 : i32
    %c0_i32_0 = arith.constant 0 : i32
    %c0_i32_1 = arith.constant 0 : i32
    return %c0_i32, %c0_i32_0 : i32, i32
  }
  func.func @transform_3(%arg0: i32) -> (i32, i32) {
    %c0_i32 = arith.constant 0 : i32
    %c0_i32_0 = arith.constant 0 : i32
    %c0_i32_1 = arith.constant 0 : i32
    return %c0_i32, %c0_i32_0 : i32, i32
  }
  func.func @transform_4(%arg0: i32) -> (i32, i32) {
    %c0_i32 = arith.constant 0 : i32
    %c0_i32_0 = arith.constant 0 : i32
    %c0_i32_1 = arith.constant 0 : i32
    return %c0_i32, %c0_i32_0 : i32, i32
  }
  func.func @transform_5(%arg0: i32) -> (i32, i32) {
    %c0_i32 = arith.constant 0 : i32
    %c0_i32_0 = arith.constant 0 : i32
    %c0_i32_1 = arith.constant 0 : i32
    return %c0_i32, %c0_i32_0 : i32, i32
  }
}

</mosaic_0001>

<bundles_post_ra>
// kernel: star_discriminator_forward.8
= control target key start
LH: loop header
LB: loop body
LE: loop exit
PB: predicated region body
PF: predicated region fallthrough
CT: control target
= control target key end

     0   :  { %s1661_s15 = smov 0   ;;  %s2240_s0 = inlined_call_operand.vmem [shape: bf16[2,82,32], index: 0, kind: input, shape index: {}]   ;;  %s2241_s1 = inlined_call_operand.vmem [shape: bf16[9,32,64], index: 1, kind: input, shape index: {}]   ;;  %s2242_s2 = inlined_call_operand.vmem [shape: f32[1,64], index: 2, kind: input, shape index: {}]   ;;  %s2243_s3 = inlined_call_operand.vmem [shape: bf16[2,64,64], index: 3, kind: input, shape index: {}]   ;;  %s2244_s4 = inlined_call_operand.vmem [shape: bf16[2,64,64], index: 4, kind: output, shape index: {}]  }
   0x1 LB: > { %s1379_s16 = sadd.s32 4294967295, %s1633_s15   ;;  %p1383_p0 = scmp.ge.s32.totalorder %s1633_s15, 1  ;;  %s1633_s15 = sphi %s1661_s15, %s14_s15  }
   0x2   : > { %p172_p1 = scmp.lt.s32.totalorder %s1633_s15, 3 }
   0x4   : > { %p173_p2 = pnand %p1383_p0, %p172_p1 }
   0x5   : > { %p203_p3 = scmp.lt.s32.totalorder (!%p173_p2), %s1379_s16, 1 }
   0x6   : > { %176 = sbr.rel (%p173_p2) target bundleno = 316 (0x13c), region = 36 }
   0xb   : > { %v1552_v0 = vld [vmem:[%s2241_s1 + $0x18] sm:$0xff]  ;;  %v274_v1 = vlaneseq  ;;  %v1551_v2 = vld [vmem:[%s2241_s1 + $0x10] sm:$0xff]  ;;  %s2256_s16 = smov (!%p203_p3, %s1379_s16), 1  ;;  %v1554_v4 = vld [vmem:[%s2241_s1 + $0x28] sm:$0xff]  ;;  %vm453_vm5 = vsmask.f32 7424 }
   0xc   : > { %1610 = vmatpush.bf16.msra.mxu1 %v1552_v0  ;;  %1611 = vmatpush.bf16.msra.mxu2 %v1552_v0  ;;  %s1616_s21 = smul.u32 44, %s2256_s16  ;;  %v1556_v5 = vld [vmem:[%s2241_s1 + $0x38] sm:$0xff]  ;;  %v1550_v9 = vld [vmem:[%s2241_s1 + $0x8] sm:$0xff]  ;;  %v1553_v11 = vld [vmem:[%s2241_s1 + $0x20] sm:$0xff]  ;;  %vm502_vm6 = vcmask 261120   ;;  %v1635_v62 = vmov 0.0  }
   0xd   : > { %v1677_v3 = vshrl.u32 %v274_v1, 7  ;;  %1612 = vmatpush.bf16.msra.mxu3 %v1552_v0  ;;  %521 = vmatpush.bf16.msra.mxu0 %v1552_v0  ;;  %v1558_v10 = vld [vmem:[%s2241_s1 + $0x48] sm:$0xff]  ;;  %v1555_v24 = vld [vmem:[%s2241_s1 + $0x30] sm:$0xff]  ;;  %v1549_v30 = vld [vmem:[%s2241_s1] sm:$0xff] }
   0xe   : > { %s1702_s6 = scalar_lea.vmem %s2240_s0, %s1616_s21  ;;  %v1557_v31 = vld [vmem:[%s2241_s1 + $0x40] sm:$0xff] }
   0xf   : > { %v1687_v6 = vadd.s32 8, %v1677_v3  ;;  %v287_v7 = vand.u32 7, %v1677_v3  ;;  %v1691_v8 = vadd.s32 16, %v1677_v3  ;;  %v1603_v12 = vld [vmem:[%s1702_s6 + $0x8] sm:$0xff]   ;;  %v1604_v13 = vld [vmem:[%s1702_s6 + $0x10] sm:$0xff]   ;;  %v1605_v14 = vld [vmem:[%s1702_s6 + $0x18] sm:$0xff]  }
  0x10   : > { %1613 = vmatpush.bf16.msra.mxu1 %v1551_v2  ;;  %1614 = vmatpush.bf16.msra.mxu2 %v1551_v2  ;;  %v1712_v16 = vadd.s32 24, %v1677_v3  ;;  %v1573_v18 = vunpack.c.l.bf16 %v1603_v12  ;;  %v1574_v19 = vunpack.c.h.bf16 %v1603_v12  ;;  %v1577_v20 = vunpack.c.l.bf16 %v1604_v13  ;;  %v1716_v22 = vld [vmem:[%s1702_s6 + $0x20] sm:$0xff]  }
  0x11   : > { %1615 = vmatpush.bf16.msra.mxu3 %v1551_v2  ;;  %522 = vmatpush.bf16.msra.mxu0 %v1551_v2  ;;  %v294_v15 = vand.u32 7, %v1687_v6  ;;  %v301_v17 = vand.u32 7, %v1691_v8  ;;  %v1578_v21 = vunpack.c.h.bf16 %v1604_v13  ;;  %v1568_v23 = vld [vmem:[%s1702_s6] sm:$0xff]   ;;  %vm1724_vm0 = vcmp.ne.s32.totalorder %v287_v7, 7  ;;  %v1562_v13 = vld [vmem:[%s2241_s1 + $0x68] sm:$0xff] }
  0x12   : > { %v1581_v26 = vunpack.c.l.bf16 %v1605_v14  ;;  %v1582_v27 = vunpack.c.h.bf16 %v1605_v14  ;;  %v1585_v28 = vunpack.c.l.bf16 %v1716_v22  ;;  %v1569_v29 = vunpack.c.l.bf16 %v1568_v23 }
  0x13   : > { %vm243_vm1 = vcmp.gt.f32.partialorder %v1573_v18, 0.0  ;;  %vm244_vm2 = vcmp.gt.f32.partialorder %v1574_v19, 0.0  ;;  %vm245_vm3 = vcmp.gt.f32.partialorder %v1577_v20, 0.0  ;;  %vm246_vm4 = vcmp.gt.f32.partialorder %v1578_v21, 0.0 }
  0x14   : > { %694 = vmatpush.bf16.msrb.mxu2 %v1554_v4  ;;  %574 = vmatpush.bf16.msrb.mxu1 %v1550_v9  ;;  %v254_v32 = vmul.f32 0.2, %v1573_v18  ;;  %v255_v33 = vmul.f32 0.2, %v1574_v19  ;;  %v256_v34 = vmul.f32 0.2, %v1577_v20  ;;  %v1570_v35 = vunpack.c.h.bf16 %v1568_v23 }
  0x15   : > { %772 = vmatpush.bf16.msrb.mxu3 %v1556_v5  ;;  %879 = vmatpush.bf16.msrb.mxu0 %v1558_v10  ;;  %v257_v36 = vmul.f32 0.2, %v1578_v21  ;;  %vm247_vm7 = vcmp.gt.f32.partialorder %v1581_v26, 0.0  ;;  %vm248_vm8 = vcmp.gt.f32.partialorder %v1582_v27, 0.0  ;;  %v258_v37 = vmul.f32 0.2, %v1581_v26 }
  0x16   : > { %v1736_v38 = vsel %vm243_vm1, %v1573_v18, %v254_v32  ;;  %v1739_v39 = vsel %vm244_vm2, %v1574_v19, %v255_v33  ;;  %v1742_v40 = vsel %vm245_vm3, %v1577_v20, %v256_v34  ;;  %v259_v41 = vmul.f32 0.2, %v1582_v27  ;;  %v1560_v5 = vld [vmem:[%s2241_s1 + $0x58] sm:$0xff] }
  0x17   : > { %v1745_v42 = vsel %vm246_vm4, %v1578_v21, %v257_v36  ;;  %v449_v43 = vpack.c.bf16 %v1739_v39, %v1736_v38  ;;  %v1749_v44 = vsel %vm247_vm7, %v1581_v26, %v258_v37  ;;  %vm249_vm9 = vcmp.gt.f32.partialorder %v1585_v28, 0.0  ;;  %v1564_v20 = vld [vmem:[%s2241_s1 + $0x78] sm:$0xff] }
  0x18   : > { %695 = vmatpush.bf16.msrb.mxu2 %v1553_v11  ;;  %575 = vmatpush.bf16.msrb.mxu1 %v1549_v30  ;;  %v450_v45 = vpack.c.bf16 %v1745_v42, %v1742_v40  ;;  %v1753_v46 = vsel %vm248_vm8, %v1582_v27, %v259_v41  ;;  %v260_v47 = vmul.f32 0.2, %v1585_v28  ;;  %vm241_vm10 = vcmp.gt.f32.partialorder %v1569_v29, 0.0 }
  0x19   : > { %773 = vmatpush.bf16.msrb.mxu3 %v1555_v24  ;;  %880 = vmatpush.bf16.msrb.mxu0 %v1557_v31  ;;  %v462_v48 = vshll.u32 %v449_v43, 16  ;;  %v466_v49 = vshrl.u32 %v449_v43, 16  ;;  %v451_v50 = vpack.c.bf16 %v1753_v46, %v1749_v44  ;;  %vm242_vm11 = vcmp.gt.f32.partialorder %v1570_v35, 0.0 }
  0x1a   : > { %v470_v51 = vshll.u32 %v450_v45, 16  ;;  %v474_v52 = vshrl.u32 %v450_v45, 16  ;;  %v1757_v53 = vsel %vm249_vm9, %v1585_v28, %v260_v47  ;;  %v252_v54 = vmul.f32 0.2, %v1569_v29  ;;  %v1566_v45 = vld [vmem:[%s2241_s1 + $0x88] sm:$0xff] }
  0x1b   : > { %v464_v55 = vrot.slane %v462_v48, 1  ;;  %v478_v56 = vshll.u32 %v451_v50, 16  ;;  %v452_v57 = vpack.c.bf16 %v1757_v53, %v1757_v53  ;;  %v482_v58 = vshrl.u32 %v451_v50, 16 }
  0x1c   : > { %v472_v59 = vrot.slane %v470_v51, 1  ;;  %v253_v60 = vmul.f32 0.2, %v1570_v35  ;;  %v263_v61 = vsel %vm241_vm10, %v1569_v29, %v252_v54  ;;  %v1397_v63 = vsel %vm1724_vm0, 1.0, %v1635_v62 }
  0x1d   : > { %v468_v0 = vor.u32 %v466_v49, %v464_v55  ;;  %v480_v1 = vrot.slane %v478_v56, 1  ;;  %v486_v2 = vshll.u32 %v452_v57, 16  ;;  %v308_v4 = vand.u32 7, %v1712_v16 }
  0x1e   : > { %v476_v9 = vor.u32 %v474_v52, %v472_v59  ;;  %v1769_v10 = vsel %vm242_vm11, %v1570_v35, %v253_v60  ;;  %vm1773_vm12 = vcmp.ne.s32.totalorder %v287_v7, 0  ;;  %vm1779_vm13 = vcmp.ne.s32.totalorder %v294_v15, 7 }
  0x1f   : > { %v1787_v14 = vsel %vm453_vm5, %v468_v0, %v472_v59  ;;  %v1789_v18 = vor.u32 %v482_v58, %v480_v1  ;;  %v488_v19 = vrot.slane %v486_v2, 1  ;;  %v448_v7 = vpack.c.bf16 %v1769_v10, %v263_v61 }
  0x20   : > { %1418 = vmatmul.msk.bf16.vlgmr.msra.gmra.mxu1 %vm502_vm6, %v1787_v14  ;;  %v1798_v21 = vsel %vm453_vm5, %v476_v9, %v480_v1  ;;  %vm1802_vm14 = vcmp.ne.s32.totalorder %v294_v15, 0  ;;  %v1806_v24 = vrot.slane %v1397_v63, 6  ;;  %vm405_vm15 = vcmp.ne.s32.totalorder %v301_v17, 7 }
  0x21   : > { %1419 = vmatmul.msk.bf16.vlgmr.msra.gmra.mxu2 %vm502_vm6, %v1798_v21  ;;  %v489_v25 = vsel %vm453_vm5, %v1789_v18, %v488_v19  ;;  %v455_v26 = vshrl.u32 %v448_v7, 16  ;;  %v457_v27 = vshll.u32 %v448_v7, 16  ;;  %vm406_vm0 = vcmp.ne.s32.totalorder %v308_v4, 7  ;;  %973 = vmatpush.bf16.msra.mxu1 %v1560_v5 }
  0x22   : > { %1420 = vmatmul.msk.bf16.vlgmr.msra.gmra.mxu3 %vm502_vm6, %v489_v25  ;;  %v1398_v6 = vsel %vm1779_vm13, 1.0, %v1635_v62  ;;  %v1399_v15 = vsel %vm405_vm15, 1.0, %v1635_v62  ;;  %v1822_v28 = vsel %vm406_vm0, 1.0, %v1635_v62  ;;  %vm605_vm1 = vcmask 1041408   ;;  %1051 = vmatpush.bf16.msra.mxu2 %v1562_v13 }
  0x23   : > { %v459_v29 = vrot.slane %v457_v27, 1  ;;  %v607_v30 = vrot.slane %v1398_v6, 6  ;;  %v609_v31 = vrot.slane %v1399_v15, 6  ;;  %v611_v32 = vrot.slane %v1822_v28, 6  ;;  %1126 = vmatpush.bf16.msra.mxu3 %v1564_v20 }
  0x24   : > { %v1828_v33 = vsel %vm1773_vm12, 1.0, %v1635_v62  ;;  %v1833_v34 = vsel %vm1802_vm14, 1.0, %v1635_v62  ;;  %v630_v35 = vmul.f32 %v1806_v24, %v263_v61  ;;  %v808_v51 = vpack.c.bf16 %v1736_v38, %v1769_v10 }
  0x25   : > { %v460_v36 = vor.u32 %v459_v29, %v455_v26  ;;  %v1838_v37 = vsel %vm605_vm1, %v1806_v24, %v607_v30  ;;  %v1841_v41 = vsel %vm605_vm1, %v607_v30, %v609_v31  ;;  %v1844_v43 = vsel %vm605_vm1, %v609_v31, %v611_v32 }
  0x26   : > { %v631_v47 = vmul.f32 %v1838_v37, %v1769_v10  ;;  %v632_v48 = vmul.f32 %v1841_v41, %v1736_v38  ;;  %v633_v49 = vmul.f32 %v1844_v43, %v1739_v39  ;;  %v427_v52 = vmul.f32 %v1828_v33, %v263_v61 }
  0x27   : > { %v465_v50 = vsel %vm453_vm5, %v460_v36, %v464_v55  ;;  %v428_v54 = vmul.f32 %v1833_v34, %v1769_v10  ;;  %v1864_v58 = vpack.c.bf16 %v1742_v40, %v1739_v39  ;;  %v816_v59 = vshll.u32 %v808_v51, 16 }
  0x28   : > { %1417 = vmatmul.msk.bf16.vlgmr.msra.gmra.mxu0 %vm502_vm6, %v465_v50  ;;  %v644_v56 = vpack.c.bf16 %v631_v47, %v630_v35  ;;  %v645_v57 = vpack.c.bf16 %v633_v49, %v632_v48  ;;  %v725_v63 = vmul.f32 %v1828_v33, %v1769_v10  ;;  %v726_v61 = vmul.f32 %v1833_v34, %v1736_v38  ;;  %v1563_v50 = vld [vmem:[%s2241_s1 + $0x70] sm:$0xff] }
  0x29   : > { %1220 = vmatpush.bf16.msra.mxu0 %v1566_v45  ;;  %vm654_vm2 = vcmask 1046528   ;;  %v1873_v0 = vadd.s32 32, %v1677_v3  ;;  %v1876_v1 = vadd.s32 40, %v1677_v3  ;;  %v439_v2 = vpack.c.bf16 %v428_v54, %v427_v52  ;;  %v1565_v52 = vld [vmem:[%s2241_s1 + $0x80] sm:$0xff]  ;;  %1127 = vmatpush.bf16.msra.mxu3 %v1563_v50 }
  0x2a   : > { %v655_v60 = vrot.slane %v644_v56, 1  ;;  %v1866_v55 = vrot.slane %v645_v57, 1  ;;  %v814_v5 = vshrl.u32 %v808_v51, 16  ;;  %v818_v9 = vrot.slane %v816_v59, 1  ;;  %v1559_v51 = vld [vmem:[%s2241_s1 + $0x50] sm:$0xff] }
  0x2b   : > { %v821_v11 = vshll.u32 %v1864_v58, 16  ;;  %v315_v12 = vand.u32 7, %v1873_v0  ;;  %v322_v13 = vand.u32 7, %v1876_v1  ;;  %v738_v7 = vpack.c.bf16 %v726_v61, %v725_v63  ;;  %974 = vmatpush.bf16.msra.mxu1 %v1559_v51 }
  0x2c   : > { %v657_v19 = vsel %vm654_vm2, %v655_v60, %v1866_v55  ;;  %v1884_v20 = vadd.s32 48, %v1677_v3  ;;  %v1887_v23 = vadd.s32 56, %v1677_v3  ;;  %vm381_vm7 = vcmp.ne.s32.totalorder %v301_v17, 0  ;;  %v1561_v17 = vld [vmem:[%s2241_s1 + $0x60] sm:$0xff] }
  0x2d   : > { %vm407_vm3 = vcmp.ne.s32.totalorder %v315_v12, 7  ;;  %vm408_vm4 = vcmp.ne.s32.totalorder %v322_v13, 7  ;;  %v819_v27 = vor.u32 %v818_v9, %v814_v5  ;;  %v823_v6 = vrot.slane %v821_v11, 1  ;;  %1052 = vmatpush.bf16.msra.mxu2 %v1561_v17  ;;  %1221 = vmatpush.bf16.msra.mxu0 %v1565_v52 }
  0x2e   : > { %v1401_v25 = vsel %vm407_vm3, 1.0, %v1635_v62  ;;  %v1402_v26 = vsel %vm408_vm4, 1.0, %v1635_v62  ;;  %vm382_vm8 = vcmp.ne.s32.totalorder %v308_v4, 0  ;;  %v329_v3 = vand.u32 7, %v1884_v20 }
  0x2f   : > { %v613_v15 = vrot.slane %v1401_v25, 6  ;;  %v615_v28 = vrot.slane %v1402_v26, 6  ;;  %v336_v8 = vand.u32 7, %v1887_v23  ;;  %v1910_v31 = vsel %vm381_vm7, 1.0, %v1635_v62 }
  0x30   : > { %1429 = vmatmul.msk.bf16.vlgmr.msrb.gmra.mxu1 %vm502_vm6, %v439_v2  ;;  %v824_v35 = vsel %vm453_vm5, %v819_v27, %v823_v6  ;;  %v1918_v36 = vsel %vm382_vm8, 1.0, %v1635_v62  ;;  %vm409_vm9 = vcmp.ne.s32.totalorder %v329_v3, 7  ;;  %v429_v45 = vmul.f32 %v1910_v31, %v1736_v38 }
  0x31   : > { %1445 = vmatmul.msk.bf16.vlgmr.msrb.gmra.mxu2 %vm502_vm6, %v657_v19  ;;  %v1904_v29 = vsel %vm605_vm1, %v611_v32, %v613_v15  ;;  %v1907_v30 = vsel %vm605_vm1, %v613_v15, %v615_v28  ;;  %vm410_vm10 = vcmp.ne.s32.totalorder %v336_v8, 7  ;;  %v430_v47 = vmul.f32 %v1918_v36, %v1739_v39 }
  0x32   : > { %1461 = vmatmul.msk.bf16.vlgmr.msrb.gmra.mxu3 %vm502_vm6, %v738_v7  ;;  %v634_v16 = vmul.f32 %v1904_v29, %v1742_v40  ;;  %v635_v4 = vmul.f32 %v1907_v30, %v1745_v42  ;;  %v1403_v48 = vsel %vm409_vm9, 1.0, %v1635_v62  ;;  %v1404_v49 = vsel %vm410_vm10, 1.0, %v1635_v62 }
  0x33   : > { %v810_v54 = vpack.c.bf16 %v1749_v44, %v1745_v42  ;;  %v727_v57 = vmul.f32 %v1910_v31, %v1739_v39  ;;  %v728_v59 = vmul.f32 %v1918_v36, %v1742_v40  ;;  %v617_v60 = vrot.slane %v1403_v48, 6 }
  0x34   : > { %v646_v32 = vpack.c.bf16 %v635_v4, %v634_v16  ;;  %v1946_v63 = vrot.slane %v1404_v49, 6  ;;  %v440_v61 = vpack.c.bf16 %v430_v47, %v429_v45  ;;  %v825_v0 = vshrl.u32 %v1864_v58, 16 }
  0x35   : > { %v829_v1 = vshll.u32 %v810_v54, 16  ;;  %v739_v5 = vpack.c.bf16 %v728_v59, %v727_v57  ;;  %v1952_v9 = vsel %vm605_vm1, %v615_v28, %v617_v60  ;;  %vm383_vm11 = vcmp.ne.s32.totalorder %v315_v12, 0 }
  0x36   : > { %v658_v56 = vrot.slane %v646_v32, 1  ;;  %v1956_v11 = vsel %vm605_vm1, %v617_v60, %v1946_v63  ;;  %v827_v19 = vor.u32 %v825_v0, %v823_v6  ;;  %vm384_vm12 = vcmp.ne.s32.totalorder %v322_v13, 0 }
  0x37   : > { %v831_v7 = vrot.slane %v829_v1, 1  ;;  %v636_v58 = vmul.f32 %v1952_v9, %v1749_v44  ;;  %v1966_v25 = vsel %vm383_vm11, 1.0, %v1635_v62  ;;  %v1969_v26 = vsel %vm384_vm12, 1.0, %v1635_v62 }
  0x38   : > { %1477 = vmatmul.msk.bf16.vlgmr.msrb.gmra.mxu0 %vm502_vm6, %v824_v35  ;;  %v659_v2 = vsel %vm654_vm2, %v1866_v55, %v658_v56  ;;  %v637_v55 = vmul.f32 %v1956_v11, %v1753_v46  ;;  %v431_v12 = vmul.f32 %v1966_v25, %v1742_v40  ;;  %v432_v13 = vmul.f32 %v1969_v26, %v1745_v42 }
  0x39   : > { %v832_v27 = vsel %vm453_vm5, %v827_v19, %v831_v7  ;;  %v1978_v15 = vpack.c.bf16 %v1757_v53, %v1753_v46  ;;  %v910_v28 = vmul.f32 %v1806_v24, %v1769_v10  ;;  %v911_v17 = vmul.f32 %v1838_v37, %v1736_v38 }
  0x3a   : > { %v647_v6 = vpack.c.bf16 %v637_v55, %v636_v58  ;;  %v912_v16 = vmul.f32 %v1841_v41, %v1739_v39  ;;  %v913_v4 = vmul.f32 %v1844_v43, %v1742_v40  ;;  %v729_v35 = vmul.f32 %v1966_v25, %v1745_v42 }
  0x3b   : > { %v730_v45 = vmul.f32 %v1969_v26, %v1749_v44  ;;  %v924_v47 = vpack.c.bf16 %v911_v17, %v910_v28  ;;  %v441_v49 = vpack.c.bf16 %v432_v13, %v431_v12  ;;  %v833_v10 = vshrl.u32 %v810_v54, 16 }
  0x3c   : > { %v660_v32 = vrot.slane %v647_v6, 1  ;;  %v925_v48 = vpack.c.bf16 %v913_v4, %v912_v16  ;;  %v837_v50 = vshll.u32 %v1978_v15, 16  ;;  %v1586_v60 = vunpack.c.h.bf16 %v1716_v22 }
  0x3d   : > { %v934_v51 = vrot.slane %v924_v47, 1  ;;  %v740_v59 = vpack.c.bf16 %v730_v45, %v729_v35  ;;  %vm2002_vm13 = vcmp.ne.s32.totalorder %v329_v3, 0  ;;  %v835_v54 = vor.u32 %v833_v10, %v831_v7 }
  0x3e   : > { %v1994_v52 = vrot.slane %v925_v48, 1  ;;  %v661_v57 = vsel %vm654_vm2, %v658_v56, %v660_v32  ;;  %v839_v1 = vrot.slane %v837_v50, 1  ;;  %v1005_v56 = vmul.f32 %v1833_v34, %v1739_v39 }
  0x3f   : > { %v1157_v22 = vmul.f32 %v1806_v24, %v1736_v38  ;;  %v1158_v20 = vmul.f32 %v1838_v37, %v1739_v39  ;;  %v1159_v3 = vmul.f32 %v1841_v41, %v1742_v40  ;;  %vm386_vm14 = vcmp.ne.s32.totalorder %v336_v8, 0 }
  0x40   : > { %1430 = vmatmul.msk.bf16.gmra.mxu1 %vm502_vm6, %v440_v61  ;;  %v936_v61 = vsel %vm654_vm2, %v934_v51, %v1994_v52  ;;  %v261_v34 = vmul.f32 0.2, %v1586_v60  ;;  %vm250_vm15 = vcmp.gt.f32.partialorder %v1586_v60, 0.0  ;;  %v2028_v39 = vsel %vm2002_vm13, 1.0, %v1635_v62 }
  0x41   : > { %1446 = vmatmul.msk.bf16.gmra.mxu2 %vm502_vm6, %v659_v2  ;;  %v1004_v2 = vmul.f32 %v1828_v33, %v1736_v38  ;;  %v638_v33 = vmul.f32 %v1946_v63, %v1757_v53  ;;  %v1171_v38 = vpack.c.bf16 %v1158_v20, %v1157_v22  ;;  %v840_v37 = vsel %vm453_vm5, %v835_v54, %v839_v1  ;;  %v229_v22 = vld [vmem:[%s1702_s6 + $0x28] sm:$0x1]  ;;  %s1547_s6 = sshll.u32 %s2256_s16, 5 }
  0x42   : > { %1462 = vmatmul.msk.bf16.gmra.mxu3 %vm502_vm6, %v739_v5  ;;  %v1160_v5 = vmul.f32 %v1844_v43, %v1745_v42  ;;  %v2032_v41 = vsel %vm386_vm14, 1.0, %v1635_v62  ;;  %v2034_v7 = vsel %vm250_vm15, %v1586_v60, %v261_v34  ;;  %v433_v55 = vmul.f32 %v2028_v39, %v1749_v44  ;;  %s2171_s10 = scalar_lea.vmem %s2243_s3, %s1547_s6  ;;  %s2187_s17 = scalar_lea.vmem %s2244_s4, %s1547_s6 }
  0x43   : > { %v1017_v19 = vpack.c.bf16 %v1005_v56, %v1004_v2  ;;  %v1181_v43 = vrot.slane %v1171_v38, 1  ;;  %v648_v8 = vpack.c.bf16 %v638_v33, %v638_v33  ;;  %v812_v6 = vpack.c.bf16 %v2034_v7, %v2034_v7 }
  0x44   : > { %v1172_v24 = vpack.c.bf16 %v1160_v5, %v1159_v3  ;;  %v731_v12 = vmul.f32 %v2028_v39, %v1753_v46  ;;  %v732_v13 = vmul.f32 %v2032_v41, %v1757_v53  ;;  %v841_v17 = vshrl.u32 %v1978_v15, 16 }
  0x45   : > { %v662_v62 = vrot.slane %v648_v8, 1  ;;  %v845_v16 = vshll.u32 %v812_v6, 16  ;;  %v1006_v45 = vmul.f32 %v1910_v31, %v1742_v40  ;;  %v1007_v47 = vmul.f32 %v1918_v36, %v1745_v42 }
  0x46   : > { %v1182_v23 = vrot.slane %v1172_v24, 1  ;;  %v741_v35 = vpack.c.bf16 %v732_v13, %v731_v12  ;;  %v843_v48 = vor.u32 %v841_v17, %v839_v1  ;;  %v1161_v10 = vmul.f32 %v1904_v29, %v1749_v44 }
  0x47   : > { %v663_v4 = vsel %vm654_vm2, %v660_v32, %v662_v62  ;;  %v1162_v15 = vmul.f32 %v1907_v30, %v1753_v46  ;;  %v1018_v32 = vpack.c.bf16 %v1007_v47, %v1006_v45  ;;  %v1008_v36 = vmul.f32 %v1966_v25, %v1749_v44 }
  0x48   : > { %1478 = vmatmul.msk.bf16.gmra.mxu0 %vm502_vm6, %v832_v27  ;;  %v1183_v58 = vsel %vm654_vm2, %v1181_v43, %v1182_v23  ;;  %v434_v27 = vmul.f32 %v2032_v41, %v1753_v46  ;;  %v915_v60 = vmul.f32 %v1907_v30, %v1749_v44  ;;  %v1163_v0 = vmul.f32 %v1952_v9, %v1757_v53 }
  0x49   : > { %v1173_v50 = vpack.c.bf16 %v1162_v15, %v1161_v10  ;;  %v1087_v30 = vpack.c.bf16 %v2034_v7, %v1757_v53  ;;  %v1011_v43 = vmul.f32 %v2032_v41, %v2034_v7 }
  0x4a   : > { %v442_v28 = vpack.c.bf16 %v434_v27, %v433_v55 }
  0x4b   : > { %v1184_v40 = vrot.slane %v1173_v50, 1  ;;  %v1090_v20 = vshll.u32 %v1087_v30, 16  ;;  %v1094_v38 = vshrl.u32 %v1087_v30, 16 }
  0x4d   : > { %v1185_v31 = vsel %vm654_vm2, %v1182_v23, %v1184_v40  ;;  %v1092_v5 = vrot.slane %v1090_v20, 1 }
  0x4f   : > { %v1096_v8 = vor.u32 %v1094_v38, %v1092_v5 }
  0x50   : > { %1431 = vmatmul.msk.bf16.gmra.mxu1 %vm502_vm6, %v441_v49  ;;  %v847_v49 = vrot.slane %v845_v16, 1 }
  0x51   : > { %1447 = vmatmul.msk.bf16.gmra.mxu2 %vm502_vm6, %v661_v57  ;;  %v1009_v57 = vmul.f32 %v1969_v26, %v1753_v46 }
  0x52   : > { %1463 = vmatmul.msk.bf16.gmra.mxu3 %vm502_vm6, %v740_v59  ;;  %v848_v51 = vsel %vm453_vm5, %v843_v48, %v847_v49  ;;  %v914_v59 = vmul.f32 %v1904_v29, %v1745_v42  ;;  %v917_v29 = vmul.f32 %v1956_v11, %v1757_v53 }
  0x53   : > { %v1019_v25 = vpack.c.bf16 %v1009_v57, %v1008_v36 }
  0x54   : > { %v926_v54 = vpack.c.bf16 %v915_v60, %v914_v59 }
  0x56   : > { %v937_v42 = vrot.slane %v926_v54, 1 }
  0x58   : > { %1479 = vmatmul.msk.bf16.gmra.mxu0 %vm502_vm6, %v840_v37  ;;  %v938_v44 = vsel %vm654_vm2, %v1994_v52, %v937_v42  ;;  %v240_v52 = vunpack.c.l.bf16 %v229_v22 }
  0x5a   : > { %v262_v33 = vmul.f32 0.2, %v240_v52  ;;  %vm251_vm0 = vcmp.gt.f32.partialorder %v240_v52, 0.0 }
  0x60   : > { %1432 = vmatmul.msk.bf16.gmra.mxu1 %vm502_vm6, %v442_v28 }
  0x61   : > { %1448 = vmatmul.msk.bf16.gmra.mxu2 %vm502_vm6, %v663_v4 }
  0x62   : > { %1464 = vmatmul.msk.bf16.gmra.mxu3 %vm502_vm6, %v741_v35 }
  0x68   : > { %1480 = vmatmul.msk.bf16.gmra.mxu0 %vm502_vm6, %v848_v51 }
  0x70   : > { %1493 = vmatmul.msk.bf16.vlgmr.msra.gmra.mxu1 %vm502_vm6, %v936_v61  ;;  %v1164_v61 = vmul.f32 %v1956_v11, %v2034_v7  ;;  %v918_v11 = vmul.f32 %v1946_v63, %v2034_v7 }
  0x71   : > { %1509 = vmatmul.msk.bf16.vlgmr.msra.gmra.mxu2 %vm502_vm6, %v1017_v19 }
  0x72   : > { %1525 = vmatmul.msk.bf16.vlgmr.msra.gmra.mxu3 %vm502_vm6, %v1787_v14  ;;  %v1174_v26 = vpack.c.bf16 %v1164_v61, %v1163_v0  ;;  %v916_v14 = vmul.f32 %v1952_v9, %v1753_v46  ;;  %v1093_v9 = vsel %vm453_vm5, %v1789_v18, %v1092_v5  ;;  %v928_v19 = vpack.c.bf16 %v918_v11, %v918_v11 }
  0x73   : > { %v1010_v18 = vmul.f32 %v2028_v39, %v1757_v53 }
  0x74   : > { %v1186_v1 = vrot.slane %v1174_v26, 1  ;;  %v927_v56 = vpack.c.bf16 %v917_v29, %v916_v14  ;;  %v941_v37 = vrot.slane %v928_v19, 1 }
  0x75   : > { %v1020_v6 = vpack.c.bf16 %v1011_v43, %v1010_v18  ;;  %v1588_v43 = vld [vmem:[%s2171_s10] sm:$0xff]  }
  0x76   : > { %v1187_v2 = vsel %vm654_vm2, %v1184_v40, %v1186_v1  ;;  %v939_v3 = vrot.slane %v927_v56, 1 }
  0x78   : > { %1541 = vmatmul.msk.bf16.vlgmr.msra.gmra.mxu0 %vm502_vm6, %v1183_v58  ;;  %v940_v46 = vsel %vm654_vm2, %v937_v42, %v939_v3  ;;  %v942_v27 = vsel %vm654_vm2, %v939_v3, %v941_v37 }
  0x80   : > { %1494 = vmatmul.msk.bf16.gmra.mxu1 %vm502_vm6, %v938_v44 }
  0x81   : > { %1510 = vmatmul.msk.bf16.gmra.mxu2 %vm502_vm6, %v1018_v32 }
  0x82   : > { %1526 = vmatmul.msk.bf16.gmra.mxu3 %vm502_vm6, %v1798_v21  ;;  %v273_v21 = vsel %vm251_vm0, %v240_v52, %v262_v33 }
  0x83   : > { %v1088_v34 = vpack.c.bf16 %v273_v21, %v273_v21  ;;  %v1165_v23 = vmul.f32 %v1946_v63, %v273_v21 }
  0x85   : > { %v1098_v24 = vshll.u32 %v1088_v34, 16  ;;  %v1175_v62 = vpack.c.bf16 %v1165_v23, %v1165_v23 }
  0x87   : > { %v1100_v58 = vrot.slane %v1098_v24, 1  ;;  %v1188_v53 = vrot.slane %v1175_v62, 1  ;;  %v1589_v62 = vunpack.c.l.bf16 %v1588_v43 }
  0x88   : > { %1542 = vmatmul.msk.bf16.gmra.mxu0 %vm502_vm6, %v1185_v31 }
  0x89   : > { %v1101_v12 = vsel %vm453_vm5, %v1096_v8, %v1100_v58  ;;  %v1189_v41 = vsel %vm654_vm2, %v1186_v1, %v1188_v53  ;;  %v2178_v58 = vld [vmem:[%s2242_s2] ss:$0 sm:$0xff]  ;;  %vm1303_vm5 = vcmask 519168  }
  0x90   : > { %1495 = vmatmul.msk.bf16.gmra.mxu1 %vm502_vm6, %v940_v46 }
  0x91   : > { %1511 = vmatmul.msk.bf16.gmra.mxu2 %vm502_vm6, %v1019_v25 }
  0x92   : > { %1527 = vmatmul.msk.bf16.gmra.mxu3 %vm502_vm6, %v1093_v9 }
  0x98   : > { %1543 = vmatmul.msk.bf16.gmra.mxu0 %vm502_vm6, %v1187_v2 }
  0x9d   : > { %v2110_v55 = vpop.f32.mrf.mxu1 }
  0xa0   : > { %1496 = vmatmul.msk.bf16.gmra.mxu1 %vm502_vm6, %v942_v27 }
  0xa1   : > { %1512 = vmatmul.msk.bf16.gmra.mxu2 %vm502_vm6, %v1020_v6 }
  0xa2   : > { %1528 = vmatmul.msk.bf16.gmra.mxu3 %vm502_vm6, %v1101_v12 }
  0xa4   : > { %v2117_v39 = vpop.f32.mrf.mxu2 }
  0xa5   : > { %v524_v63 = vpop.f32.mrf.mxu0  ;;  %v2120_v7 = vpop.f32.mrf.mxu3 }
  0xa6   : > { %v2122_v13 = vpop.f32.mrf.mxu1 }
  0xa8   : > { %1544 = vmatmul.msk.bf16.gmra.mxu0 %vm502_vm6, %v1189_v41 }
  0xac   : > { %v2125_v28 = vpop.f32.mrf.mxu2 }
  0xad   : > { %v526_v17 = vpop.f32.mrf.mxu0  ;;  %v2127_v16 = vpop.f32.mrf.mxu3 }
  0xae   : > { %v577_v4 = vpop.f32.mrf.mxu1 }
  0xaf   : > { %v578_v56 = vadd.f32 %v577_v4, %v524_v63 }
  0xb4   : > { %v697_v35 = vpop.f32.mrf.mxu2 }
  0xb5   : > { %v882_v45 = vpop.f32.mrf.mxu0  ;;  %v775_v47 = vpop.f32.mrf.mxu3  ;;  %v717_v22 = vadd.f32 %v697_v35, %v578_v56  ;;  %v1590_v56 = vunpack.c.h.bf16 %v1588_v43 }
  0xb6   : > { %v579_v48 = vpop.f32.mrf.mxu1 }
  0xb7   : > { %v795_v52 = vadd.f32 %v775_v47, %v717_v22  ;;  %v580_v46 = vadd.f32 %v579_v48, %v526_v17 }
  0xb9   : > { %v902_v21 = vadd.f32 %v882_v45, %v795_v52 }
  0xbc   : > { %v699_v49 = vpop.f32.mrf.mxu2 }
  0xbd   : > { %v884_v10 = vpop.f32.mrf.mxu0  ;;  %v777_v15 = vpop.f32.mrf.mxu3  ;;  %v718_v9 = vadd.f32 %v699_v49, %v580_v46 }
  0xbe   : > { %v582_v32 = vpop.f32.mrf.mxu1 }
  0xbf   : > { %v796_v19 = vadd.f32 %v777_v15, %v718_v9  ;;  %v583_v18 = vadd.f32 %v582_v32, %v2110_v55 }
  0xc1   : > { %v903_v12 = vadd.f32 %v884_v10, %v796_v19 }
  0xc4   : > { %v702_v50 = vpop.f32.mrf.mxu2 }
  0xc5   : > { %v887_v51 = vpop.f32.mrf.mxu0  ;;  %v780_v40 = vpop.f32.mrf.mxu3  ;;  %v719_v27 = vadd.f32 %v702_v50, %v583_v18 }
  0xc6   : > { %v584_v31 = vpop.f32.mrf.mxu1 }
  0xc7   : > { %v797_v41 = vadd.f32 %v780_v40, %v719_v27  ;;  %v585_v48 = vadd.f32 %v584_v31, %v2122_v13 }
  0xc9   : > { %v904_v10 = vadd.f32 %v887_v51, %v797_v41 }
  0xcc   : > { %v704_v36 = vpop.f32.mrf.mxu2 }
  0xcd   : > { %v2129_v57 = vpop.f32.mrf.mxu0  ;;  %v2131_v59 = vpop.f32.mrf.mxu3  ;;  %v720_v32 = vadd.f32 %v704_v36, %v585_v48  ;;  %v1607_v36 = vld [vmem:[%s2171_s10 + $0x8] sm:$0xff]  }
  0xce   : > { %v2133_v60 = vpop.f32.mrf.mxu1  ;;  %v1593_v18 = vunpack.c.l.bf16 %v1607_v36 }
  0xcf   : > { %v798_v52 = vadd.f32 %v2131_v59, %v720_v32  ;;  %v588_v51 = vadd.f32 %v2133_v60, %v2117_v39 }
  0xd1   : > { %v905_v43 = vadd.f32 %v2129_v57, %v798_v52 }
  0xd4   : > { %v2135_v0 = vpop.f32.mrf.mxu2 }
  0xd5   : > { %v2137_v61 = vpop.f32.mrf.mxu0  ;;  %v2139_v25 = vpop.f32.mrf.mxu3 }
  0xd6   : > { %v2141_v26 = vpop.f32.mrf.mxu1 }
  0xdc   : > { %v2143_v54 = vpop.f32.mrf.mxu2 }
  0xdd   : > { %v2145_v1 = vpop.f32.mrf.mxu0  ;;  %v2147_v2 = vpop.f32.mrf.mxu3 }
  0xde   : > { %v2149_v42 = vpop.f32.mrf.mxu1 }
  0xe4   : > { %v2151_v44 = vpop.f32.mrf.mxu2 }
  0xe5   : > { %v2153_v14 = vpop.f32.mrf.mxu0  ;;  %v2155_v29 = vpop.f32.mrf.mxu3 }
  0xe6   : > { %v2157_v30 = vpop.f32.mrf.mxu1 }
  0xec   : > { %v2159_v20 = vpop.f32.mrf.mxu2 }
  0xed   : > { %v2161_v3 = vpop.f32.mrf.mxu0  ;;  %v2163_v5 = vpop.f32.mrf.mxu3 }
  0xee   : > { %v976_v33 = vpop.f32.mrf.mxu1 }
  0xef   : > { %v996_v11 = vadd.f32 %v976_v33, %v902_v21 }
  0xf4   : > { %v1054_v34 = vpop.f32.mrf.mxu2 }
  0xf5   : > { %v1223_v38 = vpop.f32.mrf.mxu0  ;;  %v1074_v24 = vadd.f32 %v1054_v34, %v996_v11  ;;  %v1129_v37 = vpop.f32.mrf.mxu3 }
  0xf6   : > { %v978_v23 = vpop.f32.mrf.mxu1 }
  0xf7   : > { %v1149_v8 = vadd.f32 %v1129_v37, %v1074_v24  ;;  %v997_v63 = vadd.f32 %v978_v23, %v903_v12 }
  0xf9   : > { %v1243_v6 = vadd.f32 %v1223_v38, %v1149_v8  ;;  %v721_v38 = vadd.f32 %v2135_v0, %v588_v51  ;;  %v590_v0 = vadd.f32 %v2141_v26, %v2125_v28 }
  0xfb   : > { %v1255_v53 = vadd.f32 %v2178_v58, %v1243_v6  ;;  %v799_v8 = vadd.f32 %v2139_v25, %v721_v38  ;;  %v722_v41 = vadd.f32 %v2143_v54, %v590_v0  ;;  %v1608_v54 = vld [vmem:[%s2171_s10 + $0x10] sm:$0xff]  }
  0xfc   : > { %v1056_v17 = vpop.f32.mrf.mxu2  ;;  %v1598_v38 = vunpack.c.h.bf16 %v1608_v54 }
  0xfd   : > { %v1279_v4 = vadd.f32 %v1589_v62, %v1255_v53  ;;  %v1225_v55 = vpop.f32.mrf.mxu0  ;;  %v1075_v35 = vadd.f32 %v1056_v17, %v997_v63  ;;  %v1131_v45 = vpop.f32.mrf.mxu3  ;;  %v906_v57 = vadd.f32 %v2137_v61, %v799_v8  ;;  %v593_v61 = vadd.f32 %v2149_v42, %v2120_v7 }
  0xfe   : > { %v981_v47 = vpop.f32.mrf.mxu1 }
  0xff   : > { %v1287_v49 = vmul.f32 0.70710677, %v1279_v4  ;;  %v1150_v15 = vadd.f32 %v1131_v45, %v1075_v35  ;;  %v998_v31 = vadd.f32 %v981_v47, %v904_v10  ;;  %v800_v47 = vadd.f32 %v2147_v2, %v722_v41 }
 0x101   : > { %v1295_v50 = vpack.c.bf16 %v1287_v49, %v1287_v49  ;;  %v1244_v40 = vadd.f32 %v1225_v55, %v1150_v15  ;;  %v1594_v55 = vunpack.c.h.bf16 %v1607_v36 }
 0x103   : > { %1304 = vst.msk [vmem:[%s2187_s17] sm:$0xf] %vm1303_vm5, %v1295_v50  ;;  %v1256_v13 = vadd.f32 %v2178_v58, %v1244_v40  ;;  %v723_v50 = vadd.f32 %v2151_v44, %v593_v61  ;;  %v595_v44 = vadd.f32 %v2157_v30, %v2127_v16 }
 0x104   : > { %v1059_v22 = vpop.f32.mrf.mxu2 }
 0x105   : > { %v1280_v33 = vadd.f32 %v1590_v56, %v1256_v13  ;;  %v1228_v46 = vpop.f32.mrf.mxu0  ;;  %v1076_v9 = vadd.f32 %v1059_v22, %v998_v31  ;;  %v1134_v21 = vpop.f32.mrf.mxu3  ;;  %v1597_v13 = vunpack.c.l.bf16 %v1608_v54  ;;  %v907_v31 = vadd.f32 %v2145_v1, %v800_v47 }
 0x106   : > { %v983_v11 = vpop.f32.mrf.mxu1  ;;  %v801_v52 = vadd.f32 %v2155_v29, %v723_v50 }
 0x107   : > { %v1288_v34 = vmul.f32 0.70710677, %v1280_v33  ;;  %v1151_v19 = vadd.f32 %v1134_v21, %v1076_v9  ;;  %v999_v23 = vadd.f32 %v983_v11, %v905_v43  ;;  %v724_v11 = vadd.f32 %v2159_v20, %v595_v44 }
 0x108   : > { %v908_v36 = vadd.f32 %v2153_v14, %v801_v52 }
 0x109   : > { %v1296_v24 = vpack.c.bf16 %v1288_v34, %v1288_v34  ;;  %v1245_v37 = vadd.f32 %v1228_v46, %v1151_v19 }
 0x10b   : > { %1305 = vst.msk [vmem:[%s2187_s17 + $0x4] sm:$0xf] %vm1303_vm5, %v1296_v24  ;;  %v1257_v59 = vadd.f32 %v2178_v58, %v1245_v37 }
 0x10c   : > { %v1061_v39 = vpop.f32.mrf.mxu2 }
 0x10d   : > { %v1281_v60 = vadd.f32 %v1593_v18, %v1257_v59  ;;  %v1230_v27 = vpop.f32.mrf.mxu0  ;;  %v1077_v6 = vadd.f32 %v1061_v39, %v999_v23  ;;  %v1136_v62 = vpop.f32.mrf.mxu3  ;;  %v802_v18 = vadd.f32 %v2163_v5, %v724_v11  ;;  %v1609_v23 = vld [vmem:[%s2171_s10 + $0x18] sm:$0xff]  }
 0x10e   : > { %v986_v12 = vpop.f32.mrf.mxu1 }
 0x10f   : > { %v1289_v53 = vmul.f32 0.70710677, %v1281_v60  ;;  %v1152_v63 = vadd.f32 %v1136_v62, %v1077_v6  ;;  %v1000_v35 = vadd.f32 %v986_v12, %v906_v57  ;;  %v909_v6 = vadd.f32 %v2161_v3, %v802_v18 }
 0x111   : > { %v1297_v17 = vpack.c.bf16 %v1289_v53, %v1289_v53  ;;  %v1246_v4 = vadd.f32 %v1230_v27, %v1152_v63  ;;  %v1601_v27 = vunpack.c.l.bf16 %v1609_v23 }
 0x113   : > { %1306 = vst.msk [vmem:[%s2187_s17 + $0x8] sm:$0xf] %vm1303_vm5, %v1297_v17  ;;  %v1258_v25 = vadd.f32 %v2178_v58, %v1246_v4 }
 0x114   : > { %v1064_v45 = vpop.f32.mrf.mxu2 }
 0x115   : > { %v1282_v28 = vadd.f32 %v1594_v55, %v1258_v25  ;;  %v1233_v26 = vpop.f32.mrf.mxu0  ;;  %v1078_v48 = vadd.f32 %v1064_v45, %v1000_v35  ;;  %v1139_v49 = vpop.f32.mrf.mxu3  ;;  %v1602_v25 = vunpack.c.h.bf16 %v1609_v23 }
 0x116   : > { %v988_v15 = vpop.f32.mrf.mxu1 }
 0x117   : > { %v1290_v10 = vmul.f32 0.70710677, %v1282_v28  ;;  %v1153_v32 = vadd.f32 %v1139_v49, %v1078_v48  ;;  %v1001_v22 = vadd.f32 %v988_v15, %v907_v31 }
 0x119   : > { %v1298_v40 = vpack.c.bf16 %v1290_v10, %v1290_v10  ;;  %v1247_v56 = vadd.f32 %v1233_v26, %v1153_v32 }
 0x11b   : > { %1307 = vst.msk [vmem:[%s2187_s17 + $0xc] sm:$0xf] %vm1303_vm5, %v1298_v40  ;;  %v1259_v2 = vadd.f32 %v2178_v58, %v1247_v56 }
 0x11c   : > { %v1066_v7 = vpop.f32.mrf.mxu2 }
 0x11d   : > { %v1283_v42 = vadd.f32 %v1597_v13, %v1259_v2  ;;  %v1235_v33 = vpop.f32.mrf.mxu0  ;;  %v1079_v46 = vadd.f32 %v1066_v7, %v1001_v22  ;;  %v1141_v9 = vpop.f32.mrf.mxu3 }
 0x11e   : > { %v991_v21 = vpop.f32.mrf.mxu1 }
 0x11f   : > { %v1291_v51 = vmul.f32 0.70710677, %v1283_v42  ;;  %v1154_v1 = vadd.f32 %v1141_v9, %v1079_v46  ;;  %v1002_v24 = vadd.f32 %v991_v21, %v908_v36 }
 0x121   : > { %v1299_v34 = vpack.c.bf16 %v1291_v51, %v1291_v51  ;;  %v1248_v19 = vadd.f32 %v1235_v33, %v1154_v1 }
 0x123   : > { %1308 = vst.msk [vmem:[%s2187_s17 + $0x10] sm:$0xf] %vm1303_vm5, %v1299_v34  ;;  %v1260_v29 = vadd.f32 %v2178_v58, %v1248_v19 }
 0x124   : > { %v1069_v37 = vpop.f32.mrf.mxu2 }
 0x125   : > { %v1284_v16 = vadd.f32 %v1598_v38, %v1260_v29  ;;  %v1080_v30 = vadd.f32 %v1069_v37, %v1002_v24  ;;  %v1144_v43 = vpop.f32.mrf.mxu3  ;;  %v1238_v59 = vpop.f32.mrf.mxu0 }
 0x126   : > { %v993_v20 = vpop.f32.mrf.mxu1 }
 0x127   : > { %v1292_v14 = vmul.f32 0.70710677, %v1284_v16  ;;  %v1155_v8 = vadd.f32 %v1144_v43, %v1080_v30  ;;  %v1003_v12 = vadd.f32 %v993_v20, %v909_v6 }
 0x129   : > { %v1300_v39 = vpack.c.bf16 %v1292_v14, %v1292_v14  ;;  %v1249_v60 = vadd.f32 %v1238_v59, %v1155_v8 }
 0x12b   : > { %1309 = vst.msk [vmem:[%s2187_s17 + $0x14] sm:$0xf] %vm1303_vm5, %v1300_v39  ;;  %v1261_v62 = vadd.f32 %v2178_v58, %v1249_v60 }
 0x12c   : > { %v1071_v5 = vpop.f32.mrf.mxu2 }
 0x12d   : > { %v1285_v0 = vadd.f32 %v1601_v27, %v1261_v62  ;;  %v1081_v53 = vadd.f32 %v1071_v5, %v1003_v12  ;;  %v1146_v63 = vpop.f32.mrf.mxu3  ;;  %v1240_v17 = vpop.f32.mrf.mxu0 }
 0x12f   : > { %v1293_v57 = vmul.f32 0.70710677, %v1285_v0  ;;  %v1156_v41 = vadd.f32 %v1146_v63, %v1081_v53 }
 0x131   : > { %v1301_v4 = vpack.c.bf16 %v1293_v57, %v1293_v57  ;;  %v1250_v55 = vadd.f32 %v1240_v17, %v1156_v41 }
 0x133   : > { %1310 = vst.msk [vmem:[%s2187_s17 + $0x18] sm:$0xf] %vm1303_vm5, %v1301_v4  ;;  %v1262_v3 = vadd.f32 %v2178_v58, %v1250_v55 }
 0x135   : > { %v1286_v35 = vadd.f32 %v1602_v25, %v1262_v3 }
 0x137   : > { %v1294_v45 = vmul.f32 0.70710677, %v1286_v35 }
 0x139   : > { %v1302_v47 = vpack.c.bf16 %v1294_v45, %v1294_v45 }
 0x13b   : > { %1311 = vst.msk [vmem:[%s2187_s17 + $0x1c] sm:$0xf] %vm1303_vm5, %v1302_v47 }
 0x13c PF: > { %s14_s15 = sadd.s32 1, %s1633_s15  }
 0x13d   : > { %p11_p4 = scmp.ge.s32.totalorder %s14_s15, 4  }
 0x13f   :  { %13 = sbr.rel (!%p11_p4) target bundleno = 1 (0x1), region = 77 }

// kernel: star_discriminator_forward.9
= control target key start
LH: loop header
LB: loop body
LE: loop exit
PB: predicated region body
PF: predicated region fallthrough
CT: control target
= control target key end

     0   :  { %s2006_s18 = smov 0   ;;  %s2608_s0 = inlined_call_operand.vmem [shape: bf16[2,82,64], index: 0, kind: input, shape index: {}]   ;;  %s2609_s1 = inlined_call_operand.vmem [shape: bf16[9,64,64], index: 1, kind: input, shape index: {}]   ;;  %s2610_s2 = inlined_call_operand.vmem [shape: f32[1,64], index: 2, kind: input, shape index: {}]   ;;  %s2611_s3 = inlined_call_operand.vmem [shape: bf16[16,64], index: 3, kind: input, shape index: {}]   ;;  %s2612_s4 = inlined_call_operand.vmem [shape: bf16[2,16,64], index: 4, kind: output, shape index: {0}]   ;;  %s2613_s5 = inlined_call_operand.vmem [shape: bf16[2,16,64], index: 5, kind: output, shape index: {1}]  }
   0x1 LB: > { %s1611_s19 = sadd.s32 4294967295, %s1973_s18   ;;  %p1615_p0 = scmp.ge.s32.totalorder %s1973_s18, 1  ;;  %s1973_s18 = sphi %s2006_s18, %s16_s18  }
   0x2   : > { %p190_p1 = scmp.lt.s32.totalorder %s1973_s18, 3 }
   0x4   : > { %p191_p2 = pnand %p1615_p0, %p190_p1 }
   0x5   : > { %p223_p3 = scmp.lt.s32.totalorder (!%p191_p2), %s1611_s19, 1 }
   0x6   : > { %194 = sbr.rel (%p191_p2) target bundleno = 488 (0x1e8), region = 36 }
   0xb   : > { %v1894_v0 = vld [vmem:[%s2609_s1 + $0x18] sm:$0xff]  ;;  %v294_v3 = vlaneseq  ;;  %v1893_v4 = vld [vmem:[%s2609_s1 + $0x10] sm:$0xff]  ;;  %s2615_s19 = smov (!%p223_p3, %s1611_s19), 1  ;;  %v1892_v12 = vld [vmem:[%s2609_s1 + $0x8] sm:$0xff]  ;;  %vm657_vm0 = vcmask 1041408   ;;  %vm542_vm3 = vcmask 523264  }
   0xc   : > { %v1902_v1 = vld [vmem:[%s2609_s1 + $0x58] sm:$0xff]  ;;  %624 = vmatpush.bf16.msra.mxu1 %v1894_v0  ;;  %v1901_v5 = vld [vmem:[%s2609_s1 + $0x50] sm:$0xff]  ;;  %s1956_s7 = smul.u32 44, %s2615_s19  ;;  %v1900_v15 = vld [vmem:[%s2609_s1 + $0x48] sm:$0xff]  ;;  %v1975_v22 = vmov 0.0   ;;  %vm710_vm12 = vcmask 1046528  }
   0xd   : > { %v1898_v2 = vld [vmem:[%s2609_s1 + $0x38] sm:$0xff]  ;;  %760 = vmatpush.bf16.msra.mxu2 %v1902_v1  ;;  %v2031_v6 = vshrl.u32 %v294_v3, 7  ;;  %v1897_v7 = vld [vmem:[%s2609_s1 + $0x30] sm:$0xff]  ;;  %v1896_v16 = vld [vmem:[%s2609_s1 + $0x28] sm:$0xff]  ;;  %vm481_vm13 = vsmask.f32 7424 }
   0xe   : > { %559 = vmatpush.bf16.msra.mxu0 %v1898_v2  ;;  %1952 = vmatpush.bf16.msra.mxu3 %v1898_v2  ;;  %s2063_s16 = scalar_lea.vmem %s2608_s0, %s1956_s7  ;;  %v1891_v30 = vld [vmem:[%s2609_s1] sm:$0xff]  ;;  %v1906_v62 = vld [vmem:[%s2609_s1 + $0x78] sm:$0xff]  ;;  %s1889_s7 = sshll.u32 %s2615_s19, 3 }
   0xf   : > { %v296_v8 = vadd.s32 8, %v2031_v6  ;;  %v307_v9 = vand.u32 7, %v2031_v6  ;;  %v2040_v10 = vadd.s32 16, %v2031_v6  ;;  %v2043_v11 = vadd.s32 24, %v2031_v6  ;;  %v1929_v19 = vld [vmem:[%s2063_s16] sm:$0xff]   ;;  %v1948_v20 = vld [vmem:[%s2063_s16 + $0x8] sm:$0xff]   ;;  %s237_s10 = scalar_lea.vmem %s2613_s5, %s1889_s7  ;;  %s232_s13 = scalar_lea.vmem %s2612_s4, %s1889_s7 }
  0x10   : > { %v2049_v13 = vadd.s32 32, %v2031_v6  ;;  %v2052_v14 = vadd.s32 40, %v2031_v6  ;;  %625 = vmatpush.bf16.msra.mxu1 %v1893_v4  ;;  %v1949_v21 = vld [vmem:[%s2063_s16 + $0x10] sm:$0xff]   ;;  %v1930_v26 = vunpack.c.l.bf16 %v1929_v19  ;;  %v2074_v27 = vunpack.c.h.bf16 %v1929_v19  ;;  %v1899_v31 = vld [vmem:[%s2609_s1 + $0x40] sm:$0xff]  ;;  %v1950_v47 = vld [vmem:[%s2063_s16 + $0x18] sm:$0xff]  }
  0x11   : > { %761 = vmatpush.bf16.msra.mxu2 %v1901_v5  ;;  %v314_v17 = vand.u32 7, %v296_v8  ;;  %vm399_vm1 = vcmp.ne.s32.totalorder %v307_v9, 0  ;;  %vm423_vm2 = vcmp.ne.s32.totalorder %v307_v9, 7  ;;  %v321_v18 = vand.u32 7, %v2040_v10  ;;  %v1895_v38 = vld [vmem:[%s2609_s1 + $0x20] sm:$0xff]  ;;  %v1910_v63 = vld [vmem:[%s2609_s1 + $0x98] sm:$0xff] }
  0x12   : > { %560 = vmatpush.bf16.msra.mxu0 %v1897_v7  ;;  %1953 = vmatpush.bf16.msra.mxu3 %v1897_v7  ;;  %v2070_v23 = vsel %vm399_vm1, 1.0, %v1975_v22  ;;  %v1629_v24 = vsel %vm423_vm2, 1.0, %v1975_v22  ;;  %v328_v25 = vand.u32 7, %v2043_v11  ;;  %v2076_v28 = vunpack.c.l.bf16 %v1949_v21  ;;  %v1905_v8 = vld [vmem:[%s2609_s1 + $0x70] sm:$0xff]  ;;  %v1908_v10 = vld [vmem:[%s2609_s1 + $0x88] sm:$0xff] }
  0x13   : > { %v2078_v29 = vunpack.c.h.bf16 %v1949_v21  ;;  %vm400_vm4 = vcmp.ne.s32.totalorder %v314_v17, 0  ;;  %vm424_vm5 = vcmp.ne.s32.totalorder %v314_v17, 7  ;;  %v2086_v32 = vrot.slane %v1629_v24, 6  ;;  %v1909_v9 = vld [vmem:[%s2609_s1 + $0x90] sm:$0xff] }
  0x14   : > { %v2088_v33 = vunpack.c.l.bf16 %v1948_v20  ;;  %626 = vmatpush.bf16.msra.mxu1 %v1892_v12  ;;  %vm261_vm6 = vcmp.gt.f32.partialorder %v1930_v26, 0.0  ;;  %vm262_vm7 = vcmp.gt.f32.partialorder %v2074_v27, 0.0  ;;  %v272_v34 = vmul.f32 0.2, %v1930_v26 }
  0x15   : > { %762 = vmatpush.bf16.msra.mxu2 %v1900_v15  ;;  %v273_v35 = vmul.f32 0.2, %v2074_v27  ;;  %v2093_v36 = vsel %vm400_vm4, 1.0, %v1975_v22  ;;  %v1630_v37 = vsel %vm424_vm5, 1.0, %v1975_v22  ;;  %v2099_v39 = vunpack.c.h.bf16 %v1948_v20 }
  0x16   : > { %561 = vmatpush.bf16.msra.mxu0 %v1896_v16  ;;  %1954 = vmatpush.bf16.msra.mxu3 %v1896_v16  ;;  %vm263_vm8 = vcmp.gt.f32.partialorder %v2088_v33, 0.0  ;;  %v283_v40 = vsel %vm261_vm6, %v1930_v26, %v272_v34  ;;  %v659_v42 = vrot.slane %v1630_v37, 6  ;;  %v274_v43 = vmul.f32 0.2, %v2088_v33 }
  0x17   : > { %v2103_v41 = vsel %vm262_vm7, %v2074_v27, %v273_v35  ;;  %v447_v44 = vmul.f32 %v2070_v23, %v283_v40  ;;  %vm264_vm9 = vcmp.gt.f32.partialorder %v2099_v39, 0.0  ;;  %v275_v46 = vmul.f32 0.2, %v2099_v39  ;;  %v1904_v35 = vld [vmem:[%s2609_s1 + $0x68] sm:$0xff] }
  0x18   : > { %v448_v45 = vmul.f32 %v2093_v36, %v2103_v41  ;;  %627 = vmatpush.bf16.msra.mxu1 %v1891_v30  ;;  %v2113_v48 = vsel %vm263_vm8, %v2088_v33, %v274_v43  ;;  %vm425_vm10 = vcmp.ne.s32.totalorder %v321_v18, 7  ;;  %vm426_vm11 = vcmp.ne.s32.totalorder %v328_v25, 7 }
  0x19   : > { %763 = vmatpush.bf16.msra.mxu2 %v1899_v31  ;;  %v2121_v49 = vsel %vm657_vm0, %v2086_v32, %v659_v42  ;;  %v2124_v51 = vsel %vm264_vm9, %v2099_v39, %v275_v46  ;;  %v1631_v52 = vsel %vm425_vm10, 1.0, %v1975_v22  ;;  %v2128_v53 = vsel %vm426_vm11, 1.0, %v1975_v22 }
  0x1a   : > { %v463_v50 = vpack.c.bf16 %v448_v45, %v447_v44  ;;  %562 = vmatpush.bf16.msra.mxu0 %v1895_v38  ;;  %1955 = vmatpush.bf16.msra.mxu3 %v1895_v38  ;;  %v661_v54 = vrot.slane %v1631_v52, 6  ;;  %v663_v55 = vrot.slane %v2128_v53, 6  ;;  %v682_v56 = vmul.f32 %v2086_v32, %v283_v40 }
  0x1b   : > { %v683_v57 = vmul.f32 %v2121_v49, %v2103_v41  ;;  %v476_v58 = vpack.c.bf16 %v2103_v41, %v283_v40  ;;  %v2138_v59 = vpack.c.bf16 %v2124_v51, %v2113_v48  ;;  %v2140_v60 = vunpack.c.l.bf16 %v1950_v47  ;;  %v2208_v40 = vld [vmem:[%s2063_s16 + $0x20] sm:$0xff]  }
  0x1c   : > { %1681 = vmatmul.msk.bf16.vlgmr.msra.gmra.mxu1 %vm542_vm3, %v463_v50  ;;  %v2142_v61 = vunpack.c.h.bf16 %v1950_v47  ;;  %v2151_v0 = vsel %vm657_vm0, %v659_v42, %v661_v54  ;;  %v2156_v1 = vsel %vm657_vm0, %v661_v54, %v663_v55  ;;  %vm265_vm14 = vcmp.gt.f32.partialorder %v2076_v28, 0.0 }
  0x1d   : > { %v700_v2 = vpack.c.bf16 %v683_v57, %v682_v56  ;;  %v684_v3 = vmul.f32 %v2151_v0, %v2113_v48  ;;  %v685_v4 = vmul.f32 %v2156_v1, %v2124_v51  ;;  %v483_v5 = vshrl.u32 %v476_v58, 16  ;;  %v1903_v57 = vld [vmem:[%s2609_s1 + $0x60] sm:$0xff] }
  0x1e   : > { %v485_v7 = vshll.u32 %v476_v58, 16  ;;  %854 = vmatpush.bf16.msrb.mxu3 %v1906_v62  ;;  %977 = vmatpush.bf16.msrb.mxu0 %v1910_v63  ;;  %v490_v15 = vshll.u32 %v2138_v59, 16  ;;  %vm266_vm15 = vcmp.gt.f32.partialorder %v2078_v29, 0.0  ;;  %vm267_vm1 = vcmp.gt.f32.partialorder %v2140_v60, 0.0  ;;  %v1907_v58 = vld [vmem:[%s2609_s1 + $0x80] sm:$0xff] }
  0x1f   : > { %v711_v12 = vrot.slane %v700_v2, 1  ;;  %v701_v16 = vpack.c.bf16 %v685_v4, %v684_v3  ;;  %vm268_vm2 = vcmp.gt.f32.partialorder %v2142_v61, 0.0  ;;  %v276_v19 = vmul.f32 0.2, %v2076_v28 }
  0x20   : > { %v487_v17 = vrot.slane %v485_v7, 1  ;;  %v492_v20 = vrot.slane %v490_v15, 1  ;;  %v277_v21 = vmul.f32 0.2, %v2078_v29  ;;  %v278_v24 = vmul.f32 0.2, %v2140_v60 }
  0x21   : > { %vm401_vm4 = vcmp.ne.s32.totalorder %v321_v18, 0  ;;  %v2178_v26 = vrot.slane %v701_v16, 1  ;;  %v279_v31 = vmul.f32 0.2, %v2142_v61  ;;  %v2184_v34 = vsel %vm265_vm14, %v2076_v28, %v276_v19 }
  0x22   : > { %v488_v30 = vor.u32 %v487_v17, %v483_v5  ;;  %855 = vmatpush.bf16.msrb.mxu3 %v1905_v8  ;;  %978 = vmatpush.bf16.msrb.mxu0 %v1909_v9  ;;  %v2195_v18 = vsel %vm266_vm15, %v2078_v29, %v277_v21  ;;  %v2200_v37 = vsel %vm267_vm1, %v2140_v60, %v278_v24  ;;  %vm402_vm5 = vcmp.ne.s32.totalorder %v328_v25, 0  ;;  %v1914_v24 = vld [vmem:[%s2609_s1 + $0xb8] sm:$0xff] }
  0x23   : > { %v2205_v38 = vsel %vm401_vm4, 1.0, %v1975_v22  ;;  %v713_v42 = vsel %vm710_vm12, %v711_v12, %v2178_v26  ;;  %v2216_v44 = vsel %vm268_vm2, %v2142_v61, %v279_v31  ;;  %v478_v45 = vpack.c.bf16 %v2195_v18, %v2184_v34  ;;  %1087 = vmatpush.bf16.msrb.mxu1 %v1914_v24  ;;  %v1913_v24 = vld [vmem:[%s2609_s1 + $0xb0] sm:$0xff] }
  0x24   : > { %v493_v43 = vsel %vm481_vm13, %v488_v30, %v492_v20  ;;  %1709 = vmatmul.msk.bf16.vlgmr.msra.gmra.mxu2 %vm542_vm3, %v713_v42  ;;  %v2224_v11 = vpack.c.bf16 %v2216_v44, %v2200_v37  ;;  %v2227_v25 = vsel %vm402_vm5, 1.0, %v1975_v22  ;;  %v449_v46 = vmul.f32 %v2205_v38, %v2113_v48 }
  0x25   : > { %1661 = vmatmul.msk.bf16.vlgmr.msra.gmra.mxu0 %vm542_vm3, %v493_v43  ;;  %v335_v47 = vand.u32 7, %v2049_v13  ;;  %v498_v50 = vshll.u32 %v478_v45, 16  ;;  %v502_v52 = vshrl.u32 %v478_v45, 16  ;;  %v450_v54 = vmul.f32 %v2227_v25, %v2124_v51 }
  0x26   : > { %v342_v56 = vand.u32 7, %v2052_v14  ;;  %856 = vmatpush.bf16.msrb.mxu3 %v1904_v35  ;;  %979 = vmatpush.bf16.msrb.mxu0 %v1908_v10  ;;  %v506_v62 = vshll.u32 %v2224_v11, 16  ;;  %v2243_v13 = vunpack.c.l.bf16 %v2208_v40  ;;  %v494_v7 = vshrl.u32 %v2138_v59, 16 }
  0x27   : > { %vm427_vm6 = vcmp.ne.s32.totalorder %v335_v47, 7  ;;  %v500_v63 = vrot.slane %v498_v50, 1  ;;  %v464_v2 = vpack.c.bf16 %v450_v54, %v449_v46  ;;  %vm403_vm9 = vcmp.ne.s32.totalorder %v335_v47, 0  ;;  %1088 = vmatpush.bf16.msrb.mxu1 %v1913_v24 }
  0x28   : > { %vm428_vm7 = vcmp.ne.s32.totalorder %v342_v56, 7  ;;  %v1633_v14 = vsel %vm427_vm6, 1.0, %v1975_v22  ;;  %v508_v3 = vrot.slane %v506_v62, 1  ;;  %vm269_vm8 = vcmp.gt.f32.partialorder %v2243_v13, 0.0 }
  0x29   : > { %v1634_v4 = vsel %vm428_vm7, 1.0, %v1975_v22  ;;  %v665_v5 = vrot.slane %v1633_v14, 6  ;;  %v504_v8 = vor.u32 %v502_v52, %v500_v63  ;;  %v280_v12 = vmul.f32 0.2, %v2243_v13 }
  0x2a   : > { %v667_v9 = vrot.slane %v1634_v4, 6  ;;  %857 = vmatpush.bf16.msrb.mxu3 %v1903_v57  ;;  %980 = vmatpush.bf16.msrb.mxu0 %v1907_v58  ;;  %vm404_vm10 = vcmp.ne.s32.totalorder %v342_v56, 0  ;;  %v301_v30 = vadd.s32 48, %v2031_v6  ;;  %v302_v31 = vadd.s32 56, %v2031_v6 }
  0x2b   : > { %v2253_v15 = vsel %vm657_vm0, %v663_v55, %v665_v5  ;;  %v2256_v16 = vsel %vm481_vm13, %v504_v8, %v508_v3  ;;  %v2265_v19 = vsel %vm269_vm8, %v2243_v13, %v280_v12  ;;  %v496_v55 = vor.u32 %v494_v7, %v492_v20 }
  0x2c   : > { %1682 = vmatmul.msk.bf16.gmra.mxu1 %vm542_vm3, %v464_v2  ;;  %v2260_v59 = vsel %vm657_vm0, %v665_v5, %v667_v9  ;;  %v686_v17 = vmul.f32 %v2253_v15, %v2184_v34  ;;  %1663 = vmatmul.msk.bf16.vlgmr.msra.gmra.mxu3 %vm542_vm3, %v2256_v16  ;;  %v480_v21 = vpack.c.bf16 %v2265_v19, %v2265_v19  ;;  %v510_v10 = vshrl.u32 %v2224_v11, 16  ;;  %v1918_v2 = vld [vmem:[%s2609_s1 + $0xd8] sm:$0xff] }
  0x2d   : > { %v687_v53 = vmul.f32 %v2260_v59, %v2195_v18  ;;  %v349_v42 = vand.u32 7, %v301_v30  ;;  %v356_v43 = vand.u32 7, %v302_v31  ;;  %v2280_v46 = vsel %vm403_vm9, 1.0, %v1975_v22  ;;  %1181 = vmatpush.bf16.msrb.mxu2 %v1918_v2  ;;  %v1917_v30 = vld [vmem:[%s2609_s1 + $0xd0] sm:$0xff]  ;;  %v1912_v31 = vld [vmem:[%s2609_s1 + $0xa8] sm:$0xff] }
  0x2e   : > { %v514_v45 = vshll.u32 %v480_v21, 16  ;;  %v2283_v50 = vsel %vm404_vm10, 1.0, %v1975_v22  ;;  %v2286_v47 = vsel %vm481_vm13, %v496_v55, %v500_v63  ;;  %v896_v6 = vpack.c.bf16 %v2113_v48, %v2103_v41  ;;  %1089 = vmatpush.bf16.msrb.mxu1 %v1912_v31 }
  0x2f   : > { %v702_v35 = vpack.c.bf16 %v687_v53, %v686_v17  ;;  %vm429_vm11 = vcmp.ne.s32.totalorder %v349_v42, 7  ;;  %vm430_vm14 = vcmp.ne.s32.totalorder %v356_v43, 7  ;;  %v451_v56 = vmul.f32 %v2280_v46, %v2184_v34 }
  0x30   : > { %v1635_v52 = vsel %vm429_vm11, 1.0, %v1975_v22  ;;  %v1636_v54 = vsel %vm430_vm14, 1.0, %v1975_v22  ;;  %v452_v57 = vmul.f32 %v2283_v50, %v2195_v18  ;;  %v2303_v63 = vor.u32 %v510_v10, %v508_v3 }
  0x31   : > { %v714_v20 = vrot.slane %v702_v35, 1  ;;  %v669_v58 = vrot.slane %v1635_v52, 6  ;;  %v2298_v62 = vrot.slane %v1636_v54, 6  ;;  %v897_v5 = vpack.c.bf16 %v2184_v34, %v2124_v51  ;;  %1182 = vmatpush.bf16.msrb.mxu2 %v1917_v30 }
  0x32   : > { %v904_v7 = vshll.u32 %v896_v6, 16  ;;  %v465_v12 = vpack.c.bf16 %v452_v57, %v451_v56  ;;  %v902_v53 = vshrl.u32 %v896_v6, 16  ;;  %vm406_vm15 = vcmp.ne.s32.totalorder %v356_v43, 0 }
  0x33   : > { %v715_v11 = vsel %vm710_vm12, %v2178_v26, %v714_v20  ;;  %v516_v26 = vrot.slane %v514_v45, 1  ;;  %v2309_v14 = vsel %vm657_vm0, %v667_v9, %v669_v58  ;;  %v2313_v4 = vsel %vm657_vm0, %v669_v58, %v2298_v62  ;;  %v1911_v58 = vld [vmem:[%s2609_s1 + $0xa0] sm:$0xff] }
  0x34   : > { %1710 = vmatmul.msk.bf16.gmra.mxu2 %vm542_vm3, %v715_v11  ;;  %v688_v3 = vmul.f32 %v2309_v14, %v2200_v37  ;;  %v689_v8 = vmul.f32 %v2313_v4, %v2216_v44  ;;  %v906_v55 = vrot.slane %v904_v7, 1  ;;  %v909_v21 = vshll.u32 %v897_v5, 16  ;;  %1090 = vmatpush.bf16.msrb.mxu1 %v1911_v58 }
  0x35   : > { %1662 = vmatmul.msk.bf16.gmra.mxu0 %vm542_vm3, %v2286_v47  ;;  %v517_v9 = vsel %vm481_vm13, %v2303_v63, %v516_v26  ;;  %vm405_vm0 = vcmp.ne.s32.totalorder %v349_v42, 0  ;;  %v2336_v6 = vmul.f32 %v2070_v23, %v2113_v48  ;;  %v1916_v42 = vld [vmem:[%s2609_s1 + $0xc8] sm:$0xff]  ;;  %v2343_v43 = vmul.f32 %v2093_v36, %v2124_v51  ;;  %v1915_v26 = vld [vmem:[%s2609_s1 + $0xc0] sm:$0xff] }
  0x36   : > { %v703_v17 = vpack.c.bf16 %v689_v8, %v688_v3  ;;  %v907_v10 = vor.u32 %v906_v55, %v902_v53  ;;  %v911_v45 = vrot.slane %v909_v21, 1  ;;  %v2346_v11 = vsel %vm405_vm0, 1.0, %v1975_v22  ;;  %1183 = vmatpush.bf16.msrb.mxu2 %v1916_v42 }
  0x37   : > { %v2349_v52 = vsel %vm406_vm15, 1.0, %v1975_v22  ;;  %v1137_v54 = vpack.c.bf16 %v2343_v43, %v2336_v6  ;;  %v453_v22 = vmul.f32 %v2346_v11, %v2200_v37  ;;  %v794_v7 = vmul.f32 %v2093_v36, %v2113_v48  ;;  %v1919_v6 = vld [vmem:[%s2609_s1 + $0xe0] sm:$0xff] }
  0x38   : > { %v716_v35 = vrot.slane %v703_v17, 1  ;;  %v912_v57 = vsel %vm481_vm13, %v907_v10, %v911_v45  ;;  %v454_v2 = vmul.f32 %v2349_v52, %v2216_v44  ;;  %v690_v3 = vmul.f32 %v2298_v62, %v2265_v19  ;;  %v1923_v43 = vld [vmem:[%s2609_s1 + $0x100] sm:$0xff] }
  0x39   : > { %v898_v8 = vpack.c.bf16 %v2200_v37, %v2195_v18  ;;  %v913_v53 = vshrl.u32 %v897_v5, 16  ;;  %v1011_v36 = vmul.f32 %v2121_v49, %v2113_v48  ;;  %v1012_v21 = vmul.f32 %v2151_v0, %v2124_v51 }
  0x3a   : > { %v717_v56 = vsel %vm710_vm12, %v714_v20, %v716_v35  ;;  %v793_v20 = vmul.f32 %v2070_v23, %v2103_v41  ;;  %1184 = vmatpush.bf16.msrb.mxu2 %v1915_v26  ;;  %v704_v17 = vpack.c.bf16 %v690_v3, %v690_v3  ;;  %v1010_v23 = vmul.f32 %v2086_v32, %v2103_v41 }
  0x3b   : > { %v917_v55 = vshll.u32 %v898_v8, 16  ;;  %v1013_v24 = vmul.f32 %v2156_v1, %v2184_v34  ;;  %v2387_v5 = vmul.f32 %v2205_v38, %v2184_v34  ;;  %v2391_v30 = vmul.f32 %v2227_v25, %v2195_v18 }
  0x3c   : > { %1683 = vmatmul.msk.bf16.gmra.mxu1 %vm542_vm3, %v465_v12  ;;  %1664 = vmatmul.msk.bf16.gmra.mxu3 %vm542_vm3, %v517_v9  ;;  %v466_v12 = vpack.c.bf16 %v454_v2, %v453_v22  ;;  %v810_v9 = vpack.c.bf16 %v794_v7, %v793_v20  ;;  %v718_v41 = vrot.slane %v704_v17, 1  ;;  %v915_v31 = vor.u32 %v913_v53, %v911_v45 }
  0x3d   : > { %v919_v10 = vrot.slane %v917_v55, 1  ;;  %v1138_v42 = vpack.c.bf16 %v2391_v30, %v2387_v5  ;;  %v795_v22 = vmul.f32 %v2205_v38, %v2124_v51  ;;  %v796_v2 = vmul.f32 %v2227_v25, %v2184_v34  ;;  %v1922_v38 = vld [vmem:[%s2609_s1 + $0xf8] sm:$0xff] }
  0x3e   : > { %v719_v58 = vsel %vm710_vm12, %v716_v35, %v718_v41  ;;  %v899_v7 = vpack.c.bf16 %v2265_v19, %v2216_v44  ;;  %v2407_v17 = vunpack.c.h.bf16 %v2208_v40  ;;  %v1926_v25 = vld [vmem:[%s2609_s1 + $0x118] sm:$0xff]  ;;  %v1014_v53 = vmul.f32 %v2253_v15, %v2195_v18  ;;  %1272 = vmatpush.bf16.msra.mxu3 %v1922_v38 }
  0x3f   : > { %v920_v26 = vsel %vm481_vm13, %v915_v31, %v919_v10  ;;  %v811_v3 = vpack.c.bf16 %v796_v2, %v795_v22  ;;  %v2423_v40 = vmul.f32 %v2280_v46, %v2200_v37  ;;  %v2427_v55 = vmul.f32 %v2283_v50, %v2216_v44  ;;  %1382 = vmatpush.bf16.msra.mxu0 %v1926_v25 }
  0x40   : > { %v281_v41 = vmul.f32 0.2, %v2407_v17  ;;  %vm270_vm1 = vcmp.gt.f32.partialorder %v2407_v17, 0.0  ;;  %v797_v22 = vmul.f32 %v2280_v46, %v2195_v18  ;;  %v798_v2 = vmul.f32 %v2283_v50, %v2200_v37 }
  0x41   : > { %v1139_v31 = vpack.c.bf16 %v2427_v55, %v2423_v40  ;;  %v929_v50 = vshrl.u32 %v899_v7, 16  ;;  %v1126_v38 = vmul.f32 %v2346_v11, %v2265_v19  ;;  %v799_v55 = vmul.f32 %v2346_v11, %v2216_v44 }
  0x42   : > { %v812_v46 = vpack.c.bf16 %v798_v2, %v797_v22  ;;  %v1307_v5 = vmul.f32 %v2151_v0, %v2184_v34  ;;  %v1308_v30 = vmul.f32 %v2156_v1, %v2195_v18  ;;  %v1309_v34 = vmul.f32 %v2253_v15, %v2200_v37  ;;  %v249_v15 = vld [vmem:[%s2063_s16 + $0x28] sm:$0x1] }
  0x43   : > { %v1310_v18 = vmul.f32 %v2260_v59, %v2216_v44  ;;  %v260_v22 = vunpack.c.l.bf16 %v249_v15 }
  0x44   : > { %1711 = vmatmul.msk.bf16.gmra.mxu2 %vm542_vm3, %v717_v56  ;;  %v1028_v56 = vpack.c.bf16 %v1011_v36, %v1010_v23 }
  0x45   : > { %1765 = vmatmul.msk.bf16.vlgmr.msrb.gmra.mxu0 %vm542_vm3, %v912_v57  ;;  %v1029_v57 = vpack.c.bf16 %v1013_v24, %v1012_v21  ;;  %v1921_v21 = vld [vmem:[%s2609_s1 + $0xf0] sm:$0xff]  ;;  %vm271_vm2 = vcmp.gt.f32.partialorder %v260_v22, 0.0 }
  0x46   : > { %v1038_v45 = vrot.slane %v1028_v56, 1  ;;  %v1925_v24 = vld [vmem:[%s2609_s1 + $0x110] sm:$0xff]  ;;  %1273 = vmatpush.bf16.msra.mxu3 %v1921_v21 }
  0x47   : > { %v1039_v20 = vrot.slane %v1029_v57, 1  ;;  %1383 = vmatpush.bf16.msra.mxu0 %v1925_v24  ;;  %v1920_v57 = vld [vmem:[%s2609_s1 + $0xe8] sm:$0xff]  ;;  %v1306_v24 = vmul.f32 %v2121_v49, %v2124_v51 }
  0x49   : > { %v1040_v35 = vsel %vm710_vm12, %v1038_v45, %v1039_v20 }
  0x4a   : > { %1274 = vmatpush.bf16.msra.mxu3 %v1920_v57 }
  0x4c   : > { %1684 = vmatmul.msk.bf16.gmra.mxu1 %vm542_vm3, %v466_v12  ;;  %1737 = vmatmul.msk.bf16.vlgmr.msrb.gmra.mxu3 %vm542_vm3, %v810_v9  ;;  %v921_v12 = vshrl.u32 %v898_v8, 16  ;;  %v925_v9 = vshll.u32 %v899_v7, 16  ;;  %v1015_v8 = vmul.f32 %v2260_v59, %v2200_v37  ;;  %v1311_v37 = vmul.f32 %v2309_v14, %v2265_v19 }
  0x4e   : > { %v923_v23 = vor.u32 %v921_v12, %v919_v10  ;;  %v927_v36 = vrot.slane %v925_v9, 1  ;;  %v1030_v56 = vpack.c.bf16 %v1015_v8, %v1014_v53  ;;  %1275 = vmatpush.bf16.msra.mxu3 %v1919_v6  ;;  %v1016_v12 = vmul.f32 %v2309_v14, %v2216_v44 }
  0x4f   : > { %v1017_v9 = vmul.f32 %v2313_v4, %v2265_v19 }
  0x50   : > { %v928_v10 = vsel %vm481_vm13, %v923_v23, %v927_v36  ;;  %v1041_v45 = vrot.slane %v1030_v56, 1  ;;  %v931_v7 = vor.u32 %v929_v50, %v927_v36  ;;  %v800_v23 = vmul.f32 %v2349_v52, %v2265_v19 }
  0x51   : > { %v1031_v8 = vpack.c.bf16 %v1017_v9, %v1016_v12  ;;  %v1305_v36 = vmul.f32 %v2086_v32, %v2113_v48 }
  0x53   : > { %v1043_v21 = vrot.slane %v1031_v8, 1 }
  0x54   : > { %1712 = vmatmul.msk.bf16.gmra.mxu2 %vm542_vm3, %v719_v58  ;;  %v1924_v58 = vld [vmem:[%s2609_s1 + $0x108] sm:$0xff] }
  0x55   : > { %1766 = vmatmul.msk.bf16.gmra.mxu0 %vm542_vm3, %v920_v26  ;;  %v2447_v26 = vsel %vm270_vm1, %v2407_v17, %v281_v41  ;;  %v1044_v11 = vsel %vm710_vm12, %v1041_v45, %v1043_v21  ;;  %v1323_v41 = vpack.c.bf16 %v1306_v24, %v1305_v36 }
  0x56   : > { %1384 = vmatpush.bf16.msra.mxu0 %v1924_v58  ;;  %v1018_v32 = vmul.f32 %v2298_v62, %v2447_v26  ;;  %v1312_v44 = vmul.f32 %v2313_v4, %v2447_v26 }
  0x57   : > { %v1333_v48 = vrot.slane %v1323_v41, 1 }
  0x58   : > { %v1032_v51 = vpack.c.bf16 %v1018_v32, %v1018_v32  ;;  %v1326_v58 = vpack.c.bf16 %v1312_v44, %v1311_v37 }
  0x5a   : > { %1385 = vmatpush.bf16.msra.mxu0 %v1923_v43  ;;  %v1045_v1 = vrot.slane %v1032_v51, 1  ;;  %v1338_v2 = vrot.slane %v1326_v58, 1 }
  0x5c   : > { %1793 = vmatmul.msk.bf16.vlgmr.msrb.gmra.mxu1 %vm542_vm3, %v1040_v35  ;;  %1738 = vmatmul.msk.bf16.gmra.mxu3 %vm542_vm3, %v811_v3  ;;  %v900_v3 = vpack.c.bf16 %v2447_v26, %v2447_v26  ;;  %v1046_v56 = vsel %vm710_vm12, %v1043_v21, %v1045_v1 }
  0x5e   : > { %v933_v35 = vshll.u32 %v900_v3, 16 }
  0x60   : > { %v935_v25 = vrot.slane %v933_v35, 1 }
  0x62   : > { %v936_v40 = vsel %vm481_vm13, %v931_v7, %v935_v25 }
  0x64   : > { %1821 = vmatmul.msk.bf16.vlgmr.msrb.gmra.mxu2 %vm542_vm3, %v1137_v54  ;;  %v1042_v54 = vsel %vm710_vm12, %v1039_v20, %v1041_v45  ;;  %v1127_v20 = vmul.f32 %v2349_v52, %v2447_v26  ;;  %v1324_v52 = vpack.c.bf16 %v1308_v30, %v1307_v5  ;;  %v282_v45 = vmul.f32 0.2, %v260_v22 }
  0x65   : > { %1767 = vmatmul.msk.bf16.gmra.mxu0 %vm542_vm3, %v928_v10  ;;  %v1325_v10 = vpack.c.bf16 %v1310_v18, %v1309_v34 }
  0x66   : > { %v1140_v53 = vpack.c.bf16 %v1127_v20, %v1126_v38  ;;  %v1334_v49 = vrot.slane %v1324_v52, 1  ;;  %v293_v4 = vsel %vm271_vm2, %v260_v22, %v282_v45 }
  0x67   : > { %v1336_v57 = vrot.slane %v1325_v10, 1  ;;  %v1313_v50 = vmul.f32 %v2298_v62, %v293_v4  ;;  %v1224_v20 = vpack.c.bf16 %v293_v4, %v293_v4 }
  0x68   : > { %v1335_v0 = vsel %vm710_vm12, %v1333_v48, %v1334_v49 }
  0x69   : > { %v1339_v14 = vsel %vm710_vm12, %v1336_v57, %v1338_v2  ;;  %v1327_v9 = vpack.c.bf16 %v1313_v50, %v1313_v50  ;;  %v1234_v62 = vshll.u32 %v1224_v20, 16 }
  0x6b   : > { %v1340_v7 = vrot.slane %v1327_v9, 1  ;;  %v1236_v24 = vrot.slane %v1234_v62, 1 }
  0x6c   : > { %1794 = vmatmul.msk.bf16.gmra.mxu1 %vm542_vm3, %v1042_v54  ;;  %1739 = vmatmul.msk.bf16.gmra.mxu3 %vm542_vm3, %v812_v46 }
  0x6d   : > { %v1341_v21 = vsel %vm710_vm12, %v1338_v2, %v1340_v7 }
  0x74   : > { %1822 = vmatmul.msk.bf16.gmra.mxu2 %vm542_vm3, %v1138_v42  ;;  %v813_v42 = vpack.c.bf16 %v800_v23, %v799_v55 }
  0x75   : > { %1768 = vmatmul.msk.bf16.gmra.mxu0 %vm542_vm3, %v936_v40 }
  0x7c   : > { %1795 = vmatmul.msk.bf16.gmra.mxu1 %vm542_vm3, %v1044_v11  ;;  %1740 = vmatmul.msk.bf16.gmra.mxu3 %vm542_vm3, %v813_v42 }
  0x84   : > { %1823 = vmatmul.msk.bf16.gmra.mxu2 %vm542_vm3, %v1139_v31  ;;  %v1337_v31 = vsel %vm710_vm12, %v1334_v49, %v1336_v57  ;;  %vm1457_vm12 = vcmask 519168  }
  0x85   : > { %1877 = vmatmul.msk.bf16.vlgmr.msra.gmra.mxu0 %vm542_vm3, %v1335_v0 }
  0x8c   : > { %1796 = vmatmul.msk.bf16.gmra.mxu1 %vm542_vm3, %v1046_v56  ;;  %1849 = vmatmul.msk.bf16.vlgmr.msra.gmra.mxu3 %vm542_vm3, %v2286_v47  ;;  %v1223_v47 = vpack.c.bf16 %v2447_v26, %v2265_v19 }
  0x8e   : > { %v1226_v43 = vshll.u32 %v1223_v47, 16  ;;  %v1230_v23 = vshrl.u32 %v1223_v47, 16 }
  0x90   : > { %v1228_v54 = vrot.slane %v1226_v43, 1 }
  0x92   : > { %v1229_v19 = vsel %vm481_vm13, %v2303_v63, %v1228_v54  ;;  %v1232_v63 = vor.u32 %v1230_v23, %v1228_v54 }
  0x94   : > { %1824 = vmatmul.msk.bf16.gmra.mxu2 %vm542_vm3, %v1140_v53  ;;  %v1237_v41 = vsel %vm481_vm13, %v1232_v63, %v1236_v24 }
  0x95   : > { %1878 = vmatmul.msk.bf16.gmra.mxu0 %vm542_vm3, %v1337_v31 }
  0x99   : > { %v629_v59 = vpop.f32.mrf.mxu1 }
  0x9c   : > { %1850 = vmatmul.msk.bf16.gmra.mxu3 %vm542_vm3, %v2256_v16 }
  0xa1   : > { %v631_v3 = vpop.f32.mrf.mxu1 }
  0xa2   : > { %v564_v6 = vpop.f32.mrf.mxu0 }
  0xa3   : > { %v630_v46 = vadd.f32 %v629_v59, %v564_v6 }
  0xa5   : > { %1879 = vmatmul.msk.bf16.gmra.mxu0 %vm542_vm3, %v1339_v14 }
  0xa7   : > { %v765_v35 = vpop.f32.mrf.mxu2 }
  0xa8   : > { %v785_v16 = vadd.f32 %v765_v35, %v630_v46 }
  0xa9   : > { %v634_v12 = vpop.f32.mrf.mxu1 }
  0xaa   : > { %v566_v26 = vpop.f32.mrf.mxu0 }
  0xab   : > { %v632_v38 = vadd.f32 %v631_v3, %v566_v26 }
  0xac   : > { %1851 = vmatmul.msk.bf16.gmra.mxu3 %vm542_vm3, %v1229_v19 }
  0xaf   : > { %v574_v25 = vpop.f32.mrf.mxu3  ;;  %v767_v53 = vpop.f32.mrf.mxu2 }
  0xb0   : > { %v786_v8 = vadd.f32 %v767_v53, %v632_v38 }
  0xb1   : > { %v636_v40 = vpop.f32.mrf.mxu1 }
  0xb2   : > { %v569_v55 = vpop.f32.mrf.mxu0 }
  0xb3   : > { %v635_v36 = vadd.f32 %v634_v12, %v569_v55 }
  0xb5   : > { %1880 = vmatmul.msk.bf16.gmra.mxu0 %vm542_vm3, %v1341_v21 }
  0xb7   : > { %v576_v5 = vpop.f32.mrf.mxu3  ;;  %v770_v30 = vpop.f32.mrf.mxu2 }
  0xb8   : > { %v787_v42 = vadd.f32 %v770_v30, %v635_v36 }
  0xb9   : > { %v639_v11 = vpop.f32.mrf.mxu1 }
  0xba   : > { %v571_v52 = vpop.f32.mrf.mxu0  ;;  %v640_v32 = vadd.f32 %v639_v11, %v574_v25 }
  0xbb   : > { %v637_v48 = vadd.f32 %v636_v40, %v571_v52 }
  0xbc   : > { %1852 = vmatmul.msk.bf16.gmra.mxu3 %vm542_vm3, %v1237_v41 }
  0xbf   : > { %v579_v49 = vpop.f32.mrf.mxu3  ;;  %v772_v51 = vpop.f32.mrf.mxu2 }
  0xc0   : > { %v788_v0 = vadd.f32 %v772_v51, %v637_v48 }
  0xc1   : > { %v641_v1 = vpop.f32.mrf.mxu1 }
  0xc2   : > { %v982_v34 = vpop.f32.mrf.mxu0  ;;  %v642_v18 = vadd.f32 %v641_v1, %v576_v5 }
  0xc7   : > { %v2533_v56 = vpop.f32.mrf.mxu3  ;;  %v775_v10 = vpop.f32.mrf.mxu2 }
  0xc8   : > { %v789_v57 = vadd.f32 %v775_v10, %v640_v32 }
  0xc9   : > { %v644_v31 = vpop.f32.mrf.mxu1 }
  0xca   : > { %v984_v37 = vpop.f32.mrf.mxu0  ;;  %v645_v44 = vadd.f32 %v644_v31, %v579_v49  ;;  %v2552_v31 = vld [vmem:[%s2610_s2] ss:$0 sm:$0xff] }
  0xcf   : > { %v859_v15 = vpop.f32.mrf.mxu3  ;;  %v777_v59 = vpop.f32.mrf.mxu2 }
  0xd0   : > { %v879_v58 = vadd.f32 %v859_v15, %v785_v16  ;;  %v790_v22 = vadd.f32 %v777_v59, %v642_v18  ;;  %v1463_v15 = vpack.c.bf16 %v2243_v13, %v2142_v61 }
  0xd1   : > { %v2535_v47 = vpop.f32.mrf.mxu1 }
  0xd2   : > { %v987_v2 = vpop.f32.mrf.mxu0  ;;  %v1002_v45 = vadd.f32 %v982_v34, %v879_v58 }
  0xd7   : > { %v861_v3 = vpop.f32.mrf.mxu3  ;;  %v780_v6 = vpop.f32.mrf.mxu2 }
  0xd8   : > { %v880_v43 = vadd.f32 %v861_v3, %v786_v8  ;;  %v791_v14 = vadd.f32 %v780_v6, %v645_v44 }
  0xd9   : > { %v1092_v46 = vpop.f32.mrf.mxu1 }
  0xda   : > { %v989_v4 = vpop.f32.mrf.mxu0  ;;  %v1112_v54 = vadd.f32 %v1092_v46, %v1002_v45  ;;  %v1003_v50 = vadd.f32 %v984_v37, %v880_v43  ;;  %v1493_v43 = vshrl.u32 %v1463_v15, 16  ;;  %v1462_v46 = vpack.c.bf16 %v2140_v60, %v2078_v29 }
  0xdf   : > { %v864_v35 = vpop.f32.mrf.mxu3  ;;  %v2537_v12 = vpop.f32.mrf.mxu2 }
  0xe0   : > { %v881_v19 = vadd.f32 %v864_v35, %v787_v42 }
  0xe1   : > { %v1094_v11 = vpop.f32.mrf.mxu1 }
  0xe2   : > { %v992_v26 = vpop.f32.mrf.mxu0  ;;  %v1004_v9 = vadd.f32 %v987_v2, %v881_v19  ;;  %v1113_v34 = vadd.f32 %v1094_v11, %v1003_v50  ;;  %v1489_v2 = vshll.u32 %v1463_v15, 16 }
  0xe4   : > { %v1491_v6 = vrot.slane %v1489_v2, 1 }
  0xe7   : > { %v866_v16 = vpop.f32.mrf.mxu3  ;;  %v1186_v38 = vpop.f32.mrf.mxu2 }
  0xe8   : > { %v882_v20 = vadd.f32 %v866_v16, %v788_v0  ;;  %v1206_v7 = vadd.f32 %v1186_v38, %v1112_v54  ;;  %v1485_v16 = vshrl.u32 %v1462_v46, 16  ;;  %v1461_v38 = vpack.c.bf16 %v2076_v28, %v2099_v39 }
  0xe9   : > { %v1097_v48 = vpop.f32.mrf.mxu1 }
  0xea   : > { %v994_v25 = vpop.f32.mrf.mxu0  ;;  %v1005_v53 = vadd.f32 %v989_v4, %v882_v20  ;;  %v1495_v4 = vor.u32 %v1493_v43, %v1491_v6  ;;  %v1114_v50 = vadd.f32 %v1097_v48, %v1004_v9  ;;  %v1473_v60 = vshll.u32 %v1461_v38, 16 }
  0xeb   : > { %v1477_v9 = vshrl.u32 %v1461_v38, 16 }
  0xef   : > { %v869_v40 = vpop.f32.mrf.mxu3  ;;  %v1188_v41 = vpop.f32.mrf.mxu2 }
  0xf0   : > { %v883_v55 = vadd.f32 %v869_v40, %v789_v57  ;;  %v1207_v18 = vadd.f32 %v1188_v41, %v1113_v34 }
  0xf1   : > { %v1099_v44 = vpop.f32.mrf.mxu1 }
  0xf2   : > { %v997_v8 = vpop.f32.mrf.mxu0  ;;  %v2539_v23 = vadd.f32 %v992_v26, %v883_v55 }
  0xf7   : > { %v871_v62 = vpop.f32.mrf.mxu3  ;;  %v1191_v0 = vpop.f32.mrf.mxu2 }
  0xf8   : > { %v884_v21 = vadd.f32 %v871_v62, %v790_v22  ;;  %v1464_v22 = vpack.c.bf16 %v2407_v17, %v2407_v17  ;;  %v1481_v17 = vshll.u32 %v1462_v46, 16  ;;  %v1208_v20 = vadd.f32 %v1191_v0, %v1114_v50 }
  0xf9   : > { %v1475_v62 = vrot.slane %v1473_v60, 1 }
  0xfa   : > { %v2541_v36 = vpop.f32.mrf.mxu0  ;;  %v2543_v63 = vadd.f32 %v994_v25, %v884_v21  ;;  %v1483_v26 = vrot.slane %v1481_v17, 1  ;;  %v1115_v25 = vadd.f32 %v1099_v44, %v1005_v53  ;;  %v1460_v21 = vpack.c.bf16 %v2088_v33, %v2074_v27 }
  0xfc   : > { %v1487_v29 = vor.u32 %v1485_v16, %v1483_v26  ;;  %v1468_v28 = vshll.u32 %v1460_v21, 16 }
  0xfe   : > { %v1470_v53 = vrot.slane %v1468_v28, 1 }
  0xff   : > { %v874_v24 = vpop.f32.mrf.mxu3  ;;  %v1193_v58 = vpop.f32.mrf.mxu2 }
 0x100   : > { %v885_v5 = vadd.f32 %v874_v24, %v791_v14  ;;  %v1497_v14 = vshll.u32 %v1464_v22, 16  ;;  %v1209_v24 = vadd.f32 %v1193_v58, %v1115_v25 }
 0x102   : > { %v2545_v30 = vadd.f32 %v997_v8, %v885_v5  ;;  %v1387_v42 = vpop.f32.mrf.mxu0  ;;  %v1499_v54 = vrot.slane %v1497_v14, 1  ;;  %v1492_v8 = vsel %vm481_vm13, %v1487_v29, %v1491_v6 }
 0x104   : > { %v1500_v19 = vsel %vm481_vm13, %v1495_v4, %v1499_v54 }
 0x105   : > { %1509 = vmatpush.bf16.msra.mxu2 %v1500_v19 }
 0x107   : > { %v2547_v52 = vpop.f32.mrf.mxu3  ;;  %v1196_v55 = vpop.f32.mrf.mxu2 }
 0x109   : > { %1510 = vmatpush.bf16.msra.mxu2 %v1492_v8 }
 0x10a   : > { %v1389_v32 = vpop.f32.mrf.mxu0 }
 0x10f   : > { %v1277_v49 = vpop.f32.mrf.mxu3 }
 0x110   : > { %v1297_v51 = vadd.f32 %v1277_v49, %v1206_v7  ;;  %v1102_v7 = vpop.f32.mrf.mxu1 }
 0x112   : > { %v1407_v1 = vadd.f32 %v1387_v42, %v1297_v51  ;;  %v1392_v57 = vpop.f32.mrf.mxu0  ;;  %v1479_v42 = vor.u32 %v1477_v9, %v1475_v62 }
 0x114   : > { %v2559_v45 = vadd.f32 %v2552_v31, %v1407_v1  ;;  %v1484_v41 = vsel %vm481_vm13, %v1479_v42, %v1483_v26 }
 0x115   : > { %1511 = vmatpush.bf16.msra.mxu2 %v1484_v41 }
 0x117   : > { %v1279_v10 = vpop.f32.mrf.mxu3 }
 0x118   : > { %v1298_v37 = vadd.f32 %v1279_v10, %v1207_v18  ;;  %v1104_v27 = vpop.f32.mrf.mxu1  ;;  %v1198_v18 = vpop.f32.mrf.mxu2 }
 0x119   : > { %v1117_v15 = vadd.f32 %v1104_v27, %v2543_v63 }
 0x11a   : > { %v1408_v59 = vadd.f32 %v1389_v32, %v1298_v37  ;;  %v1394_v35 = vpop.f32.mrf.mxu0  ;;  %v1466_v32 = vshrl.u32 %v1460_v21, 16  ;;  %v1116_v37 = vadd.f32 %v1102_v7, %v2539_v23 }
 0x11b   : > { %v1211_v22 = vadd.f32 %v1198_v18, %v1117_v15 }
 0x11c   : > { %v2562_v3 = vadd.f32 %v2552_v31, %v1408_v59  ;;  %v1471_v51 = vor.u32 %v1470_v53, %v1466_v32  ;;  %v1210_v44 = vadd.f32 %v1196_v55, %v1116_v37 }
 0x11e   : > { %v1429_v61 = vpack.c.bf16 %v2562_v3, %v2559_v45  ;;  %v1476_v33 = vsel %vm481_vm13, %v1471_v51, %v1475_v62 }
 0x11f   : > { %v1282_v13 = vpop.f32.mrf.mxu3  ;;  %1512 = vmatpush.bf16.msra.mxu2 %v1476_v33 }
 0x120   : > { %v1299_v40 = vadd.f32 %v1282_v13, %v1208_v20  ;;  %v1107_v2 = vpop.f32.mrf.mxu1  ;;  %v1201_v46 = vpop.f32.mrf.mxu2  ;;  %v647_v13 = vadd.f32 %v2535_v47, %v2533_v56 }
 0x121   : > { %v1118_v26 = vadd.f32 %v1107_v2, %v2545_v30 }
 0x122   : > { %v1409_v39 = vadd.f32 %v1392_v57, %v1299_v40  ;;  %v1397_v49 = vpop.f32.mrf.mxu0  ;;  %v1927_v57 = vld [vmem:[%s2611_s3] sm:$0xff]  ;;  %v792_v54 = vadd.f32 %v2537_v12, %v647_v13 }
 0x123   : > { %1886 = vmatmul.msk.bf16.vlgmr.msra.gmra.mxu2 %vm542_vm3, %v1927_v57  ;;  %v1212_v20 = vadd.f32 %v1201_v46, %v1118_v26 }
 0x124   : > { %v1421_v0 = vadd.f32 %v2552_v31, %v1409_v39  ;;  %v886_v63 = vadd.f32 %v2547_v52, %v792_v54 }
 0x126   : > { %v1009_v38 = vadd.f32 %v2541_v36, %v886_v63 }
 0x127   : > { %v1284_v5 = vpop.f32.mrf.mxu3 }
 0x128   : > { %v1300_v11 = vadd.f32 %v1284_v5, %v1209_v24  ;;  %v1109_v16 = vpop.f32.mrf.mxu1  ;;  %v1203_v7 = vpop.f32.mrf.mxu2 }
 0x129   : > { %v1119_v56 = vadd.f32 %v1109_v16, %v1009_v38 }
 0x12a   : > { %v1410_v48 = vadd.f32 %v1394_v35, %v1300_v11  ;;  %v1399_v58 = vpop.f32.mrf.mxu0 }
 0x12b   : > { %v1213_v12 = vadd.f32 %v1203_v7, %v1119_v56 }
 0x12c   : > { %v1422_v1 = vadd.f32 %v2552_v31, %v1410_v48 }
 0x12e   : > { %v1430_v34 = vpack.c.bf16 %v1422_v1, %v1421_v0 }
 0x12f   : > { %v1287_v10 = vpop.f32.mrf.mxu3 }
 0x130   : > { %v1301_v59 = vadd.f32 %v1287_v10, %v1210_v44 }
 0x132   : > { %v1411_v43 = vadd.f32 %v1397_v49, %v1301_v59  ;;  %v1402_v35 = vpop.f32.mrf.mxu0 }
 0x134   : > { %v1423_v23 = vadd.f32 %v2552_v31, %v1411_v43 }
 0x137   : > { %v1289_v6 = vpop.f32.mrf.mxu3 }
 0x138   : > { %v1302_v14 = vadd.f32 %v1289_v6, %v1211_v22 }
 0x13a   : > { %v1412_v4 = vadd.f32 %v1399_v58, %v1302_v14  ;;  %v1404_v40 = vpop.f32.mrf.mxu0 }
 0x13c   : > { %v1424_v17 = vadd.f32 %v2552_v31, %v1412_v4 }
 0x13e   : > { %v1431_v50 = vpack.c.bf16 %v1424_v17, %v1423_v23 }
 0x13f   : > { %v1292_v19 = vpop.f32.mrf.mxu3 }
 0x140   : > { %v1303_v47 = vadd.f32 %v1292_v19, %v1212_v20 }
 0x142   : > { %v1413_v60 = vadd.f32 %v1402_v35, %v1303_v47 }
 0x144   : > { %v1425_v52 = vadd.f32 %v2552_v31, %v1413_v60 }
 0x147   : > { %v1294_v29 = vpop.f32.mrf.mxu3 }
 0x148   : > { %v1304_v25 = vadd.f32 %v1294_v29, %v1213_v12 }
 0x14a   : > { %v1414_v55 = vadd.f32 %v1404_v40, %v1304_v25 }
 0x14c   : > { %v1426_v8 = vadd.f32 %v2552_v31, %v1414_v55 }
 0x14e   : > { %v1432_v62 = vpack.c.bf16 %v1426_v8, %v1425_v52 }
 0x150   : > { %1445 = vmatpush.bf16.msra.mxu1 %v1432_v62 }
 0x154   : > { %1446 = vmatpush.bf16.msra.mxu1 %v1431_v50 }
 0x158   : > { %1447 = vmatpush.bf16.msra.mxu1 %v1430_v34 }
 0x15c   : > { %1448 = vmatpush.bf16.msra.mxu1 %v1429_v61 }
 0x15f   : > { %1885 = vmatmul.msk.bf16.vlgmr.msra.gmra.mxu1 %vm542_vm3, %v1927_v57 }
 0x1a6   : > { %v1514_v36 = vpop.f32.mrf.mxu2 }
 0x1a7   : > { %v1519_v9 = vpack.c.bf16 %v1514_v36, %v1514_v36 }
 0x1a9   : > { %1521 = vst.msk [vmem:[%s237_s10] sm:$0xf] %vm1457_vm12, %v1519_v9 }
 0x1ae   : > { %v1516_v30 = vpop.f32.mrf.mxu2 }
 0x1af   : > { %v1520_v31 = vpack.c.bf16 %v1516_v30, %v1516_v30 }
 0x1b1   : > { %1522 = vst.msk [vmem:[%s237_s10 + $0x4] sm:$0xf] %vm1457_vm12, %v1520_v31 }
 0x1dc   : > { %v1450_v45 = vpop.f32.mrf.mxu1 }
 0x1dd   : > { %v1455_v3 = vpack.c.bf16 %v1450_v45, %v1450_v45 }
 0x1df   : > { %1458 = vst.msk [vmem:[%s232_s13] sm:$0xf] %vm1457_vm12, %v1455_v3 }
 0x1e4   : > { %v1452_v61 = vpop.f32.mrf.mxu1 }
 0x1e5   : > { %v1456_v21 = vpack.c.bf16 %v1452_v61, %v1452_v61 }
 0x1e7   : > { %1459 = vst.msk [vmem:[%s232_s13 + $0x4] sm:$0xf] %vm1457_vm12, %v1456_v21 }
 0x1e8 PF: > { %s16_s18 = sadd.s32 1, %s1973_s18  }
 0x1e9   : > { %p13_p4 = scmp.ge.s32.totalorder %s16_s18, 4  }
 0x1eb   :  { %15 = sbr.rel (!%p13_p4) target bundleno = 1 (0x1), region = 86 }

// kernel: star_discriminator_forward.6
= control target key start
LH: loop header
LB: loop body
LE: loop exit
PB: predicated region body
PF: predicated region fallthrough
CT: control target
= control target key end

     0   :  { %s3522_s12 = smov 0   ;;  %s4974_s0 = inlined_call_operand.vmem [shape: bf16[2,290,3], index: 0, kind: input, shape index: {}]   ;;  %s4975_s1 = inlined_call_operand.vmem [shape: bf16[9,3,32], index: 1, kind: input, shape index: {}]   ;;  %s4976_s2 = inlined_call_operand.vmem [shape: f32[1,32], index: 2, kind: input, shape index: {}]   ;;  %s4977_s3 = inlined_call_operand.vmem [shape: bf16[2,256,32], index: 3, kind: output, shape index: {}]  }
   0x1 LB: > { %s3186_s13 = sadd.s32 4294967295, %s3497_s12   ;;  %p3190_p0 = scmp.ge.s32.totalorder %s3497_s12, 1  ;;  %s3497_s12 = sphi %s3522_s12, %s13_s12  }
   0x2   : > { %p137_p1 = scmp.lt.s32.totalorder %s3497_s12, 3 }
   0x4   : > { %p138_p2 = pnand %p3190_p0, %p137_p1 }
   0x6   : > { %141 = sbr.rel (%p138_p2) target bundleno = 737 (0x2e1), region = 32 }
   0xb   : > { %v3226_v0 = vld [vmem:[%s4975_s1 + $0x2] sm:$0x3]  ;;  %vm1105_vm0 = vcmask 1040384   ;;  %vm1106_vm1 = vcmask 1041408   ;;  %p161_p3 = scmp.lt.s32.totalorder %s3186_s13, 1  ;;  %v3499_v1 = vmov 65535  }
   0xc   : > { %v1107_v2 = vsel %vm1105_vm0, 4294967295, %v3499_v1  ;;  %v3259_v3 = vld [vmem:[%s4975_s1 + $0x4] sm:$0x3]  ;;  %v3276_v5 = vld [vmem:[%s4975_s1 + $0x6] sm:$0x3]  ;;  %vm1056_vm3 = vcmask 23552  }
   0xd   : > { %v3537_v4 = vsel %vm1106_vm1, %v1107_v2, 0  ;;  %s5260_s13 = smov (!%p161_p3, %s3186_s13), 1  ;;  %v887_v6 = vld [vmem:[%s4975_s1] sm:$0x3]  ;;  %v3293_v10 = vld [vmem:[%s4975_s1 + $0x8] sm:$0x3] }
   0xe   : > { %v1110_v7 = vand.u32 %v3226_v0, %v3537_v4  ;;  %v1621_v8 = vand.u32 %v3259_v3, %v3537_v4  ;;  %v1843_v9 = vand.u32 %v3276_v5, %v3537_v4  ;;  %s3473_s24 = smul.u32 148, %s5260_s13  ;;  %v1250_v11 = vand.u32 %v3537_v4, %v887_v6  ;;  %s3380_s11 = sshll.u32 %s5260_s13, 7 }
   0xf   : > { %v1990_v12 = vand.u32 %v3293_v10, %v3537_v4  ;;  %vm923_vm2 = vsmask.f32 7424  ;;  %vm1538_vm8 = vcmask 1046528   ;;  %s4723_s16 = scalar_lea.vmem %s4977_s3, %s3380_s11 }
  0x10   : > { %3470 = vmatpush.bf16.msra.mxu1 %v1110_v7  ;;  %3471 = vmatpush.bf16.msra.mxu2 %v1110_v7  ;;  %s3559_s27 = scalar_lea.vmem %s4974_s0, %s3473_s24 }
  0x11   : > { %3472 = vmatpush.bf16.msra.mxu3 %v1110_v7  ;;  %1119 = vmatpush.bf16.msra.mxu0 %v1110_v7  ;;  %v3562_v13 = vld [vmem:[%s3559_s27 + $0x20] sm:$0xff]   ;;  %v3565_v14 = vld [vmem:[%s3559_s27 + $0x28] sm:$0xff]   ;;  %v3614_v46 = vld [vmem:[%s3559_s27 + $0x30] sm:$0xff]  }
  0x12   : > { %v3568_v15 = vld [vmem:[%s3559_s27 + $0x40] sm:$0xff]   ;;  %v3571_v16 = vld [vmem:[%s3559_s27 + $0x48] sm:$0xff]   ;;  %v956_v17 = vshll.u32 %v3562_v13, 16  ;;  %v960_v18 = vshrl.u32 %v3562_v13, 16  ;;  %v964_v19 = vshll.u32 %v3565_v14, 16  ;;  %v3620_v48 = vld [vmem:[%s3559_s27 + $0x50] sm:$0xff]  }
  0x13   : > { %v988_v20 = vshll.u32 %v3568_v15, 16  ;;  %v3578_v21 = vld [vmem:[%s3559_s27 + $0x60] sm:$0xff]   ;;  %v992_v24 = vshrl.u32 %v3568_v15, 16  ;;  %v996_v25 = vshll.u32 %v3571_v16, 16  ;;  %v3465_v26 = vld [vmem:[%s3559_s27 + $0x68] sm:$0xff]   ;;  %v968_v50 = vshrl.u32 %v3565_v14, 16 }
  0x14   : > { %1630 = vmatpush.bf16.msrb.mxu2 %v1621_v8  ;;  %1259 = vmatpush.bf16.msrb.mxu1 %v1250_v11  ;;  %v3580_v22 = vrot.slane %v956_v17, 1  ;;  %v966_v23 = vrot.slane %v964_v19, 1  ;;  %v1020_v30 = vshll.u32 %v3578_v21, 16  ;;  %v3590_v31 = vld [vmem:[%s3559_s27] sm:$0xff]   ;;  %v3593_v32 = vld [vmem:[%s3559_s27 + $0x8] sm:$0xff]   ;;  %v1024_v34 = vshrl.u32 %v3578_v21, 16 }
  0x15   : > { %1852 = vmatpush.bf16.msrb.mxu3 %v1843_v9  ;;  %1999 = vmatpush.bf16.msrb.mxu0 %v1990_v12  ;;  %v3585_v27 = vrot.slane %v988_v20, 1  ;;  %v998_v29 = vrot.slane %v996_v25, 1  ;;  %v1028_v35 = vshll.u32 %v3465_v26, 16  ;;  %v925_v38 = vshrl.u32 %v3590_v31, 16  ;;  %v3466_v55 = vld [vmem:[%s3559_s27 + $0x70] sm:$0xff]   ;;  %v3647_v10 = vld [vmem:[%s3559_s27 + $0x38] sm:$0xff]  }
  0x16   : > { %v962_v28 = vor.u32 %v960_v18, %v3580_v22  ;;  %v3600_v37 = vrot.slane %v1020_v30, 1  ;;  %v927_v41 = vshll.u32 %v3590_v31, 16  ;;  %v932_v42 = vshll.u32 %v3593_v32, 16  ;;  %v3454_v60 = vld [vmem:[%s3559_s27 + $0x10] sm:$0xff]   ;;  %v3651_v12 = vld [vmem:[%s3559_s27 + $0x58] sm:$0xff]  }
  0x17   : > { %v994_v33 = vor.u32 %v992_v24, %v3585_v27  ;;  %v1030_v40 = vrot.slane %v1028_v35, 1  ;;  %v972_v51 = vshll.u32 %v3614_v46, 16  ;;  %v1000_v53 = vshrl.u32 %v3571_v16, 16 }
  0x18   : > { %v3598_v36 = vsel %vm923_vm2, %v962_v28, %v966_v23  ;;  %v1026_v43 = vor.u32 %v1024_v34, %v3600_v37  ;;  %v929_v44 = vrot.slane %v927_v41, 1  ;;  %v934_v45 = vrot.slane %v932_v42, 1  ;;  %v3673_v41 = vld [vmem:[%s3559_s27 + $0x18] sm:$0xff]  }
  0x19   : > { %5076 = vst [vmem:[#allocation2_spill] sm:$0xff] %v3598_v36  ;;  %3231 = vmatmul.msk.bf16.vlgmr.msra.gmra.mxu1 %vm1056_vm3, %v3598_v36  ;;  %v3606_v39 = vsel %vm923_vm2, %v994_v33, %v998_v29  ;;  %v1004_v54 = vshll.u32 %v3620_v48, 16  ;;  %v970_v56 = vor.u32 %v968_v50, %v966_v23  ;;  %v974_v57 = vrot.slane %v972_v51, 1 }
  0x1a   : > { %5077 = vst [vmem:[#allocation3_spill] sm:$0xff] %v3606_v39  ;;  %3235 = vmatmul.msk.bf16.vlgmr.msra.gmra.mxu2 %vm1056_vm3, %v3606_v39  ;;  %v3617_v47 = vsel %vm923_vm2, %v1026_v43, %v1030_v40  ;;  %v930_v49 = vor.u32 %v929_v44, %v925_v38  ;;  %v1032_v58 = vshrl.u32 %v3465_v26, 16  ;;  %v1036_v59 = vshll.u32 %v3466_v55, 16  ;;  %v3666_v26 = vld [vmem:[%s3559_s27 + $0x78] sm:$0xff]  }
  0x1b   : > { %5078 = vst [vmem:[#allocation4_spill] sm:$0xff] %v3617_v47  ;;  %3239 = vmatmul.msk.bf16.vlgmr.msra.gmra.mxu3 %vm1056_vm3, %v3617_v47  ;;  %v1002_v61 = vor.u32 %v1000_v53, %v998_v29  ;;  %v1006_v62 = vrot.slane %v1004_v54, 1  ;;  %v936_v63 = vshrl.u32 %v3593_v32, 16  ;;  %v940_v0 = vshll.u32 %v3454_v60, 16 }
  0x1c   : > { %v935_v52 = vsel %vm923_vm2, %v930_v49, %v934_v45  ;;  %v3634_v1 = vsel %vm923_vm2, %v970_v56, %v974_v57  ;;  %v1034_v2 = vor.u32 %v1032_v58, %v1030_v40  ;;  %v1038_v3 = vrot.slane %v1036_v59, 1 }
  0x1d   : > { %3227 = vmatmul.msk.bf16.vlgmr.msra.gmra.mxu0 %vm1056_vm3, %v935_v52  ;;  %5079 = vst [vmem:[#allocation5_spill] sm:$0xff] %v3634_v1  ;;  %v3637_v5 = vsel %vm923_vm2, %v1002_v61, %v1006_v62  ;;  %v938_v6 = vor.u32 %v936_v63, %v934_v45  ;;  %v942_v7 = vrot.slane %v940_v0, 1  ;;  %v246_v9 = vlaneseq  ;;  %v3468_v61 = vld [vmem:[%s3559_s27 + $0x80] sm:$0xff]  }
  0x1e   : > { %v3644_v8 = vsel %vm923_vm2, %v1034_v2, %v1038_v3  ;;  %v976_v11 = vshrl.u32 %v3614_v46, 16  ;;  %v980_v19 = vshll.u32 %v3647_v10, 16  ;;  %v1008_v20 = vshrl.u32 %v3620_v48, 16 }
  0x1f   : > { %v3653_v17 = vshrl.u32 %v246_v9, 7  ;;  %v3658_v18 = vsel %vm923_vm2, %v938_v6, %v942_v7  ;;  %v1012_v25 = vshll.u32 %v3651_v12, 16  ;;  %v1040_v38 = vshrl.u32 %v3466_v55, 16 }
  0x20   : > { %v978_v28 = vor.u32 %v976_v11, %v974_v57  ;;  %v982_v34 = vrot.slane %v980_v19, 1  ;;  %v1010_v35 = vor.u32 %v1008_v20, %v1006_v62  ;;  %v1044_v40 = vshll.u32 %v3666_v26, 16 }
  0x21   : > { %v248_v23 = vadd.s32 8, %v3653_v17  ;;  %v250_v24 = vadd.s32 24, %v3653_v17  ;;  %v283_v29 = vand.u32 15, %v3653_v17  ;;  %v1014_v42 = vrot.slane %v1012_v25, 1 }
  0x22   : > { %v944_v43 = vshrl.u32 %v3454_v60, 16  ;;  %v4983_v44 = vmov 0.0   ;;  %v948_v50 = vshll.u32 %v3673_v41, 16  ;;  %v3501_v51 = vmov 1.0  }
  0x23   : > { %v290_v30 = vand.u32 15, %v248_v23  ;;  %v304_v33 = vand.u32 15, %v250_v24  ;;  %vm663_vm6 = vcmp.ne.s32.totalorder %v283_v29, 0  ;;  %v3682_v52 = vrot.slane %v3501_v51, 6 }
  0x24   : > { %v3686_v54 = vsel %vm923_vm2, %v978_v28, %v982_v34  ;;  %v1042_v55 = vor.u32 %v1040_v38, %v1038_v3  ;;  %v1046_v56 = vrot.slane %v1044_v40, 1  ;;  %v3689_v58 = vunpack.c.l.bf16 %v3454_v60  ;;  %v3327_v28 = vld [vmem:[%s4975_s1 + $0xc] sm:$0x3]  ;;  %v3344_v38 = vld [vmem:[%s4975_s1 + $0xe] sm:$0x3] }
  0x25   : > { %vm760_vm4 = vcmp.ne.s32.totalorder %v290_v30, 15  ;;  %vm762_vm5 = vcmp.ne.s32.totalorder %v304_v33, 15  ;;  %5080 = vst [vmem:[#allocation6_spill] sm:$0xff] %v3686_v54  ;;  %v3692_v59 = vsel %vm923_vm2, %v1010_v35, %v1014_v42  ;;  %v3696_v62 = vunpack.c.h.bf16 %v3593_v32  ;;  %v3310_v40 = vld [vmem:[%s4975_s1 + $0xa] sm:$0x3] }
  0x26   : > { %v3676_v45 = vsel %vm760_vm4, 1.0, %v4983_v44  ;;  %v3679_v49 = vsel %vm762_vm5, 1.0, %v4983_v44  ;;  %v3698_v63 = vunpack.c.h.bf16 %v3454_v60  ;;  %v3701_v0 = vsel %vm663_vm6, 1.0, %v4983_v44 }
  0x27   : > { %v1374_v53 = vrot.slane %v3676_v45, 6  ;;  %v4978_v57 = vrot.slane %v3679_v49, 6  ;;  %v946_v2 = vor.u32 %v944_v43, %v942_v7  ;;  %v950_v3 = vrot.slane %v948_v50, 1  ;;  %v3361_v43 = vld [vmem:[%s4975_s1 + $0x10] sm:$0x3] }
  0x28   : > { %v3707_v6 = vmul.f32 %v3689_v58, %v3701_v0  ;;  %v3714_v60 = vsel %vm923_vm2, %v1042_v55, %v1046_v56  ;;  %v3716_v11 = vunpack.c.l.bf16 %v3468_v61  ;;  %v984_v29 = vshrl.u32 %v3647_v10, 16 }
  0x29   : > { %3232 = vmatmul.msk.bf16.gmra.mxu1 %vm1056_vm3, %v3634_v1  ;;  %v1375_v9 = vsel %vm1106_vm1, %v3682_v52, %v1374_v53  ;;  %v3722_v7 = vsel %vm1106_vm1, %v3682_v52, %v4978_v57  ;;  %v3739_v25 = vsel %vm923_vm2, %v946_v2, %v950_v3  ;;  %v2486_v33 = vand.u32 %v3327_v28, %v3537_v4 }
  0x2a   : > { %3236 = vmatmul.msk.bf16.gmra.mxu2 %vm1056_vm3, %v3637_v5  ;;  %v3725_v19 = vmul.f32 %v3696_v62, %v1375_v9  ;;  %v3731_v23 = vmul.f32 %v3698_v63, %v3722_v7  ;;  %v3734_v24 = vmul.f32 %v3698_v63, %v1375_v9  ;;  %5081 = vst [vmem:[#allocation7_spill] sm:$0xff] %v3739_v25  ;;  %v1016_v35 = vshrl.u32 %v3651_v12, 16 }
  0x2b   : > { %3240 = vmatmul.msk.bf16.gmra.mxu3 %vm1056_vm3, %v3644_v8  ;;  %v922_v30 = vpack.c.bf16 %v3716_v11, %v3716_v11  ;;  %2495 = vmatpush.bf16.msra.mxu2 %v2486_v33  ;;  %v2633_v45 = vand.u32 %v3344_v38, %v3537_v4  ;;  %v2264_v50 = vand.u32 %v3310_v40, %v3537_v4  ;;  %v1048_v61 = vshrl.u32 %v3666_v26, 16 }
  0x2c   : > { %v2907_v51 = vand.u32 %v3361_v43, %v3537_v4  ;;  %v986_v55 = vor.u32 %v984_v29, %v982_v34  ;;  %v1018_v28 = vor.u32 %v1016_v35, %v1014_v42  ;;  %v952_v33 = vshrl.u32 %v3673_v41, 16 }
  0x2d   : > { %3228 = vmatmul.msk.bf16.gmra.mxu0 %vm1056_vm3, %v3658_v18  ;;  %v1052_v2 = vshll.u32 %v922_v30, 16  ;;  %2642 = vmatpush.bf16.msra.mxu3 %v2633_v45  ;;  %v3769_v57 = vor.u32 %v1048_v61, %v1046_v56  ;;  %v252_v40 = vadd.s32 40, %v3653_v17  ;;  %v3773_v4 = vunpack.c.l.bf16 %v3593_v32 }
  0x2e   : > { %2273 = vmatpush.bf16.msra.mxu1 %v2264_v50  ;;  %2916 = vmatpush.bf16.msra.mxu0 %v2907_v51  ;;  %v3767_v20 = vsel %vm923_vm2, %v986_v55, %v3585_v27  ;;  %v3777_v26 = vsel %vm923_vm2, %v1018_v28, %v3600_v37  ;;  %v3383_v34 = vunpack.c.l.bf16 %v3590_v31  ;;  %v3384_v42 = vunpack.c.h.bf16 %v3590_v31 }
  0x2f   : > { %5082 = vst [vmem:[#allocation8_spill] sm:$0xff] %v3767_v20  ;;  %v1054_v38 = vrot.slane %v1052_v2, 1  ;;  %v3783_v27 = vsel %vm1106_vm1, %v1374_v53, %v3682_v52  ;;  %v954_v56 = vor.u32 %v952_v33, %v950_v3  ;;  %v318_v37 = vand.u32 15, %v252_v40 }
  0x30   : > { %v1469_v29 = vmul.f32 %v3383_v34, %v3682_v52  ;;  %v1470_v30 = vmul.f32 %v3384_v42, %v1375_v9  ;;  %v1471_v31 = vmul.f32 %v3773_v4, %v3783_v27  ;;  %v1472_v53 = vmul.f32 %v3696_v62, %v3722_v7 }
  0x31   : > { %v1055_v32 = vsel %vm923_vm2, %v3769_v57, %v1054_v38  ;;  %v3799_v3 = vsel %vm923_vm2, %v954_v56, %v3580_v22  ;;  %vm764_vm7 = vcmp.ne.s32.totalorder %v318_v37, 15  ;;  %v855_v9 = vmul.f32 %v3383_v34, %v3701_v0 }
  0x32   : > { %5083 = vst [vmem:[#allocation9_spill] sm:$0xff] %v3799_v3  ;;  %v1504_v35 = vpack.c.bf16 %v1470_v30, %v1469_v29  ;;  %v1505_v43 = vpack.c.bf16 %v1472_v53, %v1471_v31  ;;  %v3212_v45 = vsel %vm764_vm7, 1.0, %v4983_v44  ;;  %v249_v55 = vadd.s32 16, %v3653_v17 }
  0x33   : > { %v1382_v61 = vrot.slane %v3212_v45, 6  ;;  %v888_v2 = vpack.c.bf16 %v3384_v42, %v855_v9  ;;  %v1744_v22 = vmul.f32 %v3773_v4, %v3701_v0  ;;  %v254_v28 = vadd.s32 56, %v3653_v17 }
  0x34   : > { %v1539_v50 = vrot.slane %v1504_v35, 1  ;;  %v1540_v51 = vrot.slane %v1505_v43, 1  ;;  %v297_v38 = vand.u32 15, %v249_v55  ;;  %v5084_v40 = vrot.slane %v3679_v49, 6 }
  0x35   : > { %v3818_v56 = vsel %vm1106_vm1, %v3682_v52, %v1382_v61  ;;  %v1778_v42 = vpack.c.bf16 %v3696_v62, %v1744_v22  ;;  %v332_v0 = vand.u32 15, %v254_v28  ;;  %v251_v35 = vadd.s32 32, %v3653_v17 }
  0x36   : > { %v1541_v33 = vsel %vm1538_vm8, %v1539_v50, %v1540_v51  ;;  %v3814_v34 = vsel %vm1106_vm1, %v5084_v40, %v3682_v52  ;;  %5085 = vst [vmem:[#allocation10_spill] sm:$0xff] %v3818_v56  ;;  %vm665_vm9 = vcmp.ne.s32.totalorder %v297_v38, 0  ;;  %v1474_v49 = vmul.f32 %v3698_v63, %v3818_v56 }
  0x37   : > { %v3829_v37 = vsel %vm665_vm9, 1.0, %v4983_v44  ;;  %vm766_vm10 = vcmp.ne.s32.totalorder %v332_v0, 15  ;;  %v256_v50 = vadd.s32 72, %v3653_v17  ;;  %v3842_v55 = vunpack.c.l.bf16 %v3673_v41 }
  0x38   : > { %5086 = vst [vmem:[#allocation11_spill] sm:$0xff] %v3829_v37  ;;  %v857_v30 = vmul.f32 %v3773_v4, %v3829_v37  ;;  %v3213_v31 = vsel %vm766_vm10, 1.0, %v4983_v44  ;;  %v1746_v45 = vmul.f32 %v3689_v58, %v3829_v37  ;;  %v311_v22 = vand.u32 15, %v251_v35 }
  0x39   : > { %3233 = vmatmul.msk.bf16.gmra.mxu1 %vm1056_vm3, %v3686_v54  ;;  %v1386_v43 = vrot.slane %v3213_v31, 6  ;;  %v3850_v28 = vsel %vm1106_vm1, %v1382_v61, %v3682_v52  ;;  %v346_v38 = vand.u32 15, %v256_v50  ;;  %v258_v35 = vadd.s32 88, %v3653_v17 }
  0x3a   : > { %3237 = vmatmul.msk.bf16.gmra.mxu2 %vm1056_vm3, %v3692_v59  ;;  %v889_v9 = vpack.c.bf16 %v3696_v62, %v857_v30  ;;  %5087 = vst [vmem:[#allocation12_spill] sm:$0xff] %v3850_v28  ;;  %vm667_vm11 = vcmp.ne.s32.totalorder %v311_v22, 0 }
  0x3b   : > { %3241 = vmatmul.msk.bf16.gmra.mxu3 %vm1056_vm3, %v3714_v60  ;;  %v3854_v62 = vsel %vm1106_vm1, %v3682_v52, %v1386_v43  ;;  %v3865_v61 = vsel %vm667_vm11, 1.0, %v4983_v44  ;;  %vm768_vm12 = vcmp.ne.s32.totalorder %v346_v38, 15  ;;  %v3886_v22 = vsel %vm1106_vm1, %v1386_v43, %v3682_v52 }
  0x3c   : > { %5088 = vst [vmem:[#allocation13_spill] sm:$0xff] %v3854_v62  ;;  %v3214_v0 = vsel %vm768_vm12, 1.0, %v4983_v44  ;;  %v1748_v31 = vmul.f32 %v3842_v55, %v3865_v61 }
  0x3d   : > { %3229 = vmatmul.msk.bf16.gmra.mxu0 %vm1056_vm3, %v3739_v25  ;;  %5089 = vst [vmem:[#allocation14_spill] sm:$0xff] %v3865_v61 }
  0x3e   : > { %5092 = vst [vmem:[#allocation17_spill] sm:$0xff] %v3886_v22 }
  0x49   : > { %3234 = vmatmul.msk.bf16.gmra.mxu1 %vm1056_vm3, %v3767_v20 }
  0x4a   : > { %3238 = vmatmul.msk.bf16.gmra.mxu2 %vm1056_vm3, %v3777_v26 }
  0x4b   : > { %3242 = vmatmul.msk.bf16.gmra.mxu3 %vm1056_vm3, %v1055_v32  ;;  %v1473_v32 = vmul.f32 %v3689_v58, %v3814_v34 }
  0x4d   : > { %3230 = vmatmul.msk.bf16.gmra.mxu0 %vm1056_vm3, %v3799_v3  ;;  %v1506_v29 = vpack.c.bf16 %v1474_v49, %v1473_v32  ;;  %v253_v49 = vadd.s32 48, %v3653_v17 }
  0x4f   : > { %v1542_v53 = vrot.slane %v1506_v29, 1  ;;  %v1390_v29 = vrot.slane %v3214_v0, 6 }
  0x59   : > { %3243 = vmatmul.msk.bf16.vlgmr.msrb.gmra.mxu1 %vm1056_vm3, %v888_v2  ;;  %v1543_v2 = vsel %vm1538_vm8, %v1540_v51, %v1542_v53 }
  0x5a   : > { %3260 = vmatmul.msk.bf16.vlgmr.msrb.gmra.mxu2 %vm1056_vm3, %v1541_v33  ;;  %v1779_v33 = vpack.c.bf16 %v3698_v63, %v1746_v45  ;;  %v3881_v45 = vunpack.c.h.bf16 %v3562_v13 }
  0x5b   : > { %3277 = vmatmul.msk.bf16.vlgmr.msrb.gmra.mxu3 %vm1056_vm3, %v1778_v42  ;;  %v859_v42 = vmul.f32 %v3689_v58, %v3865_v61 }
  0x5c   : > { %5091 = vst [vmem:[#allocation16_spill] sm:$0xff] %v3881_v45 }
  0x5d   : > { %3294 = vmatmul.msk.bf16.vlgmr.msrb.gmra.mxu0 %vm1056_vm3, %v3658_v18  ;;  %v3845_v18 = vunpack.c.h.bf16 %v3673_v41  ;;  %v1475_v41 = vmul.f32 %v3842_v55, %v3850_v28  ;;  %v890_v30 = vpack.c.bf16 %v3698_v63, %v859_v42 }
  0x5f   : > { %v1476_v51 = vmul.f32 %v3845_v18, %v3854_v62  ;;  %v1780_v38 = vpack.c.bf16 %v3845_v18, %v1748_v31 }
  0x61   : > { %v1507_v40 = vpack.c.bf16 %v1476_v51, %v1475_v41  ;;  %v360_v41 = vand.u32 15, %v258_v35 }
  0x63   : > { %v1544_v32 = vrot.slane %v1507_v40, 1  ;;  %vm770_vm14 = vcmp.ne.s32.totalorder %v360_v41, 15 }
  0x64   : > { %v3215_v42 = vsel %vm770_vm14, 1.0, %v4983_v44 }
  0x65   : > { %v1545_v50 = vsel %vm1538_vm8, %v1542_v53, %v1544_v32 }
  0x69   : > { %3244 = vmatmul.msk.bf16.gmra.mxu1 %vm1056_vm3, %v889_v9  ;;  %v3878_v9 = vunpack.c.l.bf16 %v3562_v13 }
  0x6a   : > { %3261 = vmatmul.msk.bf16.gmra.mxu2 %vm1056_vm3, %v1543_v2  ;;  %v325_v2 = vand.u32 15, %v253_v49  ;;  %v255_v49 = vadd.s32 64, %v3653_v17 }
  0x6b   : > { %3278 = vmatmul.msk.bf16.gmra.mxu3 %vm1056_vm3, %v1779_v33  ;;  %5090 = vst [vmem:[#allocation15_spill] sm:$0xff] %v3878_v9  ;;  %v3890_v33 = vsel %vm1106_vm1, %v3682_v52, %v1390_v29  ;;  %v1477_v13 = vmul.f32 %v3878_v9, %v3886_v22 }
  0x6c   : > { %5093 = vst [vmem:[#allocation18_spill] sm:$0xff] %v3890_v33  ;;  %vm669_vm13 = vcmp.ne.s32.totalorder %v325_v2, 0  ;;  %v1478_v53 = vmul.f32 %v3881_v45, %v3890_v33  ;;  %v3914_v2 = vunpack.c.l.bf16 %v3565_v14 }
  0x6d   : > { %3295 = vmatmul.msk.bf16.gmra.mxu0 %vm1056_vm3, %v3739_v25  ;;  %v3901_v43 = vsel %vm669_vm13, 1.0, %v4983_v44 }
  0x6e   : > { %5094 = vst [vmem:[#allocation19_spill] sm:$0xff] %v3901_v43  ;;  %v1508_v51 = vpack.c.bf16 %v1478_v53, %v1477_v13  ;;  %v861_v40 = vmul.f32 %v3842_v55, %v3901_v43  ;;  %v1750_v35 = vmul.f32 %v3878_v9, %v3901_v43  ;;  %v339_v13 = vand.u32 15, %v255_v49 }
  0x6f   : > { %5095 = vst [vmem:[#allocation20_spill] sm:$0xff] %v3914_v2  ;;  %v3922_v53 = vsel %vm1106_vm1, %v1390_v29, %v3682_v52 }
  0x70   : > { %v1546_v0 = vrot.slane %v1508_v51, 1  ;;  %v891_v31 = vpack.c.bf16 %v3845_v18, %v861_v40  ;;  %5097 = vst [vmem:[#allocation22_spill] sm:$0xff] %v3922_v53  ;;  %v1781_v40 = vpack.c.bf16 %v3881_v45, %v1750_v35  ;;  %vm671_vm15 = vcmp.ne.s32.totalorder %v339_v13, 0 }
  0x71   : > { %v3937_v29 = vsel %vm671_vm15, 1.0, %v4983_v44 }
  0x72   : > { %v1547_v41 = vsel %vm1538_vm8, %v1544_v32, %v1546_v0  ;;  %5099 = vst [vmem:[#allocation24_spill] sm:$0xff] %v3937_v29 }
  0x79   : > { %3245 = vmatmul.msk.bf16.gmra.mxu1 %vm1056_vm3, %v890_v30  ;;  %v1394_v30 = vrot.slane %v3215_v42, 6 }
  0x7a   : > { %3262 = vmatmul.msk.bf16.gmra.mxu2 %vm1056_vm3, %v1545_v50  ;;  %v260_v50 = vadd.s32 104, %v3653_v17 }
  0x7b   : > { %3279 = vmatmul.msk.bf16.gmra.mxu3 %vm1056_vm3, %v1780_v38  ;;  %v3917_v38 = vunpack.c.h.bf16 %v3565_v14  ;;  %v3926_v51 = vsel %vm1106_vm1, %v3682_v52, %v1394_v30  ;;  %v1479_v14 = vmul.f32 %v3914_v2, %v3922_v53 }
  0x7c   : > { %5098 = vst [vmem:[#allocation23_spill] sm:$0xff] %v3926_v51  ;;  %v374_v42 = vand.u32 15, %v260_v50 }
  0x7d   : > { %3296 = vmatmul.msk.bf16.gmra.mxu0 %vm1056_vm3, %v3799_v3  ;;  %5096 = vst [vmem:[#allocation21_spill] sm:$0xff] %v3917_v38  ;;  %v1480_v32 = vmul.f32 %v3917_v38, %v3926_v51 }
  0x7e   : > { %vm772_vm0 = vcmp.ne.s32.totalorder %v374_v42, 15  ;;  %v262_v42 = vadd.s32 120, %v3653_v17 }
  0x7f   : > { %v1509_v49 = vpack.c.bf16 %v1480_v32, %v1479_v14  ;;  %v3216_v35 = vsel %vm772_vm0, 1.0, %v4983_v44  ;;  %v3952_v14 = vunpack.c.l.bf16 %v3614_v46  ;;  %v3955_v32 = vunpack.c.h.bf16 %v3614_v46 }
  0x80   : > { %v1398_v13 = vrot.slane %v3216_v35, 6  ;;  %v3960_v35 = vsel %vm1106_vm1, %v1394_v30, %v3682_v52  ;;  %v388_v43 = vand.u32 15, %v262_v42 }
  0x81   : > { %v1548_v50 = vrot.slane %v1509_v49, 1  ;;  %5100 = vst [vmem:[#allocation25_spill] sm:$0xff] %v3952_v14  ;;  %v1481_v46 = vmul.f32 %v3952_v14, %v3960_v35 }
  0x82   : > { %5101 = vst [vmem:[#allocation26_spill] sm:$0xff] %v3955_v32  ;;  %vm774_vm5 = vcmp.ne.s32.totalorder %v388_v43, 15 }
  0x83   : > { %v1549_v49 = vsel %vm1538_vm8, %v1546_v0, %v1548_v50  ;;  %5102 = vst [vmem:[#allocation27_spill] sm:$0xff] %v3960_v35  ;;  %v259_v35 = vadd.s32 96, %v3653_v17 }
  0x89   : > { %3246 = vmatmul.msk.bf16.gmra.mxu1 %vm1056_vm3, %v891_v31  ;;  %v863_v31 = vmul.f32 %v3878_v9, %v3937_v29 }
  0x8a   : > { %3263 = vmatmul.msk.bf16.gmra.mxu2 %vm1056_vm3, %v1547_v41  ;;  %v257_v41 = vadd.s32 80, %v3653_v17 }
  0x8b   : > { %3280 = vmatmul.msk.bf16.gmra.mxu3 %vm1056_vm3, %v1781_v40  ;;  %v892_v51 = vpack.c.bf16 %v3881_v45, %v863_v31  ;;  %v1752_v40 = vmul.f32 %v3914_v2, %v3937_v29  ;;  %v3964_v31 = vsel %vm1106_vm1, %v3682_v52, %v1398_v13 }
  0x8c   : > { %v353_v44 = vand.u32 15, %v257_v41  ;;  %5103 = vst [vmem:[#allocation28_spill] sm:$0xff] %v3964_v31  ;;  %v1482_v0 = vmul.f32 %v3955_v32, %v3964_v31 }
  0x8d   : > { %3297 = vmatmul.msk.bf16.gmra.mxu0 %vm1056_vm3, %v3598_v36  ;;  %v1782_v29 = vpack.c.bf16 %v3917_v38, %v1752_v40 }
  0x8e   : > { %vm673_vm4 = vcmp.ne.s32.totalorder %v353_v44, 0  ;;  %v1510_v42 = vpack.c.bf16 %v1482_v0, %v1481_v46 }
  0x96   : > { %v3948_v53 = vpop.f32.mrf.mxu1 }
  0x99   : > { %3247 = vmatmul.msk.bf16.gmra.mxu1 %vm1056_vm3, %v892_v51  ;;  %v5105_v51 = vmov 0.0  }
  0x9a   : > { %3264 = vmatmul.msk.bf16.gmra.mxu2 %vm1056_vm3, %v1549_v49  ;;  %v3973_v30 = vpop.f32.mrf.mxu0  ;;  %v3981_v40 = vsel %vm673_vm4, 1.0, %v5105_v51  ;;  %v3217_v31 = vsel %vm774_vm5, 1.0, %v5105_v51 }
  0x9b   : > { %3281 = vmatmul.msk.bf16.gmra.mxu3 %vm1056_vm3, %v1782_v29  ;;  %5106 = vst [vmem:[#allocation30_spill] sm:$0xff] %v3981_v40  ;;  %v865_v49 = vmul.f32 %v3914_v2, %v3981_v40  ;;  %v1550_v29 = vrot.slane %v1510_v42, 1  ;;  %v1402_v33 = vrot.slane %v3217_v31, 6  ;;  %v1754_v46 = vmul.f32 %v3952_v14, %v3981_v40 }
  0x9c   : > { %v4005_v42 = vunpack.c.h.bf16 %v3647_v10  ;;  %v367_v2 = vand.u32 15, %v259_v35 }
  0x9d   : > { %v3976_v41 = vpop.f32.mrf.mxu2  ;;  %3298 = vmatmul.msk.bf16.gmra.mxu0 %vm1056_vm3, %v3634_v1  ;;  %v893_v43 = vpack.c.bf16 %v3917_v38, %v865_v49  ;;  %v4002_v1 = vunpack.c.l.bf16 %v3647_v10  ;;  %v1551_v31 = vsel %vm1538_vm8, %v1548_v50, %v1550_v29  ;;  %v4012_v49 = vsel %vm1106_vm1, %v1398_v13, %v3682_v52 }
  0x9e   : > { %5104 = vst [vmem:[#allocation29_spill] sm:$0xff] %v3976_v41  ;;  %v3978_v36 = vpop.f32.mrf.mxu1  ;;  %v3985_v44 = vpop.f32.mrf.mxu3  ;;  %v4016_v40 = vsel %vm1106_vm1, %v3682_v52, %v1402_v33  ;;  %v1783_v38 = vpack.c.bf16 %v3955_v32, %v1754_v46  ;;  %vm675_vm6 = vcmp.ne.s32.totalorder %v367_v2, 0 }
  0x9f   : > { %5107 = vst [vmem:[#allocation31_spill] sm:$0xff] %v3985_v44  ;;  %v264_v44 = vadd.s32 136, %v3653_v17  ;;  %v1483_v50 = vmul.f32 %v4002_v1, %v4012_v49  ;;  %v1484_v35 = vmul.f32 %v4005_v42, %v4016_v40 }
  0xa0   : > { %5109 = vst [vmem:[#allocation33_spill] sm:$0xff] %v4002_v1 }
  0xa1   : > { %5110 = vst [vmem:[#allocation34_spill] sm:$0xff] %v4005_v42  ;;  %v402_v10 = vand.u32 15, %v264_v44  ;;  %v1511_v44 = vpack.c.bf16 %v1484_v35, %v1483_v50 }
  0xa2   : > { %v3991_v22 = vpop.f32.mrf.mxu0  ;;  %5112 = vst [vmem:[#allocation36_spill] sm:$0xff] %v4012_v49 }
  0xa3   : > { %5113 = vst [vmem:[#allocation37_spill] sm:$0xff] %v4016_v40  ;;  %vm776_vm7 = vcmp.ne.s32.totalorder %v402_v10, 15  ;;  %v261_v40 = vadd.s32 112, %v3653_v17 }
  0xa5   : > { %v3993_v61 = vpop.f32.mrf.mxu2 }
  0xa6   : > { %5108 = vst [vmem:[#allocation32_spill] sm:$0xff] %v3993_v61  ;;  %v3998_v0 = vpop.f32.mrf.mxu1  ;;  %v4008_v3 = vpop.f32.mrf.mxu3 }
  0xa7   : > { %5111 = vst [vmem:[#allocation35_spill] sm:$0xff] %v4008_v3 }
  0xa9   : > { %3248 = vmatmul.msk.bf16.gmra.mxu1 %vm1056_vm3, %v893_v43  ;;  %v4033_v43 = vsel %vm675_vm6, 1.0, %v5105_v51 }
  0xaa   : > { %3265 = vmatmul.msk.bf16.gmra.mxu2 %vm1056_vm3, %v1551_v31  ;;  %v4025_v13 = vpop.f32.mrf.mxu0  ;;  %5115 = vst [vmem:[#allocation39_spill] sm:$0xff] %v4033_v43  ;;  %v867_v46 = vmul.f32 %v3952_v14, %v4033_v43  ;;  %v3218_v31 = vsel %vm776_vm7, 1.0, %v5105_v51  ;;  %v1756_v50 = vmul.f32 %v4002_v1, %v4033_v43  ;;  %v381_v14 = vand.u32 15, %v261_v40 }
  0xab   : > { %3282 = vmatmul.msk.bf16.gmra.mxu3 %vm1056_vm3, %v1783_v38  ;;  %v1552_v38 = vrot.slane %v1511_v44, 1  ;;  %v1406_v49 = vrot.slane %v3218_v31, 6  ;;  %v4057_v44 = vunpack.c.h.bf16 %v3568_v15 }
  0xac   : > { %v894_v10 = vpack.c.bf16 %v3955_v32, %v867_v46  ;;  %v4064_v46 = vsel %vm1106_vm1, %v1402_v33, %v3682_v52  ;;  %v1784_v32 = vpack.c.bf16 %v4005_v42, %v1756_v50  ;;  %vm677_vm9 = vcmp.ne.s32.totalorder %v381_v14, 0 }
  0xad   : > { %v4028_v3 = vpop.f32.mrf.mxu2  ;;  %3299 = vmatmul.msk.bf16.gmra.mxu0 %vm1056_vm3, %v3686_v54  ;;  %v4054_v54 = vunpack.c.l.bf16 %v3568_v15  ;;  %5119 = vst [vmem:[#allocation43_spill] sm:$0xff] %v4057_v44  ;;  %v1553_v31 = vsel %vm1538_vm8, %v1550_v29, %v1552_v38  ;;  %v4068_v43 = vsel %vm1106_vm1, %v3682_v52, %v1406_v49 }
  0xae   : > { %5114 = vst [vmem:[#allocation38_spill] sm:$0xff] %v4028_v3  ;;  %v4030_v62 = vpop.f32.mrf.mxu1  ;;  %v4037_v2 = vpop.f32.mrf.mxu3  ;;  %v1486_v29 = vmul.f32 %v4057_v44, %v4068_v43 }
  0xaf   : > { %5116 = vst [vmem:[#allocation40_spill] sm:$0xff] %v4037_v2  ;;  %v266_v2 = vadd.s32 152, %v3653_v17  ;;  %v1485_v40 = vmul.f32 %v4054_v54, %v4064_v46 }
  0xb0   : > { %5118 = vst [vmem:[#allocation42_spill] sm:$0xff] %v4054_v54 }
  0xb1   : > { %5121 = vst [vmem:[#allocation45_spill] sm:$0xff] %v4064_v46  ;;  %v416_v15 = vand.u32 15, %v266_v2  ;;  %v1512_v2 = vpack.c.bf16 %v1486_v29, %v1485_v40 }
  0xb2   : > { %v4043_v3 = vpop.f32.mrf.mxu0  ;;  %5122 = vst [vmem:[#allocation46_spill] sm:$0xff] %v4068_v43  ;;  %v263_v43 = vadd.s32 128, %v3653_v17 }
  0xb3   : > { %vm778_vm10 = vcmp.ne.s32.totalorder %v416_v15, 15 }
  0xb5   : > { %v4045_v28 = vpop.f32.mrf.mxu2 }
  0xb6   : > { %5117 = vst [vmem:[#allocation41_spill] sm:$0xff] %v4045_v28  ;;  %v4050_v35 = vpop.f32.mrf.mxu1  ;;  %v4060_v61 = vpop.f32.mrf.mxu3 }
  0xb7   : > { %5120 = vst [vmem:[#allocation44_spill] sm:$0xff] %v4060_v61 }
  0xb9   : > { %3249 = vmatmul.msk.bf16.gmra.mxu1 %vm1056_vm3, %v894_v10  ;;  %v4085_v10 = vsel %vm677_vm9, 1.0, %v5105_v51 }
  0xba   : > { %3266 = vmatmul.msk.bf16.gmra.mxu2 %vm1056_vm3, %v1553_v31  ;;  %v4077_v33 = vpop.f32.mrf.mxu0  ;;  %5124 = vst [vmem:[#allocation48_spill] sm:$0xff] %v4085_v10  ;;  %v869_v50 = vmul.f32 %v4002_v1, %v4085_v10  ;;  %v3219_v31 = vsel %vm778_vm10, 1.0, %v5105_v51  ;;  %v1758_v40 = vmul.f32 %v4054_v54, %v4085_v10  ;;  %v395_v1 = vand.u32 15, %v263_v43 }
  0xbb   : > { %3283 = vmatmul.msk.bf16.gmra.mxu3 %vm1056_vm3, %v1784_v32  ;;  %v1554_v32 = vrot.slane %v1512_v2, 1  ;;  %v1410_v46 = vrot.slane %v3219_v31, 6  ;;  %v4109_v2 = vunpack.c.h.bf16 %v3571_v16 }
  0xbc   : > { %v895_v15 = vpack.c.bf16 %v4005_v42, %v869_v50  ;;  %v4116_v50 = vsel %vm1106_vm1, %v1406_v49, %v3682_v52  ;;  %v1785_v42 = vpack.c.bf16 %v4057_v44, %v1758_v40  ;;  %vm679_vm11 = vcmp.ne.s32.totalorder %v395_v1, 0 }
  0xbd   : > { %v4080_v61 = vpop.f32.mrf.mxu2  ;;  %3300 = vmatmul.msk.bf16.gmra.mxu0 %vm1056_vm3, %v3767_v20  ;;  %v4106_v20 = vunpack.c.l.bf16 %v3571_v16  ;;  %v1555_v31 = vsel %vm1538_vm8, %v1552_v38, %v1554_v32  ;;  %5128 = vst [vmem:[#allocation52_spill] sm:$0xff] %v4116_v50  ;;  %v4120_v10 = vsel %vm1106_vm1, %v3682_v52, %v1410_v46 }
  0xbe   : > { %5123 = vst [vmem:[#allocation47_spill] sm:$0xff] %v4080_v61  ;;  %v4082_v28 = vpop.f32.mrf.mxu1  ;;  %v4089_v14 = vpop.f32.mrf.mxu3  ;;  %v1488_v38 = vmul.f32 %v4109_v2, %v4120_v10 }
  0xbf   : > { %5125 = vst [vmem:[#allocation49_spill] sm:$0xff] %v4089_v14  ;;  %v268_v14 = vadd.s32 168, %v3653_v17  ;;  %v1487_v43 = vmul.f32 %v4106_v20, %v4116_v50 }
  0xc0   : > { %5129 = vst [vmem:[#allocation53_spill] sm:$0xff] %v4120_v10  ;;  %v265_v10 = vadd.s32 144, %v3653_v17 }
  0xc1   : > { %v430_v16 = vand.u32 15, %v268_v14  ;;  %v1513_v14 = vpack.c.bf16 %v1488_v38, %v1487_v43  ;;  %v4155_v38 = vunpack.c.l.bf16 %v3620_v48 }
  0xc2   : > { %v4095_v61 = vpop.f32.mrf.mxu0  ;;  %v409_v25 = vand.u32 15, %v265_v10 }
  0xc3   : > { %vm780_vm12 = vcmp.ne.s32.totalorder %v430_v16, 15 }
  0xc4   : > { %vm681_vm13 = vcmp.ne.s32.totalorder %v409_v25, 0 }
  0xc5   : > { %v4097_v37 = vpop.f32.mrf.mxu2 }
  0xc6   : > { %5126 = vst [vmem:[#allocation50_spill] sm:$0xff] %v4097_v37  ;;  %v4102_v29 = vpop.f32.mrf.mxu1  ;;  %v4112_v45 = vpop.f32.mrf.mxu3 }
  0xc7   : > { %5127 = vst [vmem:[#allocation51_spill] sm:$0xff] %v4112_v45 }
  0xc9   : > { %3250 = vmatmul.msk.bf16.gmra.mxu1 %vm1056_vm3, %v895_v15  ;;  %v4137_v15 = vsel %vm679_vm11, 1.0, %v5105_v51 }
  0xca   : > { %3267 = vmatmul.msk.bf16.gmra.mxu2 %vm1056_vm3, %v1555_v31  ;;  %v4129_v49 = vpop.f32.mrf.mxu0  ;;  %5131 = vst [vmem:[#allocation55_spill] sm:$0xff] %v4137_v15  ;;  %v871_v40 = vmul.f32 %v4054_v54, %v4137_v15  ;;  %v3220_v31 = vsel %vm780_vm12, 1.0, %v5105_v51  ;;  %v1760_v43 = vmul.f32 %v4106_v20, %v4137_v15  ;;  %vm3098_vm12 = vcmask 257024  }
  0xcb   : > { %3284 = vmatmul.msk.bf16.gmra.mxu3 %vm1056_vm3, %v1785_v42  ;;  %v1556_v42 = vrot.slane %v1513_v14, 1  ;;  %v1414_v50 = vrot.slane %v3220_v31, 6  ;;  %v4159_v14 = vunpack.c.h.bf16 %v3620_v48 }
  0xcc   : > { %v896_v16 = vpack.c.bf16 %v4057_v44, %v871_v40  ;;  %v4167_v40 = vsel %vm1106_vm1, %v1410_v46, %v3682_v52  ;;  %v1786_v48 = vpack.c.bf16 %v4109_v2, %v1760_v43 }
  0xcd   : > { %v4132_v45 = vpop.f32.mrf.mxu2  ;;  %3301 = vmatmul.msk.bf16.gmra.mxu0 %vm1056_vm3, %v3606_v39  ;;  %v270_v39 = vadd.s32 184, %v3653_v17  ;;  %v1557_v54 = vsel %vm1538_vm8, %v1554_v32, %v1556_v42  ;;  %5135 = vst [vmem:[#allocation59_spill] sm:$0xff] %v4167_v40  ;;  %v4171_v15 = vsel %vm1106_vm1, %v3682_v52, %v1414_v50  ;;  %v1489_v10 = vmul.f32 %v4155_v38, %v4167_v40 }
  0xce   : > { %5130 = vst [vmem:[#allocation54_spill] sm:$0xff] %v4132_v45  ;;  %v4134_v37 = vpop.f32.mrf.mxu1  ;;  %v4141_v1 = vpop.f32.mrf.mxu3  ;;  %v1490_v32 = vmul.f32 %v4159_v14, %v4171_v15 }
  0xcf   : > { %5132 = vst [vmem:[#allocation56_spill] sm:$0xff] %v4141_v1 }
  0xd0   : > { %5136 = vst [vmem:[#allocation60_spill] sm:$0xff] %v4171_v15 }
  0xd2   : > { %v4147_v45 = vpop.f32.mrf.mxu0 }
  0xd5   : > { %v4149_v9 = vpop.f32.mrf.mxu2 }
  0xd6   : > { %5133 = vst [vmem:[#allocation57_spill] sm:$0xff] %v4149_v9  ;;  %v1261_v1 = vpop.f32.mrf.mxu1  ;;  %v4163_v9 = vpop.f32.mrf.mxu3 }
  0xd7   : > { %v1262_v31 = vadd.f32 %v1261_v1, %v3973_v30  ;;  %5134 = vst [vmem:[#allocation58_spill] sm:$0xff] %v4163_v9  ;;  %v444_v30 = vand.u32 15, %v270_v39  ;;  %v1514_v39 = vpack.c.bf16 %v1490_v32, %v1489_v10 }
  0xd9   : > { %3251 = vmatmul.msk.bf16.gmra.mxu1 %vm1056_vm3, %v896_v16  ;;  %v4182_v16 = vsel %vm681_vm13, 1.0, %v5105_v51  ;;  %vm782_vm14 = vcmp.ne.s32.totalorder %v444_v30, 15  ;;  %v1558_v40 = vrot.slane %v1514_v39, 1  ;;  %v4201_v39 = vunpack.c.h.bf16 %v3651_v12 }
  0xda   : > { %3268 = vmatmul.msk.bf16.gmra.mxu2 %vm1056_vm3, %v1557_v54  ;;  %v2001_v46 = vpop.f32.mrf.mxu0  ;;  %5137 = vst [vmem:[#allocation61_spill] sm:$0xff] %v4182_v16  ;;  %v873_v15 = vmul.f32 %v4106_v20, %v4182_v16 }
  0xdb   : > { %3285 = vmatmul.msk.bf16.gmra.mxu3 %vm1056_vm3, %v1786_v48  ;;  %v3221_v48 = vsel %vm782_vm14, 1.0, %v5105_v51 }
  0xdc   : > { %v1418_v41 = vrot.slane %v3221_v48, 6 }
  0xdd   : > { %v1632_v1 = vpop.f32.mrf.mxu2  ;;  %3302 = vmatmul.msk.bf16.gmra.mxu0 %vm1056_vm3, %v3637_v5 }
  0xde   : > { %v1712_v9 = vadd.f32 %v1632_v1, %v1262_v31  ;;  %v1263_v44 = vpop.f32.mrf.mxu1  ;;  %v1854_v25 = vpop.f32.mrf.mxu3  ;;  %v267_v31 = vadd.s32 160, %v3653_v17 }
  0xdf   : > { %v1264_v54 = vadd.f32 %v1263_v44, %v3991_v22  ;;  %v897_v22 = vpack.c.bf16 %v4109_v2, %v873_v15  ;;  %v1762_v44 = vmul.f32 %v4155_v38, %v4182_v16  ;;  %v4207_v15 = vsel %vm1106_vm1, %v1414_v50, %v3682_v52 }
  0xe0   : > { %v1934_v43 = vadd.f32 %v1854_v25, %v1712_v9  ;;  %v4197_v9 = vunpack.c.l.bf16 %v3651_v12  ;;  %v272_v25 = vadd.s32 200, %v3653_v17  ;;  %v423_v48 = vand.u32 15, %v267_v31  ;;  %5139 = vst [vmem:[#allocation63_spill] sm:$0xff] %v4207_v15 }
  0xe1   : > { %v4211_v16 = vsel %vm1106_vm1, %v3682_v52, %v1418_v41  ;;  %v1787_v12 = vpack.c.bf16 %v4159_v14, %v1762_v44 }
  0xe2   : > { %v4191_v1 = vadd.f32 %v2001_v46, %v1934_v43  ;;  %v2003_v30 = vpop.f32.mrf.mxu0  ;;  %v1559_v43 = vsel %vm1538_vm8, %v1556_v42, %v1558_v40  ;;  %5140 = vst [vmem:[#allocation64_spill] sm:$0xff] %v4211_v16  ;;  %vm683_vm15 = vcmp.ne.s32.totalorder %v423_v48, 0  ;;  %v1491_v42 = vmul.f32 %v4197_v9, %v4207_v15 }
  0xe3   : > { %v1492_v50 = vmul.f32 %v4201_v39, %v4211_v16  ;;  %v4224_v44 = vsel %vm683_vm15, 1.0, %v5105_v51  ;;  %v4246_v15 = vunpack.c.h.bf16 %v3578_v21 }
  0xe4   : > { %5138 = vst [vmem:[#allocation62_spill] sm:$0xff] %v4191_v1 }
  0xe5   : > { %v1634_v56 = vpop.f32.mrf.mxu2  ;;  %5141 = vst [vmem:[#allocation65_spill] sm:$0xff] %v4224_v44 }
  0xe6   : > { %v1713_v10 = vadd.f32 %v1634_v56, %v1264_v54  ;;  %v1266_v32 = vpop.f32.mrf.mxu1  ;;  %v1856_v1 = vpop.f32.mrf.mxu3 }
  0xe7   : > { %v1267_v46 = vadd.f32 %v1266_v32, %v4025_v13  ;;  %v458_v13 = vand.u32 15, %v272_v25  ;;  %v1515_v25 = vpack.c.bf16 %v1492_v50, %v1491_v42 }
  0xe8   : > { %v1935_v56 = vadd.f32 %v1856_v1, %v1713_v10 }
  0xe9   : > { %3252 = vmatmul.msk.bf16.gmra.mxu1 %vm1056_vm3, %v897_v22  ;;  %vm784_vm0 = vcmp.ne.s32.totalorder %v458_v13, 15 }
  0xea   : > { %3269 = vmatmul.msk.bf16.gmra.mxu2 %vm1056_vm3, %v1559_v43  ;;  %v4220_v54 = vadd.f32 %v2003_v30, %v1935_v56  ;;  %v2006_v31 = vpop.f32.mrf.mxu0  ;;  %v875_v30 = vmul.f32 %v4155_v38, %v4224_v44  ;;  %v4232_v56 = vsel %vm784_vm0, 1.0, %v5105_v51 }
  0xeb   : > { %3286 = vmatmul.msk.bf16.gmra.mxu3 %vm1056_vm3, %v1787_v12  ;;  %v269_v12 = vadd.s32 176, %v3653_v17  ;;  %v1422_v13 = vrot.slane %v4232_v56, 6 }
  0xec   : > { %v898_v50 = vpack.c.bf16 %v4159_v14, %v875_v30  ;;  %v4252_v30 = vsel %vm1106_vm1, %v1418_v41, %v3682_v52 }
  0xed   : > { %v1637_v1 = vpop.f32.mrf.mxu2  ;;  %3303 = vmatmul.msk.bf16.gmra.mxu0 %vm1056_vm3, %v3692_v59  ;;  %v437_v56 = vand.u32 15, %v269_v12  ;;  %5143 = vst [vmem:[#allocation67_spill] sm:$0xff] %v4252_v30 }
  0xee   : > { %v1714_v10 = vadd.f32 %v1637_v1, %v1267_v46  ;;  %v1268_v22 = vpop.f32.mrf.mxu1  ;;  %v1859_v43 = vpop.f32.mrf.mxu3  ;;  %v1560_v46 = vrot.slane %v1515_v25, 1  ;;  %v274_v25 = vadd.s32 216, %v3653_v17 }
  0xef   : > { %v1269_v32 = vadd.f32 %v1268_v22, %v4043_v3  ;;  %v4242_v22 = vunpack.c.l.bf16 %v3578_v21  ;;  %vm685_vm4 = vcmp.ne.s32.totalorder %v437_v56, 0 }
  0xf0   : > { %v1936_v48 = vadd.f32 %v1859_v43, %v1714_v10  ;;  %v1764_v10 = vmul.f32 %v4197_v9, %v4224_v44  ;;  %v4256_v44 = vsel %vm1106_vm1, %v3682_v52, %v1422_v13 }
  0xf1   : > { %5144 = vst [vmem:[#allocation68_spill] sm:$0xff] %v4256_v44  ;;  %v1494_v41 = vmul.f32 %v4246_v15, %v4256_v44 }
  0xf2   : > { %v4235_v1 = vadd.f32 %v2006_v31, %v1936_v48  ;;  %v2008_v3 = vpop.f32.mrf.mxu0  ;;  %v1561_v48 = vsel %vm1538_vm8, %v1558_v40, %v1560_v46  ;;  %v1788_v21 = vpack.c.bf16 %v4201_v39, %v1764_v10  ;;  %v1493_v40 = vmul.f32 %v4242_v22, %v4252_v30 }
  0xf3   : > { %v4269_v10 = vsel %vm685_vm4, 1.0, %v5105_v51 }
  0xf4   : > { %5142 = vst [vmem:[#allocation66_spill] sm:$0xff] %v4235_v1  ;;  %v877_v56 = vmul.f32 %v4197_v9, %v4269_v10 }
  0xf5   : > { %v1639_v42 = vpop.f32.mrf.mxu2  ;;  %5146 = vst [vmem:[#allocation70_spill] sm:$0xff] %v4269_v10 }
  0xf6   : > { %v1715_v43 = vadd.f32 %v1639_v42, %v1269_v32  ;;  %v1271_v16 = vpop.f32.mrf.mxu1  ;;  %v1861_v1 = vpop.f32.mrf.mxu3 }
  0xf7   : > { %v1272_v31 = vadd.f32 %v1271_v16, %v4077_v33  ;;  %v472_v33 = vand.u32 15, %v274_v25  ;;  %v1516_v25 = vpack.c.bf16 %v1494_v41, %v1493_v40  ;;  %v899_v41 = vpack.c.bf16 %v4201_v39, %v877_v56 }
  0xf8   : > { %v1937_v32 = vadd.f32 %v1861_v1, %v1715_v43  ;;  %v4296_v56 = vsel %vm1106_vm1, %v1422_v13, %v3682_v52 }
  0xf9   : > { %3253 = vmatmul.msk.bf16.gmra.mxu1 %vm1056_vm3, %v898_v50  ;;  %vm786_vm5 = vcmp.ne.s32.totalorder %v472_v33, 15  ;;  %5148 = vst [vmem:[#allocation72_spill] sm:$0xff] %v4296_v56 }
  0xfa   : > { %3270 = vmatmul.msk.bf16.gmra.mxu2 %vm1056_vm3, %v1561_v48  ;;  %v4265_v16 = vadd.f32 %v2008_v3, %v1937_v32  ;;  %v2011_v12 = vpop.f32.mrf.mxu0  ;;  %v4277_v32 = vsel %vm786_vm5, 1.0, %v5105_v51 }
  0xfb   : > { %3287 = vmatmul.msk.bf16.gmra.mxu3 %vm1056_vm3, %v1788_v21  ;;  %v271_v21 = vadd.s32 192, %v3653_v17  ;;  %v1426_v33 = vrot.slane %v4277_v32, 6 }
  0xfc   : > { %5145 = vst [vmem:[#allocation69_spill] sm:$0xff] %v4265_v16 }
  0xfd   : > { %v1642_v1 = vpop.f32.mrf.mxu2  ;;  %3304 = vmatmul.msk.bf16.gmra.mxu0 %vm1056_vm3, %v3777_v26  ;;  %v451_v32 = vand.u32 15, %v271_v21 }
  0xfe   : > { %v1716_v42 = vadd.f32 %v1642_v1, %v1272_v31  ;;  %v1273_v50 = vpop.f32.mrf.mxu1  ;;  %v1864_v48 = vpop.f32.mrf.mxu3  ;;  %v1562_v31 = vrot.slane %v1516_v25, 1  ;;  %v276_v25 = vadd.s32 232, %v3653_v17 }
  0xff   : > { %v1274_v43 = vadd.f32 %v1273_v50, %v4095_v61  ;;  %v3486_v50 = vld [vmem:[%s3559_s27 + $0x68] sm:$0xff]   ;;  %vm687_vm6 = vcmp.ne.s32.totalorder %v451_v32, 0 }
 0x100   : > { %v1938_v3 = vadd.f32 %v1864_v48, %v1716_v42  ;;  %v1766_v42 = vmul.f32 %v4242_v22, %v4269_v10  ;;  %v4287_v48 = vunpack.c.l.bf16 %v3486_v50  ;;  %v4290_v16 = vunpack.c.h.bf16 %v3486_v50 }
 0x101   : > { %v4300_v10 = vsel %vm1106_vm1, %v3682_v52, %v1426_v33 }
 0x102   : > { %v4280_v1 = vadd.f32 %v2011_v12, %v1938_v3  ;;  %v2013_v61 = vpop.f32.mrf.mxu0  ;;  %v1563_v3 = vsel %vm1538_vm8, %v1560_v46, %v1562_v31  ;;  %5149 = vst [vmem:[#allocation73_spill] sm:$0xff] %v4300_v10  ;;  %v1495_v46 = vmul.f32 %v4287_v48, %v4296_v56  ;;  %v1496_v13 = vmul.f32 %v4290_v16, %v4300_v10  ;;  %v3487_v56 = vld [vmem:[%s3559_s27 + $0x70] sm:$0xff]  }
 0x104   : > { %5147 = vst [vmem:[#allocation71_spill] sm:$0xff] %v4280_v1 }
 0x105   : > { %v1644_v40 = vpop.f32.mrf.mxu2 }
 0x106   : > { %v1717_v44 = vadd.f32 %v1644_v40, %v1274_v43  ;;  %v1276_v30 = vpop.f32.mrf.mxu1  ;;  %v1866_v1 = vpop.f32.mrf.mxu3  ;;  %v1789_v40 = vpack.c.bf16 %v4246_v15, %v1766_v42  ;;  %v4313_v42 = vsel %vm687_vm6, 1.0, %v5105_v51 }
 0x107   : > { %v1277_v12 = vadd.f32 %v1276_v30, %v4129_v49  ;;  %v486_v49 = vand.u32 15, %v276_v25  ;;  %5151 = vst [vmem:[#allocation75_spill] sm:$0xff] %v4313_v42  ;;  %v1517_v25 = vpack.c.bf16 %v1496_v13, %v1495_v46  ;;  %v879_v32 = vmul.f32 %v4242_v22, %v4313_v42 }
 0x108   : > { %v1939_v43 = vadd.f32 %v1866_v1, %v1717_v44  ;;  %v1768_v13 = vmul.f32 %v4287_v48, %v4313_v42 }
 0x109   : > { %3254 = vmatmul.msk.bf16.gmra.mxu1 %vm1056_vm3, %v899_v41  ;;  %vm788_vm7 = vcmp.ne.s32.totalorder %v486_v49, 15  ;;  %v900_v46 = vpack.c.bf16 %v4246_v15, %v879_v32 }
 0x10a   : > { %3271 = vmatmul.msk.bf16.gmra.mxu2 %vm1056_vm3, %v1563_v3  ;;  %v4309_v30 = vadd.f32 %v2013_v61, %v1939_v43  ;;  %v2016_v21 = vpop.f32.mrf.mxu0  ;;  %v3224_v43 = vsel %vm788_vm7, 1.0, %v5105_v51 }
 0x10b   : > { %3288 = vmatmul.msk.bf16.gmra.mxu3 %vm1056_vm3, %v1789_v40  ;;  %v273_v40 = vadd.s32 208, %v3653_v17  ;;  %v1430_v49 = vrot.slane %v3224_v43, 6 }
 0x10c   : > { %5150 = vst [vmem:[#allocation74_spill] sm:$0xff] %v4309_v30  ;;  %v4329_v30 = vunpack.c.l.bf16 %v3487_v56 }
 0x10d   : > { %v1647_v44 = vpop.f32.mrf.mxu2  ;;  %3305 = vmatmul.msk.bf16.gmra.mxu0 %vm1056_vm3, %v3617_v47  ;;  %v4340_v32 = vsel %vm1106_vm1, %v3682_v52, %v1430_v49 }
 0x10e   : > { %v1718_v1 = vadd.f32 %v1647_v44, %v1277_v12  ;;  %v1278_v41 = vpop.f32.mrf.mxu1  ;;  %v1869_v3 = vpop.f32.mrf.mxu3  ;;  %v1564_v12 = vrot.slane %v1517_v25, 1  ;;  %v4331_v25 = vunpack.c.h.bf16 %v3487_v56  ;;  %5154 = vst [vmem:[#allocation78_spill] sm:$0xff] %v4340_v32 }
 0x10f   : > { %v1279_v50 = vadd.f32 %v1278_v41, %v4147_v45 }
 0x110   : > { %v1940_v61 = vadd.f32 %v1869_v3, %v1718_v1  ;;  %v278_v3 = vadd.s32 248, %v3653_v17 }
 0x112   : > { %v4322_v44 = vadd.f32 %v2016_v21, %v1940_v61  ;;  %v2018_v10 = vpop.f32.mrf.mxu0  ;;  %v1565_v21 = vsel %vm1538_vm8, %v1562_v31, %v1564_v12  ;;  %v465_v61 = vand.u32 15, %v273_v40  ;;  %v500_v56 = vand.u32 15, %v278_v3 }
 0x114   : > { %5152 = vst [vmem:[#allocation76_spill] sm:$0xff] %v4322_v44  ;;  %v4336_v44 = vsel %vm1106_vm1, %v1426_v33, %v3682_v52  ;;  %vm689_vm9 = vcmp.ne.s32.totalorder %v465_v61, 0  ;;  %v1498_v33 = vmul.f32 %v4331_v25, %v4340_v32  ;;  %vm790_vm10 = vcmp.ne.s32.totalorder %v500_v56, 15 }
 0x115   : > { %v1649_v45 = vpop.f32.mrf.mxu2  ;;  %5153 = vst [vmem:[#allocation77_spill] sm:$0xff] %v4336_v44  ;;  %v1497_v31 = vmul.f32 %v4329_v30, %v4336_v44  ;;  %v3488_v44 = vld [vmem:[%s3559_s27 + $0x78] sm:$0xff]  }
 0x116   : > { %v1719_v41 = vadd.f32 %v1649_v45, %v1279_v50  ;;  %v1281_v1 = vpop.f32.mrf.mxu1  ;;  %v1871_v43 = vpop.f32.mrf.mxu3  ;;  %v1790_v45 = vpack.c.bf16 %v4290_v16, %v1768_v13 }
 0x117   : > { %v1282_v42 = vadd.f32 %v1281_v1, %v3948_v53  ;;  %v1518_v3 = vpack.c.bf16 %v1498_v33, %v1497_v31  ;;  %v3225_v1 = vsel %vm790_vm10, 1.0, %v5105_v51 }
 0x118   : > { %v1941_v50 = vadd.f32 %v1871_v43, %v1719_v41  ;;  %v4365_v56 = vrot.slane %v3225_v1, 6 }
 0x119   : > { %3255 = vmatmul.msk.bf16.gmra.mxu1 %vm1056_vm3, %v900_v46  ;;  %v1566_v43 = vrot.slane %v1518_v3, 1  ;;  %v4373_v3 = vunpack.c.h.bf16 %v3488_v44 }
 0x11a   : > { %3272 = vmatmul.msk.bf16.gmra.mxu2 %vm1056_vm3, %v1565_v21  ;;  %v4349_v40 = vadd.f32 %v2018_v10, %v1941_v50  ;;  %v2021_v47 = vpop.f32.mrf.mxu0  ;;  %v4354_v21 = vsel %vm689_vm9, 1.0, %v5105_v51 }
 0x11b   : > { %3289 = vmatmul.msk.bf16.gmra.mxu3 %vm1056_vm3, %v1790_v45  ;;  %v881_v53 = vmul.f32 %v4287_v48, %v4354_v21 }
 0x11c   : > { %5155 = vst [vmem:[#allocation79_spill] sm:$0xff] %v4349_v40  ;;  %v4371_v40 = vunpack.c.l.bf16 %v3488_v44 }
 0x11d   : > { %v1652_v46 = vpop.f32.mrf.mxu2  ;;  %3306 = vmatmul.msk.bf16.gmra.mxu0 %vm1056_vm3, %v3644_v8 }
 0x11e   : > { %v1720_v41 = vadd.f32 %v1652_v46, %v1282_v42  ;;  %v1283_v13 = vpop.f32.mrf.mxu1  ;;  %v1874_v61 = vpop.f32.mrf.mxu3  ;;  %v275_v42 = vadd.s32 224, %v3653_v17  ;;  %v901_v46 = vpack.c.bf16 %v4290_v16, %v881_v53  ;;  %v4383_v53 = vsel %vm1106_vm1, %v3682_v52, %v4365_v56 }
 0x11f   : > { %v1284_v45 = vadd.f32 %v1283_v13, %v3978_v36  ;;  %v4378_v13 = vsel %vm1106_vm1, %v1430_v49, %v3682_v52  ;;  %5157 = vst [vmem:[#allocation81_spill] sm:$0xff] %v4383_v53  ;;  %v1500_v44 = vmul.f32 %v4373_v3, %v4383_v53 }
 0x120   : > { %v1942_v10 = vadd.f32 %v1874_v61, %v1720_v41  ;;  %v1770_v41 = vmul.f32 %v4329_v30, %v4354_v21  ;;  %5156 = vst [vmem:[#allocation80_spill] sm:$0xff] %v4378_v13 }
 0x122   : > { %v4362_v50 = vadd.f32 %v2021_v47, %v1942_v10  ;;  %v2023_v31 = vpop.f32.mrf.mxu0  ;;  %v1567_v47 = vsel %vm1538_vm8, %v1564_v12, %v1566_v43  ;;  %v479_v10 = vand.u32 15, %v275_v42  ;;  %v1499_v12 = vmul.f32 %v4371_v40, %v4378_v13 }
 0x124   : > { %vm691_vm11 = vcmp.ne.s32.totalorder %v479_v10, 0  ;;  %v1519_v10 = vpack.c.bf16 %v1500_v44, %v1499_v12  ;;  %v4412_v12 = vld [vmem:[%s3559_s27 + $0x80] sm:$0xff]  }
 0x125   : > { %v1654_v33 = vpop.f32.mrf.mxu2  ;;  %v1971_v44 = vshll.u32 %v4412_v12, 16 }
 0x126   : > { %v1721_v61 = vadd.f32 %v1654_v33, %v1284_v45  ;;  %v1286_v32 = vpop.f32.mrf.mxu1  ;;  %v1876_v36 = vpop.f32.mrf.mxu3  ;;  %v1791_v45 = vpack.c.bf16 %v4331_v25, %v1770_v41 }
 0x127   : > { %v1287_v42 = vadd.f32 %v1286_v32, %v3998_v0  ;;  %v277_v0 = vadd.s32 240, %v3653_v17  ;;  %v4404_v32 = vrot.slane %v1519_v10, 1 }
 0x128   : > { %v1943_v1 = vadd.f32 %v1876_v36, %v1721_v61 }
 0x129   : > { %3256 = vmatmul.msk.bf16.gmra.mxu1 %vm1056_vm3, %v901_v46 }
 0x12a   : > { %3273 = vmatmul.msk.bf16.gmra.mxu2 %vm1056_vm3, %v1567_v47  ;;  %v4392_v49 = vadd.f32 %v2023_v31, %v1943_v1  ;;  %v2026_v33 = vpop.f32.mrf.mxu0  ;;  %v4397_v47 = vsel %vm691_vm11, 1.0, %v5105_v51 }
 0x12b   : > { %3290 = vmatmul.msk.bf16.gmra.mxu3 %vm1056_vm3, %v1791_v45  ;;  %5159 = vst [vmem:[#allocation83_spill] sm:$0xff] %v4397_v47  ;;  %v883_v31 = vmul.f32 %v4329_v30, %v4397_v47 }
 0x12c   : > { %5158 = vst [vmem:[#allocation82_spill] sm:$0xff] %v4392_v49 }
 0x12d   : > { %v1657_v46 = vpop.f32.mrf.mxu2  ;;  %3307 = vmatmul.msk.bf16.gmra.mxu0 %vm1056_vm3, %v3714_v60  ;;  %v902_v17 = vpack.c.bf16 %v4331_v25, %v883_v31  ;;  %v1973_v31 = vrot.slane %v1971_v44, 1 }
 0x12e   : > { %v1722_v61 = vadd.f32 %v1657_v46, %v1287_v42  ;;  %v1288_v41 = vpop.f32.mrf.mxu1  ;;  %v1879_v36 = vpop.f32.mrf.mxu3  ;;  %v1772_v42 = vmul.f32 %v4371_v40, %v4397_v47  ;;  %v2115_v46 = vmul.f32 %v3689_v58, %v3783_v27  ;;  %v2113_v47 = vmul.f32 %v3773_v4, %v3682_v52 }
 0x12f   : > { %v1289_v45 = vadd.f32 %v1288_v41, %v4030_v62  ;;  %v2758_v62 = vmul.f32 %v3842_v55, %v3783_v27  ;;  %v1569_v41 = vsel %vm1538_vm8, %v1566_v43, %v4404_v32  ;;  %v1501_v4 = vmul.f32 %v3716_v11, %v4365_v56 }
 0x130   : > { %v1944_v53 = vadd.f32 %v1879_v36, %v1722_v61  ;;  %v1792_v49 = vpack.c.bf16 %v4373_v3, %v1772_v42  ;;  %v2149_v27 = vpack.c.bf16 %v3731_v23, %v2115_v46  ;;  %v3469_v42 = vld [vmem:[%s3559_s27 + $0x88] sm:$0xff]  }
 0x132   : > { %v4406_v1 = vadd.f32 %v2026_v33, %v1944_v53  ;;  %v2028_v61 = vpop.f32.mrf.mxu0  ;;  %v493_v53 = vand.u32 15, %v277_v0  ;;  %v2759_v33 = vmul.f32 %v3845_v18, %v3722_v7  ;;  %v2148_v0 = vpack.c.bf16 %v3725_v19, %v2113_v47 }
 0x133   : > { %v2756_v7 = vmul.f32 %v3689_v58, %v3682_v52  ;;  %v4440_v44 = vrot.slane %v2149_v27, 1  ;;  %v4446_v52 = vsel %vm923_vm2, %v3769_v57, %v1973_v31 }
 0x134   : > { %5160 = vst [vmem:[#allocation84_spill] sm:$0xff] %v4406_v1  ;;  %vm4433_vm1 = vcmp.ne.s32.totalorder %v493_v53, 0  ;;  %v2792_v47 = vpack.c.bf16 %v2759_v33, %v2758_v62 }
 0x135   : > { %v1659_v36 = vpop.f32.mrf.mxu2  ;;  %v2791_v19 = vpack.c.bf16 %v3734_v24, %v2756_v7  ;;  %v4460_v57 = vsel %vm4433_vm1, 1.0, %v5105_v51  ;;  %v4474_v7 = vunpack.c.h.bf16 %v4412_v12 }
 0x136   : > { %v1723_v10 = vadd.f32 %v1659_v36, %v1289_v45  ;;  %v1291_v13 = vpop.f32.mrf.mxu1  ;;  %v1881_v1 = vpop.f32.mrf.mxu3  ;;  %v4455_v24 = vrot.slane %v2792_v47, 1 }
 0x137   : > { %v1292_v23 = vadd.f32 %v1291_v13, %v4050_v35  ;;  %v2825_v53 = vrot.slane %v2791_v19, 1  ;;  %v1520_v13 = vpack.c.bf16 %v1501_v4, %v1501_v4  ;;  %v1975_v19 = vshrl.u32 %v4412_v12, 16 }
 0x138   : > { %v1945_v45 = vadd.f32 %v1881_v1, %v1723_v10  ;;  %v2182_v1 = vrot.slane %v2148_v0, 1 }
 0x139   : > { %3257 = vmatmul.msk.bf16.gmra.mxu1 %vm1056_vm3, %v902_v17  ;;  %v4451_v17 = vunpack.c.l.bf16 %v3469_v42  ;;  %v1570_v0 = vrot.slane %v1520_v13, 1 }
 0x13a   : > { %3274 = vmatmul.msk.bf16.gmra.mxu2 %vm1056_vm3, %v1569_v41  ;;  %v4448_v58 = vadd.f32 %v2028_v61, %v1945_v45  ;;  %v2031_v46 = vpop.f32.mrf.mxu0  ;;  %v2184_v10 = vsel %vm1538_vm8, %v2182_v1, %v4440_v44  ;;  %v885_v41 = vmul.f32 %v4371_v40, %v4460_v57  ;;  %v1774_v1 = vmul.f32 %v3716_v11, %v4460_v57 }
 0x13b   : > { %3291 = vmatmul.msk.bf16.gmra.mxu3 %vm1056_vm3, %v1792_v49  ;;  %v2827_v49 = vsel %vm1538_vm8, %v2825_v53, %v4455_v24  ;;  %v1969_v45 = vpack.c.bf16 %v4451_v17, %v4451_v17 }
 0x13c   : > { %v903_v42 = vpack.c.bf16 %v4373_v3, %v885_v41 }
 0x13d   : > { %v1662_v36 = vpop.f32.mrf.mxu2  ;;  %3308 = vmatmul.msk.bf16.gmra.mxu0 %vm1056_vm3, %v4446_v52  ;;  %v1979_v47 = vshll.u32 %v1969_v45, 16 }
 0x13e   : > { %v1724_v62 = vadd.f32 %v1662_v36, %v1292_v23  ;;  %v1293_v35 = vpop.f32.mrf.mxu1  ;;  %v1884_v61 = vpop.f32.mrf.mxu3 }
 0x13f   : > { %v1294_v51 = vadd.f32 %v1293_v35, %v4082_v28  ;;  %v4484_v35 = vor.u32 %v1975_v19, %v1973_v31  ;;  %v1981_v13 = vrot.slane %v1979_v47, 1 }
 0x140   : > { %v1946_v33 = vadd.f32 %v1884_v61, %v1724_v62  ;;  %v1793_v62 = vpack.c.bf16 %v4474_v7, %v1774_v1 }
 0x142   : > { %v4470_v27 = vadd.f32 %v2031_v46, %v1946_v33  ;;  %v2033_v43 = vpop.f32.mrf.mxu0  ;;  %v1571_v46 = vsel %vm1538_vm8, %v4404_v32, %v1570_v0  ;;  %v1982_v32 = vsel %vm923_vm2, %v4484_v35, %v1981_v13 }
 0x145   : > { %v1664_v4 = vpop.f32.mrf.mxu2 }
 0x146   : > { %v1725_v23 = vadd.f32 %v1664_v4, %v1294_v51  ;;  %v1296_v36 = vpop.f32.mrf.mxu1  ;;  %v1886_v53 = vpop.f32.mrf.mxu3 }
 0x147   : > { %v1297_v12 = vadd.f32 %v1296_v36, %v4102_v29  ;;  %v5163_v36 = vpack.c.bf16 %v3698_v63, %v3707_v6 }
 0x148   : > { %v1947_v28 = vadd.f32 %v1886_v53, %v1725_v23  ;;  %v5164_v53 = vld [vmem:[#allocation10_spill] sm:$0xff] }
 0x149   : > { %3258 = vmatmul.msk.bf16.gmra.mxu1 %vm1056_vm3, %v903_v42 }
 0x14a   : > { %3275 = vmatmul.msk.bf16.gmra.mxu2 %vm1056_vm3, %v1571_v46  ;;  %v4487_v61 = vadd.f32 %v2033_v43, %v1947_v28  ;;  %v2036_v33 = vpop.f32.mrf.mxu0  ;;  %v2117_v46 = vmul.f32 %v3842_v55, %v3814_v34  ;;  %v2118_v28 = vmul.f32 %v3845_v18, %v5164_v53 }
 0x14b   : > { %3292 = vmatmul.msk.bf16.gmra.mxu3 %vm1056_vm3, %v1793_v62  ;;  %v5165_v62 = vld [vmem:[#allocation29_spill] sm:$0xff] }
 0x14c   : > { %v2150_v63 = vpack.c.bf16 %v2118_v28, %v2117_v46 }
 0x14d   : > { %v1667_v41 = vpop.f32.mrf.mxu2  ;;  %3309 = vmatmul.msk.bf16.gmra.mxu0 %vm1056_vm3, %v1982_v32 }
 0x14e   : > { %v1726_v45 = vadd.f32 %v1667_v41, %v1297_v12  ;;  %v1298_v0 = vpop.f32.mrf.mxu1  ;;  %v1889_v31 = vpop.f32.mrf.mxu3 }
 0x14f   : > { %v1299_v43 = vadd.f32 %v1298_v0, %v4134_v37  ;;  %v5167_v0 = vld [vmem:[#allocation15_spill] sm:$0xff] }
 0x150   : > { %v1948_v51 = vadd.f32 %v1889_v31, %v1726_v45  ;;  %v2760_v31 = vmul.f32 %v5167_v0, %v3814_v34 }
 0x152   : > { %v4494_v4 = vadd.f32 %v2036_v33, %v1948_v51  ;;  %v2038_v42 = vpop.f32.mrf.mxu0  ;;  %v5166_v33 = vld [vmem:[#allocation7_spill] sm:$0xff]  ;;  %v5168_v51 = vld [vmem:[#allocation16_spill] sm:$0xff] }
 0x155   : > { %v1669_v1 = vpop.f32.mrf.mxu2 }
 0x156   : > { %v1727_v29 = vadd.f32 %v1669_v1, %v1299_v43  ;;  %v1301_v19 = vpop.f32.mrf.mxu1  ;;  %v1891_v47 = vpop.f32.mrf.mxu3  ;;  %v2761_v43 = vmul.f32 %v5168_v51, %v5164_v53  ;;  %v5169_v1 = vld [vmem:[#allocation11_spill] sm:$0xff] }
 0x157   : > { %v1302_v13 = vadd.f32 %v1301_v19, %v5165_v62 }
 0x158   : > { %v1949_v23 = vadd.f32 %v1891_v47, %v1727_v29  ;;  %v2389_v29 = vmul.f32 %v3842_v55, %v5169_v1  ;;  %v5170_v47 = vld [vmem:[#allocation32_spill] sm:$0xff]  ;;  %v2793_v28 = vpack.c.bf16 %v2761_v43, %v2760_v31  ;;  %v5174_v31 = vld [vmem:[#allocation9_spill] sm:$0xff] }
 0x159   : > { %3311 = vmatmul.msk.bf16.vlgmr.msra.gmra.mxu1 %vm1056_vm3, %v2184_v10  ;;  %v5171_v55 = vld [vmem:[#allocation12_spill] sm:$0xff] }
 0x15a   : > { %3328 = vmatmul.msk.bf16.vlgmr.msra.gmra.mxu2 %vm1056_vm3, %v5163_v36  ;;  %v4506_v37 = vadd.f32 %v2038_v42, %v1949_v23  ;;  %v2041_v12 = vpop.f32.mrf.mxu0  ;;  %v2185_v42 = vrot.slane %v2150_v63, 1  ;;  %v2422_v34 = vpack.c.bf16 %v3845_v18, %v2389_v29 }
 0x15b   : > { %3345 = vmatmul.msk.bf16.vlgmr.msra.gmra.mxu3 %vm1056_vm3, %v5166_v33 }
 0x15d   : > { %v1672_v10 = vpop.f32.mrf.mxu2  ;;  %3362 = vmatmul.msk.bf16.vlgmr.msra.gmra.mxu0 %vm1056_vm3, %v2827_v49 }
 0x15e   : > { %v1728_v32 = vadd.f32 %v1672_v10, %v1302_v13  ;;  %v1303_v41 = vpop.f32.mrf.mxu1  ;;  %v1894_v6 = vpop.f32.mrf.mxu3  ;;  %v2186_v13 = vsel %vm1538_vm8, %v4440_v44, %v2185_v42  ;;  %v2828_v10 = vrot.slane %v2793_v28, 1 }
 0x15f   : > { %v1304_v23 = vadd.f32 %v1303_v41, %v5170_v47 }
 0x160   : > { %v1950_v45 = vadd.f32 %v1894_v6, %v1728_v32  ;;  %v5172_v32 = vld [vmem:[#allocation13_spill] sm:$0xff]  ;;  %v5173_v6 = vld [vmem:[#allocation38_spill] sm:$0xff]  ;;  %v2829_v18 = vsel %vm1538_vm8, %v4455_v24, %v2828_v10 }
 0x161   : > { %v2120_v41 = vmul.f32 %v5168_v51, %v5172_v32  ;;  %v5179_v24 = vld [vmem:[#allocation41_spill] sm:$0xff] }
 0x162   : > { %v4518_v19 = vadd.f32 %v2041_v12, %v1950_v45  ;;  %v2043_v36 = vpop.f32.mrf.mxu0  ;;  %v2119_v12 = vmul.f32 %v5167_v0, %v5171_v55 }
 0x164   : > { %v2151_v47 = vpack.c.bf16 %v2120_v41, %v2119_v12 }
 0x165   : > { %v1674_v46 = vpop.f32.mrf.mxu2 }
 0x166   : > { %v1729_v49 = vadd.f32 %v1674_v46, %v1304_v23  ;;  %v1306_v62 = vpop.f32.mrf.mxu1  ;;  %v1896_v33 = vpop.f32.mrf.mxu3 }
 0x167   : > { %v1307_v45 = vadd.f32 %v1306_v62, %v5173_v6 }
 0x168   : > { %v1951_v53 = vadd.f32 %v1896_v33, %v1729_v49  ;;  %v5176_v49 = vld [vmem:[#allocation21_spill] sm:$0xff] }
 0x169   : > { %3312 = vmatmul.msk.bf16.gmra.mxu1 %vm1056_vm3, %v2186_v13  ;;  %v2763_v62 = vmul.f32 %v5176_v49, %v5172_v32  ;;  %v2187_v13 = vrot.slane %v2151_v47, 1 }
 0x16a   : > { %3329 = vmatmul.msk.bf16.gmra.mxu2 %vm1056_vm3, %v2422_v34  ;;  %v4530_v63 = vadd.f32 %v2043_v36, %v1951_v53  ;;  %v2046_v44 = vpop.f32.mrf.mxu0  ;;  %v5175_v36 = vld [vmem:[#allocation20_spill] sm:$0xff]  ;;  %v5177_v34 = vld [vmem:[#allocation14_spill] sm:$0xff] }
 0x16b   : > { %3346 = vmatmul.msk.bf16.gmra.mxu3 %vm1056_vm3, %v5174_v31  ;;  %v2762_v28 = vmul.f32 %v5175_v36, %v5171_v55  ;;  %v2391_v33 = vmul.f32 %v5167_v0, %v5177_v34  ;;  %v5180_v0 = vld [vmem:[#allocation17_spill] sm:$0xff]  ;;  %v5184_v34 = vld [vmem:[#allocation2_spill] sm:$0xff] }
 0x16d   : > { %v1677_v43 = vpop.f32.mrf.mxu2  ;;  %3363 = vmatmul.msk.bf16.gmra.mxu0 %vm1056_vm3, %v2829_v18  ;;  %v2794_v41 = vpack.c.bf16 %v2763_v62, %v2762_v28  ;;  %v2423_v55 = vpack.c.bf16 %v5168_v51, %v2391_v33  ;;  %v5183_v28 = vld [vmem:[#allocation47_spill] sm:$0xff] }
 0x16e   : > { %v1730_v1 = vadd.f32 %v1677_v43, %v1307_v45  ;;  %v1308_v29 = vpop.f32.mrf.mxu1  ;;  %v1899_v23 = vpop.f32.mrf.mxu3  ;;  %v2188_v43 = vsel %vm1538_vm8, %v2185_v42, %v2187_v13 }
 0x16f   : > { %v1309_v6 = vadd.f32 %v1308_v29, %v5179_v24  ;;  %v2830_v32 = vrot.slane %v2794_v41, 1  ;;  %v5181_v29 = vld [vmem:[#allocation18_spill] sm:$0xff] }
 0x170   : > { %v1952_v46 = vadd.f32 %v1899_v23, %v1730_v1  ;;  %v2122_v47 = vmul.f32 %v5176_v49, %v5181_v29 }
 0x171   : > { %v2831_v51 = vsel %vm1538_vm8, %v2828_v10, %v2830_v32  ;;  %v5189_v10 = vld [vmem:[#allocation50_spill] sm:$0xff] }
 0x172   : > { %v4544_v53 = vadd.f32 %v2046_v44, %v1952_v46  ;;  %v2048_v45 = vpop.f32.mrf.mxu0  ;;  %v2121_v44 = vmul.f32 %v5175_v36, %v5180_v0 }
 0x174   : > { %5178 = vst [vmem:[#allocation10_spill] sm:$0xff] %v4544_v53 }
 0x175   : > { %v1679_v12 = vpop.f32.mrf.mxu2 }
 0x176   : > { %v1731_v31 = vadd.f32 %v1679_v12, %v1309_v6  ;;  %v1311_v18 = vpop.f32.mrf.mxu1  ;;  %v1901_v1 = vpop.f32.mrf.mxu3  ;;  %v2152_v12 = vpack.c.bf16 %v2122_v47, %v2121_v44 }
 0x177   : > { %v1312_v62 = vadd.f32 %v1311_v18, %v5183_v28 }
 0x178   : > { %v1953_v23 = vadd.f32 %v1901_v1, %v1731_v31  ;;  %v2189_v1 = vrot.slane %v2152_v12, 1 }
 0x179   : > { %3313 = vmatmul.msk.bf16.gmra.mxu1 %vm1056_vm3, %v2188_v43  ;;  %v5185_v43 = vld [vmem:[#allocation25_spill] sm:$0xff] }
 0x17a   : > { %3330 = vmatmul.msk.bf16.gmra.mxu2 %vm1056_vm3, %v2423_v55  ;;  %v4555_v46 = vadd.f32 %v2048_v45, %v1953_v23  ;;  %v2051_v42 = vpop.f32.mrf.mxu0  ;;  %v2764_v45 = vmul.f32 %v5185_v43, %v5180_v0  ;;  %v5186_v55 = vld [vmem:[#allocation26_spill] sm:$0xff]  ;;  %v5187_v23 = vld [vmem:[#allocation19_spill] sm:$0xff] }
 0x17b   : > { %3347 = vmatmul.msk.bf16.gmra.mxu3 %vm1056_vm3, %v5184_v34  ;;  %v2765_v18 = vmul.f32 %v5186_v55, %v5181_v29  ;;  %v2393_v28 = vmul.f32 %v5175_v36, %v5187_v23  ;;  %v5190_v36 = vld [vmem:[#allocation22_spill] sm:$0xff]  ;;  %v5194_v23 = vld [vmem:[#allocation5_spill] sm:$0xff] }
 0x17c   : > { %5182 = vst [vmem:[#allocation29_spill] sm:$0xff] %v4555_v46 }
 0x17d   : > { %v1682_v33 = vpop.f32.mrf.mxu2  ;;  %3364 = vmatmul.msk.bf16.gmra.mxu0 %vm1056_vm3, %v2831_v51  ;;  %v2795_v47 = vpack.c.bf16 %v2765_v18, %v2764_v45  ;;  %v2424_v0 = vpack.c.bf16 %v5176_v49, %v2393_v28  ;;  %v5193_v45 = vld [vmem:[#allocation54_spill] sm:$0xff] }
 0x17e   : > { %v1732_v24 = vadd.f32 %v1682_v33, %v1312_v62  ;;  %v1313_v6 = vpop.f32.mrf.mxu1  ;;  %v1904_v41 = vpop.f32.mrf.mxu3 }
 0x17f   : > { %v1314_v62 = vadd.f32 %v1313_v6, %v5189_v10  ;;  %v2832_v29 = vrot.slane %v2795_v47, 1  ;;  %v5191_v6 = vld [vmem:[#allocation23_spill] sm:$0xff] }
 0x180   : > { %v1954_v31 = vadd.f32 %v1904_v41, %v1732_v24  ;;  %v2190_v24 = vsel %vm1538_vm8, %v2187_v13, %v2189_v1  ;;  %v2124_v12 = vmul.f32 %v5186_v55, %v5191_v6 }
 0x181   : > { %v2833_v49 = vsel %vm1538_vm8, %v2830_v32, %v2832_v29  ;;  %v5199_v32 = vld [vmem:[#allocation57_spill] sm:$0xff] }
 0x182   : > { %v4568_v34 = vadd.f32 %v2051_v42, %v1954_v31  ;;  %v2053_v33 = vpop.f32.mrf.mxu0  ;;  %v2123_v42 = vmul.f32 %v5185_v43, %v5190_v36 }
 0x184   : > { %5188 = vst [vmem:[#allocation7_spill] sm:$0xff] %v4568_v34 }
 0x185   : > { %v1684_v44 = vpop.f32.mrf.mxu2 }
 0x186   : > { %v1733_v51 = vadd.f32 %v1684_v44, %v1314_v62  ;;  %v1316_v46 = vpop.f32.mrf.mxu1  ;;  %v1906_v41 = vpop.f32.mrf.mxu3  ;;  %v2153_v44 = vpack.c.bf16 %v2124_v12, %v2123_v42 }
 0x187   : > { %v1317_v18 = vadd.f32 %v1316_v46, %v5193_v45 }
 0x188   : > { %v1955_v53 = vadd.f32 %v1906_v41, %v1733_v51  ;;  %v5197_v41 = vld [vmem:[#allocation24_spill] sm:$0xff] }
 0x189   : > { %3314 = vmatmul.msk.bf16.gmra.mxu1 %vm1056_vm3, %v2190_v24  ;;  %v5195_v24 = vld [vmem:[#allocation33_spill] sm:$0xff]  ;;  %v2395_v45 = vmul.f32 %v5185_v43, %v5197_v41  ;;  %v5200_v43 = vld [vmem:[#allocation27_spill] sm:$0xff]  ;;  %v5204_v41 = vld [vmem:[#allocation6_spill] sm:$0xff] }
 0x18a   : > { %3331 = vmatmul.msk.bf16.gmra.mxu2 %vm1056_vm3, %v2424_v0  ;;  %v4579_v31 = vadd.f32 %v2053_v33, %v1955_v53  ;;  %v2056_v13 = vpop.f32.mrf.mxu0  ;;  %v2766_v53 = vmul.f32 %v5195_v24, %v5190_v36  ;;  %v5196_v33 = vld [vmem:[#allocation34_spill] sm:$0xff]  ;;  %v2191_v0 = vrot.slane %v2153_v44, 1 }
 0x18b   : > { %3348 = vmatmul.msk.bf16.gmra.mxu3 %vm1056_vm3, %v5194_v23  ;;  %v2767_v46 = vmul.f32 %v5196_v33, %v5191_v6  ;;  %v2425_v36 = vpack.c.bf16 %v5186_v55, %v2395_v45 }
 0x18c   : > { %5192 = vst [vmem:[#allocation15_spill] sm:$0xff] %v4579_v31 }
 0x18d   : > { %v1687_v28 = vpop.f32.mrf.mxu2  ;;  %3365 = vmatmul.msk.bf16.gmra.mxu0 %vm1056_vm3, %v2833_v49  ;;  %v2796_v12 = vpack.c.bf16 %v2767_v46, %v2766_v53  ;;  %v5203_v53 = vld [vmem:[#allocation31_spill] sm:$0xff] }
 0x18e   : > { %v1734_v10 = vadd.f32 %v1687_v28, %v1317_v18  ;;  %v1318_v62 = vpop.f32.mrf.mxu1  ;;  %v1909_v47 = vpop.f32.mrf.mxu3 }
 0x18f   : > { %v1319_v18 = vadd.f32 %v1318_v62, %v5199_v32  ;;  %v2834_v6 = vrot.slane %v2796_v12, 1  ;;  %v5201_v62 = vld [vmem:[#allocation28_spill] sm:$0xff] }
 0x190   : > { %v1956_v51 = vadd.f32 %v1909_v47, %v1734_v10  ;;  %v2192_v10 = vsel %vm1538_vm8, %v2189_v1, %v2191_v0  ;;  %v2126_v44 = vmul.f32 %v5196_v33, %v5201_v62 }
 0x191   : > { %v2835_v55 = vsel %vm1538_vm8, %v2832_v29, %v2834_v6  ;;  %v5208_v29 = vld [vmem:[#allocation35_spill] sm:$0xff] }
 0x192   : > { %v4592_v23 = vadd.f32 %v2056_v13, %v1956_v51  ;;  %v2058_v28 = vpop.f32.mrf.mxu0  ;;  %v2125_v13 = vmul.f32 %v5195_v24, %v5200_v43 }
 0x194   : > { %5198 = vst [vmem:[#allocation16_spill] sm:$0xff] %v4592_v23 }
 0x195   : > { %v1689_v42 = vpop.f32.mrf.mxu2 }
 0x196   : > { %v1735_v49 = vadd.f32 %v1689_v42, %v1319_v18  ;;  %v1321_v31 = vpop.f32.mrf.mxu1  ;;  %v1911_v47 = vpop.f32.mrf.mxu3  ;;  %v2154_v42 = vpack.c.bf16 %v2126_v44, %v2125_v13 }
 0x197   : > { %v1322_v46 = vadd.f32 %v1321_v31, %v5203_v53 }
 0x198   : > { %v1957_v34 = vadd.f32 %v1911_v47, %v1735_v49  ;;  %v5207_v47 = vld [vmem:[#allocation30_spill] sm:$0xff] }
 0x199   : > { %3315 = vmatmul.msk.bf16.gmra.mxu1 %vm1056_vm3, %v2192_v10  ;;  %v5205_v10 = vld [vmem:[#allocation42_spill] sm:$0xff]  ;;  %v2397_v53 = vmul.f32 %v5195_v24, %v5207_v47  ;;  %v5209_v24 = vld [vmem:[#allocation36_spill] sm:$0xff] }
 0x19a   : > { %3332 = vmatmul.msk.bf16.gmra.mxu2 %vm1056_vm3, %v2425_v36  ;;  %v4603_v51 = vadd.f32 %v2058_v28, %v1957_v34  ;;  %v2061_v1 = vpop.f32.mrf.mxu0  ;;  %v2768_v34 = vmul.f32 %v5205_v10, %v5200_v43  ;;  %v5206_v28 = vld [vmem:[#allocation43_spill] sm:$0xff]  ;;  %v2193_v36 = vrot.slane %v2154_v42, 1  ;;  %v5212_v47 = vld [vmem:[#allocation8_spill] sm:$0xff] }
 0x19b   : > { %3349 = vmatmul.msk.bf16.gmra.mxu3 %vm1056_vm3, %v5204_v41  ;;  %v2769_v31 = vmul.f32 %v5206_v28, %v5201_v62  ;;  %v2426_v43 = vpack.c.bf16 %v5196_v33, %v2397_v53 }
 0x19c   : > { %5202 = vst [vmem:[#allocation11_spill] sm:$0xff] %v4603_v51 }
 0x19d   : > { %v1692_v45 = vpop.f32.mrf.mxu2  ;;  %3366 = vmatmul.msk.bf16.gmra.mxu0 %vm1056_vm3, %v2835_v55  ;;  %v2797_v44 = vpack.c.bf16 %v2769_v31, %v2768_v34  ;;  %v5211_v34 = vld [vmem:[#allocation40_spill] sm:$0xff] }
 0x19e   : > { %v1736_v32 = vadd.f32 %v1692_v45, %v1322_v46  ;;  %v1323_v18 = vpop.f32.mrf.mxu1  ;;  %v1914_v12 = vpop.f32.mrf.mxu3 }
 0x19f   : > { %v1324_v46 = vadd.f32 %v1323_v18, %v5208_v29  ;;  %v2836_v62 = vrot.slane %v2797_v44, 1  ;;  %v5210_v18 = vld [vmem:[#allocation37_spill] sm:$0xff] }
 0x1a0   : > { %v1958_v49 = vadd.f32 %v1914_v12, %v1736_v32  ;;  %v2194_v32 = vsel %vm1538_vm8, %v2191_v0, %v2193_v36  ;;  %v2128_v42 = vmul.f32 %v5206_v28, %v5210_v18 }
 0x1a1   : > { %v2837_v33 = vsel %vm1538_vm8, %v2834_v6, %v2836_v62  ;;  %v5214_v6 = vld [vmem:[#allocation44_spill] sm:$0xff] }
 0x1a2   : > { %v4616_v41 = vadd.f32 %v2061_v1, %v1958_v49  ;;  %v2063_v45 = vpop.f32.mrf.mxu0  ;;  %v2127_v1 = vmul.f32 %v5205_v10, %v5209_v24 }
 0x1a5   : > { %v1694_v13 = vpop.f32.mrf.mxu2 }
 0x1a6   : > { %v1737_v55 = vadd.f32 %v1694_v13, %v1324_v46  ;;  %v1326_v51 = vpop.f32.mrf.mxu1  ;;  %v1916_v12 = vpop.f32.mrf.mxu3  ;;  %v2155_v13 = vpack.c.bf16 %v2128_v42, %v2127_v1 }
 0x1a7   : > { %v1327_v31 = vadd.f32 %v1326_v51, %v5211_v34  ;;  %v2771_v51 = vmul.f32 %v4109_v2, %v5210_v18 }
 0x1a8   : > { %v1959_v23 = vadd.f32 %v1916_v12, %v1737_v55 }
 0x1a9   : > { %3316 = vmatmul.msk.bf16.gmra.mxu1 %vm1056_vm3, %v2194_v32  ;;  %v5213_v32 = vld [vmem:[#allocation39_spill] sm:$0xff] }
 0x1aa   : > { %3333 = vmatmul.msk.bf16.gmra.mxu2 %vm1056_vm3, %v2426_v43  ;;  %v4627_v49 = vadd.f32 %v2063_v45, %v1959_v23  ;;  %v2066_v0 = vpop.f32.mrf.mxu0  ;;  %v2770_v23 = vmul.f32 %v4106_v20, %v5209_v24  ;;  %v2195_v45 = vrot.slane %v2155_v13, 1  ;;  %v2399_v43 = vmul.f32 %v5205_v10, %v5213_v32  ;;  %v5215_v10 = vld [vmem:[#allocation45_spill] sm:$0xff]  ;;  %v5218_v32 = vld [vmem:[#allocation3_spill] sm:$0xff] }
 0x1ab   : > { %3350 = vmatmul.msk.bf16.gmra.mxu3 %vm1056_vm3, %v5212_v47 }
 0x1ac   : > { %v2798_v42 = vpack.c.bf16 %v2771_v51, %v2770_v23  ;;  %v2427_v24 = vpack.c.bf16 %v5206_v28, %v2399_v43  ;;  %v5217_v23 = vld [vmem:[#allocation49_spill] sm:$0xff] }
 0x1ad   : > { %v1697_v53 = vpop.f32.mrf.mxu2  ;;  %3367 = vmatmul.msk.bf16.gmra.mxu0 %vm1056_vm3, %v2837_v33 }
 0x1ae   : > { %v1738_v29 = vadd.f32 %v1697_v53, %v1327_v31  ;;  %v1328_v46 = vpop.f32.mrf.mxu1  ;;  %v1919_v44 = vpop.f32.mrf.mxu3  ;;  %v2196_v53 = vsel %vm1538_vm8, %v2193_v36, %v2195_v45  ;;  %v2838_v18 = vrot.slane %v2798_v42, 1 }
 0x1af   : > { %v1329_v34 = vadd.f32 %v1328_v46, %v5214_v6  ;;  %v5216_v46 = vld [vmem:[#allocation46_spill] sm:$0xff] }
 0x1b0   : > { %v1960_v55 = vadd.f32 %v1919_v44, %v1738_v29  ;;  %v2130_v13 = vmul.f32 %v4109_v2, %v5216_v46  ;;  %v2839_v28 = vsel %vm1538_vm8, %v2836_v62, %v2838_v18  ;;  %v5220_v62 = vld [vmem:[#allocation51_spill] sm:$0xff] }
 0x1b2   : > { %v4640_v12 = vadd.f32 %v2066_v0, %v1960_v55  ;;  %v2068_v31 = vpop.f32.mrf.mxu0  ;;  %v2129_v0 = vmul.f32 %v4106_v20, %v5215_v10 }
 0x1b5   : > { %v1699_v1 = vpop.f32.mrf.mxu2 }
 0x1b6   : > { %v1739_v47 = vadd.f32 %v1699_v1, %v1329_v34  ;;  %v1331_v33 = vpop.f32.mrf.mxu1  ;;  %v1921_v29 = vpop.f32.mrf.mxu3  ;;  %v2156_v1 = vpack.c.bf16 %v2130_v13, %v2129_v0 }
 0x1b7   : > { %v1332_v51 = vadd.f32 %v1331_v33, %v5217_v23  ;;  %v2773_v33 = vmul.f32 %v4159_v14, %v5216_v46 }
 0x1b8   : > { %v1961_v44 = vadd.f32 %v1921_v29, %v1739_v47 }
 0x1b9   : > { %3317 = vmatmul.msk.bf16.gmra.mxu1 %vm1056_vm3, %v2196_v53  ;;  %v2197_v53 = vrot.slane %v2156_v1, 1 }
 0x1ba   : > { %3334 = vmatmul.msk.bf16.gmra.mxu2 %vm1056_vm3, %v2427_v24  ;;  %v4651_v55 = vadd.f32 %v2068_v31, %v1961_v44  ;;  %v2071_v36 = vpop.f32.mrf.mxu0  ;;  %v2772_v31 = vmul.f32 %v4155_v38, %v5215_v10  ;;  %v5219_v24 = vld [vmem:[#allocation48_spill] sm:$0xff] }
 0x1bb   : > { %3351 = vmatmul.msk.bf16.gmra.mxu3 %vm1056_vm3, %v5218_v32  ;;  %v2401_v29 = vmul.f32 %v4106_v20, %v5219_v24  ;;  %v5221_v20 = vld [vmem:[#allocation52_spill] sm:$0xff] }
 0x1bc   : > { %v2799_v13 = vpack.c.bf16 %v2773_v33, %v2772_v31  ;;  %v5223_v31 = vld [vmem:[#allocation56_spill] sm:$0xff] }
 0x1bd   : > { %v1702_v43 = vpop.f32.mrf.mxu2  ;;  %3368 = vmatmul.msk.bf16.gmra.mxu0 %vm1056_vm3, %v2839_v28  ;;  %v2428_v10 = vpack.c.bf16 %v4109_v2, %v2401_v29 }
 0x1be   : > { %v1740_v6 = vadd.f32 %v1702_v43, %v1332_v51  ;;  %v1333_v34 = vpop.f32.mrf.mxu1  ;;  %v1924_v42 = vpop.f32.mrf.mxu3  ;;  %v2198_v43 = vsel %vm1538_vm8, %v2195_v45, %v2197_v53  ;;  %v2840_v46 = vrot.slane %v2799_v13, 1 }
 0x1bf   : > { %v1334_v23 = vadd.f32 %v1333_v34, %v5220_v62  ;;  %v5222_v34 = vld [vmem:[#allocation53_spill] sm:$0xff] }
 0x1c0   : > { %v1962_v47 = vadd.f32 %v1924_v42, %v1740_v6  ;;  %v2132_v1 = vmul.f32 %v4159_v14, %v5222_v34  ;;  %v2841_v2 = vsel %vm1538_vm8, %v2838_v18, %v2840_v46  ;;  %v5225_v18 = vld [vmem:[#allocation58_spill] sm:$0xff] }
 0x1c2   : > { %v4664_v44 = vadd.f32 %v2071_v36, %v1962_v47  ;;  %v2073_v51 = vpop.f32.mrf.mxu0  ;;  %v2131_v36 = vmul.f32 %v4155_v38, %v5221_v20 }
 0x1c5   : > { %v1704_v0 = vpop.f32.mrf.mxu2 }
 0x1c6   : > { %v1741_v32 = vadd.f32 %v1704_v0, %v1334_v23  ;;  %v1336_v28 = vpop.f32.mrf.mxu1  ;;  %v1926_v6 = vpop.f32.mrf.mxu3  ;;  %v2157_v23 = vpack.c.bf16 %v2132_v1, %v2131_v36 }
 0x1c7   : > { %v1337_v33 = vadd.f32 %v1336_v28, %v5223_v31 }
 0x1c8   : > { %v1963_v42 = vadd.f32 %v1926_v6, %v1741_v32  ;;  %v2775_v32 = vmul.f32 %v4201_v39, %v5222_v34  ;;  %v2199_v28 = vrot.slane %v2157_v23, 1 }
 0x1c9   : > { %3318 = vmatmul.msk.bf16.gmra.mxu1 %vm1056_vm3, %v2198_v43  ;;  %v5224_v43 = vld [vmem:[#allocation55_spill] sm:$0xff] }
 0x1ca   : > { %3335 = vmatmul.msk.bf16.gmra.mxu2 %vm1056_vm3, %v2428_v10  ;;  %v4675_v47 = vadd.f32 %v2073_v51, %v1963_v42  ;;  %v2076_v45 = vpop.f32.mrf.mxu0  ;;  %v2774_v51 = vmul.f32 %v4197_v9, %v5221_v20 }
 0x1cb   : > { %3352 = vmatmul.msk.bf16.gmra.mxu3 %vm1056_vm3, %v3637_v5  ;;  %v2403_v5 = vmul.f32 %v4155_v38, %v5224_v43  ;;  %v5226_v38 = vld [vmem:[#allocation59_spill] sm:$0xff] }
 0x1cc   : > { %v2800_v1 = vpack.c.bf16 %v2775_v32, %v2774_v51 }
 0x1cd   : > { %v1707_v24 = vpop.f32.mrf.mxu2  ;;  %3369 = vmatmul.msk.bf16.gmra.mxu0 %vm1056_vm3, %v2841_v2  ;;  %v2200_v2 = vsel %vm1538_vm8, %v2197_v53, %v2199_v28  ;;  %v2429_v20 = vpack.c.bf16 %v4159_v14, %v2403_v5 }
 0x1ce   : > { %v1742_v29 = vadd.f32 %v1707_v24, %v1337_v33  ;;  %v1338_v62 = vpop.f32.mrf.mxu1  ;;  %v1929_v0 = vpop.f32.mrf.mxu3  ;;  %v2842_v34 = vrot.slane %v2800_v1, 1  ;;  %v2776_v1 = vmul.f32 %v4242_v22, %v5226_v38 }
 0x1cf   : > { %v1339_v6 = vadd.f32 %v1338_v62, %v5225_v18  ;;  %v5227_v62 = vld [vmem:[#allocation60_spill] sm:$0xff] }
 0x1d0   : > { %v1964_v13 = vadd.f32 %v1929_v0, %v1742_v29  ;;  %v2134_v23 = vmul.f32 %v4201_v39, %v5227_v62  ;;  %v2843_v14 = vsel %vm1538_vm8, %v2840_v46, %v2842_v34 }
 0x1d2   : > { %v4688_v10 = vadd.f32 %v2076_v45, %v1964_v13  ;;  %v2078_v42 = vpop.f32.mrf.mxu0  ;;  %v2133_v45 = vmul.f32 %v4197_v9, %v5226_v38  ;;  %v5228_v13 = vld [vmem:[#allocation62_spill] sm:$0xff] }
 0x1d4   : > { %v2158_v18 = vpack.c.bf16 %v2134_v23, %v2133_v45 }
 0x1d5   : > { %v1709_v36 = vpop.f32.mrf.mxu2 }
 0x1d6   : > { %v1743_v31 = vadd.f32 %v1709_v36, %v1339_v6  ;;  %v2275_v33 = vpop.f32.mrf.mxu1  ;;  %v1931_v24 = vpop.f32.mrf.mxu3  ;;  %v2201_v46 = vrot.slane %v2158_v18, 1 }
 0x1d7   : > { %v2355_v51 = vadd.f32 %v2275_v33, %v5228_v13 }
 0x1d8   : > { %v1965_v29 = vadd.f32 %v1931_v24, %v1743_v31  ;;  %v5229_v31 = vld [vmem:[#allocation61_spill] sm:$0xff] }
 0x1d9   : > { %3319 = vmatmul.msk.bf16.gmra.mxu1 %vm1056_vm3, %v2200_v2  ;;  %v2405_v33 = vmul.f32 %v4197_v9, %v5229_v31  ;;  %v2202_v9 = vsel %vm1538_vm8, %v2199_v28, %v2201_v46 }
 0x1da   : > { %3336 = vmatmul.msk.bf16.gmra.mxu2 %vm1056_vm3, %v2429_v20  ;;  %v4699_v0 = vadd.f32 %v2078_v42, %v1965_v29  ;;  %v2918_v53 = vpop.f32.mrf.mxu0  ;;  %v4709_v42 = vld [vmem:[%s4976_s2] ss:$0 sm:$0xff] }
 0x1db   : > { %3353 = vmatmul.msk.bf16.gmra.mxu3 %vm1056_vm3, %v3692_v59  ;;  %v2777_v59 = vmul.f32 %v4246_v15, %v5227_v62  ;;  %v2430_v13 = vpack.c.bf16 %v4201_v39, %v2405_v33 }
 0x1dd   : > { %v2497_v32 = vpop.f32.mrf.mxu2  ;;  %3370 = vmatmul.msk.bf16.gmra.mxu0 %vm1056_vm3, %v2843_v14  ;;  %v2801_v23 = vpack.c.bf16 %v2777_v59, %v2776_v1 }
 0x1de   : > { %v2577_v43 = vadd.f32 %v2497_v32, %v2355_v51  ;;  %v2277_v5 = vpop.f32.mrf.mxu1  ;;  %v2644_v6 = vpop.f32.mrf.mxu3  ;;  %v5230_v32 = vld [vmem:[#allocation63_spill] sm:$0xff] }
 0x1df   : > { %v2356_v20 = vadd.f32 %v2277_v5, %v4220_v54  ;;  %v2844_v14 = vrot.slane %v2801_v23, 1  ;;  %v5231_v5 = vld [vmem:[#allocation64_spill] sm:$0xff]  ;;  %v2778_v23 = vmul.f32 %v4287_v48, %v5230_v32 }
 0x1e0   : > { %v2724_v36 = vadd.f32 %v2644_v6, %v2577_v43  ;;  %v2135_v43 = vmul.f32 %v4242_v22, %v5230_v32  ;;  %v2136_v18 = vmul.f32 %v4246_v15, %v5231_v5  ;;  %v5232_v6 = vld [vmem:[#allocation66_spill] sm:$0xff] }
 0x1e1   : > { %v2845_v59 = vsel %vm1538_vm8, %v2842_v34, %v2844_v14  ;;  %v5233_v34 = vld [vmem:[#allocation65_spill] sm:$0xff] }
 0x1e2   : > { %v2998_v2 = vadd.f32 %v2918_v53, %v2724_v36  ;;  %v2920_v29 = vpop.f32.mrf.mxu0 }
 0x1e4   : > { %v3034_v24 = vadd.f32 %v4709_v42, %v2998_v2 }
 0x1e5   : > { %v2499_v45 = vpop.f32.mrf.mxu2 }
 0x1e6   : > { %v2578_v38 = vadd.f32 %v2499_v45, %v2356_v20  ;;  %v2280_v62 = vpop.f32.mrf.mxu1  ;;  %v3066_v51 = vpack.c.bf16 %v3034_v24, %v3034_v24  ;;  %v2646_v54 = vpop.f32.mrf.mxu3  ;;  %v2159_v20 = vpack.c.bf16 %v2136_v18, %v2135_v43 }
 0x1e7   : > { %v2357_v39 = vadd.f32 %v2280_v62, %v5232_v6  ;;  %v2407_v62 = vmul.f32 %v4242_v22, %v5233_v34 }
 0x1e8   : > { %3099 = vst.msk [vmem:[%s4723_s16] sm:$0xf] %vm3098_vm12, %v3066_v51  ;;  %v2725_v53 = vadd.f32 %v2646_v54, %v2578_v38  ;;  %v2203_v38 = vrot.slane %v2159_v20, 1  ;;  %v5237_v20 = vld [vmem:[#allocation71_spill] sm:$0xff] }
 0x1e9   : > { %3320 = vmatmul.msk.bf16.gmra.mxu1 %vm1056_vm3, %v2202_v9 }
 0x1ea   : > { %3337 = vmatmul.msk.bf16.gmra.mxu2 %vm1056_vm3, %v2430_v13  ;;  %v2999_v28 = vadd.f32 %v2920_v29, %v2725_v53  ;;  %v2923_v1 = vpop.f32.mrf.mxu0  ;;  %v5234_v13 = vld [vmem:[#allocation69_spill] sm:$0xff]  ;;  %v2204_v32 = vsel %vm1538_vm8, %v2201_v46, %v2203_v38 }
 0x1eb   : > { %3354 = vmatmul.msk.bf16.gmra.mxu3 %vm1056_vm3, %v3777_v26  ;;  %v2779_v26 = vmul.f32 %v4290_v16, %v5231_v5 }
 0x1ec   : > { %v3035_v36 = vadd.f32 %v4709_v42, %v2999_v28 }
 0x1ed   : > { %v2502_v31 = vpop.f32.mrf.mxu2  ;;  %3371 = vmatmul.msk.bf16.gmra.mxu0 %vm1056_vm3, %v2845_v59  ;;  %v2802_v18 = vpack.c.bf16 %v2779_v26, %v2778_v23 }
 0x1ee   : > { %v2579_v33 = vadd.f32 %v2502_v31, %v2357_v39  ;;  %v2282_v2 = vpop.f32.mrf.mxu1  ;;  %v3067_v24 = vpack.c.bf16 %v3035_v36, %v3035_v36  ;;  %v2649_v45 = vpop.f32.mrf.mxu3  ;;  %v2431_v39 = vpack.c.bf16 %v4246_v15, %v2407_v62 }
 0x1ef   : > { %v2358_v51 = vadd.f32 %v2282_v2, %v5234_v13  ;;  %v2846_v22 = vrot.slane %v2802_v18, 1 }
 0x1f0   : > { %3100 = vst.msk [vmem:[%s4723_s16 + $0x4] sm:$0xf] %vm3098_vm12, %v3067_v24  ;;  %v2726_v29 = vadd.f32 %v2649_v45, %v2579_v33  ;;  %v5236_v33 = vld [vmem:[#allocation68_spill] sm:$0xff] }
 0x1f1   : > { %v2138_v2 = vmul.f32 %v4290_v16, %v5236_v33  ;;  %v2847_v23 = vsel %vm1538_vm8, %v2844_v14, %v2846_v22  ;;  %v5239_v14 = vld [vmem:[#allocation70_spill] sm:$0xff] }
 0x1f2   : > { %v3000_v9 = vadd.f32 %v2923_v1, %v2726_v29  ;;  %v2925_v53 = vpop.f32.mrf.mxu0  ;;  %v5235_v1 = vld [vmem:[#allocation67_spill] sm:$0xff]  ;;  %v5238_v29 = vld [vmem:[#allocation4_spill] sm:$0xff] }
 0x1f3   : > { %v2137_v31 = vmul.f32 %v4287_v48, %v5235_v1 }
 0x1f4   : > { %v3036_v54 = vadd.f32 %v4709_v42, %v3000_v9 }
 0x1f5   : > { %v2504_v43 = vpop.f32.mrf.mxu2  ;;  %v2160_v9 = vpack.c.bf16 %v2138_v2, %v2137_v31 }
 0x1f6   : > { %v2580_v28 = vadd.f32 %v2504_v43, %v2358_v51  ;;  %v2285_v6 = vpop.f32.mrf.mxu1  ;;  %v3068_v36 = vpack.c.bf16 %v3036_v54, %v3036_v54  ;;  %v2651_v5 = vpop.f32.mrf.mxu3  ;;  %v2781_v43 = vmul.f32 %v4331_v25, %v5236_v33 }
 0x1f7   : > { %v2359_v15 = vadd.f32 %v2285_v6, %v5237_v20  ;;  %v2205_v18 = vrot.slane %v2160_v9, 1 }
 0x1f8   : > { %3101 = vst.msk [vmem:[%s4723_s16 + $0x8] sm:$0xf] %vm3098_vm12, %v3068_v36  ;;  %v2727_v59 = vadd.f32 %v2651_v5, %v2580_v28  ;;  %v2409_v28 = vmul.f32 %v4287_v48, %v5239_v14 }
 0x1f9   : > { %3321 = vmatmul.msk.bf16.gmra.mxu1 %vm1056_vm3, %v2204_v32  ;;  %v5240_v32 = vld [vmem:[#allocation74_spill] sm:$0xff] }
 0x1fa   : > { %3338 = vmatmul.msk.bf16.gmra.mxu2 %vm1056_vm3, %v2431_v39  ;;  %v3001_v46 = vadd.f32 %v2925_v53, %v2727_v59  ;;  %v2928_v45 = vpop.f32.mrf.mxu0  ;;  %v2780_v53 = vmul.f32 %v4329_v30, %v5235_v1  ;;  %v2206_v1 = vsel %vm1538_vm8, %v2203_v38, %v2205_v18  ;;  %v2432_v20 = vpack.c.bf16 %v4290_v16, %v2409_v28 }
 0x1fb   : > { %3355 = vmatmul.msk.bf16.gmra.mxu3 %vm1056_vm3, %v5238_v29 }
 0x1fc   : > { %v3037_v24 = vadd.f32 %v4709_v42, %v3001_v46  ;;  %v2803_v31 = vpack.c.bf16 %v2781_v43, %v2780_v53 }
 0x1fd   : > { %v2507_v26 = vpop.f32.mrf.mxu2  ;;  %3372 = vmatmul.msk.bf16.gmra.mxu0 %vm1056_vm3, %v2847_v23  ;;  %v5242_v23 = vld [vmem:[#allocation73_spill] sm:$0xff] }
 0x1fe   : > { %v2581_v34 = vadd.f32 %v2507_v26, %v2359_v15  ;;  %v2287_v62 = vpop.f32.mrf.mxu1  ;;  %v3069_v13 = vpack.c.bf16 %v3037_v24, %v3037_v24  ;;  %v2654_v51 = vpop.f32.mrf.mxu3  ;;  %v2848_v48 = vrot.slane %v2803_v31, 1  ;;  %v2140_v26 = vmul.f32 %v4331_v25, %v5242_v23 }
 0x1ff   : > { %v2360_v39 = vadd.f32 %v2287_v62, %v5240_v32 }
 0x200   : > { %3102 = vst.msk [vmem:[%s4723_s16 + $0xc] sm:$0xf] %vm3098_vm12, %v3069_v13  ;;  %v2728_v54 = vadd.f32 %v2654_v51, %v2581_v34  ;;  %v5243_v34 = vld [vmem:[#allocation76_spill] sm:$0xff]  ;;  %v2849_v13 = vsel %vm1538_vm8, %v2846_v22, %v2848_v48  ;;  %v5244_v22 = vld [vmem:[#allocation75_spill] sm:$0xff] }
 0x202   : > { %v3002_v6 = vadd.f32 %v2928_v45, %v2728_v54  ;;  %v2930_v5 = vpop.f32.mrf.mxu0  ;;  %v5241_v45 = vld [vmem:[#allocation72_spill] sm:$0xff] }
 0x203   : > { %v2139_v29 = vmul.f32 %v4329_v30, %v5241_v45  ;;  %v2782_v32 = vmul.f32 %v4371_v40, %v5241_v45 }
 0x204   : > { %v3038_v36 = vadd.f32 %v4709_v42, %v3002_v6 }
 0x205   : > { %v2509_v59 = vpop.f32.mrf.mxu2  ;;  %v2161_v43 = vpack.c.bf16 %v2140_v26, %v2139_v29 }
 0x206   : > { %v2582_v2 = vadd.f32 %v2509_v59, %v2360_v39  ;;  %v2290_v46 = vpop.f32.mrf.mxu1  ;;  %v3070_v15 = vpack.c.bf16 %v3038_v36, %v3038_v36  ;;  %v2656_v33 = vpop.f32.mrf.mxu3  ;;  %v2411_v36 = vmul.f32 %v4329_v30, %v5244_v22  ;;  %v5245_v59 = vld [vmem:[#allocation79_spill] sm:$0xff] }
 0x207   : > { %v2361_v16 = vadd.f32 %v2290_v46, %v5243_v34  ;;  %v2207_v39 = vrot.slane %v2161_v43, 1 }
 0x208   : > { %3103 = vst.msk [vmem:[%s4723_s16 + $0x10] sm:$0xf] %vm3098_vm12, %v3070_v15  ;;  %v2729_v24 = vadd.f32 %v2656_v33, %v2582_v2  ;;  %v2433_v45 = vpack.c.bf16 %v4331_v25, %v2411_v36  ;;  %v5248_v36 = vld [vmem:[#allocation82_spill] sm:$0xff] }
 0x209   : > { %3322 = vmatmul.msk.bf16.gmra.mxu1 %vm1056_vm3, %v2206_v1 }
 0x20a   : > { %3339 = vmatmul.msk.bf16.gmra.mxu2 %vm1056_vm3, %v2432_v20  ;;  %v3003_v38 = vadd.f32 %v2930_v5, %v2729_v24  ;;  %v2933_v9 = vpop.f32.mrf.mxu0  ;;  %v2208_v24 = vsel %vm1538_vm8, %v2205_v18, %v2207_v39 }
 0x20b   : > { %3356 = vmatmul.msk.bf16.gmra.mxu3 %vm1056_vm3, %v3644_v8  ;;  %v2783_v8 = vmul.f32 %v4373_v3, %v5242_v23 }
 0x20c   : > { %v3039_v62 = vadd.f32 %v4709_v42, %v3003_v38  ;;  %v5246_v38 = vld [vmem:[#allocation77_spill] sm:$0xff] }
 0x20d   : > { %v2512_v51 = vpop.f32.mrf.mxu2  ;;  %3373 = vmatmul.msk.bf16.gmra.mxu0 %vm1056_vm3, %v2849_v13  ;;  %v2804_v20 = vpack.c.bf16 %v2783_v8, %v2782_v32  ;;  %v2141_v34 = vmul.f32 %v4371_v40, %v5246_v38 }
 0x20e   : > { %v2583_v54 = vadd.f32 %v2512_v51, %v2361_v16  ;;  %v2292_v53 = vpop.f32.mrf.mxu1  ;;  %v3071_v14 = vpack.c.bf16 %v3039_v62, %v3039_v62  ;;  %v2659_v28 = vpop.f32.mrf.mxu3  ;;  %v5247_v16 = vld [vmem:[#allocation78_spill] sm:$0xff] }
 0x20f   : > { %v2362_v31 = vadd.f32 %v2292_v53, %v5245_v59  ;;  %v2850_v30 = vrot.slane %v2804_v20, 1  ;;  %v2142_v62 = vmul.f32 %v4373_v3, %v5247_v16 }
 0x210   : > { %3104 = vst.msk [vmem:[%s4723_s16 + $0x14] sm:$0xf] %vm3098_vm12, %v3071_v14  ;;  %v2730_v6 = vadd.f32 %v2659_v28, %v2583_v54 }
 0x211   : > { %v2851_v51 = vsel %vm1538_vm8, %v2848_v48, %v2850_v30  ;;  %v2162_v14 = vpack.c.bf16 %v2142_v62, %v2141_v34  ;;  %v2413_v48 = vmul.f32 %v4371_v40, %v4354_v21 }
 0x212   : > { %v3004_v5 = vadd.f32 %v2933_v9, %v2730_v6  ;;  %v2935_v46 = vpop.f32.mrf.mxu0 }
 0x213   : > { %v2209_v8 = vrot.slane %v2162_v14, 1 }
 0x214   : > { %v3040_v2 = vadd.f32 %v4709_v42, %v3004_v5 }
 0x215   : > { %v2514_v1 = vpop.f32.mrf.mxu2 }
 0x216   : > { %v2584_v15 = vadd.f32 %v2514_v1, %v2362_v31  ;;  %v2295_v33 = vpop.f32.mrf.mxu1  ;;  %v3072_v29 = vpack.c.bf16 %v3040_v2, %v3040_v2  ;;  %v2661_v23 = vpop.f32.mrf.mxu3 }
 0x217   : > { %v2363_v25 = vadd.f32 %v2295_v33, %v4362_v50  ;;  %v2784_v50 = vmul.f32 %v3716_v11, %v5246_v38  ;;  %v2434_v33 = vpack.c.bf16 %v4373_v3, %v2413_v48  ;;  %v5251_v3 = vld [vmem:[#allocation84_spill] sm:$0xff] }
 0x218   : > { %3105 = vst.msk [vmem:[%s4723_s16 + $0x18] sm:$0xf] %vm3098_vm12, %v3072_v29  ;;  %v2731_v26 = vadd.f32 %v2661_v23, %v2584_v15  ;;  %v2210_v15 = vsel %vm1538_vm8, %v2207_v39, %v2209_v8  ;;  %v5249_v29 = vld [vmem:[#allocation80_spill] sm:$0xff] }
 0x219   : > { %3323 = vmatmul.msk.bf16.gmra.mxu1 %vm1056_vm3, %v2208_v24  ;;  %v2143_v23 = vmul.f32 %v3716_v11, %v5249_v29 }
 0x21a   : > { %3340 = vmatmul.msk.bf16.gmra.mxu2 %vm1056_vm3, %v2433_v45  ;;  %v3005_v18 = vadd.f32 %v2935_v46, %v2731_v26  ;;  %v2938_v13 = vpop.f32.mrf.mxu0  ;;  %v5250_v26 = vld [vmem:[#allocation81_spill] sm:$0xff] }
 0x21b   : > { %3357 = vmatmul.msk.bf16.gmra.mxu3 %vm1056_vm3, %v3714_v60  ;;  %v2785_v60 = vmul.f32 %v4474_v7, %v5247_v16  ;;  %v2144_v38 = vmul.f32 %v4474_v7, %v5250_v26 }
 0x21c   : > { %v3041_v9 = vadd.f32 %v4709_v42, %v3005_v18 }
 0x21d   : > { %v2517_v54 = vpop.f32.mrf.mxu2  ;;  %3374 = vmatmul.msk.bf16.gmra.mxu0 %vm1056_vm3, %v2851_v51  ;;  %v2805_v46 = vpack.c.bf16 %v2785_v60, %v2784_v50 }
 0x21e   : > { %v2585_v53 = vadd.f32 %v2517_v54, %v2363_v25  ;;  %v2297_v43 = vpop.f32.mrf.mxu1  ;;  %v3073_v28 = vpack.c.bf16 %v3041_v9, %v3041_v9  ;;  %v2664_v6 = vpop.f32.mrf.mxu3  ;;  %v4845_v9 = vld [vmem:[%s3559_s27 + $0x88] sm:$0xff]  }
 0x21f   : > { %v2364_v5 = vadd.f32 %v2297_v43, %v5248_v36  ;;  %v2852_v21 = vrot.slane %v2805_v46, 1  ;;  %v2614_v60 = vshll.u32 %v4845_v9, 16 }
 0x220   : > { %3106 = vst.msk [vmem:[%s4723_s16 + $0x1c] sm:$0xf] %vm3098_vm12, %v3073_v28  ;;  %v2732_v32 = vadd.f32 %v2664_v6, %v2585_v53  ;;  %v2163_v53 = vpack.c.bf16 %v2144_v38, %v2143_v23 }
 0x221   : > { %v2853_v18 = vsel %vm1538_vm8, %v2850_v30, %v2852_v21 }
 0x222   : > { %v3006_v22 = vadd.f32 %v2938_v13, %v2732_v32  ;;  %v2940_v31 = vpop.f32.mrf.mxu0  ;;  %v3452_v13 = vunpack.c.h.bf16 %v4845_v9  ;;  %v2211_v6 = vrot.slane %v2163_v53, 1  ;;  %v5252_v32 = vld [vmem:[#allocation83_spill] sm:$0xff] }
 0x223   : > { %v2415_v50 = vmul.f32 %v3716_v11, %v5252_v32  ;;  %v208_v11 = vld [vmem:[%s3559_s27 + $0x90] sm:$0x1] }
 0x224   : > { %v3042_v59 = vadd.f32 %v4709_v42, %v3006_v22  ;;  %v2787_v30 = vmul.f32 %v3452_v13, %v5250_v26 }
 0x225   : > { %v2519_v2 = vpop.f32.mrf.mxu2 }
 0x226   : > { %v2586_v1 = vadd.f32 %v2519_v2, %v2364_v5  ;;  %v2300_v20 = vpop.f32.mrf.mxu1  ;;  %v3074_v24 = vpack.c.bf16 %v3042_v59, %v3042_v59  ;;  %v2666_v45 = vpop.f32.mrf.mxu3 }
 0x227   : > { %v2365_v34 = vadd.f32 %v2300_v20, %v5251_v3  ;;  %v2435_v20 = vpack.c.bf16 %v4474_v7, %v2415_v50  ;;  %v245_v7 = vunpack.c.l.bf16 %v208_v11 }
 0x228   : > { %3107 = vst.msk [vmem:[%s4723_s16 + $0x20] sm:$0xf] %vm3098_vm12, %v3074_v24  ;;  %v2733_v40 = vadd.f32 %v2666_v45, %v2586_v1  ;;  %v2212_v1 = vsel %vm1538_vm8, %v2209_v8, %v2211_v6  ;;  %v2145_v8 = vmul.f32 %v4451_v17, %v4365_v56 }
 0x229   : > { %3324 = vmatmul.msk.bf16.gmra.mxu1 %vm1056_vm3, %v2210_v15  ;;  %v2616_v15 = vrot.slane %v2614_v60, 1 }
 0x22a   : > { %3341 = vmatmul.msk.bf16.gmra.mxu2 %vm1056_vm3, %v2434_v33  ;;  %v3007_v39 = vadd.f32 %v2940_v31, %v2733_v40  ;;  %v2943_v62 = vpop.f32.mrf.mxu0 }
 0x22b   : > { %3358 = vmatmul.msk.bf16.gmra.mxu3 %vm1056_vm3, %v4446_v52  ;;  %v2786_v52 = vmul.f32 %v4451_v17, %v5249_v29  ;;  %v2617_v40 = vsel %vm923_vm2, %v4484_v35, %v2616_v15  ;;  %v2612_v35 = vpack.c.bf16 %v245_v7, %v245_v7 }
 0x22c   : > { %v3043_v16 = vadd.f32 %v4709_v42, %v3007_v39 }
 0x22d   : > { %v2522_v25 = vpop.f32.mrf.mxu2  ;;  %3375 = vmatmul.msk.bf16.gmra.mxu0 %vm1056_vm3, %v2853_v18  ;;  %v2806_v31 = vpack.c.bf16 %v2787_v30, %v2786_v52 }
 0x22e   : > { %v2587_v51 = vadd.f32 %v2522_v25, %v2365_v34  ;;  %v2302_v54 = vpop.f32.mrf.mxu1  ;;  %v3075_v43 = vpack.c.bf16 %v3043_v16, %v3043_v16  ;;  %v2669_v14 = vpop.f32.mrf.mxu3 }
 0x22f   : > { %v2366_v22 = vadd.f32 %v2302_v54, %v4448_v58  ;;  %v2854_v58 = vrot.slane %v2806_v31, 1  ;;  %v2788_v54 = vmul.f32 %v4365_v56, %v245_v7 }
 0x230   : > { %3108 = vst.msk [vmem:[%s4723_s16 + $0x24] sm:$0xf] %vm3098_vm12, %v3075_v43  ;;  %v2734_v28 = vadd.f32 %v2669_v14, %v2587_v51  ;;  %v2622_v43 = vshll.u32 %v2612_v35, 16 }
 0x231   : > { %v2855_v39 = vsel %vm1538_vm8, %v2852_v21, %v2854_v58  ;;  %v2417_v21 = vmul.f32 %v4451_v17, %v4460_v57  ;;  %v2807_v60 = vpack.c.bf16 %v2788_v54, %v2788_v54 }
 0x232   : > { %v3008_v48 = vadd.f32 %v2943_v62, %v2734_v28  ;;  %v2945_v5 = vpop.f32.mrf.mxu0  ;;  %v2164_v62 = vpack.c.bf16 %v2145_v8, %v2145_v8 }
 0x233   : > { %v2436_v56 = vpack.c.bf16 %v3452_v13, %v2417_v21 }
 0x234   : > { %v3044_v36 = vadd.f32 %v4709_v42, %v3008_v48  ;;  %v2213_v53 = vrot.slane %v2164_v62, 1 }
 0x235   : > { %v2524_v59 = vpop.f32.mrf.mxu2 }
 0x236   : > { %v2588_v2 = vadd.f32 %v2524_v59, %v2366_v22  ;;  %v2305_v46 = vpop.f32.mrf.mxu1  ;;  %v3076_v33 = vpack.c.bf16 %v3044_v36, %v3044_v36  ;;  %v2671_v24 = vpop.f32.mrf.mxu3  ;;  %v2214_v36 = vsel %vm1538_vm8, %v2211_v6, %v2213_v53 }
 0x237   : > { %v2367_v23 = vadd.f32 %v2305_v46, %v4470_v27  ;;  %v2618_v27 = vshrl.u32 %v4845_v9, 16 }
 0x238   : > { %3109 = vst.msk [vmem:[%s4723_s16 + $0x28] sm:$0xf] %vm3098_vm12, %v3076_v33  ;;  %v2735_v45 = vadd.f32 %v2671_v24, %v2588_v2 }
 0x239   : > { %3325 = vmatmul.msk.bf16.gmra.mxu1 %vm1056_vm3, %v2212_v1  ;;  %v2620_v50 = vor.u32 %v2618_v27, %v2616_v15 }
 0x23a   : > { %3342 = vmatmul.msk.bf16.gmra.mxu2 %vm1056_vm3, %v2435_v20  ;;  %v3009_v29 = vadd.f32 %v2945_v5, %v2735_v45  ;;  %v2948_v38 = vpop.f32.mrf.mxu0  ;;  %v2624_v5 = vrot.slane %v2622_v43, 1 }
 0x23b   : > { %3359 = vmatmul.msk.bf16.gmra.mxu3 %vm1056_vm3, %v2617_v40 }
 0x23c   : > { %v3045_v26 = vadd.f32 %v4709_v42, %v3009_v29  ;;  %v2625_v31 = vsel %vm923_vm2, %v2620_v50, %v2624_v5  ;;  %v5253_v50 = vld [vmem:[#allocation10_spill] sm:$0xff] }
 0x23d   : > { %v2527_v3 = vpop.f32.mrf.mxu2  ;;  %3376 = vmatmul.msk.bf16.gmra.mxu0 %vm1056_vm3, %v2855_v39 }
 0x23e   : > { %v2589_v34 = vadd.f32 %v2527_v3, %v2367_v23  ;;  %v2307_v16 = vpop.f32.mrf.mxu1  ;;  %v3077_v18 = vpack.c.bf16 %v3045_v26, %v3045_v26  ;;  %v2674_v25 = vpop.f32.mrf.mxu3 }
 0x23f   : > { %v2368_v28 = vadd.f32 %v2307_v16, %v4487_v61  ;;  %v2856_v61 = vrot.slane %v2807_v60, 1 }
 0x240   : > { %3110 = vst.msk [vmem:[%s4723_s16 + $0x2c] sm:$0xf] %vm3098_vm12, %v3077_v18  ;;  %v2736_v51 = vadd.f32 %v2674_v25, %v2589_v34 }
 0x241   : > { %v2857_v46 = vsel %vm1538_vm8, %v2854_v58, %v2856_v61  ;;  %v5254_v61 = vld [vmem:[#allocation29_spill] sm:$0xff] }
 0x242   : > { %v3010_v14 = vadd.f32 %v2948_v38, %v2736_v51  ;;  %v2950_v30 = vpop.f32.mrf.mxu0 }
 0x244   : > { %v3046_v52 = vadd.f32 %v4709_v42, %v3010_v14 }
 0x245   : > { %v2529_v32 = vpop.f32.mrf.mxu2 }
 0x246   : > { %v2590_v48 = vadd.f32 %v2529_v32, %v2368_v28  ;;  %v2310_v22 = vpop.f32.mrf.mxu1  ;;  %v3078_v17 = vpack.c.bf16 %v3046_v52, %v3046_v52  ;;  %v2676_v57 = vpop.f32.mrf.mxu3 }
 0x247   : > { %v2369_v6 = vadd.f32 %v2310_v22, %v4494_v4 }
 0x248   : > { %3111 = vst.msk [vmem:[%s4723_s16 + $0x30] sm:$0xf] %vm3098_vm12, %v3078_v17  ;;  %v2737_v59 = vadd.f32 %v2676_v57, %v2590_v48 }
 0x249   : > { %3326 = vmatmul.msk.bf16.gmra.mxu1 %vm1056_vm3, %v2214_v36 }
 0x24a   : > { %3343 = vmatmul.msk.bf16.gmra.mxu2 %vm1056_vm3, %v2436_v56  ;;  %v3011_v2 = vadd.f32 %v2950_v30, %v2737_v59  ;;  %v2953_v13 = vpop.f32.mrf.mxu0 }
 0x24b   : > { %3360 = vmatmul.msk.bf16.gmra.mxu3 %vm1056_vm3, %v2625_v31 }
 0x24c   : > { %v3047_v9 = vadd.f32 %v4709_v42, %v3011_v2 }
 0x24d   : > { %v2532_v1 = vpop.f32.mrf.mxu2  ;;  %3377 = vmatmul.msk.bf16.gmra.mxu0 %vm1056_vm3, %v2857_v46 }
 0x24e   : > { %v2591_v20 = vadd.f32 %v2532_v1, %v2369_v6  ;;  %v2312_v15 = vpop.f32.mrf.mxu1  ;;  %v3079_v33 = vpack.c.bf16 %v3047_v9, %v3047_v9  ;;  %v2679_v11 = vpop.f32.mrf.mxu3 }
 0x24f   : > { %v2370_v4 = vadd.f32 %v2312_v15, %v4506_v37 }
 0x250   : > { %3112 = vst.msk [vmem:[%s4723_s16 + $0x34] sm:$0xf] %vm3098_vm12, %v3079_v33  ;;  %v2738_v24 = vadd.f32 %v2679_v11, %v2591_v20  ;;  %v5255_v11 = vld [vmem:[#allocation7_spill] sm:$0xff] }
 0x252   : > { %v3012_v45 = vadd.f32 %v2953_v13, %v2738_v24  ;;  %v2955_v8 = vpop.f32.mrf.mxu0 }
 0x254   : > { %v3048_v40 = vadd.f32 %v4709_v42, %v3012_v45 }
 0x255   : > { %v2534_v7 = vpop.f32.mrf.mxu2 }
 0x256   : > { %v2592_v58 = vadd.f32 %v2534_v7, %v2370_v4  ;;  %v2315_v29 = vpop.f32.mrf.mxu1  ;;  %v3080_v23 = vpack.c.bf16 %v3048_v40, %v3048_v40  ;;  %v2681_v26 = vpop.f32.mrf.mxu3 }
 0x257   : > { %v2371_v3 = vadd.f32 %v2315_v29, %v4518_v19 }
 0x258   : > { %3113 = vst.msk [vmem:[%s4723_s16 + $0x38] sm:$0xf] %vm3098_vm12, %v3080_v23  ;;  %v2739_v38 = vadd.f32 %v2681_v26, %v2592_v58 }
 0x25a   : > { %v3013_v39 = vadd.f32 %v2955_v8, %v2739_v38  ;;  %v2958_v16 = vpop.f32.mrf.mxu0  ;;  %v5256_v38 = vld [vmem:[#allocation15_spill] sm:$0xff] }
 0x25c   : > { %v3049_v34 = vadd.f32 %v4709_v42, %v3013_v39 }
 0x25d   : > { %v2537_v62 = vpop.f32.mrf.mxu2 }
 0x25e   : > { %v2593_v37 = vadd.f32 %v2537_v62, %v2371_v3  ;;  %v2317_v35 = vpop.f32.mrf.mxu1  ;;  %v3081_v18 = vpack.c.bf16 %v3049_v34, %v3049_v34  ;;  %v2684_v25 = vpop.f32.mrf.mxu3 }
 0x25f   : > { %v2372_v54 = vadd.f32 %v2317_v35, %v4530_v63 }
 0x260   : > { %3114 = vst.msk [vmem:[%s4723_s16 + $0x3c] sm:$0xf] %vm3098_vm12, %v3081_v18  ;;  %v2740_v51 = vadd.f32 %v2684_v25, %v2593_v37 }
 0x262   : > { %v3014_v27 = vadd.f32 %v2958_v16, %v2740_v51  ;;  %v2960_v21 = vpop.f32.mrf.mxu0 }
 0x264   : > { %v3050_v53 = vadd.f32 %v4709_v42, %v3014_v27  ;;  %v5257_v27 = vld [vmem:[#allocation16_spill] sm:$0xff] }
 0x265   : > { %v2539_v43 = vpop.f32.mrf.mxu2 }
 0x266   : > { %v2594_v19 = vadd.f32 %v2539_v43, %v2372_v54  ;;  %v2320_v14 = vpop.f32.mrf.mxu1  ;;  %v3082_v28 = vpack.c.bf16 %v3050_v53, %v3050_v53  ;;  %v2686_v52 = vpop.f32.mrf.mxu3 }
 0x267   : > { %v2373_v60 = vadd.f32 %v2320_v14, %v5253_v50  ;;  %v5258_v50 = vld [vmem:[#allocation11_spill] sm:$0xff] }
 0x268   : > { %3115 = vst.msk [vmem:[%s4723_s16 + $0x40] sm:$0xf] %vm3098_vm12, %v3082_v28  ;;  %v2741_v30 = vadd.f32 %v2686_v52, %v2594_v19 }
 0x26a   : > { %v3015_v32 = vadd.f32 %v2960_v21, %v2741_v30  ;;  %v2963_v22 = vpop.f32.mrf.mxu0 }
 0x26c   : > { %v3051_v48 = vadd.f32 %v4709_v42, %v3015_v32 }
 0x26d   : > { %v2542_v36 = vpop.f32.mrf.mxu2 }
 0x26e   : > { %v2595_v63 = vadd.f32 %v2542_v36, %v2373_v60  ;;  %v2322_v56 = vpop.f32.mrf.mxu1  ;;  %v3083_v5 = vpack.c.bf16 %v3051_v48, %v3051_v48  ;;  %v2689_v17 = vpop.f32.mrf.mxu3 }
 0x26f   : > { %v2374_v31 = vadd.f32 %v2322_v56, %v5254_v61 }
 0x270   : > { %3116 = vst.msk [vmem:[%s4723_s16 + $0x44] sm:$0xf] %vm3098_vm12, %v3083_v5  ;;  %v2742_v57 = vadd.f32 %v2689_v17, %v2595_v63 }
 0x272   : > { %v3016_v59 = vadd.f32 %v2963_v22, %v2742_v57  ;;  %v2965_v6 = vpop.f32.mrf.mxu0 }
 0x274   : > { %v3052_v2 = vadd.f32 %v4709_v42, %v3016_v59 }
 0x275   : > { %v2544_v9 = vpop.f32.mrf.mxu2 }
 0x276   : > { %v2596_v13 = vadd.f32 %v2544_v9, %v2374_v31  ;;  %v2325_v46 = vpop.f32.mrf.mxu1  ;;  %v3084_v1 = vpack.c.bf16 %v3052_v2, %v3052_v2  ;;  %v2691_v20 = vpop.f32.mrf.mxu3 }
 0x277   : > { %v2375_v24 = vadd.f32 %v2325_v46, %v5255_v11 }
 0x278   : > { %3117 = vst.msk [vmem:[%s4723_s16 + $0x48] sm:$0xf] %vm3098_vm12, %v3084_v1  ;;  %v2743_v15 = vadd.f32 %v2691_v20, %v2596_v13 }
 0x27a   : > { %v3017_v33 = vadd.f32 %v2965_v6, %v2743_v15  ;;  %v2968_v4 = vpop.f32.mrf.mxu0 }
 0x27c   : > { %v3053_v45 = vadd.f32 %v4709_v42, %v3017_v33 }
 0x27d   : > { %v2547_v40 = vpop.f32.mrf.mxu2 }
 0x27e   : > { %v2597_v8 = vadd.f32 %v2547_v40, %v2375_v24  ;;  %v2327_v7 = vpop.f32.mrf.mxu1  ;;  %v3085_v58 = vpack.c.bf16 %v3053_v45, %v3053_v45  ;;  %v2694_v29 = vpop.f32.mrf.mxu3 }
 0x27f   : > { %v2376_v39 = vadd.f32 %v2327_v7, %v5256_v38 }
 0x280   : > { %3118 = vst.msk [vmem:[%s4723_s16 + $0x4c] sm:$0xf] %vm3098_vm12, %v3085_v58  ;;  %v2744_v23 = vadd.f32 %v2694_v29, %v2597_v8 }
 0x282   : > { %v3018_v26 = vadd.f32 %v2968_v4, %v2744_v23  ;;  %v2970_v34 = vpop.f32.mrf.mxu0 }
 0x284   : > { %v3054_v3 = vadd.f32 %v4709_v42, %v3018_v26 }
 0x285   : > { %v2549_v16 = vpop.f32.mrf.mxu2 }
 0x286   : > { %v2598_v62 = vadd.f32 %v2549_v16, %v2376_v39  ;;  %v2330_v37 = vpop.f32.mrf.mxu1  ;;  %v3086_v35 = vpack.c.bf16 %v3054_v3, %v3054_v3  ;;  %v2696_v18 = vpop.f32.mrf.mxu3 }
 0x287   : > { %v2377_v54 = vadd.f32 %v2330_v37, %v5257_v27 }
 0x288   : > { %3119 = vst.msk [vmem:[%s4723_s16 + $0x50] sm:$0xf] %vm3098_vm12, %v3086_v35  ;;  %v2745_v25 = vadd.f32 %v2696_v18, %v2598_v62 }
 0x28a   : > { %v3019_v51 = vadd.f32 %v2970_v34, %v2745_v25  ;;  %v2973_v21 = vpop.f32.mrf.mxu0 }
 0x28c   : > { %v3055_v53 = vadd.f32 %v4709_v42, %v3019_v51 }
 0x28d   : > { %v2552_v43 = vpop.f32.mrf.mxu2 }
 0x28e   : > { %v2599_v19 = vadd.f32 %v2552_v43, %v2377_v54  ;;  %v2332_v14 = vpop.f32.mrf.mxu1  ;;  %v3087_v28 = vpack.c.bf16 %v3055_v53, %v3055_v53  ;;  %v2699_v52 = vpop.f32.mrf.mxu3 }
 0x28f   : > { %v2378_v60 = vadd.f32 %v2332_v14, %v5258_v50 }
 0x290   : > { %3120 = vst.msk [vmem:[%s4723_s16 + $0x54] sm:$0xf] %vm3098_vm12, %v3087_v28  ;;  %v2746_v30 = vadd.f32 %v2699_v52, %v2599_v19 }
 0x292   : > { %v3020_v32 = vadd.f32 %v2973_v21, %v2746_v30  ;;  %v2975_v22 = vpop.f32.mrf.mxu0 }
 0x294   : > { %v3056_v48 = vadd.f32 %v4709_v42, %v3020_v32 }
 0x295   : > { %v2554_v36 = vpop.f32.mrf.mxu2 }
 0x296   : > { %v2600_v63 = vadd.f32 %v2554_v36, %v2378_v60  ;;  %v2335_v56 = vpop.f32.mrf.mxu1  ;;  %v3088_v5 = vpack.c.bf16 %v3056_v48, %v3056_v48  ;;  %v2701_v17 = vpop.f32.mrf.mxu3 }
 0x297   : > { %v2379_v61 = vadd.f32 %v2335_v56, %v4616_v41 }
 0x298   : > { %3121 = vst.msk [vmem:[%s4723_s16 + $0x58] sm:$0xf] %vm3098_vm12, %v3088_v5  ;;  %v2747_v57 = vadd.f32 %v2701_v17, %v2600_v63 }
 0x29a   : > { %v3021_v59 = vadd.f32 %v2975_v22, %v2747_v57  ;;  %v2978_v2 = vpop.f32.mrf.mxu0 }
 0x29c   : > { %v3057_v31 = vadd.f32 %v4709_v42, %v3021_v59 }
 0x29d   : > { %v2557_v6 = vpop.f32.mrf.mxu2 }
 0x29e   : > { %v2601_v9 = vadd.f32 %v2557_v6, %v2379_v61  ;;  %v2337_v13 = vpop.f32.mrf.mxu1  ;;  %v3089_v46 = vpack.c.bf16 %v3057_v31, %v3057_v31  ;;  %v2704_v1 = vpop.f32.mrf.mxu3 }
 0x29f   : > { %v2380_v33 = vadd.f32 %v2337_v13, %v4627_v49 }
 0x2a0   : > { %3122 = vst.msk [vmem:[%s4723_s16 + $0x5c] sm:$0xf] %vm3098_vm12, %v3089_v46  ;;  %v2748_v20 = vadd.f32 %v2704_v1, %v2601_v9 }
 0x2a2   : > { %v3022_v15 = vadd.f32 %v2978_v2, %v2748_v20  ;;  %v2980_v24 = vpop.f32.mrf.mxu0 }
 0x2a4   : > { %v3058_v11 = vadd.f32 %v4709_v42, %v3022_v15 }
 0x2a5   : > { %v2559_v45 = vpop.f32.mrf.mxu2 }
 0x2a6   : > { %v2602_v41 = vadd.f32 %v2559_v45, %v2380_v33  ;;  %v2340_v4 = vpop.f32.mrf.mxu1  ;;  %v3090_v40 = vpack.c.bf16 %v3058_v11, %v3058_v11  ;;  %v2706_v8 = vpop.f32.mrf.mxu3 }
 0x2a7   : > { %v2381_v29 = vadd.f32 %v2340_v4, %v4640_v12 }
 0x2a8   : > { %3123 = vst.msk [vmem:[%s4723_s16 + $0x60] sm:$0xf] %vm3098_vm12, %v3090_v40  ;;  %v2749_v7 = vadd.f32 %v2706_v8, %v2602_v41 }
 0x2aa   : > { %v3023_v58 = vadd.f32 %v2980_v24, %v2749_v7  ;;  %v2983_v26 = vpop.f32.mrf.mxu0 }
 0x2ac   : > { %v3059_v23 = vadd.f32 %v4709_v42, %v3023_v58 }
 0x2ad   : > { %v2562_v38 = vpop.f32.mrf.mxu2 }
 0x2ae   : > { %v2603_v49 = vadd.f32 %v2562_v38, %v2381_v29  ;;  %v2342_v39 = vpop.f32.mrf.mxu1  ;;  %v3091_v3 = vpack.c.bf16 %v3059_v23, %v3059_v23  ;;  %v2709_v34 = vpop.f32.mrf.mxu3 }
 0x2af   : > { %v2382_v37 = vadd.f32 %v2342_v39, %v4651_v55 }
 0x2b0   : > { %3124 = vst.msk [vmem:[%s4723_s16 + $0x64] sm:$0xf] %vm3098_vm12, %v3091_v3  ;;  %v2750_v16 = vadd.f32 %v2709_v34, %v2603_v49 }
 0x2b2   : > { %v3024_v62 = vadd.f32 %v2983_v26, %v2750_v16  ;;  %v2985_v18 = vpop.f32.mrf.mxu0 }
 0x2b4   : > { %v3060_v35 = vadd.f32 %v4709_v42, %v3024_v62 }
 0x2b5   : > { %v2564_v25 = vpop.f32.mrf.mxu2 }
 0x2b6   : > { %v2604_v12 = vadd.f32 %v2564_v25, %v2382_v37  ;;  %v2345_v51 = vpop.f32.mrf.mxu1  ;;  %v3092_v27 = vpack.c.bf16 %v3060_v35, %v3060_v35  ;;  %v2711_v54 = vpop.f32.mrf.mxu3 }
 0x2b7   : > { %v2383_v43 = vadd.f32 %v2345_v51, %v4664_v44 }
 0x2b8   : > { %3125 = vst.msk [vmem:[%s4723_s16 + $0x68] sm:$0xf] %vm3098_vm12, %v3092_v27  ;;  %v2751_v53 = vadd.f32 %v2711_v54, %v2604_v12 }
 0x2ba   : > { %v3025_v21 = vadd.f32 %v2985_v18, %v2751_v53  ;;  %v2988_v14 = vpop.f32.mrf.mxu0 }
 0x2bc   : > { %v3061_v19 = vadd.f32 %v4709_v42, %v3025_v21 }
 0x2bd   : > { %v2567_v28 = vpop.f32.mrf.mxu2 }
 0x2be   : > { %v2605_v55 = vadd.f32 %v2567_v28, %v2383_v43  ;;  %v2347_v52 = vpop.f32.mrf.mxu1  ;;  %v3093_v30 = vpack.c.bf16 %v3061_v19, %v3061_v19  ;;  %v2714_v32 = vpop.f32.mrf.mxu3 }
 0x2bf   : > { %v2384_v48 = vadd.f32 %v2347_v52, %v4675_v47 }
 0x2c0   : > { %3126 = vst.msk [vmem:[%s4723_s16 + $0x6c] sm:$0xf] %vm3098_vm12, %v3093_v30  ;;  %v2752_v50 = vadd.f32 %v2714_v32, %v2605_v55 }
 0x2c2   : > { %v3026_v60 = vadd.f32 %v2988_v14, %v2752_v50  ;;  %v2990_v44 = vpop.f32.mrf.mxu0 }
 0x2c4   : > { %v3062_v22 = vadd.f32 %v4709_v42, %v3026_v60 }
 0x2c5   : > { %v2569_v36 = vpop.f32.mrf.mxu2 }
 0x2c6   : > { %v2606_v63 = vadd.f32 %v2569_v36, %v2384_v48  ;;  %v3094_v56 = vpack.c.bf16 %v3062_v22, %v3062_v22  ;;  %v2350_v5 = vpop.f32.mrf.mxu1  ;;  %v2716_v17 = vpop.f32.mrf.mxu3 }
 0x2c7   : > { %v2385_v61 = vadd.f32 %v2350_v5, %v4688_v10 }
 0x2c8   : > { %3127 = vst.msk [vmem:[%s4723_s16 + $0x70] sm:$0xf] %vm3098_vm12, %v3094_v56  ;;  %v2753_v57 = vadd.f32 %v2716_v17, %v2606_v63 }
 0x2ca   : > { %v3027_v59 = vadd.f32 %v2990_v44, %v2753_v57  ;;  %v2993_v9 = vpop.f32.mrf.mxu0 }
 0x2cc   : > { %v3063_v31 = vadd.f32 %v4709_v42, %v3027_v59 }
 0x2cd   : > { %v2572_v2 = vpop.f32.mrf.mxu2 }
 0x2ce   : > { %v2607_v47 = vadd.f32 %v2572_v2, %v2385_v61  ;;  %v3095_v6 = vpack.c.bf16 %v3063_v31, %v3063_v31  ;;  %v2719_v13 = vpop.f32.mrf.mxu3  ;;  %v2352_v1 = vpop.f32.mrf.mxu1 }
 0x2cf   : > { %v2386_v15 = vadd.f32 %v2352_v1, %v4699_v0 }
 0x2d0   : > { %3128 = vst.msk [vmem:[%s4723_s16 + $0x74] sm:$0xf] %vm3098_vm12, %v3095_v6  ;;  %v2754_v46 = vadd.f32 %v2719_v13, %v2607_v47 }
 0x2d2   : > { %v3028_v20 = vadd.f32 %v2993_v9, %v2754_v46  ;;  %v2995_v4 = vpop.f32.mrf.mxu0 }
 0x2d4   : > { %v3064_v33 = vadd.f32 %v4709_v42, %v3028_v20 }
 0x2d5   : > { %v2574_v11 = vpop.f32.mrf.mxu2 }
 0x2d6   : > { %v2608_v10 = vadd.f32 %v2574_v11, %v2386_v15  ;;  %v3096_v24 = vpack.c.bf16 %v3064_v33, %v3064_v33  ;;  %v2721_v45 = vpop.f32.mrf.mxu3 }
 0x2d8   : > { %3129 = vst.msk [vmem:[%s4723_s16 + $0x78] sm:$0xf] %vm3098_vm12, %v3096_v24  ;;  %v2755_v41 = vadd.f32 %v2721_v45, %v2608_v10 }
 0x2da   : > { %v3029_v40 = vadd.f32 %v2995_v4, %v2755_v41 }
 0x2dc   : > { %v3065_v8 = vadd.f32 %v4709_v42, %v3029_v40 }
 0x2de   : > { %v3097_v7 = vpack.c.bf16 %v3065_v8, %v3065_v8 }
 0x2e0   : > { %3130 = vst.msk [vmem:[%s4723_s16 + $0x7c] sm:$0xf] %vm3098_vm12, %v3097_v7 }
 0x2e1 PF: > { %s13_s12 = sadd.s32 1, %s3497_s12  }
 0x2e2   : > { %p10_p4 = scmp.ge.s32.totalorder %s13_s12, 4  }
 0x2e4   :  { %12 = sbr.rel (!%p10_p4) target bundleno = 1 (0x1), region = 70 }

// kernel: star_discriminator_forward.7
= control target key start
LH: loop header
LB: loop body
LE: loop exit
PB: predicated region body
PF: predicated region fallthrough
CT: control target
= control target key end

     0   :  { %s4439_s21 = smov 0   ;;  %s6380_s0 = inlined_call_operand.vmem [shape: bf16[2,290,32], index: 0, kind: input, shape index: {}]   ;;  %s6381_s1 = inlined_call_operand.vmem [shape: bf16[9,32,32], index: 1, kind: input, shape index: {}]   ;;  %s6382_s2 = inlined_call_operand.vmem [shape: f32[1,32], index: 2, kind: input, shape index: {}]   ;;  %s6383_s3 = inlined_call_operand.vmem [shape: bf16[64,256], index: 3, kind: input, shape index: {}]   ;;  %s6384_s4 = inlined_call_operand.vmem [shape: bf16[32,64], index: 4, kind: input, shape index: {}]   ;;  %s6385_s5 = inlined_call_operand.vmem [shape: bf16[2,64,32], index: 5, kind: output, shape index: {0}]   ;;  %s6386_s6 = inlined_call_operand.vmem [shape: bf16[2,64,64], index: 6, kind: output, shape index: {1}]  }
   0x1 LB: > { %s3904_s22 = sadd.s32 4294967295, %s4400_s21   ;;  %p3908_p0 = scmp.ge.s32.totalorder %s4400_s21, 1  ;;  %s4400_s21 = sphi %s4439_s21, %s17_s21  }
   0x2   : > { %p215_p1 = scmp.lt.s32.totalorder %s4400_s21, 3 }
   0x4   : > { %p216_p2 = pnand %p3908_p0, %p215_p1 }
   0x6   : > { %219 = sbr.rel (%p216_p2) target bundleno = 1109 (0x455), region = 40 }
   0xb   : > { %v4245_v0 = vld [vmem:[%s6381_s1 + $0x18] sm:$0xff]  ;;  %p250_p3 = scmp.lt.s32.totalorder %s3904_s22, 1  ;;  %v451_v1 = vlaneseq  ;;  %v4244_v2 = vld [vmem:[%s6381_s1 + $0x10] sm:$0xff]  ;;  %v4243_v4 = vld [vmem:[%s6381_s1 + $0x8] sm:$0xff]  ;;  %vm1134_vm4 = vsmask.f32 7424 }
   0xc   : > { %1334 = vmatpush.bf16.msra.mxu0 %v4245_v0  ;;  %4359 = vmatpush.bf16.msra.mxu1 %v4245_v0  ;;  %v4247_v5 = vld [vmem:[%s6381_s1 + $0x28] sm:$0xff]  ;;  %v4242_v7 = vld [vmem:[%s6381_s1] sm:$0xff]  ;;  %vm1279_vm5 = vcmask 261120  }
   0xd   : > { %s6811_s22 = smov (!%p250_p3, %s3904_s22), 1  ;;  %v4455_v3 = vshrl.u32 %v451_v1, 7  ;;  %4360 = vmatpush.bf16.msra.mxu2 %v4245_v0  ;;  %4361 = vmatpush.bf16.msra.mxu3 %v4245_v0  ;;  %v4246_v19 = vld [vmem:[%s6381_s1 + $0x20] sm:$0xff] }
   0xe   : > { %s4365_s27 = smul.u32 148, %s6811_s22  ;;  %s4240_s12 = sshll.u32 %s6811_s22, 5 }
   0xf   : > { %v4465_v6 = vadd.s32 8, %v4455_v3  ;;  %v4479_v11 = vadd.s32 24, %v4455_v3  ;;  %s6343_s15 = scalar_lea.vmem %s6385_s5, %s4240_s12  ;;  %s264_s18 = scalar_lea.vmem %s6386_s6, %s4240_s12 }
  0x10   : > { %1335 = vmatpush.bf16.msra.mxu0 %v4244_v2  ;;  %4362 = vmatpush.bf16.msra.mxu1 %v4244_v2  ;;  %s4470_s10 = scalar_lea.vmem %s6380_s0, %s4365_s27 }
  0x11   : > { %4363 = vmatpush.bf16.msra.mxu2 %v4244_v2  ;;  %4364 = vmatpush.bf16.msra.mxu3 %v4244_v2  ;;  %v4271_v8 = vld [vmem:[%s4470_s10] sm:$0xff]   ;;  %v4342_v9 = vld [vmem:[%s4470_s10 + $0x8] sm:$0xff]   ;;  %v495_v12 = vand.u32 15, %v4465_v6  ;;  %v4351_v17 = vld [vmem:[%s4470_s10 + $0x50] sm:$0xff]  }
  0x12   : > { %v4350_v10 = vld [vmem:[%s4470_s10 + $0x48] sm:$0xff]   ;;  %v4272_v13 = vunpack.c.l.bf16 %v4271_v8  ;;  %v4273_v14 = vunpack.c.h.bf16 %v4271_v8  ;;  %v4276_v15 = vunpack.c.l.bf16 %v4342_v9  ;;  %v4277_v16 = vunpack.c.h.bf16 %v4342_v9  ;;  %v4352_v18 = vld [vmem:[%s4470_s10 + $0x58] sm:$0xff]   ;;  %v4353_v50 = vld [vmem:[%s4470_s10 + $0x60] sm:$0xff]  }
  0x13   : > { %v4308_v20 = vunpack.c.l.bf16 %v4350_v10  ;;  %v4309_v21 = vunpack.c.h.bf16 %v4350_v10  ;;  %v4312_v22 = vunpack.c.l.bf16 %v4351_v17  ;;  %v4313_v23 = vunpack.c.h.bf16 %v4351_v17  ;;  %v4343_v55 = vld [vmem:[%s4470_s10 + $0x10] sm:$0xff]   ;;  %v4354_v17 = vld [vmem:[%s4470_s10 + $0x68] sm:$0xff]  }
  0x14   : > { %1483 = vmatpush.bf16.msrb.mxu1 %v4243_v4  ;;  %vm340_vm0 = vcmp.gt.f32.partialorder %v4272_v13, 0.0  ;;  %vm341_vm1 = vcmp.gt.f32.partialorder %v4273_v14, 0.0  ;;  %vm342_vm2 = vcmp.gt.f32.partialorder %v4276_v15, 0.0  ;;  %vm343_vm3 = vcmp.gt.f32.partialorder %v4277_v16, 0.0 }
  0x15   : > { %1867 = vmatpush.bf16.msrb.mxu2 %v4247_v5  ;;  %v377_v24 = vmul.f32 0.2, %v4272_v13  ;;  %v378_v25 = vmul.f32 0.2, %v4273_v14  ;;  %v379_v26 = vmul.f32 0.2, %v4276_v15  ;;  %v4316_v27 = vunpack.c.l.bf16 %v4352_v18 }
  0x16   : > { %v380_v28 = vmul.f32 0.2, %v4277_v16  ;;  %vm358_vm6 = vcmp.gt.f32.partialorder %v4308_v20, 0.0  ;;  %vm359_vm7 = vcmp.gt.f32.partialorder %v4309_v21, 0.0  ;;  %vm360_vm8 = vcmp.gt.f32.partialorder %v4312_v22, 0.0 }
  0x17   : > { %v4488_v29 = vsel %vm340_vm0, %v4272_v13, %v377_v24  ;;  %v4491_v30 = vsel %vm341_vm1, %v4273_v14, %v378_v25  ;;  %v4494_v31 = vsel %vm342_vm2, %v4276_v15, %v379_v26  ;;  %vm361_vm9 = vcmp.gt.f32.partialorder %v4313_v23, 0.0 }
  0x18   : > { %1484 = vmatpush.bf16.msrb.mxu1 %v4242_v7  ;;  %6535 = vst [vmem:[#allocation2_spill] sm:$0xff] %v4494_v31  ;;  %v4497_v32 = vsel %vm343_vm3, %v4277_v16, %v380_v28  ;;  %v1117_v33 = vpack.c.bf16 %v4491_v30, %v4488_v29  ;;  %v395_v34 = vmul.f32 0.2, %v4308_v20  ;;  %v396_v35 = vmul.f32 0.2, %v4309_v21 }
  0x19   : > { %1868 = vmatpush.bf16.msrb.mxu2 %v4246_v19  ;;  %v4503_v36 = vpack.c.bf16 %v4497_v32, %v4494_v31  ;;  %v397_v37 = vmul.f32 0.2, %v4312_v22  ;;  %v398_v38 = vmul.f32 0.2, %v4313_v23  ;;  %v4317_v39 = vunpack.c.h.bf16 %v4352_v18 }
  0x1a   : > { %v1136_v40 = vshrl.u32 %v1117_v33, 16  ;;  %v1138_v41 = vshll.u32 %v1117_v33, 16  ;;  %v4506_v42 = vsel %vm358_vm6, %v4308_v20, %v395_v34  ;;  %v4509_v43 = vsel %vm359_vm7, %v4309_v21, %v396_v35 }
  0x1b   : > { %6536 = vst [vmem:[#allocation3_spill] sm:$0xff] %v4509_v43  ;;  %v1143_v44 = vshll.u32 %v4503_v36, 16  ;;  %v4513_v45 = vsel %vm360_vm8, %v4312_v22, %v397_v37  ;;  %v4515_v46 = vsel %vm361_vm9, %v4313_v23, %v398_v38  ;;  %v1126_v47 = vpack.c.bf16 %v4509_v43, %v4506_v42  ;;  %v4344_v38 = vld [vmem:[%s4470_s10 + $0x18] sm:$0xff]  }
  0x1c   : > { %6537 = vst [vmem:[#allocation4_spill] sm:$0xff] %v4513_v45  ;;  %v1140_v48 = vrot.slane %v1138_v41, 1  ;;  %v1127_v49 = vpack.c.bf16 %v4515_v46, %v4513_v45  ;;  %vm362_vm10 = vcmp.gt.f32.partialorder %v4316_v27, 0.0  ;;  %vm363_vm11 = vcmp.gt.f32.partialorder %v4317_v39, 0.0 }
  0x1d   : > { %6538 = vst [vmem:[#allocation5_spill] sm:$0xff] %v4515_v46  ;;  %v1145_v51 = vrot.slane %v1143_v44, 1  ;;  %v1207_v52 = vshll.u32 %v1126_v47, 16  ;;  %v1211_v53 = vshrl.u32 %v1126_v47, 16  ;;  %v399_v54 = vmul.f32 0.2, %v4316_v27 }
  0x1e   : > { %v1141_v56 = vor.u32 %v1140_v48, %v1136_v40  ;;  %v1215_v57 = vshll.u32 %v1127_v49, 16  ;;  %v400_v58 = vmul.f32 0.2, %v4317_v39  ;;  %v1219_v59 = vshrl.u32 %v1127_v49, 16 }
  0x1f   : > { %v4523_v60 = vrot.slane %v1207_v52, 1  ;;  %v4525_v61 = vsel %vm362_vm10, %v4316_v27, %v399_v54  ;;  %v4320_v62 = vunpack.c.l.bf16 %v4353_v50  ;;  %v4321_v63 = vunpack.c.h.bf16 %v4353_v50 }
  0x20   : > { %6539 = vst [vmem:[#allocation6_spill] sm:$0xff] %v4525_v61  ;;  %v1146_v0 = vsel %vm1134_vm4, %v1141_v56, %v1145_v51  ;;  %v1217_v1 = vrot.slane %v1215_v57, 1  ;;  %v4529_v2 = vsel %vm363_vm11, %v4317_v39, %v400_v58  ;;  %v4280_v4 = vunpack.c.l.bf16 %v4343_v55 }
  0x21   : > { %3958 = vmatmul.msk.bf16.vlgmr.msra.gmra.mxu0 %vm1279_vm5, %v1146_v0  ;;  %v1213_v5 = vor.u32 %v1211_v53, %v4523_v60  ;;  %v1128_v7 = vpack.c.bf16 %v4529_v2, %v4525_v61  ;;  %vm364_vm12 = vcmp.gt.f32.partialorder %v4320_v62, 0.0  ;;  %vm365_vm13 = vcmp.gt.f32.partialorder %v4321_v63, 0.0 }
  0x22   : > { %v1221_v8 = vor.u32 %v1219_v59, %v1217_v1  ;;  %v401_v9 = vmul.f32 0.2, %v4320_v62  ;;  %v402_v10 = vmul.f32 0.2, %v4321_v63  ;;  %v4281_v13 = vunpack.c.h.bf16 %v4343_v55 }
  0x23   : > { %v4536_v14 = vsel %vm1134_vm4, %v1213_v5, %v1217_v1  ;;  %v1223_v15 = vshll.u32 %v1128_v7, 16  ;;  %v1227_v16 = vshrl.u32 %v1128_v7, 16  ;;  %vm344_vm14 = vcmp.gt.f32.partialorder %v4280_v4, 0.0 }
  0x24   : > { %6540 = vst [vmem:[#allocation7_spill] sm:$0xff] %v4536_v14  ;;  %3967 = vmatmul.msk.bf16.vlgmr.msra.gmra.mxu1 %vm1279_vm5, %v4536_v14  ;;  %v4541_v18 = vsel %vm364_vm12, %v4320_v62, %v401_v9  ;;  %v4543_v19 = vsel %vm365_vm13, %v4321_v63, %v402_v10  ;;  %vm345_vm15 = vcmp.gt.f32.partialorder %v4281_v13, 0.0  ;;  %v381_v20 = vmul.f32 0.2, %v4280_v4 }
  0x25   : > { %v1225_v21 = vrot.slane %v1223_v15, 1  ;;  %v1129_v22 = vpack.c.bf16 %v4543_v19, %v4541_v18  ;;  %v382_v23 = vmul.f32 0.2, %v4281_v13  ;;  %v1147_v24 = vshrl.u32 %v4503_v36, 16 }
  0x26   : > { %v4548_v25 = vsel %vm344_vm14, %v4280_v4, %v381_v20  ;;  %v4324_v26 = vunpack.c.l.bf16 %v4354_v17  ;;  %v4325_v27 = vunpack.c.h.bf16 %v4354_v17  ;;  %v488_v28 = vand.u32 15, %v4455_v3 }
  0x27   : > { %v4552_v33 = vsel %vm1134_vm4, %v1221_v8, %v1225_v21  ;;  %v1229_v34 = vor.u32 %v1227_v16, %v1225_v21  ;;  %v1231_v35 = vshll.u32 %v1129_v22, 16  ;;  %v4554_v37 = vsel %vm345_vm15, %v4281_v13, %v382_v23 }
  0x28   : > { %6541 = vst [vmem:[#allocation8_spill] sm:$0xff] %v4552_v33  ;;  %3968 = vmatmul.msk.bf16.vlgmr.msra.gmra.mxu2 %vm1279_vm5, %v4552_v33  ;;  %v1119_v36 = vpack.c.bf16 %v4554_v37, %v4548_v25  ;;  %vm366_vm0 = vcmp.gt.f32.partialorder %v4324_v26, 0.0  ;;  %vm367_vm1 = vcmp.gt.f32.partialorder %v4325_v27, 0.0  ;;  %v509_v39 = vand.u32 15, %v4479_v11 }
  0x29   : > { %v1233_v40 = vrot.slane %v1231_v35, 1  ;;  %v1149_v41 = vor.u32 %v1147_v24, %v1145_v51  ;;  %v403_v44 = vmul.f32 0.2, %v4324_v26  ;;  %v404_v47 = vmul.f32 0.2, %v4325_v27 }
  0x2a   : > { %v1151_v48 = vshll.u32 %v1119_v36, 16  ;;  %vm868_vm2 = vcmp.ne.s32.totalorder %v488_v28, 0  ;;  %v4284_v49 = vunpack.c.l.bf16 %v4344_v38  ;;  %v4285_v50 = vunpack.c.h.bf16 %v4344_v38  ;;  %v4355_v28 = vld [vmem:[%s4470_s10 + $0x70] sm:$0xff]  }
  0x2b   : > { %v4563_v52 = vsel %vm1134_vm4, %v1229_v34, %v1233_v40  ;;  %v4565_v53 = vsel %vm366_vm0, %v4324_v26, %v403_v44  ;;  %v4567_v54 = vsel %vm367_vm1, %v4325_v27, %v404_v47  ;;  %v6387_v51 = vmov 0.0  }
  0x2c   : > { %6542 = vst [vmem:[#allocation9_spill] sm:$0xff] %v4563_v52  ;;  %3969 = vmatmul.msk.bf16.vlgmr.msra.gmra.mxu3 %vm1279_vm5, %v4563_v52  ;;  %v1153_v55 = vrot.slane %v1151_v48, 1  ;;  %v4573_v11 = vpack.c.bf16 %v4567_v54, %v4565_v53  ;;  %v4576_v56 = vsel %vm868_vm2, 1.0, %v6387_v51  ;;  %vm346_vm3 = vcmp.gt.f32.partialorder %v4284_v49, 0.0 }
  0x2d   : > { %6543 = vst [vmem:[#allocation10_spill] sm:$0xff] %v4565_v53  ;;  %v1235_v57 = vshrl.u32 %v1129_v22, 16  ;;  %v1060_v58 = vmul.f32 %v4576_v56, %v4488_v29  ;;  %vm347_vm6 = vcmp.gt.f32.partialorder %v4285_v50, 0.0  ;;  %v383_v59 = vmul.f32 0.2, %v4284_v49 }
  0x2e   : > { %6544 = vst [vmem:[#allocation11_spill] sm:$0xff] %v4567_v54  ;;  %v4581_v62 = vsel %vm1134_vm4, %v1149_v41, %v1153_v55  ;;  %v1239_v63 = vshll.u32 %v4573_v11, 16  ;;  %v384_v0 = vmul.f32 0.2, %v4285_v50  ;;  %vm965_vm7 = vcmp.ne.s32.totalorder %v495_v12, 15 }
  0x2f   : > { %6545 = vst [vmem:[#allocation12_spill] sm:$0xff] %v4576_v56  ;;  %v4586_v1 = vsel %vm346_vm3, %v4284_v49, %v383_v59  ;;  %vm967_vm8 = vcmp.ne.s32.totalorder %v509_v39, 15  ;;  %v1096_v4 = vpack.c.bf16 %v4491_v30, %v1060_v58  ;;  %v3930_v7 = vsel %vm965_vm7, 1.0, %v6387_v51 }
  0x30   : > { %v4589_v5 = vsel %vm347_vm6, %v4285_v50, %v384_v0  ;;  %v3931_v8 = vsel %vm967_vm8, 1.0, %v6387_v51  ;;  %vm1598_vm9 = vcmask 1041408   ;;  %v4403_v9 = vmov 1.0   ;;  %v4345_v50 = vld [vmem:[%s4470_s10 + $0x20] sm:$0xff]  }
  0x31   : > { %3959 = vmatmul.msk.bf16.gmra.mxu0 %vm1279_vm5, %v4581_v62  ;;  %v4595_v10 = vrot.slane %v4403_v9, 6  ;;  %v1600_v6 = vrot.slane %v3930_v7, 6  ;;  %v1604_v12 = vrot.slane %v3931_v8, 6  ;;  %v1237_v13 = vor.u32 %v1235_v57, %v1233_v40 }
  0x32   : > { %v4597_v15 = vrot.slane %v1239_v63, 1  ;;  %v4601_v16 = vpack.c.bf16 %v4589_v5, %v4586_v1  ;;  %v1155_v17 = vshrl.u32 %v1119_v36, 16  ;;  %vm1767_vm10 = vcmask 1046528  }
  0x33   : > { %6546 = vst [vmem:[#allocation13_spill] sm:$0xff] %v4595_v10  ;;  %v4605_v20 = vsel %vm1598_vm9, %v4595_v10, %v1600_v6  ;;  %v4609_v21 = vsel %vm1598_vm9, %v1600_v6, %v4595_v10  ;;  %v4613_v22 = vsel %vm1598_vm9, %v4595_v10, %v1604_v12  ;;  %v1695_v23 = vmul.f32 %v4595_v10, %v4488_v29 }
  0x34   : > { %6547 = vst [vmem:[#allocation14_spill] sm:$0xff] %v4609_v21  ;;  %3982 = vmatmul.msk.bf16.vlgmr.msrb.gmra.mxu1 %vm1279_vm5, %v1096_v4  ;;  %v1696_v24 = vmul.f32 %v4605_v20, %v4491_v30  ;;  %v1697_v26 = vmul.f32 %v4609_v21, %v4494_v31  ;;  %v1698_v27 = vmul.f32 %v4613_v22, %v4497_v32  ;;  %v1159_v36 = vshll.u32 %v4601_v16, 16 }
  0x35   : > { %6548 = vst [vmem:[#allocation15_spill] sm:$0xff] %v4613_v22  ;;  %v4627_v34 = vsel %vm1134_vm4, %v1237_v13, %v4597_v15  ;;  %v1157_v29 = vor.u32 %v1155_v17, %v1153_v55  ;;  %v4328_v39 = vunpack.c.l.bf16 %v4355_v28  ;;  %v4329_v30 = vunpack.c.h.bf16 %v4355_v28 }
  0x36   : > { %6549 = vst [vmem:[#allocation16_spill] sm:$0xff] %v4627_v34  ;;  %v1733_v35 = vpack.c.bf16 %v1696_v24, %v1695_v23  ;;  %v1734_v38 = vpack.c.bf16 %v1698_v27, %v1697_v26  ;;  %v454_v44 = vadd.s32 16, %v4455_v3  ;;  %v457_v47 = vadd.s32 40, %v4455_v3  ;;  %v4356_v26 = vld [vmem:[%s4470_s10 + $0x78] sm:$0xff]  }
  0x37   : > { %v1161_v48 = vrot.slane %v1159_v36, 1  ;;  %vm368_vm11 = vcmp.gt.f32.partialorder %v4328_v39, 0.0  ;;  %vm369_vm12 = vcmp.gt.f32.partialorder %v4329_v30, 0.0  ;;  %v405_v49 = vmul.f32 0.2, %v4328_v39 }
  0x38   : > { %v1768_v40 = vrot.slane %v1733_v35, 1  ;;  %v4630_v41 = vrot.slane %v1734_v38, 1  ;;  %v406_v55 = vmul.f32 0.2, %v4329_v30  ;;  %v502_v58 = vand.u32 15, %v454_v44 }
  0x39   : > { %v4639_v59 = vsel %vm1134_vm4, %v1157_v29, %v1161_v48  ;;  %v4641_v63 = vsel %vm368_vm11, %v4328_v39, %v405_v49  ;;  %v523_v0 = vand.u32 15, %v457_v47  ;;  %v4649_v7 = vsel %vm1598_vm9, %v1604_v12, %v4595_v10 }
  0x3a   : > { %v1770_v57 = vsel %vm1767_vm10, %v1768_v40, %v4630_v41  ;;  %6550 = vst [vmem:[#allocation17_spill] sm:$0xff] %v4639_v59  ;;  %v4645_v4 = vsel %vm369_vm12, %v4329_v30, %v406_v55  ;;  %vm870_vm13 = vcmp.ne.s32.totalorder %v502_v58, 0  ;;  %v4288_v8 = vunpack.c.l.bf16 %v4345_v50 }
  0x3b   : > { %4010 = vmatmul.msk.bf16.vlgmr.msrb.gmra.mxu2 %vm1279_vm5, %v1770_v57  ;;  %6551 = vst [vmem:[#allocation18_spill] sm:$0xff] %v4641_v63  ;;  %v4653_v9 = vpack.c.bf16 %v4645_v4, %v4641_v63  ;;  %v4656_v6 = vsel %vm870_vm13, 1.0, %v6387_v51  ;;  %vm969_vm14 = vcmp.ne.s32.totalorder %v523_v0, 15  ;;  %v4289_v13 = vunpack.c.h.bf16 %v4345_v50  ;;  %v4346_v0 = vld [vmem:[%s4470_s10 + $0x28] sm:$0xff]  }
  0x3c   : > { %3970 = vmatmul.msk.bf16.gmra.mxu3 %vm1279_vm5, %v4627_v34  ;;  %6552 = vst [vmem:[#allocation19_spill] sm:$0xff] %v4645_v4  ;;  %v1062_v17 = vmul.f32 %v4656_v6, %v4494_v31  ;;  %v3932_v23 = vsel %vm969_vm14, 1.0, %v6387_v51  ;;  %vm348_vm15 = vcmp.gt.f32.partialorder %v4288_v8, 0.0  ;;  %v385_v24 = vmul.f32 0.2, %v4288_v8 }
  0x3d   : > { %6553 = vst [vmem:[#allocation20_spill] sm:$0xff] %v4649_v7  ;;  %v1243_v12 = vshrl.u32 %v4573_v11, 16  ;;  %v1608_v27 = vrot.slane %v3932_v23, 6  ;;  %vm349_vm0 = vcmp.gt.f32.partialorder %v4289_v13, 0.0  ;;  %v386_v28 = vmul.f32 0.2, %v4289_v13 }
  0x3e   : > { %6554 = vst [vmem:[#allocation21_spill] sm:$0xff] %v4656_v6  ;;  %v1247_v35 = vshll.u32 %v4653_v9, 16  ;;  %v1097_v38 = vpack.c.bf16 %v4497_v32, %v1062_v17  ;;  %v1699_v29 = vmul.f32 %v4649_v7, %v4548_v25  ;;  %v4667_v36 = vsel %vm348_vm15, %v4288_v8, %v385_v24 }
  0x3f   : > { %6555 = vst [vmem:[#allocation22_spill] sm:$0xff] %v4667_v36  ;;  %v4673_v39 = vsel %vm1598_vm9, %v4595_v10, %v1608_v27  ;;  %v4675_v11 = vsel %vm349_vm0, %v4289_v13, %v386_v28  ;;  %v4332_v30 = vunpack.c.l.bf16 %v4356_v26  ;;  %v4333_v47 = vunpack.c.h.bf16 %v4356_v26 }
  0x40   : > { %6556 = vst [vmem:[#allocation23_spill] sm:$0xff] %v4673_v39  ;;  %v1700_v40 = vmul.f32 %v4673_v39, %v4554_v37  ;;  %v4681_v44 = vpack.c.bf16 %v4675_v11, %v4667_v36  ;;  %v1245_v49 = vor.u32 %v1243_v12, %v4597_v15  ;;  %v4684_v50 = vrot.slane %v1247_v35, 1 }
  0x41   : > { %3960 = vmatmul.msk.bf16.gmra.mxu0 %vm1279_vm5, %v4639_v59  ;;  %6557 = vst [vmem:[#allocation24_spill] sm:$0xff] %v4675_v11  ;;  %v1163_v55 = vshrl.u32 %v4601_v16, 16  ;;  %v456_v58 = vadd.s32 32, %v4455_v3  ;;  %v407_v8 = vmul.f32 0.2, %v4332_v30  ;;  %v459_v13 = vadd.s32 56, %v4455_v3 }
  0x42   : > { %v1735_v57 = vpack.c.bf16 %v1700_v40, %v1699_v29  ;;  %v1167_v23 = vshll.u32 %v4681_v44, 16  ;;  %vm370_vm1 = vcmp.gt.f32.partialorder %v4332_v30, 0.0  ;;  %v408_v24 = vmul.f32 0.2, %v4333_v47 }
  0x43   : > { %vm371_vm2 = vcmp.gt.f32.partialorder %v4333_v47, 0.0  ;;  %v516_v15 = vand.u32 15, %v456_v58  ;;  %v537_v26 = vand.u32 15, %v459_v13  ;;  %v4292_v12 = vunpack.c.l.bf16 %v4346_v0 }
  0x44   : > { %3983 = vmatmul.msk.bf16.gmra.mxu1 %vm1279_vm5, %v1097_v38  ;;  %v4691_v17 = vrot.slane %v1735_v57, 1  ;;  %v4696_v28 = vsel %vm1134_vm4, %v1245_v49, %v4684_v50  ;;  %v1165_v35 = vor.u32 %v1163_v55, %v1161_v48  ;;  %v4293_v38 = vunpack.c.h.bf16 %v4346_v0  ;;  %v4249_v55 = vld [vmem:[%s6381_s1 + $0x38] sm:$0xff] }
  0x45   : > { %6558 = vst [vmem:[#allocation25_spill] sm:$0xff] %v4696_v28  ;;  %v4701_v29 = vsel %vm370_vm1, %v4332_v30, %v407_v8  ;;  %vm872_vm3 = vcmp.ne.s32.totalorder %v516_v15, 0  ;;  %vm971_vm6 = vcmp.ne.s32.totalorder %v537_v26, 15  ;;  %v4705_v40 = vsel %vm1598_vm9, %v1608_v27, %v4595_v10  ;;  %2101 = vmatpush.bf16.msrb.mxu3 %v4249_v55  ;;  %v4248_v26 = vld [vmem:[%s6381_s1 + $0x30] sm:$0xff] }
  0x46   : > { %v1772_v16 = vsel %vm1767_vm10, %v4630_v41, %v4691_v17  ;;  %6559 = vst [vmem:[#allocation26_spill] sm:$0xff] %v4701_v29  ;;  %v1169_v57 = vrot.slane %v1167_v23, 1  ;;  %v4707_v58 = vsel %vm371_vm2, %v4333_v47, %v408_v24  ;;  %v4710_v49 = vsel %vm872_vm3, 1.0, %v6387_v51 }
  0x47   : > { %6560 = vst [vmem:[#allocation27_spill] sm:$0xff] %v4705_v40  ;;  %v3933_v13 = vsel %vm971_vm6, 1.0, %v6387_v51  ;;  %v387_v48 = vmul.f32 0.2, %v4292_v12  ;;  %v388_v30 = vmul.f32 0.2, %v4293_v38  ;;  %v1064_v27 = vmul.f32 %v4710_v49, %v4548_v25 }
  0x48   : > { %6561 = vst [vmem:[#allocation28_spill] sm:$0xff] %v4707_v58  ;;  %v1612_v41 = vrot.slane %v3933_v13, 6  ;;  %v1701_v47 = vmul.f32 %v4705_v40, %v4586_v1  ;;  %vm350_vm7 = vcmp.gt.f32.partialorder %v4292_v12, 0.0  ;;  %vm351_vm8 = vcmp.gt.f32.partialorder %v4293_v38, 0.0  ;;  %v4357_v51 = vld [vmem:[%s4470_s10 + $0x80] sm:$0xff]  }
  0x49   : > { %6562 = vst [vmem:[#allocation29_spill] sm:$0xff] %v4710_v49  ;;  %v4725_v0 = vpack.c.bf16 %v4707_v58, %v4701_v29  ;;  %v4732_v23 = vsel %vm1134_vm4, %v1165_v35, %v1169_v57  ;;  %v458_v15 = vadd.s32 48, %v4455_v3  ;;  %v4742_v13 = vsel %vm351_vm8, %v4293_v38, %v388_v30  ;;  %2102 = vmatpush.bf16.msrb.mxu3 %v4248_v26 }
  0x4a   : > { %v4729_v8 = vsel %vm1598_vm9, %v4595_v10, %v1612_v41  ;;  %6564 = vst [vmem:[#allocation31_spill] sm:$0xff] %v4732_v23  ;;  %v1098_v35 = vpack.c.bf16 %v4554_v37, %v1064_v27  ;;  %v1251_v55 = vshrl.u32 %v4653_v9, 16  ;;  %v4336_v38 = vunpack.c.l.bf16 %v4357_v51 }
  0x4b   : > { %4011 = vmatmul.msk.bf16.gmra.mxu2 %vm1279_vm5, %v1772_v16  ;;  %6563 = vst [vmem:[#allocation30_spill] sm:$0xff] %v4729_v8  ;;  %v1702_v24 = vmul.f32 %v4729_v8, %v4589_v5  ;;  %v4740_v16 = vsel %vm350_vm7, %v4292_v12, %v387_v48  ;;  %v1255_v52 = vshll.u32 %v4725_v0, 16  ;;  %v530_v48 = vand.u32 15, %v458_v15 }
  0x4c   : > { %3971 = vmatmul.msk.bf16.gmra.mxu3 %vm1279_vm5, %v4696_v28  ;;  %6565 = vst [vmem:[#allocation32_spill] sm:$0xff] %v4742_v13  ;;  %v461_v28 = vadd.s32 72, %v4455_v3  ;;  %v4753_v12 = vpack.c.bf16 %v4742_v13, %v4740_v16  ;;  %v6566_v27 = vmov 0.0   ;;  %v1253_v40 = vor.u32 %v1251_v55, %v4684_v50 }
  0x4d   : > { %v1736_v34 = vpack.c.bf16 %v1702_v24, %v1701_v47  ;;  %v4347_v24 = vld [vmem:[%s4470_s10 + $0x30] sm:$0xff]   ;;  %v1257_v9 = vrot.slane %v1255_v52, 1  ;;  %v409_v7 = vmul.f32 0.2, %v4336_v38  ;;  %vm874_vm12 = vcmp.ne.s32.totalorder %v530_v48, 0 }
  0x4e   : > { %v551_v8 = vand.u32 15, %v461_v28  ;;  %v1171_v28 = vshrl.u32 %v4681_v44, 16  ;;  %v1175_v39 = vshll.u32 %v4753_v12, 16  ;;  %vm372_vm13 = vcmp.gt.f32.partialorder %v4336_v38, 0.0 }
  0x4f   : > { %v1773_v30 = vrot.slane %v1736_v34, 1  ;;  %v4296_v51 = vunpack.c.l.bf16 %v4347_v24  ;;  %v4297_v15 = vunpack.c.h.bf16 %v4347_v24  ;;  %v4766_v26 = vsel %vm1598_vm9, %v1612_v41, %v4595_v10 }
  0x50   : > { %vm973_vm11 = vcmp.ne.s32.totalorder %v551_v8, 15  ;;  %v463_v8 = vadd.s32 88, %v4455_v3  ;;  %6567 = vst [vmem:[#allocation33_spill] sm:$0xff] %v4766_v26  ;;  %v4769_v52 = vsel %vm1134_vm4, %v1253_v40, %v1257_v9  ;;  %v4772_v44 = vsel %vm874_vm12, 1.0, %v6566_v27 }
  0x51   : > { %3961 = vmatmul.msk.bf16.gmra.mxu0 %vm1279_vm5, %v4732_v23  ;;  %v3934_v47 = vsel %vm973_vm11, 1.0, %v6566_v27  ;;  %v1774_v34 = vsel %vm1767_vm10, %v4691_v17, %v1773_v30  ;;  %6568 = vst [vmem:[#allocation34_spill] sm:$0xff] %v4769_v52  ;;  %v1177_v55 = vrot.slane %v1175_v39, 1  ;;  %v4778_v48 = vsel %vm372_vm13, %v4336_v38, %v409_v7 }
  0x52   : > { %v1616_v33 = vrot.slane %v3934_v47, 6  ;;  %6569 = vst [vmem:[#allocation35_spill] sm:$0xff] %v4772_v44  ;;  %v1703_v17 = vmul.f32 %v4766_v26, %v4667_v36  ;;  %v389_v41 = vmul.f32 0.2, %v4296_v51  ;;  %v390_v47 = vmul.f32 0.2, %v4297_v15 }
  0x53   : > { %6571 = vst [vmem:[#allocation37_spill] sm:$0xff] %v4778_v48  ;;  %v565_v40 = vand.u32 15, %v463_v8  ;;  %v1066_v24 = vmul.f32 %v4772_v44, %v4586_v1  ;;  %vm352_vm14 = vcmp.gt.f32.partialorder %v4296_v51, 0.0  ;;  %vm353_vm15 = vcmp.gt.f32.partialorder %v4297_v15, 0.0 }
  0x54   : > { %3984 = vmatmul.msk.bf16.gmra.mxu1 %vm1279_vm5, %v1098_v35  ;;  %v4776_v50 = vsel %vm1598_vm9, %v4595_v10, %v1616_v33  ;;  %v1173_v35 = vor.u32 %v1171_v28, %v1169_v57  ;;  %v1133_v7 = vpack.c.bf16 %v4778_v48, %v4778_v48  ;;  %v460_v38 = vadd.s32 64, %v4455_v3 }
  0x55   : > { %6570 = vst [vmem:[#allocation36_spill] sm:$0xff] %v4776_v50  ;;  %v1704_v57 = vmul.f32 %v4776_v50, %v4675_v11  ;;  %v4795_v28 = vsel %vm352_vm14, %v4296_v51, %v389_v41  ;;  %v4797_v8 = vsel %vm353_vm15, %v4297_v15, %v390_v47  ;;  %vm975_vm0 = vcmp.ne.s32.totalorder %v565_v40, 15  ;;  %v4348_v15 = vld [vmem:[%s4470_s10 + $0x38] sm:$0xff]  }
  0x56   : > { %v4792_v39 = vsel %vm1134_vm4, %v1173_v35, %v1177_v55  ;;  %6573 = vst [vmem:[#allocation39_spill] sm:$0xff] %v4797_v8  ;;  %v1259_v50 = vshrl.u32 %v4725_v0, 16  ;;  %v1263_v26 = vshll.u32 %v1133_v7, 16  ;;  %v1123_v35 = vpack.c.bf16 %v4797_v8, %v4795_v28 }
  0x57   : > { %6572 = vst [vmem:[#allocation38_spill] sm:$0xff] %v4792_v39  ;;  %v544_v14 = vand.u32 15, %v460_v38  ;;  %v3935_v48 = vsel %vm975_vm0, 1.0, %v6566_v27  ;;  %v1179_v40 = vshrl.u32 %v4753_v12, 16  ;;  %v4300_v0 = vunpack.c.l.bf16 %v4348_v15 }
  0x58   : > { %v4808_v41 = vor.u32 %v1259_v50, %v1257_v9  ;;  %v1265_v47 = vrot.slane %v1263_v26, 1  ;;  %v465_v7 = vadd.s32 104, %v4455_v3  ;;  %v4815_v22 = vsel %vm1598_vm9, %v1616_v33, %v4595_v10 }
  0x59   : > { %vm876_vm1 = vcmp.ne.s32.totalorder %v544_v14, 0  ;;  %6575 = vst [vmem:[#allocation41_spill] sm:$0xff] %v4815_v22  ;;  %v1181_v14 = vor.u32 %v1179_v40, %v1177_v55  ;;  %v391_v50 = vmul.f32 0.2, %v4300_v0  ;;  %vm354_vm2 = vcmp.gt.f32.partialorder %v4300_v0, 0.0 }
  0x5a   : > { %6574 = vst [vmem:[#allocation40_spill] sm:$0xff] %v4808_v41  ;;  %v1266_v9 = vsel %vm1134_vm4, %v4808_v41, %v1265_v47  ;;  %v4820_v26 = vsel %vm876_vm1, 1.0, %v6566_v27  ;;  %v462_v47 = vadd.s32 80, %v4455_v3 }
  0x5b   : > { %4012 = vmatmul.msk.bf16.gmra.mxu2 %vm1279_vm5, %v1774_v34  ;;  %v1099_v34 = vpack.c.bf16 %v4589_v5, %v1066_v24  ;;  %v1183_v24 = vshll.u32 %v1123_v35, 16  ;;  %6576 = vst [vmem:[#allocation42_spill] sm:$0xff] %v4820_v26  ;;  %v4838_v40 = vsel %vm354_vm2, %v4300_v0, %v391_v50  ;;  %v1982_v0 = vmul.f32 %v4576_v56, %v4494_v31 }
  0x5c   : > { %3972 = vmatmul.msk.bf16.gmra.mxu3 %vm1279_vm5, %v4769_v52  ;;  %v1737_v52 = vpack.c.bf16 %v1704_v57, %v1703_v17  ;;  %v1620_v17 = vrot.slane %v3935_v48, 6  ;;  %v4301_v57 = vunpack.c.h.bf16 %v4348_v15  ;;  %v579_v48 = vand.u32 15, %v465_v7 }
  0x5d   : > { %v558_v41 = vand.u32 15, %v462_v47  ;;  %v2019_v47 = vpack.c.bf16 %v4497_v32, %v1982_v0 }
  0x5e   : > { %v1775_v51 = vrot.slane %v1737_v52, 1  ;;  %v4824_v12 = vsel %vm1598_vm9, %v4595_v10, %v1620_v17  ;;  %v1185_v52 = vrot.slane %v1183_v24, 1  ;;  %v392_v33 = vmul.f32 0.2, %v4301_v57 }
  0x5f   : > { %6577 = vst [vmem:[#allocation43_spill] sm:$0xff] %v4824_v12  ;;  %v1706_v15 = vmul.f32 %v4824_v12, %v4742_v13  ;;  %vm355_vm3 = vcmp.gt.f32.partialorder %v4301_v57, 0.0  ;;  %vm977_vm6 = vcmp.ne.s32.totalorder %v579_v48, 15  ;;  %vm878_vm7 = vcmp.ne.s32.totalorder %v558_v41, 0 }
  0x60   : > { %v1776_v38 = vsel %vm1767_vm10, %v1773_v30, %v1775_v51  ;;  %v1705_v30 = vmul.f32 %v4815_v22, %v4740_v16  ;;  %v4835_v55 = vsel %vm1134_vm4, %v1181_v14, %v1185_v52  ;;  %v4840_v24 = vsel %vm355_vm3, %v4301_v57, %v392_v33  ;;  %v4349_v57 = vld [vmem:[%s4470_s10 + $0x40] sm:$0xff]  }
  0x61   : > { %3962 = vmatmul.msk.bf16.gmra.mxu0 %vm1279_vm5, %v4792_v39  ;;  %6578 = vst [vmem:[#allocation44_spill] sm:$0xff] %v4835_v55  ;;  %v3936_v14 = vsel %vm977_vm6, 1.0, %v6566_v27  ;;  %v1187_v33 = vshrl.u32 %v1123_v35, 16 }
  0x62   : > { %6579 = vst [vmem:[#allocation45_spill] sm:$0xff] %v4840_v24  ;;  %v1624_v50 = vrot.slane %v3936_v14, 6 }
  0x63   : > { %v1189_v41 = vor.u32 %v1187_v33, %v1185_v52 }
  0x64   : > { %3985 = vmatmul.msk.bf16.gmra.mxu1 %vm1279_vm5, %v1099_v34  ;;  %v1068_v34 = vmul.f32 %v4820_v26, %v4667_v36  ;;  %v4864_v35 = vsel %vm1598_vm9, %v4595_v10, %v1624_v50 }
  0x65   : > { %6582 = vst [vmem:[#allocation48_spill] sm:$0xff] %v4864_v35  ;;  %v1708_v31 = vmul.f32 %v4864_v35, %v4797_v8 }
  0x66   : > { %v1100_v7 = vpack.c.bf16 %v4675_v11, %v1068_v34  ;;  %v4305_v34 = vunpack.c.h.bf16 %v4349_v57 }
  0x68   : > { %v394_v0 = vmul.f32 0.2, %v4305_v34  ;;  %vm357_vm11 = vcmp.gt.f32.partialorder %v4305_v34, 0.0 }
  0x6b   : > { %4013 = vmatmul.msk.bf16.gmra.mxu2 %vm1279_vm5, %v1776_v38  ;;  %v1738_v38 = vpack.c.bf16 %v1706_v15, %v1705_v30  ;;  %v4304_v30 = vunpack.c.l.bf16 %v4349_v57  ;;  %v467_v15 = vadd.s32 120, %v4455_v3 }
  0x6c   : > { %3973 = vmatmul.msk.bf16.gmra.mxu3 %vm1279_vm5, %v1266_v9  ;;  %v1124_v9 = vpack.c.bf16 %v4840_v24, %v4838_v40 }
  0x6d   : > { %v1777_v12 = vrot.slane %v1738_v38, 1  ;;  %v4860_v38 = vsel %vm878_vm7, 1.0, %v6566_v27  ;;  %v393_v57 = vmul.f32 0.2, %v4304_v30  ;;  %v593_v56 = vand.u32 15, %v467_v15 }
  0x6e   : > { %v1191_v48 = vshll.u32 %v1124_v9, 16  ;;  %6581 = vst [vmem:[#allocation47_spill] sm:$0xff] %v4860_v38  ;;  %vm356_vm8 = vcmp.gt.f32.partialorder %v4304_v30, 0.0 }
  0x6f   : > { %v1778_v22 = vsel %vm1767_vm10, %v1775_v51, %v1777_v12  ;;  %v4878_v33 = vsel %vm356_vm8, %v4304_v30, %v393_v57  ;;  %vm979_vm12 = vcmp.ne.s32.totalorder %v593_v56, 15  ;;  %v1984_v30 = vmul.f32 %v4656_v6, %v4548_v25 }
  0x70   : > { %v1193_v14 = vrot.slane %v1191_v48, 1  ;;  %v4880_v48 = vsel %vm357_vm11, %v4305_v34, %v394_v0  ;;  %v1195_v56 = vshrl.u32 %v1124_v9, 16 }
  0x71   : > { %3963 = vmatmul.msk.bf16.gmra.mxu0 %vm1279_vm5, %v4835_v55  ;;  %6584 = vst [vmem:[#allocation50_spill] sm:$0xff] %v4880_v48  ;;  %v1125_v35 = vpack.c.bf16 %v4880_v48, %v4878_v33  ;;  %v2020_v0 = vpack.c.bf16 %v4554_v37, %v1984_v30 }
  0x72   : > { %v4875_v52 = vsel %vm1134_vm4, %v1189_v41, %v1193_v14  ;;  %v3937_v41 = vsel %vm979_vm12, 1.0, %v6566_v27  ;;  %v1197_v9 = vor.u32 %v1195_v56, %v1193_v14  ;;  %v466_v14 = vadd.s32 112, %v4455_v3  ;;  %v4251_v56 = vld [vmem:[%s6381_s1 + $0x48] sm:$0xff] }
  0x73   : > { %6583 = vst [vmem:[#allocation49_spill] sm:$0xff] %v4875_v52  ;;  %v1628_v34 = vrot.slane %v3937_v41, 6  ;;  %v1199_v57 = vshll.u32 %v1125_v35, 16  ;;  %2260 = vmatpush.bf16.msrb.mxu0 %v4251_v56 }
  0x74   : > { %3986 = vmatmul.msk.bf16.gmra.mxu1 %vm1279_vm5, %v1100_v7  ;;  %v4857_v7 = vsel %vm1598_vm9, %v1620_v17, %v4595_v10  ;;  %v1070_v17 = vmul.f32 %v4860_v38, %v4740_v16 }
  0x75   : > { %6580 = vst [vmem:[#allocation46_spill] sm:$0xff] %v4857_v7  ;;  %v1707_v51 = vmul.f32 %v4857_v7, %v4795_v28 }
  0x76   : > { %v1101_v15 = vpack.c.bf16 %v4742_v13, %v1070_v17 }
  0x7b   : > { %4014 = vmatmul.msk.bf16.gmra.mxu2 %vm1279_vm5, %v1778_v22  ;;  %v464_v22 = vadd.s32 96, %v4455_v3 }
  0x7c   : > { %4038 = vmatmul.msk.bf16.vlgmr.msrb.gmra.mxu3 %vm1279_vm5, %v2019_v47  ;;  %v1739_v47 = vpack.c.bf16 %v1708_v31, %v1707_v51  ;;  %v469_v31 = vadd.s32 136, %v4455_v3 }
  0x7d   : > { %v572_v7 = vand.u32 15, %v464_v22  ;;  %v4899_v22 = vsel %vm1598_vm9, %v1624_v50, %v4595_v10 }
  0x7e   : > { %v1779_v21 = vrot.slane %v1739_v47, 1  ;;  %6586 = vst [vmem:[#allocation52_spill] sm:$0xff] %v4899_v22  ;;  %v1201_v47 = vrot.slane %v1199_v57, 1  ;;  %v1709_v41 = vmul.f32 %v4899_v22, %v4838_v40  ;;  %v1203_v22 = vshrl.u32 %v1125_v35, 16 }
  0x7f   : > { %vm880_vm13 = vcmp.ne.s32.totalorder %v572_v7, 0  ;;  %v607_v7 = vand.u32 15, %v469_v31 }
  0x80   : > { %v1780_v51 = vsel %vm1767_vm10, %v1777_v12, %v1779_v21  ;;  %v4895_v17 = vsel %vm880_vm13, 1.0, %v6566_v27  ;;  %v4914_v30 = vsel %vm1134_vm4, %v1197_v9, %v1201_v47 }
  0x81   : > { %3964 = vmatmul.msk.bf16.gmra.mxu0 %vm1279_vm5, %v4875_v52  ;;  %6585 = vst [vmem:[#allocation51_spill] sm:$0xff] %v4895_v17  ;;  %v1072_v12 = vmul.f32 %v4895_v17, %v4795_v28  ;;  %vm981_vm14 = vcmp.ne.s32.totalorder %v607_v7, 15  ;;  %v1986_v7 = vmul.f32 %v4710_v49, %v4586_v1 }
  0x82   : > { %6588 = vst [vmem:[#allocation54_spill] sm:$0xff] %v4914_v30 }
  0x83   : > { %v1102_v57 = vpack.c.bf16 %v4797_v8, %v1072_v12  ;;  %v4250_v12 = vld [vmem:[%s6381_s1 + $0x40] sm:$0xff] }
  0x84   : > { %3987 = vmatmul.msk.bf16.gmra.mxu1 %vm1279_vm5, %v1101_v15  ;;  %v4903_v15 = vsel %vm1598_vm9, %v4595_v10, %v1628_v34  ;;  %2261 = vmatpush.bf16.msrb.mxu0 %v4250_v12 }
  0x85   : > { %6587 = vst [vmem:[#allocation53_spill] sm:$0xff] %v4903_v15  ;;  %v1710_v50 = vmul.f32 %v4903_v15, %v4840_v24 }
  0x87   : > { %v1740_v31 = vpack.c.bf16 %v1710_v50, %v1709_v41  ;;  %v471_v41 = vadd.s32 152, %v4455_v3 }
  0x89   : > { %v1781_v9 = vrot.slane %v1740_v31, 1  ;;  %v1205_v31 = vor.u32 %v1203_v22, %v1201_v47  ;;  %v468_v22 = vadd.s32 128, %v4455_v3 }
  0x8b   : > { %4015 = vmatmul.msk.bf16.gmra.mxu2 %vm1279_vm5, %v1780_v51  ;;  %v586_v51 = vand.u32 15, %v466_v14  ;;  %v1782_v50 = vsel %vm1767_vm10, %v1779_v21, %v1781_v9  ;;  %v2021_v14 = vpack.c.bf16 %v4589_v5, %v1986_v7  ;;  %v4954_v49 = vsel %vm1134_vm4, %v1205_v31, %v4523_v60 }
  0x8c   : > { %4039 = vmatmul.msk.bf16.gmra.mxu3 %vm1279_vm5, %v2020_v0  ;;  %v3938_v0 = vsel %vm981_vm14, 1.0, %v6566_v27  ;;  %6592 = vst [vmem:[#allocation58_spill] sm:$0xff] %v4954_v49  ;;  %v1988_v60 = vmul.f32 %v4772_v44, %v4667_v36 }
  0x8d   : > { %v1632_v15 = vrot.slane %v3938_v0, 6  ;;  %vm882_vm15 = vcmp.ne.s32.totalorder %v586_v51, 0  ;;  %v621_v51 = vand.u32 15, %v471_v41 }
  0x8e   : > { %v4934_v56 = vsel %vm882_vm15, 1.0, %v6566_v27 }
  0x8f   : > { %6589 = vst [vmem:[#allocation55_spill] sm:$0xff] %v4934_v56  ;;  %v4942_v35 = vsel %vm1598_vm9, %v4595_v10, %v1632_v15  ;;  %v1074_v21 = vmul.f32 %v4934_v56, %v4838_v40  ;;  %vm983_vm0 = vcmp.ne.s32.totalorder %v621_v51, 15  ;;  %v473_v51 = vadd.s32 168, %v4455_v3 }
  0x90   : > { %6591 = vst [vmem:[#allocation57_spill] sm:$0xff] %v4942_v35 }
  0x91   : > { %3965 = vmatmul.msk.bf16.gmra.mxu0 %vm1279_vm5, %v4914_v30  ;;  %v1103_v47 = vpack.c.bf16 %v4840_v24, %v1074_v21 }
  0x94   : > { %3988 = vmatmul.msk.bf16.gmra.mxu1 %vm1279_vm5, %v1102_v57  ;;  %v4938_v57 = vsel %vm1598_vm9, %v1628_v34, %v4595_v10  ;;  %v1712_v34 = vmul.f32 %v4942_v35, %v4880_v48 }
  0x95   : > { %6590 = vst [vmem:[#allocation56_spill] sm:$0xff] %v4938_v57  ;;  %v1711_v0 = vmul.f32 %v4938_v57, %v4878_v33 }
  0x97   : > { %v1741_v12 = vpack.c.bf16 %v1712_v34, %v1711_v0  ;;  %v2022_v0 = vpack.c.bf16 %v4675_v11, %v1988_v60 }
  0x99   : > { %v1783_v35 = vrot.slane %v1741_v12, 1 }
  0x9b   : > { %4016 = vmatmul.msk.bf16.gmra.mxu2 %vm1279_vm5, %v1782_v50  ;;  %v600_v50 = vand.u32 15, %v468_v22  ;;  %v1784_v21 = vsel %vm1767_vm10, %v1781_v9, %v1783_v35  ;;  %v635_v9 = vand.u32 15, %v473_v51 }
  0x9c   : > { %4040 = vmatmul.msk.bf16.gmra.mxu3 %vm1279_vm5, %v2021_v14  ;;  %v3939_v14 = vsel %vm983_vm0, 1.0, %v6566_v27 }
  0x9d   : > { %v1636_v31 = vrot.slane %v3939_v14, 6  ;;  %vm884_vm1 = vcmp.ne.s32.totalorder %v600_v50, 0  ;;  %vm985_vm2 = vcmp.ne.s32.totalorder %v635_v9, 15 }
  0x9e   : > { %v1337_v7 = vpop.f32.mrf.mxu0  ;;  %v4972_v22 = vsel %vm884_vm1, 1.0, %v6566_v27 }
  0x9f   : > { %6595 = vst [vmem:[#allocation61_spill] sm:$0xff] %v4972_v22  ;;  %v4980_v12 = vsel %vm1598_vm9, %v4595_v10, %v1636_v31  ;;  %v1076_v14 = vmul.f32 %v4972_v22, %v4878_v33 }
  0xa0   : > { %6597 = vst [vmem:[#allocation63_spill] sm:$0xff] %v4980_v12 }
  0xa1   : > { %v4958_v41 = vpop.f32.mrf.mxu1  ;;  %3966 = vmatmul.msk.bf16.gmra.mxu0 %vm1279_vm5, %v4954_v49 }
  0xa2   : > { %6593 = vst [vmem:[#allocation59_spill] sm:$0xff] %v4958_v41 }
  0xa4   : > { %3989 = vmatmul.msk.bf16.gmra.mxu1 %vm1279_vm5, %v1103_v47  ;;  %v4976_v47 = vsel %vm1598_vm9, %v1632_v15, %v4595_v10  ;;  %v1714_v15 = vmul.f32 %v4980_v12, %v4509_v43 }
  0xa5   : > { %6596 = vst [vmem:[#allocation62_spill] sm:$0xff] %v4976_v47  ;;  %v1713_v60 = vmul.f32 %v4976_v47, %v4506_v42  ;;  %v3940_v47 = vsel %vm985_vm2, 1.0, %v6566_v27 }
  0xa6   : > { %v1339_v57 = vpop.f32.mrf.mxu0  ;;  %v1640_v9 = vrot.slane %v3940_v47, 6 }
  0xa7   : > { %v1742_v51 = vpack.c.bf16 %v1714_v15, %v1713_v60  ;;  %v475_v60 = vadd.s32 184, %v4455_v3  ;;  %v5014_v15 = vsel %vm1598_vm9, %v1636_v31, %v4595_v10 }
  0xa8   : > { %6603 = vst [vmem:[#allocation69_spill] sm:$0xff] %v5014_v15  ;;  %v5018_v47 = vsel %vm1598_vm9, %v4595_v10, %v1640_v9 }
  0xa9   : > { %v4969_v34 = vpop.f32.mrf.mxu1  ;;  %v1785_v12 = vrot.slane %v1742_v51, 1  ;;  %6604 = vst [vmem:[#allocation70_spill] sm:$0xff] %v5018_v47  ;;  %v1716_v31 = vmul.f32 %v5018_v47, %v4515_v46 }
  0xaa   : > { %6594 = vst [vmem:[#allocation60_spill] sm:$0xff] %v4969_v34  ;;  %v470_v34 = vadd.s32 144, %v4455_v3 }
  0xab   : > { %4017 = vmatmul.msk.bf16.gmra.mxu2 %vm1279_vm5, %v1784_v21  ;;  %v4983_v50 = vpop.f32.mrf.mxu2  ;;  %v1104_v21 = vpack.c.bf16 %v4880_v48, %v1076_v14 }
  0xac   : > { %6598 = vst [vmem:[#allocation64_spill] sm:$0xff] %v4983_v50  ;;  %4041 = vmatmul.msk.bf16.gmra.mxu3 %vm1279_vm5, %v2022_v0  ;;  %v614_v11 = vand.u32 15, %v470_v34 }
  0xae   : > { %v1342_v44 = vpop.f32.mrf.mxu0  ;;  %vm886_vm3 = vcmp.ne.s32.totalorder %v614_v11, 0 }
  0xaf   : > { %v4993_v41 = vpop.f32.mrf.mxu3 }
  0xb0   : > { %6599 = vst [vmem:[#allocation65_spill] sm:$0xff] %v4993_v41  ;;  %v1990_v41 = vmul.f32 %v4820_v26, %v4740_v16  ;;  %v472_v26 = vadd.s32 160, %v4455_v3 }
  0xb1   : > { %v1486_v50 = vpop.f32.mrf.mxu1  ;;  %4066 = vmatmul.msk.bf16.vlgmr.msrb.gmra.mxu0 %vm1279_vm5, %v4581_v62  ;;  %v1786_v62 = vsel %vm1767_vm10, %v1783_v35, %v1785_v12 }
  0xb2   : > { %v1487_v0 = vadd.f32 %v1486_v50, %v1337_v7  ;;  %v2023_v7 = vpack.c.bf16 %v4742_v13, %v1990_v41  ;;  %v5010_v50 = vsel %vm886_vm3, 1.0, %v6566_v27  ;;  %v1715_v41 = vmul.f32 %v5014_v15, %v4513_v45 }
  0xb3   : > { %v4999_v36 = vpop.f32.mrf.mxu2  ;;  %6602 = vst [vmem:[#allocation68_spill] sm:$0xff] %v5010_v50  ;;  %v1078_v35 = vmul.f32 %v5010_v50, %v4506_v42  ;;  %v628_v15 = vand.u32 15, %v472_v26 }
  0xb4   : > { %6600 = vst [vmem:[#allocation66_spill] sm:$0xff] %v4999_v36  ;;  %3990 = vmatmul.msk.bf16.gmra.mxu1 %vm1279_vm5, %v1104_v21  ;;  %v649_v21 = vand.u32 15, %v475_v60 }
  0xb5   : > { %v1105_v60 = vpack.c.bf16 %v4509_v43, %v1078_v35  ;;  %vm888_vm7 = vcmp.ne.s32.totalorder %v628_v15, 0 }
  0xb6   : > { %v1344_v6 = vpop.f32.mrf.mxu0  ;;  %vm987_vm6 = vcmp.ne.s32.totalorder %v649_v21, 15 }
  0xb7   : > { %v5004_v14 = vpop.f32.mrf.mxu3  ;;  %v3941_v47 = vsel %vm987_vm6, 1.0, %v6566_v27 }
  0xb8   : > { %6601 = vst [vmem:[#allocation67_spill] sm:$0xff] %v5004_v14 }
  0xb9   : > { %v1488_v34 = vpop.f32.mrf.mxu1 }
  0xba   : > { %v1489_v11 = vadd.f32 %v1488_v34, %v1339_v57 }
  0xbb   : > { %4018 = vmatmul.msk.bf16.gmra.mxu2 %vm1279_vm5, %v1786_v62  ;;  %v1743_v62 = vpack.c.bf16 %v1716_v31, %v1715_v41  ;;  %v477_v31 = vadd.s32 200, %v4455_v3 }
  0xbc   : > { %4042 = vmatmul.msk.bf16.gmra.mxu3 %vm1279_vm5, %v2023_v7 }
  0xbd   : > { %v1787_v13 = vrot.slane %v1743_v62, 1  ;;  %v663_v62 = vand.u32 15, %v477_v31 }
  0xbe   : > { %v1870_v51 = vpop.f32.mrf.mxu2  ;;  %v1347_v14 = vpop.f32.mrf.mxu0 }
  0xbf   : > { %v5029_v36 = vpop.f32.mrf.mxu3  ;;  %v5031_v57 = vadd.f32 %v1870_v51, %v1487_v0  ;;  %v1644_v0 = vrot.slane %v3941_v47, 6  ;;  %v5052_v47 = vsel %vm1598_vm9, %v1640_v9, %v4595_v10  ;;  %vm989_vm8 = vcmp.ne.s32.totalorder %v663_v62, 15 }
  0xc0   : > { %6605 = vst [vmem:[#allocation71_spill] sm:$0xff] %v5029_v36  ;;  %v1992_v36 = vmul.f32 %v4860_v38, %v4795_v28  ;;  %v474_v38 = vadd.s32 176, %v4455_v3 }
  0xc1   : > { %v1491_v7 = vpop.f32.mrf.mxu1  ;;  %4067 = vmatmul.msk.bf16.gmra.mxu0 %vm1279_vm5, %v4639_v59  ;;  %6608 = vst [vmem:[#allocation74_spill] sm:$0xff] %v5052_v47  ;;  %v5056_v15 = vsel %vm1598_vm9, %v4595_v10, %v1644_v0 }
  0xc2   : > { %v1492_v34 = vadd.f32 %v1491_v7, %v1342_v44  ;;  %v1788_v44 = vsel %vm1767_vm10, %v1785_v12, %v1787_v13  ;;  %v2024_v26 = vpack.c.bf16 %v4797_v8, %v1992_v36  ;;  %6609 = vst [vmem:[#allocation75_spill] sm:$0xff] %v5056_v15  ;;  %v1717_v12 = vmul.f32 %v5052_v47, %v4525_v61 }
  0xc3   : > { %v1718_v9 = vmul.f32 %v5056_v15, %v4529_v2  ;;  %v642_v47 = vand.u32 15, %v474_v38  ;;  %v3942_v15 = vsel %vm989_vm8, 1.0, %v6566_v27 }
  0xc4   : > { %3991 = vmatmul.msk.bf16.gmra.mxu1 %vm1279_vm5, %v1105_v60  ;;  %v5048_v60 = vsel %vm888_vm7, 1.0, %v6566_v27 }
  0xc5   : > { %6607 = vst [vmem:[#allocation73_spill] sm:$0xff] %v5048_v60  ;;  %v1080_v36 = vmul.f32 %v5048_v60, %v4513_v45  ;;  %vm890_vm11 = vcmp.ne.s32.totalorder %v642_v47, 0 }
  0xc6   : > { %v1872_v51 = vpop.f32.mrf.mxu2  ;;  %v1349_v21 = vpop.f32.mrf.mxu0 }
  0xc7   : > { %v5040_v35 = vpop.f32.mrf.mxu3  ;;  %v5042_v41 = vadd.f32 %v1872_v51, %v1489_v11  ;;  %v1106_v31 = vpack.c.bf16 %v4515_v46, %v1080_v36 }
  0xc8   : > { %6606 = vst [vmem:[#allocation72_spill] sm:$0xff] %v5040_v35 }
  0xc9   : > { %v1493_v7 = vpop.f32.mrf.mxu1 }
  0xca   : > { %v1494_v11 = vadd.f32 %v1493_v7, %v1344_v6 }
  0xcb   : > { %4019 = vmatmul.msk.bf16.gmra.mxu2 %vm1279_vm5, %v1788_v44  ;;  %v1744_v44 = vpack.c.bf16 %v1718_v9, %v1717_v12  ;;  %v479_v9 = vadd.s32 216, %v4455_v3 }
  0xcc   : > { %4043 = vmatmul.msk.bf16.gmra.mxu3 %vm1279_vm5, %v2024_v26 }
  0xcd   : > { %v1789_v8 = vrot.slane %v1744_v44, 1  ;;  %v677_v44 = vand.u32 15, %v479_v9 }
  0xce   : > { %v1875_v51 = vpop.f32.mrf.mxu2  ;;  %v1352_v35 = vpop.f32.mrf.mxu0 }
  0xcf   : > { %v5067_v59 = vpop.f32.mrf.mxu3  ;;  %v5069_v6 = vadd.f32 %v1875_v51, %v1492_v34  ;;  %v1648_v34 = vrot.slane %v3942_v15, 6  ;;  %v1790_v38 = vsel %vm1767_vm10, %v1787_v13, %v1789_v8  ;;  %v5090_v15 = vsel %vm1598_vm9, %v1644_v0, %v4595_v10 }
  0xd0   : > { %6610 = vst [vmem:[#allocation76_spill] sm:$0xff] %v5067_v59  ;;  %v1994_v59 = vmul.f32 %v4895_v17, %v4838_v40  ;;  %v1719_v13 = vmul.f32 %v5090_v15, %v4541_v18  ;;  %v476_v17 = vadd.s32 192, %v4455_v3  ;;  %vm991_vm12 = vcmp.ne.s32.totalorder %v677_v44, 15 }
  0xd1   : > { %v1496_v26 = vpop.f32.mrf.mxu1  ;;  %4068 = vmatmul.msk.bf16.gmra.mxu0 %vm1279_vm5, %v4732_v23  ;;  %6613 = vst [vmem:[#allocation79_spill] sm:$0xff] %v5090_v15  ;;  %v5094_v47 = vsel %vm1598_vm9, %v4595_v10, %v1648_v34 }
  0xd2   : > { %v1497_v7 = vadd.f32 %v1496_v26, %v1347_v14  ;;  %v2025_v14 = vpack.c.bf16 %v4840_v24, %v1994_v59  ;;  %6614 = vst [vmem:[#allocation80_spill] sm:$0xff] %v5094_v47  ;;  %v1720_v0 = vmul.f32 %v5094_v47, %v4543_v19  ;;  %v656_v15 = vand.u32 15, %v476_v17 }
  0xd3   : > { %v3943_v47 = vsel %vm991_vm12, 1.0, %v6566_v27 }
  0xd4   : > { %3992 = vmatmul.msk.bf16.gmra.mxu1 %vm1279_vm5, %v1106_v31  ;;  %v5086_v31 = vsel %vm890_vm11, 1.0, %v6566_v27  ;;  %vm892_vm13 = vcmp.ne.s32.totalorder %v656_v15, 0 }
  0xd5   : > { %6612 = vst [vmem:[#allocation78_spill] sm:$0xff] %v5086_v31  ;;  %v1082_v59 = vmul.f32 %v5086_v31, %v4525_v61 }
  0xd6   : > { %v1877_v51 = vpop.f32.mrf.mxu2  ;;  %v1354_v62 = vpop.f32.mrf.mxu0 }
  0xd7   : > { %v5078_v36 = vpop.f32.mrf.mxu3  ;;  %v5080_v12 = vadd.f32 %v1877_v51, %v1494_v11  ;;  %v1107_v9 = vpack.c.bf16 %v4529_v2, %v1082_v59 }
  0xd8   : > { %6611 = vst [vmem:[#allocation77_spill] sm:$0xff] %v5078_v36 }
  0xd9   : > { %v1498_v26 = vpop.f32.mrf.mxu1 }
  0xda   : > { %v1499_v11 = vadd.f32 %v1498_v26, %v1349_v21 }
  0xdb   : > { %4020 = vmatmul.msk.bf16.gmra.mxu2 %vm1279_vm5, %v1790_v38  ;;  %v1745_v38 = vpack.c.bf16 %v1720_v0, %v1719_v13  ;;  %v481_v0 = vadd.s32 232, %v4455_v3 }
  0xdc   : > { %4044 = vmatmul.msk.bf16.gmra.mxu3 %vm1279_vm5, %v2025_v14 }
  0xdd   : > { %v1791_v24 = vrot.slane %v1745_v38, 1  ;;  %v691_v38 = vand.u32 15, %v481_v0 }
  0xde   : > { %v1880_v51 = vpop.f32.mrf.mxu2  ;;  %v1357_v36 = vpop.f32.mrf.mxu0 }
  0xdf   : > { %v5105_v23 = vpop.f32.mrf.mxu3  ;;  %v5107_v21 = vadd.f32 %v1880_v51, %v1497_v7  ;;  %v1652_v7 = vrot.slane %v3943_v47, 6  ;;  %v1792_v17 = vsel %vm1767_vm10, %v1789_v8, %v1791_v24  ;;  %v5128_v47 = vsel %vm1598_vm9, %v1648_v34, %v4595_v10 }
  0xe0   : > { %6615 = vst [vmem:[#allocation81_spill] sm:$0xff] %v5105_v23  ;;  %v1996_v23 = vmul.f32 %v4934_v56, %v4878_v33  ;;  %v1721_v8 = vmul.f32 %v5128_v47, %v4565_v53  ;;  %v478_v56 = vadd.s32 208, %v4455_v3  ;;  %vm993_vm14 = vcmp.ne.s32.totalorder %v691_v38, 15 }
  0xe1   : > { %v1501_v14 = vpop.f32.mrf.mxu1  ;;  %4069 = vmatmul.msk.bf16.gmra.mxu0 %vm1279_vm5, %v4792_v39  ;;  %6618 = vst [vmem:[#allocation84_spill] sm:$0xff] %v5128_v47  ;;  %v5132_v15 = vsel %vm1598_vm9, %v4595_v10, %v1652_v7 }
  0xe2   : > { %v1502_v26 = vadd.f32 %v1501_v14, %v1352_v35  ;;  %v2026_v35 = vpack.c.bf16 %v4880_v48, %v1996_v23  ;;  %6619 = vst [vmem:[#allocation85_spill] sm:$0xff] %v5132_v15  ;;  %v1722_v34 = vmul.f32 %v5132_v15, %v4567_v54  ;;  %v670_v47 = vand.u32 15, %v478_v56 }
  0xe3   : > { %v3944_v15 = vsel %vm993_vm14, 1.0, %v6566_v27 }
  0xe4   : > { %3993 = vmatmul.msk.bf16.gmra.mxu1 %vm1279_vm5, %v1107_v9  ;;  %v5124_v9 = vsel %vm892_vm13, 1.0, %v6566_v27  ;;  %vm894_vm15 = vcmp.ne.s32.totalorder %v670_v47, 0 }
  0xe5   : > { %6617 = vst [vmem:[#allocation83_spill] sm:$0xff] %v5124_v9  ;;  %v1084_v23 = vmul.f32 %v5124_v9, %v4541_v18 }
  0xe6   : > { %v1882_v51 = vpop.f32.mrf.mxu2  ;;  %v1359_v44 = vpop.f32.mrf.mxu0 }
  0xe7   : > { %v5116_v59 = vpop.f32.mrf.mxu3  ;;  %v5118_v13 = vadd.f32 %v1882_v51, %v1499_v11  ;;  %v1108_v0 = vpack.c.bf16 %v4543_v19, %v1084_v23 }
  0xe8   : > { %6616 = vst [vmem:[#allocation82_spill] sm:$0xff] %v5116_v59 }
  0xe9   : > { %v1503_v14 = vpop.f32.mrf.mxu1 }
  0xea   : > { %v1504_v11 = vadd.f32 %v1503_v14, %v1354_v62 }
  0xeb   : > { %4021 = vmatmul.msk.bf16.gmra.mxu2 %vm1279_vm5, %v1792_v17  ;;  %v1746_v17 = vpack.c.bf16 %v1722_v34, %v1721_v8  ;;  %v483_v34 = vadd.s32 248, %v4455_v3 }
  0xec   : > { %4045 = vmatmul.msk.bf16.gmra.mxu3 %vm1279_vm5, %v2026_v35 }
  0xed   : > { %v1793_v48 = vrot.slane %v1746_v17, 1  ;;  %v705_v17 = vand.u32 15, %v483_v34 }
  0xee   : > { %v1885_v51 = vpop.f32.mrf.mxu2  ;;  %v1362_v59 = vpop.f32.mrf.mxu0 }
  0xef   : > { %v5143_v39 = vpop.f32.mrf.mxu3  ;;  %v5145_v62 = vadd.f32 %v1885_v51, %v1502_v26  ;;  %v1656_v26 = vrot.slane %v3944_v15, 6  ;;  %v1794_v56 = vsel %vm1767_vm10, %v1791_v24, %v1793_v48  ;;  %v5166_v15 = vsel %vm1598_vm9, %v1652_v7, %v4595_v10 }
  0xf0   : > { %6620 = vst [vmem:[#allocation86_spill] sm:$0xff] %v5143_v39  ;;  %v1998_v39 = vmul.f32 %v4972_v22, %v4506_v42  ;;  %v1723_v24 = vmul.f32 %v5166_v15, %v4641_v63  ;;  %v480_v22 = vadd.s32 224, %v4455_v3  ;;  %vm995_vm0 = vcmp.ne.s32.totalorder %v705_v17, 15 }
  0xf1   : > { %v1506_v35 = vpop.f32.mrf.mxu1  ;;  %4070 = vmatmul.msk.bf16.gmra.mxu0 %vm1279_vm5, %v4835_v55  ;;  %6623 = vst [vmem:[#allocation89_spill] sm:$0xff] %v5166_v15  ;;  %v5170_v47 = vsel %vm1598_vm9, %v4595_v10, %v1656_v26  ;;  %v2000_v17 = vmul.f32 %v5010_v50, %v4513_v45 }
  0xf2   : > { %v1507_v14 = vadd.f32 %v1506_v35, %v1357_v36  ;;  %v2027_v36 = vpack.c.bf16 %v4509_v43, %v1998_v39  ;;  %6624 = vst [vmem:[#allocation90_spill] sm:$0xff] %v5170_v47  ;;  %v1724_v7 = vmul.f32 %v5170_v47, %v4645_v4  ;;  %v684_v47 = vand.u32 15, %v480_v22 }
  0xf3   : > { %v3945_v43 = vsel %vm995_vm0, 1.0, %v6566_v27 }
  0xf4   : > { %3994 = vmatmul.msk.bf16.gmra.mxu1 %vm1279_vm5, %v1108_v0  ;;  %v5162_v0 = vsel %vm894_vm15, 1.0, %v6566_v27  ;;  %vm896_vm1 = vcmp.ne.s32.totalorder %v684_v47, 0 }
  0xf5   : > { %6622 = vst [vmem:[#allocation88_spill] sm:$0xff] %v5162_v0  ;;  %v1086_v39 = vmul.f32 %v5162_v0, %v4565_v53 }
  0xf6   : > { %v1887_v51 = vpop.f32.mrf.mxu2  ;;  %v1364_v38 = vpop.f32.mrf.mxu0 }
  0xf7   : > { %v5154_v23 = vpop.f32.mrf.mxu3  ;;  %v5156_v8 = vadd.f32 %v1887_v51, %v1504_v11 }
  0xf8   : > { %6621 = vst [vmem:[#allocation87_spill] sm:$0xff] %v5154_v23 }
  0xf9   : > { %v1508_v35 = vpop.f32.mrf.mxu1 }
  0xfa   : > { %v1509_v11 = vadd.f32 %v1508_v35, %v1359_v44 }
  0xfb   : > { %4022 = vmatmul.msk.bf16.gmra.mxu2 %vm1279_vm5, %v1794_v56  ;;  %v1109_v56 = vpack.c.bf16 %v4567_v54, %v1086_v39 }
  0xfc   : > { %4046 = vmatmul.msk.bf16.gmra.mxu3 %vm1279_vm5, %v2027_v36  ;;  %v1747_v36 = vpack.c.bf16 %v1724_v7, %v1723_v24 }
  0xfe   : > { %v1890_v51 = vpop.f32.mrf.mxu2  ;;  %v1367_v23 = vpop.f32.mrf.mxu0 }
  0xff   : > { %v5181_v55 = vadd.f32 %v1890_v51, %v1507_v14  ;;  %v2104_v44 = vpop.f32.mrf.mxu3  ;;  %v1795_v14 = vrot.slane %v1747_v36, 1  ;;  %v5193_v51 = vrot.slane %v3945_v43, 6  ;;  %v5203_v36 = vsel %vm896_vm1, 1.0, %v6566_v27 }
 0x100   : > { %v5184_v34 = vadd.f32 %v2104_v44, %v5031_v57  ;;  %6626 = vst [vmem:[#allocation92_spill] sm:$0xff] %v5203_v36  ;;  %v5207_v43 = vsel %vm1598_vm9, %v1656_v26, %v4595_v10 }
 0x101   : > { %v1511_v35 = vpop.f32.mrf.mxu1  ;;  %4071 = vmatmul.msk.bf16.gmra.mxu0 %vm1279_vm5, %v4875_v52  ;;  %6625 = vst [vmem:[#allocation91_spill] sm:$0xff] %v5193_v51  ;;  %v1796_v22 = vsel %vm1767_vm10, %v1793_v48, %v1795_v14  ;;  %v5212_v47 = vsel %vm1598_vm9, %v4595_v10, %v5193_v51  ;;  %v1088_v48 = vmul.f32 %v5203_v36, %v4641_v63 }
 0x102   : > { %v1512_v15 = vadd.f32 %v1511_v35, %v1362_v59  ;;  %v2028_v59 = vpack.c.bf16 %v4515_v46, %v2000_v17  ;;  %6627 = vst [vmem:[#allocation93_spill] sm:$0xff] %v5207_v43  ;;  %v1726_v26 = vmul.f32 %v5212_v47, %v4707_v58  ;;  %v2002_v52 = vmul.f32 %v5048_v60, %v4525_v61 }
 0x103   : > { %6628 = vst [vmem:[#allocation94_spill] sm:$0xff] %v5212_v47  ;;  %v4255_v47 = vld [vmem:[%s6381_s1 + $0x68] sm:$0xff] }
 0x104   : > { %3995 = vmatmul.msk.bf16.gmra.mxu1 %vm1279_vm5, %v1109_v56  ;;  %2780 = vmatpush.bf16.msra.mxu2 %v4255_v47 }
 0x106   : > { %v1892_v57 = vpop.f32.mrf.mxu2  ;;  %v1369_v44 = vpop.f32.mrf.mxu0 }
 0x107   : > { %v5195_v39 = vadd.f32 %v1892_v57, %v1509_v11  ;;  %v2106_v24 = vpop.f32.mrf.mxu3  ;;  %v482_v57 = vadd.s32 240, %v4455_v3 }
 0x108   : > { %v5198_v7 = vadd.f32 %v2106_v24, %v5042_v41  ;;  %v1725_v41 = vmul.f32 %v5207_v43, %v4701_v29  ;;  %v4253_v43 = vld [vmem:[%s6381_s1 + $0x58] sm:$0xff] }
 0x109   : > { %v1513_v56 = vpop.f32.mrf.mxu1  ;;  %2546 = vmatpush.bf16.msra.mxu1 %v4253_v43 }
 0x10a   : > { %v1514_v11 = vadd.f32 %v1513_v56, %v1364_v38  ;;  %v1748_v56 = vpack.c.bf16 %v1726_v26, %v1725_v41  ;;  %v6630_v26 = vld [vmem:[#allocation15_spill] sm:$0xff] }
 0x10b   : > { %4023 = vmatmul.msk.bf16.gmra.mxu2 %vm1279_vm5, %v1796_v22 }
 0x10c   : > { %4047 = vmatmul.msk.bf16.gmra.mxu3 %vm1279_vm5, %v2028_v59  ;;  %v1110_v59 = vpack.c.bf16 %v4645_v4, %v1088_v48  ;;  %v6629_v48 = vld [vmem:[#allocation14_spill] sm:$0xff] }
 0x10d   : > { %v2377_v41 = vmul.f32 %v6629_v48, %v4548_v25 }
 0x10e   : > { %v1895_v35 = vpop.f32.mrf.mxu2  ;;  %v1372_v17 = vpop.f32.mrf.mxu0 }
 0x10f   : > { %v5223_v24 = vadd.f32 %v1895_v35, %v1512_v15  ;;  %v2109_v38 = vpop.f32.mrf.mxu3  ;;  %v698_v15 = vand.u32 15, %v482_v57  ;;  %v2378_v35 = vmul.f32 %v6630_v26, %v4554_v37  ;;  %v4252_v57 = vld [vmem:[%s6381_s1 + $0x50] sm:$0xff] }
 0x110   : > { %v5226_v22 = vadd.f32 %v2109_v38, %v5069_v6  ;;  %v2376_v6 = vmul.f32 %v4605_v20, %v4497_v32  ;;  %v1797_v38 = vrot.slane %v1748_v56, 1  ;;  %2547 = vmatpush.bf16.msra.mxu1 %v4252_v57 }
 0x111   : > { %v1516_v50 = vpop.f32.mrf.mxu1  ;;  %4072 = vmatmul.msk.bf16.gmra.mxu0 %vm1279_vm5, %v4914_v30  ;;  %v6631_v30 = vld [vmem:[#allocation2_spill] sm:$0xff]  ;;  %vm898_vm9 = vcmp.ne.s32.totalorder %v698_v15, 0  ;;  %v2414_v46 = vpack.c.bf16 %v2378_v35, %v2377_v41  ;;  %v2029_v15 = vpack.c.bf16 %v4529_v2, %v2002_v52 }
 0x112   : > { %v1517_v3 = vadd.f32 %v1516_v50, %v1367_v23  ;;  %v2375_v50 = vmul.f32 %v4595_v10, %v6631_v30  ;;  %v1798_v30 = vsel %vm1767_vm10, %v1795_v14, %v1797_v38  ;;  %v6633_v14 = vld [vmem:[#allocation37_spill] sm:$0xff] }
 0x113   : > { %v5264_v45 = vrot.slane %v2414_v46, 1 }
 0x114   : > { %3996 = vmatmul.msk.bf16.gmra.mxu1 %vm1279_vm5, %v1110_v59  ;;  %v4254_v59 = vld [vmem:[%s6381_s1 + $0x60] sm:$0xff]  ;;  %v2413_v56 = vpack.c.bf16 %v2376_v6, %v2375_v50 }
 0x115   : > { %2781 = vmatpush.bf16.msra.mxu2 %v4254_v59 }
 0x116   : > { %v1897_v23 = vpop.f32.mrf.mxu2  ;;  %v1374_v43 = vpop.f32.mrf.mxu0  ;;  %v2447_v61 = vrot.slane %v2413_v56, 1  ;;  %v2004_v56 = vmul.f32 %v5086_v31, %v4541_v18 }
 0x117   : > { %v5248_v47 = vadd.f32 %v1897_v23, %v1514_v11  ;;  %v2111_v32 = vpop.f32.mrf.mxu3  ;;  %v5262_v23 = vsel %vm898_vm9, 1.0, %v6566_v27  ;;  %v1727_v27 = vmul.f32 %v5193_v51, %v6633_v14 }
 0x118   : > { %v5257_v60 = vadd.f32 %v2111_v32, %v5080_v12  ;;  %6632 = vst [vmem:[#allocation14_spill] sm:$0xff] %v5262_v23  ;;  %v2449_v12 = vsel %vm1767_vm10, %v2447_v61, %v5264_v45  ;;  %v1090_v52 = vmul.f32 %v5262_v23, %v4701_v29 }
 0x119   : > { %v1518_v11 = vpop.f32.mrf.mxu1  ;;  %v1749_v32 = vpack.c.bf16 %v1727_v27, %v1727_v27  ;;  %v2030_v27 = vpack.c.bf16 %v4543_v19, %v2004_v56  ;;  %v6635_v56 = vld [vmem:[#allocation12_spill] sm:$0xff] }
 0x11a   : > { %v1519_v10 = vadd.f32 %v1518_v11, %v1369_v44  ;;  %v1111_v50 = vpack.c.bf16 %v4707_v58, %v1090_v52 }
 0x11b   : > { %4024 = vmatmul.msk.bf16.gmra.mxu2 %vm1279_vm5, %v1798_v30  ;;  %v1799_v59 = vrot.slane %v1749_v32, 1 }
 0x11c   : > { %4048 = vmatmul.msk.bf16.gmra.mxu3 %vm1279_vm5, %v2029_v15 }
 0x11d   : > { %v1800_v52 = vsel %vm1767_vm10, %v1797_v38, %v1799_v59  ;;  %v6634_v59 = vld [vmem:[#allocation7_spill] sm:$0xff] }
 0x11e   : > { %v1900_v6 = vpop.f32.mrf.mxu2  ;;  %v1377_v41 = vpop.f32.mrf.mxu0 }
 0x11f   : > { %v5274_v35 = vadd.f32 %v1900_v6, %v1517_v3  ;;  %v2114_v46 = vpop.f32.mrf.mxu3 }
 0x120   : > { %v5277_v44 = vadd.f32 %v2114_v46, %v5107_v21 }
 0x121   : > { %v1521_v61 = vpop.f32.mrf.mxu1  ;;  %4073 = vmatmul.msk.bf16.gmra.mxu0 %vm1279_vm5, %v4954_v49  ;;  %v6644_v49 = vld [vmem:[#allocation59_spill] sm:$0xff] }
 0x122   : > { %v1522_v57 = vadd.f32 %v1521_v61, %v1372_v17 }
 0x124   : > { %3997 = vmatmul.msk.bf16.gmra.mxu1 %vm1279_vm5, %v1111_v50 }
 0x126   : > { %v1902_v3 = vpop.f32.mrf.mxu2  ;;  %v1379_v30 = vpop.f32.mrf.mxu0 }
 0x127   : > { %v5285_v15 = vadd.f32 %v1902_v3, %v1519_v10  ;;  %v2116_v21 = vpop.f32.mrf.mxu3  ;;  %v2661_v3 = vmul.f32 %v6635_v56, %v4548_v25 }
 0x128   : > { %v5288_v11 = vadd.f32 %v2116_v21, %v5118_v13  ;;  %v2006_v21 = vmul.f32 %v5124_v9, %v4565_v53 }
 0x129   : > { %v1523_v6 = vpop.f32.mrf.mxu1 }
 0x12a   : > { %v1524_v17 = vadd.f32 %v1523_v6, %v1374_v43 }
 0x12b   : > { %4025 = vmatmul.msk.bf16.gmra.mxu2 %vm1279_vm5, %v1800_v52  ;;  %v6637_v52 = vld [vmem:[#allocation23_spill] sm:$0xff] }
 0x12c   : > { %4049 = vmatmul.msk.bf16.gmra.mxu3 %vm1279_vm5, %v2030_v27 }
 0x12e   : > { %v1905_v46 = vpop.f32.mrf.mxu2  ;;  %v2263_v50 = vpop.f32.mrf.mxu0 }
 0x12f   : > { %v5294_v32 = vadd.f32 %v1905_v46, %v1522_v57  ;;  %v2119_v10 = vpop.f32.mrf.mxu3  ;;  %v5297_v61 = vadd.f32 %v2263_v50, %v5184_v34  ;;  %v6636_v57 = vld [vmem:[#allocation20_spill] sm:$0xff]  ;;  %v2698_v46 = vpack.c.bf16 %v4554_v37, %v2661_v3 }
 0x130   : > { %v5300_v13 = vadd.f32 %v2119_v10, %v5145_v62  ;;  %v2379_v34 = vmul.f32 %v6636_v57, %v4586_v1  ;;  %v2380_v62 = vmul.f32 %v6637_v52, %v4589_v5 }
 0x131   : > { %v1526_v38 = vpop.f32.mrf.mxu1  ;;  %4074 = vmatmul.msk.bf16.gmra.mxu0 %vm1279_vm5, %v6634_v59 }
 0x132   : > { %v1527_v43 = vadd.f32 %v1526_v38, %v1377_v41  ;;  %v2415_v51 = vpack.c.bf16 %v2380_v62, %v2379_v34  ;;  %v6641_v62 = vld [vmem:[#allocation27_spill] sm:$0xff] }
 0x134   : > { %4094 = vmatmul.msk.bf16.vlgmr.msra.gmra.mxu1 %vm1279_vm5, %v2449_v12  ;;  %v2031_v12 = vpack.c.bf16 %v4567_v54, %v2006_v21  ;;  %v2450_v59 = vrot.slane %v2415_v51, 1  ;;  %v6639_v51 = vld [vmem:[#allocation21_spill] sm:$0xff] }
 0x135   : > { %v2663_v34 = vmul.f32 %v6639_v51, %v4586_v1 }
 0x136   : > { %v1907_v27 = vpop.f32.mrf.mxu2  ;;  %v2265_v6 = vpop.f32.mrf.mxu0 }
 0x137   : > { %v5314_v50 = vadd.f32 %v1907_v27, %v1524_v17  ;;  %v2121_v41 = vpop.f32.mrf.mxu3  ;;  %v5317_v10 = vadd.f32 %v2265_v6, %v5198_v7  ;;  %v6638_v6 = vld [vmem:[#allocation8_spill] sm:$0xff] }
 0x138   : > { %v5320_v38 = vadd.f32 %v2121_v41, %v5156_v8 }
 0x139   : > { %v1528_v56 = vpop.f32.mrf.mxu1 }
 0x13a   : > { %v1529_v9 = vadd.f32 %v1528_v56, %v1379_v30  ;;  %v2451_v30 = vsel %vm1767_vm10, %v5264_v45, %v2450_v59  ;;  %v2699_v45 = vpack.c.bf16 %v4589_v5, %v2663_v34 }
 0x13b   : > { %4122 = vmatmul.msk.bf16.vlgmr.msra.gmra.mxu2 %vm1279_vm5, %v2698_v46 }
 0x13c   : > { %4050 = vmatmul.msk.bf16.gmra.mxu3 %vm1279_vm5, %v2031_v12 }
 0x13e   : > { %v1910_v3 = vpop.f32.mrf.mxu2  ;;  %v2268_v17 = vpop.f32.mrf.mxu0 }
 0x13f   : > { %v5325_v27 = vadd.f32 %v1910_v3, %v1527_v43  ;;  %v2124_v31 = vpop.f32.mrf.mxu3  ;;  %v5328_v7 = vadd.f32 %v2268_v17, %v5226_v22  ;;  %v2008_v43 = vmul.f32 %v5162_v0, %v4641_v63  ;;  %v6640_v22 = vld [vmem:[#allocation22_spill] sm:$0xff] }
 0x140   : > { %v5331_v8 = vadd.f32 %v2124_v31, %v5181_v55  ;;  %v2381_v46 = vmul.f32 %v6641_v62, %v6640_v22  ;;  %v6642_v55 = vld [vmem:[#allocation24_spill] sm:$0xff]  ;;  %v6643_v31 = vld [vmem:[#allocation30_spill] sm:$0xff] }
 0x141   : > { %v1531_v21 = vpop.f32.mrf.mxu1  ;;  %4075 = vmatmul.msk.bf16.gmra.mxu0 %vm1279_vm5, %v6638_v6  ;;  %v2382_v41 = vmul.f32 %v6643_v31, %v6642_v55 }
 0x143   : > { %v2416_v63 = vpack.c.bf16 %v2382_v41, %v2381_v46  ;;  %v6645_v41 = vld [vmem:[#allocation9_spill] sm:$0xff] }
 0x144   : > { %4095 = vmatmul.msk.bf16.gmra.mxu1 %vm1279_vm5, %v2451_v30  ;;  %v2032_v30 = vpack.c.bf16 %v4645_v4, %v2008_v43  ;;  %v4257_v43 = vld [vmem:[%s6381_s1 + $0x78] sm:$0xff] }
 0x145   : > { %2939 = vmatpush.bf16.msra.mxu3 %v4257_v43 }
 0x146   : > { %v1912_v12 = vpop.f32.mrf.mxu2  ;;  %v2270_v56 = vpop.f32.mrf.mxu0 }
 0x147   : > { %v5346_v3 = vadd.f32 %v1912_v12, %v1529_v9  ;;  %v2126_v17 = vpop.f32.mrf.mxu3  ;;  %v5350_v51 = vadd.f32 %v2270_v56, %v5257_v60  ;;  %v1532_v9 = vadd.f32 %v1531_v21, %v6644_v49  ;;  %v2452_v12 = vrot.slane %v2416_v63, 1  ;;  %v6648_v21 = vld [vmem:[#allocation33_spill] sm:$0xff] }
 0x148   : > { %v5353_v0 = vadd.f32 %v2126_v17, %v5195_v39  ;;  %v2383_v17 = vmul.f32 %v6648_v21, %v4740_v16 }
 0x149   : > { %v1533_v6 = vpop.f32.mrf.mxu1  ;;  %v2453_v63 = vsel %vm1767_vm10, %v2450_v59, %v2452_v12 }
 0x14b   : > { %4123 = vmatmul.msk.bf16.gmra.mxu2 %vm1279_vm5, %v2699_v45  ;;  %v6649_v45 = vld [vmem:[#allocation32_spill] sm:$0xff] }
 0x14c   : > { %4051 = vmatmul.msk.bf16.gmra.mxu3 %vm1279_vm5, %v2032_v30  ;;  %v6650_v30 = vld [vmem:[#allocation36_spill] sm:$0xff] }
 0x14e   : > { %v1915_v54 = vpop.f32.mrf.mxu2  ;;  %v2273_v53 = vpop.f32.mrf.mxu0 }
 0x14f   : > { %v5359_v34 = vadd.f32 %v1915_v54, %v1532_v9  ;;  %v2129_v60 = vpop.f32.mrf.mxu3  ;;  %v5362_v56 = vadd.f32 %v2273_v53, %v5277_v44  ;;  %v6646_v54 = vld [vmem:[#allocation29_spill] sm:$0xff]  ;;  %v2010_v53 = vmul.f32 %v5203_v36, %v4701_v29  ;;  %v2384_v9 = vmul.f32 %v6650_v30, %v6649_v45 }
 0x150   : > { %v5365_v39 = vadd.f32 %v2129_v60, %v5223_v24  ;;  %v2665_v49 = vmul.f32 %v6646_v54, %v6640_v22  ;;  %v6647_v24 = vld [vmem:[#allocation60_spill] sm:$0xff] }
 0x151   : > { %v1536_v46 = vpop.f32.mrf.mxu1  ;;  %4076 = vmatmul.msk.bf16.gmra.mxu0 %vm1279_vm5, %v6645_v41  ;;  %v1534_v44 = vadd.f32 %v1533_v6, %v6647_v24  ;;  %v4256_v6 = vld [vmem:[%s6381_s1 + $0x70] sm:$0xff]  ;;  %v2033_v24 = vpack.c.bf16 %v4707_v58, %v2010_v53  ;;  %v2417_v4 = vpack.c.bf16 %v2384_v9, %v2383_v17 }
 0x152   : > { %v2700_v54 = vpack.c.bf16 %v6642_v55, %v2665_v49  ;;  %2940 = vmatpush.bf16.msra.mxu3 %v4256_v6  ;;  %v6652_v49 = vld [vmem:[#allocation64_spill] sm:$0xff] }
 0x154   : > { %4096 = vmatmul.msk.bf16.gmra.mxu1 %vm1279_vm5, %v2453_v63 }
 0x156   : > { %v1917_v60 = vpop.f32.mrf.mxu2  ;;  %v2275_v59 = vpop.f32.mrf.mxu0 }
 0x157   : > { %v5383_v43 = vadd.f32 %v1917_v60, %v1534_v44  ;;  %v2131_v41 = vpop.f32.mrf.mxu3  ;;  %v5387_v36 = vadd.f32 %v2275_v59, %v5288_v11  ;;  %v1537_v44 = vadd.f32 %v1536_v46, %v6652_v49  ;;  %v4377_v11 = vld [vmem:[%s4470_s10 + $0x80] sm:$0xff]   ;;  %v2454_v59 = vrot.slane %v2417_v4, 1  ;;  %v6655_v4 = vld [vmem:[#allocation35_spill] sm:$0xff] }
 0x158   : > { %v5393_v63 = vadd.f32 %v2131_v41, %v5248_v47  ;;  %v4337_v60 = vunpack.c.h.bf16 %v4377_v11  ;;  %v2667_v6 = vmul.f32 %v6655_v4, %v4740_v16  ;;  %v6660_v11 = vld [vmem:[#allocation43_spill] sm:$0xff] }
 0x159   : > { %6651 = vst [vmem:[#allocation15_spill] sm:$0xff] %v5387_v36  ;;  %v1538_v29 = vpop.f32.mrf.mxu1  ;;  %v2455_v46 = vsel %vm1767_vm10, %v2452_v12, %v2454_v59 }
 0x15a   : > { %v410_v9 = vmul.f32 0.2, %v4337_v60  ;;  %vm373_vm2 = vcmp.gt.f32.partialorder %v4337_v60, 0.0 }
 0x15b   : > { %4124 = vmatmul.msk.bf16.gmra.mxu2 %vm1279_vm5, %v2700_v54  ;;  %v6654_v54 = vld [vmem:[#allocation16_spill] sm:$0xff] }
 0x15c   : > { %4052 = vmatmul.msk.bf16.gmra.mxu3 %vm1279_vm5, %v2033_v24  ;;  %v6658_v24 = vld [vmem:[#allocation41_spill] sm:$0xff] }
 0x15d   : > { %v2385_v49 = vmul.f32 %v6658_v24, %v4795_v28 }
 0x15e   : > { %v1920_v36 = vpop.f32.mrf.mxu2  ;;  %v2278_v30 = vpop.f32.mrf.mxu0 }
 0x15f   : > { %v5400_v21 = vadd.f32 %v1920_v36, %v1537_v44  ;;  %v2134_v47 = vpop.f32.mrf.mxu3  ;;  %v5403_v41 = vadd.f32 %v2278_v30, %v5300_v13  ;;  %v2012_v36 = vmul.f32 %v5262_v23, %v6633_v14  ;;  %v6656_v13 = vld [vmem:[#allocation66_spill] sm:$0xff]  ;;  %v6659_v44 = vld [vmem:[#allocation39_spill] sm:$0xff] }
 0x160   : > { %v5406_v53 = vadd.f32 %v2134_v47, %v5274_v35  ;;  %v1539_v30 = vadd.f32 %v1538_v29, %v6656_v13  ;;  %v5417_v35 = vsel %vm373_vm2, %v4337_v60, %v410_v9  ;;  %v2386_v47 = vmul.f32 %v6660_v11, %v6659_v44  ;;  %v6662_v13 = vld [vmem:[#allocation65_spill] sm:$0xff] }
 0x161   : > { %6653 = vst [vmem:[#allocation2_spill] sm:$0xff] %v5403_v41  ;;  %v1541_v17 = vpop.f32.mrf.mxu1  ;;  %4077 = vmatmul.msk.bf16.gmra.mxu0 %vm1279_vm5, %v6654_v54  ;;  %v2701_v41 = vpack.c.bf16 %v6649_v45, %v2667_v6  ;;  %v2034_v60 = vpack.c.bf16 %v5417_v35, %v2012_v36 }
 0x162   : > { %6657 = vst [vmem:[#allocation12_spill] sm:$0xff] %v5417_v35 }
 0x164   : > { %4097 = vmatmul.msk.bf16.gmra.mxu1 %vm1279_vm5, %v2455_v46  ;;  %v2418_v46 = vpack.c.bf16 %v2386_v47, %v2385_v49  ;;  %v6664_v49 = vld [vmem:[#allocation25_spill] sm:$0xff] }
 0x166   : > { %v1922_v12 = vpop.f32.mrf.mxu2  ;;  %v2280_v54 = vpop.f32.mrf.mxu0 }
 0x167   : > { %v5423_v58 = vadd.f32 %v1922_v12, %v1539_v30  ;;  %v2136_v4 = vpop.f32.mrf.mxu3  ;;  %v5427_v23 = vadd.f32 %v2280_v54, %v5320_v38  ;;  %v1542_v30 = vadd.f32 %v1541_v17, %v6662_v13  ;;  %v2456_v12 = vrot.slane %v2418_v46, 1  ;;  %v6665_v17 = vld [vmem:[#allocation42_spill] sm:$0xff]  ;;  %v6669_v46 = vld [vmem:[#allocation48_spill] sm:$0xff] }
 0x168   : > { %v5430_v29 = vadd.f32 %v2136_v4, %v5285_v15  ;;  %v2669_v47 = vmul.f32 %v6665_v17, %v4795_v28 }
 0x169   : > { %6661 = vst [vmem:[#allocation20_spill] sm:$0xff] %v5427_v23  ;;  %v1543_v9 = vpop.f32.mrf.mxu1 }
 0x16b   : > { %4125 = vmatmul.msk.bf16.gmra.mxu2 %vm1279_vm5, %v2701_v41  ;;  %v2457_v41 = vsel %vm1767_vm10, %v2454_v59, %v2456_v12  ;;  %v2702_v59 = vpack.c.bf16 %v6659_v44, %v2669_v47 }
 0x16c   : > { %4053 = vmatmul.msk.bf16.gmra.mxu3 %vm1279_vm5, %v2034_v60  ;;  %v6667_v60 = vld [vmem:[#allocation46_spill] sm:$0xff] }
 0x16e   : > { %v1925_v11 = vpop.f32.mrf.mxu2  ;;  %v2283_v24 = vpop.f32.mrf.mxu0 }
 0x16f   : > { %v5436_v6 = vadd.f32 %v1925_v11, %v1542_v30  ;;  %v2139_v38 = vpop.f32.mrf.mxu3  ;;  %v5439_v54 = vadd.f32 %v2283_v24, %v5331_v8  ;;  %v6666_v11 = vld [vmem:[#allocation67_spill] sm:$0xff]  ;;  %v2387_v8 = vmul.f32 %v6667_v60, %v4838_v40  ;;  %v6668_v24 = vld [vmem:[#allocation45_spill] sm:$0xff] }
 0x170   : > { %v5442_v15 = vadd.f32 %v2139_v38, %v5294_v32  ;;  %v1544_v4 = vadd.f32 %v1543_v9, %v6666_v11  ;;  %v2388_v32 = vmul.f32 %v6669_v46, %v6668_v24  ;;  %v6671_v11 = vld [vmem:[#allocation17_spill] sm:$0xff] }
 0x171   : > { %6663 = vst [vmem:[#allocation23_spill] sm:$0xff] %v5439_v54  ;;  %v1546_v36 = vpop.f32.mrf.mxu1  ;;  %4078 = vmatmul.msk.bf16.gmra.mxu0 %vm1279_vm5, %v6664_v49 }
 0x172   : > { %v2419_v17 = vpack.c.bf16 %v2388_v32, %v2387_v8 }
 0x174   : > { %4098 = vmatmul.msk.bf16.gmra.mxu1 %vm1279_vm5, %v2457_v41  ;;  %v2458_v46 = vrot.slane %v2419_v17, 1  ;;  %v6675_v17 = vld [vmem:[#allocation47_spill] sm:$0xff] }
 0x176   : > { %v1927_v13 = vpop.f32.mrf.mxu2  ;;  %v2285_v30 = vpop.f32.mrf.mxu0 }
 0x177   : > { %v5455_v38 = vadd.f32 %v1927_v13, %v1544_v4  ;;  %v2141_v49 = vpop.f32.mrf.mxu3  ;;  %v5459_v54 = vadd.f32 %v2285_v30, %v5353_v0  ;;  %v4259_v4 = vld [vmem:[%s6381_s1 + $0x88] sm:$0xff] }
 0x178   : > { %v5462_v41 = vadd.f32 %v2141_v49, %v5314_v50  ;;  %v6672_v13 = vld [vmem:[#allocation71_spill] sm:$0xff]  ;;  %3225 = vmatpush.bf16.msra.mxu0 %v4259_v4  ;;  %v2671_v4 = vmul.f32 %v6675_v17, %v4838_v40 }
 0x179   : > { %6670 = vst [vmem:[#allocation21_spill] sm:$0xff] %v5459_v54  ;;  %v1548_v9 = vpop.f32.mrf.mxu1  ;;  %v1547_v47 = vadd.f32 %v1546_v36, %v6672_v13  ;;  %v2459_v54 = vsel %vm1767_vm10, %v2456_v12, %v2458_v46  ;;  %v5484_v36 = vpack.c.bf16 %v5417_v35, %v6633_v14  ;;  %v6677_v13 = vld [vmem:[#allocation72_spill] sm:$0xff] }
 0x17a   : > { %v2703_v17 = vpack.c.bf16 %v6668_v24, %v2671_v4  ;;  %v6685_v24 = vld [vmem:[#allocation40_spill] sm:$0xff] }
 0x17b   : > { %4126 = vmatmul.msk.bf16.gmra.mxu2 %vm1279_vm5, %v2702_v59  ;;  %v2224_v35 = vshll.u32 %v5484_v36, 16 }
 0x17c   : > { %4150 = vmatmul.msk.bf16.vlgmr.msra.gmra.mxu3 %vm1279_vm5, %v6671_v11  ;;  %v6674_v11 = vld [vmem:[#allocation34_spill] sm:$0xff] }
 0x17d   : > { %v2226_v23 = vrot.slane %v2224_v35, 1 }
 0x17e   : > { %v1930_v0 = vpop.f32.mrf.mxu2  ;;  %v2288_v30 = vpop.f32.mrf.mxu0 }
 0x17f   : > { %v5471_v50 = vadd.f32 %v1930_v0, %v1547_v47  ;;  %v2144_v49 = vpop.f32.mrf.mxu3  ;;  %v5474_v8 = vadd.f32 %v2288_v30, %v5365_v39  ;;  %v5490_v39 = vld [vmem:[%s4470_s10 + $0x88] sm:$0xff]   ;;  %v6678_v47 = vld [vmem:[#allocation52_spill] sm:$0xff]  ;;  %v6679_v30 = vld [vmem:[#allocation50_spill] sm:$0xff] }
 0x180   : > { %v5477_v32 = vadd.f32 %v2144_v49, %v5325_v27  ;;  %6676 = vst [vmem:[#allocation27_spill] sm:$0xff] %v5490_v39  ;;  %v1549_v27 = vadd.f32 %v1548_v9, %v6677_v13  ;;  %v2389_v0 = vmul.f32 %v6678_v47, %v4878_v33  ;;  %v6680_v49 = vld [vmem:[#allocation53_spill] sm:$0xff]  ;;  %v5505_v9 = vunpack.c.l.bf16 %v5490_v39 }
 0x181   : > { %6673 = vst [vmem:[#allocation22_spill] sm:$0xff] %v5474_v8  ;;  %v1551_v59 = vpop.f32.mrf.mxu1  ;;  %4079 = vmatmul.msk.bf16.gmra.mxu0 %vm1279_vm5, %v6674_v11  ;;  %v2390_v8 = vmul.f32 %v6680_v49, %v6679_v30 }
 0x182   : > { %6682 = vst [vmem:[#allocation30_spill] sm:$0xff] %v5505_v9  ;;  %vm374_vm3 = vcmp.gt.f32.partialorder %v5505_v9, 0.0 }
 0x183   : > { %v2420_v49 = vpack.c.bf16 %v2390_v8, %v2389_v0 }
 0x184   : > { %4099 = vmatmul.msk.bf16.gmra.mxu1 %vm1279_vm5, %v2459_v54 }
 0x185   : > { %v2460_v4 = vrot.slane %v2420_v49, 1 }
 0x186   : > { %v1932_v12 = vpop.f32.mrf.mxu2  ;;  %v2290_v11 = vpop.f32.mrf.mxu0 }
 0x187   : > { %v5498_v14 = vadd.f32 %v1932_v12, %v1549_v27  ;;  %v2146_v60 = vpop.f32.mrf.mxu3  ;;  %v5502_v54 = vadd.f32 %v2290_v11, %v5393_v63  ;;  %v411_v27 = vmul.f32 0.2, %v5505_v9  ;;  %v6683_v12 = vld [vmem:[#allocation31_spill] sm:$0xff]  ;;  %v6684_v63 = vld [vmem:[#allocation76_spill] sm:$0xff]  ;;  %v2461_v49 = vsel %vm1767_vm10, %v2458_v46, %v2460_v4 }
 0x188   : > { %v5508_v13 = vadd.f32 %v2146_v60, %v5346_v3  ;;  %v1552_v11 = vadd.f32 %v1551_v59, %v6684_v63  ;;  %v5518_v3 = vsel %vm1134_vm4, %v6685_v24, %v2226_v23  ;;  %v6691_v46 = vld [vmem:[#allocation56_spill] sm:$0xff] }
 0x189   : > { %6681 = vst [vmem:[#allocation24_spill] sm:$0xff] %v5502_v54  ;;  %v1553_v47 = vpop.f32.mrf.mxu1  ;;  %v5526_v0 = vsel %vm374_vm3, %v5505_v9, %v411_v27  ;;  %v3056_v27 = vmul.f32 %v6629_v48, %v4586_v1  ;;  %v6693_v9 = vld [vmem:[#allocation57_spill] sm:$0xff]  ;;  %v2228_v1 = vshrl.u32 %v5484_v36, 16 }
 0x18a   : > { %6686 = vst [vmem:[#allocation59_spill] sm:$0xff] %v5518_v3  ;;  %v2222_v24 = vpack.c.bf16 %v5526_v0, %v5526_v0 }
 0x18b   : > { %4127 = vmatmul.msk.bf16.gmra.mxu2 %vm1279_vm5, %v2703_v17  ;;  %6688 = vst [vmem:[#allocation60_spill] sm:$0xff] %v5526_v0 }
 0x18c   : > { %4151 = vmatmul.msk.bf16.gmra.mxu3 %vm1279_vm5, %v6683_v12  ;;  %v6690_v12 = vld [vmem:[#allocation77_spill] sm:$0xff]  ;;  %v2232_v48 = vshll.u32 %v2222_v24, 16 }
 0x18d   : > { %v1554_v63 = vadd.f32 %v1553_v47, %v6690_v12 }
 0x18e   : > { %v1935_v54 = vpop.f32.mrf.mxu2  ;;  %v2293_v39 = vpop.f32.mrf.mxu0 }
 0x18f   : > { %v5520_v60 = vadd.f32 %v1935_v54, %v1552_v11  ;;  %v2149_v35 = vpop.f32.mrf.mxu3  ;;  %v5523_v8 = vadd.f32 %v2293_v39, %v5406_v53  ;;  %v3055_v54 = vmul.f32 %v4605_v20, %v4554_v37  ;;  %v6689_v53 = vld [vmem:[#allocation51_spill] sm:$0xff]  ;;  %v2391_v11 = vmul.f32 %v6691_v46, %v4506_v42  ;;  %v6694_v37 = vld [vmem:[#allocation13_spill] sm:$0xff] }
 0x190   : > { %v5529_v17 = vadd.f32 %v2149_v35, %v5359_v34  ;;  %v2673_v39 = vmul.f32 %v6689_v53, %v4878_v33  ;;  %v3057_v34 = vmul.f32 %v6630_v26, %v4589_v5  ;;  %v6692_v35 = vld [vmem:[#allocation3_spill] sm:$0xff]  ;;  %v3054_v20 = vmul.f32 %v6694_v37, %v4548_v25 }
 0x191   : > { %6687 = vst [vmem:[#allocation29_spill] sm:$0xff] %v5523_v8  ;;  %v1556_v59 = vpop.f32.mrf.mxu1  ;;  %4080 = vmatmul.msk.bf16.gmra.mxu0 %vm1279_vm5, %v5518_v3  ;;  %v2392_v8 = vmul.f32 %v6693_v9, %v6692_v35 }
 0x192   : > { %v2704_v26 = vpack.c.bf16 %v6679_v30, %v2673_v39  ;;  %v3092_v12 = vpack.c.bf16 %v3055_v54, %v3054_v20  ;;  %v3093_v37 = vpack.c.bf16 %v3057_v34, %v3056_v27 }
 0x193   : > { %v2421_v36 = vpack.c.bf16 %v2392_v8, %v2391_v11 }
 0x194   : > { %4100 = vmatmul.msk.bf16.gmra.mxu1 %vm1279_vm5, %v2461_v49  ;;  %v4258_v49 = vld [vmem:[%s6381_s1 + $0x80] sm:$0xff]  ;;  %v3126_v24 = vrot.slane %v3092_v12, 1  ;;  %v5567_v39 = vrot.slane %v3093_v37, 1 }
 0x195   : > { %3226 = vmatpush.bf16.msra.mxu0 %v4258_v49  ;;  %v2462_v27 = vrot.slane %v2421_v36, 1  ;;  %v6701_v12 = vld [vmem:[#allocation82_spill] sm:$0xff]  ;;  %v6702_v36 = vld [vmem:[#allocation4_spill] sm:$0xff] }
 0x196   : > { %v1937_v53 = vpop.f32.mrf.mxu2  ;;  %v2295_v3 = vpop.f32.mrf.mxu0 }
 0x197   : > { %v5553_v0 = vadd.f32 %v1937_v53, %v1554_v63  ;;  %v2151_v5 = vpop.f32.mrf.mxu3  ;;  %v5557_v47 = vadd.f32 %v2295_v3, %v5430_v29  ;;  %v5565_v63 = vor.u32 %v2228_v1, %v2226_v23  ;;  %v2234_v53 = vrot.slane %v2232_v48, 1  ;;  %v6697_v29 = vld [vmem:[#allocation38_spill] sm:$0xff] }
 0x198   : > { %v5563_v25 = vadd.f32 %v2151_v5, %v5383_v43  ;;  %v3128_v3 = vsel %vm1767_vm10, %v3126_v24, %v5567_v39  ;;  %v6698_v43 = vld [vmem:[#allocation81_spill] sm:$0xff]  ;;  %v6703_v24 = vld [vmem:[#allocation62_spill] sm:$0xff] }
 0x199   : > { %6695 = vst [vmem:[#allocation32_spill] sm:$0xff] %v5557_v47  ;;  %v1558_v9 = vpop.f32.mrf.mxu1  ;;  %v1557_v54 = vadd.f32 %v1556_v59, %v6698_v43  ;;  %v2235_v23 = vsel %vm1134_vm4, %v5565_v63, %v2234_v53  ;;  %v2463_v59 = vsel %vm1767_vm10, %v2460_v4, %v2462_v27  ;;  %v2393_v53 = vmul.f32 %v6703_v24, %v6702_v36 }
 0x19a   : > { %6696 = vst [vmem:[#allocation64_spill] sm:$0xff] %v5565_v63  ;;  %v1559_v37 = vadd.f32 %v1558_v9, %v6701_v12  ;;  %v6708_v12 = vld [vmem:[#allocation86_spill] sm:$0xff] }
 0x19b   : > { %4128 = vmatmul.msk.bf16.gmra.mxu2 %vm1279_vm5, %v2704_v26  ;;  %v6700_v26 = vld [vmem:[#allocation55_spill] sm:$0xff] }
 0x19c   : > { %4152 = vmatmul.msk.bf16.gmra.mxu3 %vm1279_vm5, %v6697_v29  ;;  %v2675_v49 = vmul.f32 %v6700_v26, %v4506_v42  ;;  %v6705_v29 = vld [vmem:[#allocation63_spill] sm:$0xff]  ;;  %v6707_v26 = vld [vmem:[#allocation44_spill] sm:$0xff] }
 0x19e   : > { %v1940_v34 = vpop.f32.mrf.mxu2  ;;  %v2298_v8 = vpop.f32.mrf.mxu0  ;;  %v2705_v4 = vpack.c.bf16 %v6692_v35, %v2675_v49 }
 0x19f   : > { %v5577_v11 = vadd.f32 %v1940_v34, %v1557_v54  ;;  %v2154_v20 = vpop.f32.mrf.mxu3  ;;  %v5580_v1 = vadd.f32 %v2298_v8, %v5442_v15  ;;  %v6704_v15 = vld [vmem:[#allocation5_spill] sm:$0xff] }
 0x1a0   : > { %v5583_v48 = vadd.f32 %v2154_v20, %v5400_v21  ;;  %v2394_v43 = vmul.f32 %v6705_v29, %v6704_v15 }
 0x1a1   : > { %6699 = vst [vmem:[#allocation35_spill] sm:$0xff] %v5580_v1  ;;  %v1561_v5 = vpop.f32.mrf.mxu1  ;;  %4081 = vmatmul.msk.bf16.gmra.mxu0 %vm1279_vm5, %v2235_v23 }
 0x1a2   : > { %v1562_v1 = vadd.f32 %v1561_v5, %v6708_v12  ;;  %v3058_v5 = vmul.f32 %v6636_v57, %v6640_v22 }
 0x1a4   : > { %4101 = vmatmul.msk.bf16.gmra.mxu1 %vm1279_vm5, %v2463_v59  ;;  %v2422_v59 = vpack.c.bf16 %v2394_v43, %v2393_v53 }
 0x1a6   : > { %v1942_v21 = vpop.f32.mrf.mxu2  ;;  %v2300_v54 = vpop.f32.mrf.mxu0 }
 0x1a7   : > { %v5595_v34 = vadd.f32 %v1942_v21, %v1559_v37  ;;  %v2156_v8 = vpop.f32.mrf.mxu3  ;;  %v5599_v23 = vadd.f32 %v2300_v54, %v5462_v41  ;;  %v2464_v37 = vrot.slane %v2422_v59, 1  ;;  %v6712_v59 = vld [vmem:[#allocation69_spill] sm:$0xff] }
 0x1a8   : > { %v5602_v20 = vadd.f32 %v2156_v8, %v5423_v58  ;;  %v6709_v8 = vld [vmem:[#allocation61_spill] sm:$0xff] }
 0x1a9   : > { %6706 = vst [vmem:[#allocation66_spill] sm:$0xff] %v5599_v23  ;;  %v1563_v9 = vpop.f32.mrf.mxu1  ;;  %v2465_v43 = vsel %vm1767_vm10, %v2462_v27, %v2464_v37  ;;  %v6730_v23 = vld [vmem:[#allocation58_spill] sm:$0xff] }
 0x1ab   : > { %4129 = vmatmul.msk.bf16.gmra.mxu2 %vm1279_vm5, %v2705_v4  ;;  %v6711_v4 = vld [vmem:[#allocation6_spill] sm:$0xff] }
 0x1ac   : > { %4153 = vmatmul.msk.bf16.gmra.mxu3 %vm1279_vm5, %v6707_v26  ;;  %v2395_v27 = vmul.f32 %v6712_v59, %v6711_v4 }
 0x1ae   : > { %v1945_v21 = vpop.f32.mrf.mxu2  ;;  %v2303_v47 = vpop.f32.mrf.mxu0 }
 0x1af   : > { %v5608_v63 = vadd.f32 %v1945_v21, %v1562_v1  ;;  %v2159_v49 = vpop.f32.mrf.mxu3  ;;  %v5611_v41 = vadd.f32 %v2303_v47, %v5477_v32  ;;  %v3059_v1 = vmul.f32 %v6637_v52, %v6642_v55  ;;  %v2677_v32 = vmul.f32 %v6709_v8, %v6702_v36 }
 0x1b0   : > { %v5614_v58 = vadd.f32 %v2159_v49, %v5436_v6  ;;  %v6710_v6 = vld [vmem:[#allocation87_spill] sm:$0xff] }
 0x1b1   : > { %v2549_v53 = vpop.f32.mrf.mxu1  ;;  %4178 = vmatmul.msk.bf16.vlgmr.msra.gmra.mxu0 %vm1279_vm5, %v3128_v3  ;;  %v1564_v47 = vadd.f32 %v1563_v9, %v6710_v6  ;;  %v6713_v3 = vld [vmem:[#allocation70_spill] sm:$0xff]  ;;  %v3094_v21 = vpack.c.bf16 %v3059_v1, %v3058_v5  ;;  %v2706_v52 = vpack.c.bf16 %v6704_v15, %v2677_v32  ;;  %v6715_v6 = vld [vmem:[#allocation49_spill] sm:$0xff] }
 0x1b2   : > { %v2629_v54 = vadd.f32 %v2549_v53, %v5297_v61  ;;  %v2396_v26 = vmul.f32 %v6713_v3, %v4529_v2 }
 0x1b3   : > { %v3129_v8 = vrot.slane %v3094_v21, 1  ;;  %v3060_v21 = vmul.f32 %v6641_v62, %v4740_v16 }
 0x1b4   : > { %4102 = vmatmul.msk.bf16.gmra.mxu1 %vm1279_vm5, %v2465_v43  ;;  %v2423_v53 = vpack.c.bf16 %v2396_v26, %v2395_v27 }
 0x1b6   : > { %v1947_v61 = vpop.f32.mrf.mxu2  ;;  %v2305_v12 = vpop.f32.mrf.mxu0  ;;  %v2466_v5 = vrot.slane %v2423_v53, 1 }
 0x1b7   : > { %v5631_v57 = vadd.f32 %v1947_v61, %v1564_v47  ;;  %v2161_v22 = vpop.f32.mrf.mxu3  ;;  %v5635_v55 = vadd.f32 %v2305_v12, %v5508_v13  ;;  %v3130_v13 = vsel %vm1767_vm10, %v5567_v39, %v3129_v8  ;;  %v3061_v39 = vmul.f32 %v6643_v31, %v6649_v45 }
 0x1b8   : > { %v5638_v49 = vadd.f32 %v2161_v22, %v5455_v38  ;;  %v2467_v26 = vsel %vm1767_vm10, %v2464_v37, %v2466_v5  ;;  %v6718_v37 = vld [vmem:[#allocation75_spill] sm:$0xff] }
 0x1b9   : > { %6714 = vst [vmem:[#allocation39_spill] sm:$0xff] %v5635_v55  ;;  %v2551_v9 = vpop.f32.mrf.mxu1 }
 0x1ba   : > { %v2630_v43 = vadd.f32 %v2551_v9, %v5317_v10 }
 0x1bb   : > { %4130 = vmatmul.msk.bf16.gmra.mxu2 %vm1279_vm5, %v2706_v52  ;;  %v2398_v52 = vmul.f32 %v6718_v37, %v4543_v19 }
 0x1bc   : > { %4154 = vmatmul.msk.bf16.gmra.mxu3 %vm1279_vm5, %v6715_v6 }
 0x1be   : > { %v2783_v1 = vpop.f32.mrf.mxu2  ;;  %v2308_v47 = vpop.f32.mrf.mxu0 }
 0x1bf   : > { %v2164_v32 = vpop.f32.mrf.mxu3  ;;  %v5646_v61 = vadd.f32 %v2783_v1, %v2629_v54  ;;  %v5649_v38 = vadd.f32 %v2308_v47, %v5529_v17  ;;  %v6716_v54 = vld [vmem:[#allocation68_spill] sm:$0xff] }
 0x1c0   : > { %v5652_v10 = vadd.f32 %v2164_v32, %v5471_v50  ;;  %v2679_v17 = vmul.f32 %v6716_v54, %v6711_v4  ;;  %v6717_v50 = vld [vmem:[#allocation74_spill] sm:$0xff] }
 0x1c1   : > { %v2554_v27 = vpop.f32.mrf.mxu1  ;;  %4179 = vmatmul.msk.bf16.gmra.mxu0 %vm1279_vm5, %v3130_v13  ;;  %v2397_v22 = vmul.f32 %v6717_v50, %v4541_v18 }
 0x1c2   : > { %v2631_v12 = vadd.f32 %v2554_v27, %v5328_v7  ;;  %v3095_v7 = vpack.c.bf16 %v3061_v39, %v3060_v21  ;;  %v2707_v16 = vpack.c.bf16 %v4529_v2, %v2679_v17  ;;  %v6720_v27 = vld [vmem:[#allocation54_spill] sm:$0xff] }
 0x1c3   : > { %v2424_v47 = vpack.c.bf16 %v2398_v52, %v2397_v22 }
 0x1c4   : > { %4103 = vmatmul.msk.bf16.gmra.mxu1 %vm1279_vm5, %v2467_v26  ;;  %v3131_v32 = vrot.slane %v3095_v7, 1  ;;  %v6723_v7 = vld [vmem:[#allocation73_spill] sm:$0xff] }
 0x1c6   : > { %v2785_v9 = vpop.f32.mrf.mxu2  ;;  %v2310_v53 = vpop.f32.mrf.mxu0  ;;  %v3132_v39 = vsel %vm1767_vm10, %v3129_v8, %v3131_v32  ;;  %v6722_v8 = vld [vmem:[#allocation36_spill] sm:$0xff] }
 0x1c7   : > { %v2166_v6 = vpop.f32.mrf.mxu3  ;;  %v5668_v1 = vadd.f32 %v2785_v9, %v2630_v43  ;;  %v5672_v62 = vadd.f32 %v2310_v53, %v5563_v25  ;;  %v2468_v43 = vrot.slane %v2424_v47, 1  ;;  %v6721_v9 = vld [vmem:[#allocation33_spill] sm:$0xff] }
 0x1c8   : > { %v5675_v31 = vadd.f32 %v2166_v6, %v5498_v14  ;;  %v3062_v53 = vmul.f32 %v6721_v9, %v4795_v28  ;;  %v6725_v6 = vld [vmem:[#allocation79_spill] sm:$0xff] }
 0x1c9   : > { %6719 = vst [vmem:[#allocation65_spill] sm:$0xff] %v5672_v62  ;;  %v2556_v45 = vpop.f32.mrf.mxu1  ;;  %v2469_v22 = vsel %vm1767_vm10, %v2466_v5, %v2468_v43  ;;  %v6727_v5 = vld [vmem:[#allocation80_spill] sm:$0xff]  ;;  %v6729_v9 = vld [vmem:[#allocation15_spill] sm:$0xff] }
 0x1ca   : > { %v2632_v13 = vadd.f32 %v2556_v45, %v5350_v51  ;;  %v6726_v45 = vld [vmem:[#allocation11_spill] sm:$0xff] }
 0x1cb   : > { %4131 = vmatmul.msk.bf16.gmra.mxu2 %vm1279_vm5, %v2707_v16  ;;  %v2400_v47 = vmul.f32 %v6727_v5, %v6726_v45 }
 0x1cc   : > { %4155 = vmatmul.msk.bf16.gmra.mxu3 %vm1279_vm5, %v6720_v27 }
 0x1ce   : > { %v2788_v26 = vpop.f32.mrf.mxu2  ;;  %v2313_v21 = vpop.f32.mrf.mxu0 }
 0x1cf   : > { %v2169_v25 = vpop.f32.mrf.mxu3  ;;  %v5682_v54 = vadd.f32 %v2788_v26, %v2631_v12  ;;  %v5685_v14 = vadd.f32 %v2313_v21, %v5583_v48  ;;  %v3063_v12 = vmul.f32 %v6722_v8, %v6659_v44  ;;  %v2681_v48 = vmul.f32 %v6723_v7, %v4541_v18 }
 0x1d0   : > { %v5688_v17 = vadd.f32 %v2169_v25, %v5520_v60  ;;  %v6724_v60 = vld [vmem:[#allocation10_spill] sm:$0xff] }
 0x1d1   : > { %v2559_v51 = vpop.f32.mrf.mxu1  ;;  %4180 = vmatmul.msk.bf16.gmra.mxu0 %vm1279_vm5, %v3132_v39  ;;  %v2399_v16 = vmul.f32 %v6725_v6, %v6724_v60  ;;  %v2708_v28 = vpack.c.bf16 %v4543_v19, %v2681_v48 }
 0x1d2   : > { %v2633_v52 = vadd.f32 %v2559_v51, %v5362_v56  ;;  %v3096_v56 = vpack.c.bf16 %v3063_v12, %v3062_v53 }
 0x1d4   : > { %4104 = vmatmul.msk.bf16.gmra.mxu1 %vm1279_vm5, %v2469_v22  ;;  %v2425_v22 = vpack.c.bf16 %v2400_v47, %v2399_v16  ;;  %v3133_v7 = vrot.slane %v3096_v56, 1 }
 0x1d6   : > { %v2790_v27 = vpop.f32.mrf.mxu2  ;;  %v2315_v26 = vpop.f32.mrf.mxu0  ;;  %v3134_v48 = vsel %vm1767_vm10, %v3131_v32, %v3133_v7  ;;  %v6733_v32 = vld [vmem:[#allocation45_spill] sm:$0xff] }
 0x1d7   : > { %v2171_v21 = vpop.f32.mrf.mxu3  ;;  %v5704_v39 = vadd.f32 %v2790_v27, %v2632_v13  ;;  %v5708_v44 = vadd.f32 %v2315_v26, %v5602_v20  ;;  %v2470_v13 = vrot.slane %v2425_v22, 1  ;;  %v6735_v22 = vld [vmem:[#allocation78_spill] sm:$0xff] }
 0x1d8   : > { %v5711_v25 = vadd.f32 %v2171_v21, %v5553_v0  ;;  %v6732_v21 = vld [vmem:[#allocation41_spill] sm:$0xff] }
 0x1d9   : > { %6728 = vst [vmem:[#allocation42_spill] sm:$0xff] %v5708_v44  ;;  %v2561_v51 = vpop.f32.mrf.mxu1  ;;  %v2471_v26 = vsel %vm1767_vm10, %v2468_v43, %v2470_v13  ;;  %v6739_v43 = vld [vmem:[#allocation85_spill] sm:$0xff] }
 0x1da   : > { %v2634_v8 = vadd.f32 %v2561_v51, %v6729_v9  ;;  %v6734_v51 = vld [vmem:[#allocation43_spill] sm:$0xff]  ;;  %v6737_v9 = vld [vmem:[#allocation84_spill] sm:$0xff] }
 0x1db   : > { %4132 = vmatmul.msk.bf16.gmra.mxu2 %vm1279_vm5, %v2708_v28  ;;  %v3064_v28 = vmul.f32 %v6732_v21, %v4838_v40 }
 0x1dc   : > { %4156 = vmatmul.msk.bf16.gmra.mxu3 %vm1279_vm5, %v6730_v23  ;;  %v6731_v23 = vld [vmem:[#allocation2_spill] sm:$0xff] }
 0x1de   : > { %v2793_v53 = vpop.f32.mrf.mxu2  ;;  %v2318_v12 = vpop.f32.mrf.mxu0 }
 0x1df   : > { %v2174_v20 = vpop.f32.mrf.mxu3  ;;  %v5718_v27 = vadd.f32 %v2793_v53, %v2633_v52  ;;  %v5721_v0 = vadd.f32 %v2318_v12, %v5614_v58  ;;  %v3065_v52 = vmul.f32 %v6734_v51, %v6733_v32  ;;  %v2683_v58 = vmul.f32 %v6735_v22, %v6724_v60  ;;  %v6738_v12 = vld [vmem:[#allocation19_spill] sm:$0xff]  ;;  %v6741_v22 = vld [vmem:[#allocation20_spill] sm:$0xff] }
 0x1e0   : > { %v5724_v16 = vadd.f32 %v2174_v20, %v5577_v11  ;;  %v6736_v11 = vld [vmem:[#allocation18_spill] sm:$0xff]  ;;  %v2402_v20 = vmul.f32 %v6739_v43, %v6738_v12  ;;  %v6742_v43 = vld [vmem:[#allocation7_spill] sm:$0xff] }
 0x1e1   : > { %v2564_v47 = vpop.f32.mrf.mxu1  ;;  %4181 = vmatmul.msk.bf16.gmra.mxu0 %vm1279_vm5, %v3134_v48  ;;  %v2401_v53 = vmul.f32 %v6737_v9, %v6736_v11  ;;  %v2709_v40 = vpack.c.bf16 %v6726_v45, %v2683_v58 }
 0x1e2   : > { %v2635_v56 = vadd.f32 %v2564_v47, %v6731_v23  ;;  %v3097_v47 = vpack.c.bf16 %v3065_v52, %v3064_v28 }
 0x1e3   : > { %v2426_v51 = vpack.c.bf16 %v2402_v20, %v2401_v53 }
 0x1e4   : > { %4105 = vmatmul.msk.bf16.gmra.mxu1 %vm1279_vm5, %v2471_v26  ;;  %v3135_v9 = vrot.slane %v3097_v47, 1 }
 0x1e6   : > { %v2795_v48 = vpop.f32.mrf.mxu2  ;;  %v2320_v44 = vpop.f32.mrf.mxu0  ;;  %v3136_v58 = vsel %vm1767_vm10, %v3133_v7, %v3135_v9  ;;  %v6745_v7 = vld [vmem:[#allocation48_spill] sm:$0xff] }
 0x1e7   : > { %v2176_v23 = vpop.f32.mrf.mxu3  ;;  %v5740_v62 = vadd.f32 %v2795_v48, %v2634_v8  ;;  %v5744_v21 = vadd.f32 %v2320_v44, %v5638_v49  ;;  %v2472_v8 = vrot.slane %v2426_v51, 1  ;;  %v6748_v51 = vld [vmem:[#allocation89_spill] sm:$0xff] }
 0x1e8   : > { %v5747_v32 = vadd.f32 %v2176_v23, %v5595_v34  ;;  %v6744_v23 = vld [vmem:[#allocation46_spill] sm:$0xff] }
 0x1e9   : > { %6740 = vst [vmem:[#allocation67_spill] sm:$0xff] %v5744_v21  ;;  %v2566_v26 = vpop.f32.mrf.mxu1  ;;  %v2473_v48 = vsel %vm1767_vm10, %v2470_v13, %v2472_v8  ;;  %v6750_v13 = vld [vmem:[#allocation90_spill] sm:$0xff] }
 0x1ea   : > { %v2636_v55 = vadd.f32 %v2566_v26, %v6741_v22  ;;  %v6746_v26 = vld [vmem:[#allocation83_spill] sm:$0xff] }
 0x1eb   : > { %4133 = vmatmul.msk.bf16.gmra.mxu2 %vm1279_vm5, %v2709_v40  ;;  %v3066_v40 = vmul.f32 %v6744_v23, %v4878_v33 }
 0x1ec   : > { %4157 = vmatmul.msk.bf16.gmra.mxu3 %vm1279_vm5, %v6742_v43  ;;  %v6743_v43 = vld [vmem:[#allocation23_spill] sm:$0xff] }
 0x1ee   : > { %v2798_v28 = vpop.f32.mrf.mxu2  ;;  %v2323_v52 = vpop.f32.mrf.mxu0 }
 0x1ef   : > { %v2179_v49 = vpop.f32.mrf.mxu3  ;;  %v5754_v44 = vadd.f32 %v2798_v28, %v2635_v56  ;;  %v5757_v34 = vadd.f32 %v2323_v52, %v5652_v10  ;;  %v3067_v56 = vmul.f32 %v6745_v7, %v6679_v30  ;;  %v2685_v10 = vmul.f32 %v6746_v26, %v6736_v11  ;;  %v6749_v28 = vld [vmem:[#allocation28_spill] sm:$0xff] }
 0x1f0   : > { %v5760_v53 = vadd.f32 %v2179_v49, %v5608_v63  ;;  %v6747_v63 = vld [vmem:[#allocation26_spill] sm:$0xff]  ;;  %v2404_v52 = vmul.f32 %v6750_v13, %v6749_v28  ;;  %v6752_v13 = vld [vmem:[#allocation8_spill] sm:$0xff] }
 0x1f1   : > { %v2569_v20 = vpop.f32.mrf.mxu1  ;;  %4182 = vmatmul.msk.bf16.gmra.mxu0 %vm1279_vm5, %v3136_v58  ;;  %v2403_v22 = vmul.f32 %v6748_v51, %v6747_v63  ;;  %v2710_v33 = vpack.c.bf16 %v6738_v12, %v2685_v10 }
 0x1f2   : > { %v2637_v47 = vadd.f32 %v2569_v20, %v6743_v43  ;;  %v3098_v20 = vpack.c.bf16 %v3067_v56, %v3066_v40 }
 0x1f3   : > { %v2427_v7 = vpack.c.bf16 %v2404_v52, %v2403_v22 }
 0x1f4   : > { %4106 = vmatmul.msk.bf16.gmra.mxu1 %vm1279_vm5, %v2473_v48  ;;  %v3137_v26 = vrot.slane %v3098_v20, 1 }
 0x1f5   : > { %v2474_v40 = vrot.slane %v2427_v7, 1 }
 0x1f6   : > { %v2800_v58 = vpop.f32.mrf.mxu2  ;;  %v2325_v49 = vpop.f32.mrf.mxu0  ;;  %v3138_v10 = vsel %vm1767_vm10, %v3135_v9, %v3137_v26  ;;  %v6755_v9 = vld [vmem:[#allocation53_spill] sm:$0xff] }
 0x1f7   : > { %v2181_v43 = vpop.f32.mrf.mxu3  ;;  %v5776_v21 = vadd.f32 %v2800_v58, %v2636_v55  ;;  %v5780_v30 = vadd.f32 %v2325_v49, %v5675_v31  ;;  %v2475_v52 = vsel %vm1767_vm10, %v2472_v8, %v2474_v40 }
 0x1f8   : > { %v5783_v23 = vadd.f32 %v2181_v43, %v5631_v57  ;;  %v6756_v43 = vld [vmem:[#allocation88_spill] sm:$0xff] }
 0x1f9   : > { %6751 = vst [vmem:[#allocation17_spill] sm:$0xff] %v5780_v30  ;;  %v5785_v48 = vpop.f32.mrf.mxu1 }
 0x1fb   : > { %4134 = vmatmul.msk.bf16.gmra.mxu2 %vm1279_vm5, %v2710_v33  ;;  %v2687_v33 = vmul.f32 %v6756_v43, %v6747_v63 }
 0x1fc   : > { %4158 = vmatmul.msk.bf16.gmra.mxu3 %vm1279_vm5, %v6752_v13  ;;  %v6754_v13 = vld [vmem:[#allocation52_spill] sm:$0xff] }
 0x1fd   : > { %v3068_v20 = vmul.f32 %v6754_v13, %v4506_v42  ;;  %v2711_v42 = vpack.c.bf16 %v6749_v28, %v2687_v33 }
 0x1fe   : > { %v2803_v55 = vpop.f32.mrf.mxu2  ;;  %v2328_v56 = vpop.f32.mrf.mxu0 }
 0x1ff   : > { %v5791_v58 = vadd.f32 %v2803_v55, %v2637_v47  ;;  %v2942_v31 = vpop.f32.mrf.mxu3  ;;  %v5794_v57 = vadd.f32 %v2328_v56, %v5688_v17  ;;  %v3069_v47 = vmul.f32 %v6755_v9, %v6692_v35  ;;  %v6757_v17 = vld [vmem:[#allocation37_spill] sm:$0xff]  ;;  %v6759_v55 = vld [vmem:[#allocation12_spill] sm:$0xff]  ;;  %v6760_v56 = vld [vmem:[#allocation94_spill] sm:$0xff] }
 0x200   : > { %v5797_v49 = vadd.f32 %v2942_v31, %v5646_v61  ;;  %v6758_v61 = vld [vmem:[#allocation93_spill] sm:$0xff]  ;;  %v2406_v31 = vmul.f32 %v6760_v56, %v6759_v55 }
 0x201   : > { %6753 = vst [vmem:[#allocation71_spill] sm:$0xff] %v5794_v57  ;;  %v5799_v22 = vpop.f32.mrf.mxu1  ;;  %4183 = vmatmul.msk.bf16.gmra.mxu0 %vm1279_vm5, %v3138_v10  ;;  %v2405_v7 = vmul.f32 %v6758_v61, %v6757_v17  ;;  %v3099_v57 = vpack.c.bf16 %v3069_v47, %v3068_v20  ;;  %v6762_v56 = vld [vmem:[#allocation9_spill] sm:$0xff] }
 0x203   : > { %v2428_v9 = vpack.c.bf16 %v2406_v31, %v2405_v7  ;;  %v3139_v43 = vrot.slane %v3099_v57, 1  ;;  %v3070_v7 = vmul.f32 %v6691_v46, %v6702_v36 }
 0x204   : > { %4107 = vmatmul.msk.bf16.gmra.mxu1 %vm1279_vm5, %v2475_v52 }
 0x205   : > { %v2476_v61 = vrot.slane %v2428_v9, 1  ;;  %v3140_v33 = vsel %vm1767_vm10, %v3137_v26, %v3139_v43  ;;  %v6765_v26 = vld [vmem:[#allocation92_spill] sm:$0xff] }
 0x206   : > { %v5814_v8 = vpop.f32.mrf.mxu2  ;;  %v2330_v10 = vpop.f32.mrf.mxu0 }
 0x207   : > { %v2944_v30 = vpop.f32.mrf.mxu3  ;;  %v5818_v35 = vadd.f32 %v2330_v10, %v5711_v25  ;;  %v2477_v57 = vsel %vm1767_vm10, %v2474_v40, %v2476_v61 }
 0x208   : > { %v5821_v13 = vadd.f32 %v2944_v30, %v5668_v1 }
 0x209   : > { %6761 = vst [vmem:[#allocation47_spill] sm:$0xff] %v5818_v35  ;;  %v5823_v52 = vpop.f32.mrf.mxu1  ;;  %v6770_v35 = vld [vmem:[#allocation27_spill] sm:$0xff] }
 0x20b   : > { %4135 = vmatmul.msk.bf16.gmra.mxu2 %vm1279_vm5, %v2711_v42  ;;  %v2689_v42 = vmul.f32 %v6765_v26, %v6757_v17  ;;  %v6769_v26 = vld [vmem:[#allocation16_spill] sm:$0xff] }
 0x20c   : > { %4159 = vmatmul.msk.bf16.gmra.mxu3 %vm1279_vm5, %v6762_v56  ;;  %v6764_v56 = vld [vmem:[#allocation57_spill] sm:$0xff] }
 0x20d   : > { %v3071_v31 = vmul.f32 %v6764_v56, %v6704_v15 }
 0x20e   : > { %v5828_v20 = vpop.f32.mrf.mxu2  ;;  %v2333_v47 = vpop.f32.mrf.mxu0 }
 0x20f   : > { %v2947_v25 = vpop.f32.mrf.mxu3  ;;  %v5832_v10 = vadd.f32 %v2333_v47, %v5724_v16  ;;  %v6766_v16 = vld [vmem:[#allocation60_spill] sm:$0xff]  ;;  %v3100_v40 = vpack.c.bf16 %v3071_v31, %v3070_v7  ;;  %v4341_v7 = vunpack.c.h.bf16 %v6770_v35  ;;  %v3072_v35 = vmul.f32 %v6703_v24, %v6711_v4  ;;  %v6774_v4 = vld [vmem:[#allocation25_spill] sm:$0xff] }
 0x210   : > { %v5835_v1 = vadd.f32 %v2947_v25, %v5682_v54  ;;  %v6767_v54 = vld [vmem:[#allocation91_spill] sm:$0xff] }
 0x211   : > { %6763 = vst [vmem:[#allocation72_spill] sm:$0xff] %v5832_v10  ;;  %v5837_v30 = vpop.f32.mrf.mxu1  ;;  %4184 = vmatmul.msk.bf16.gmra.mxu0 %vm1279_vm5, %v3140_v33  ;;  %v2407_v9 = vmul.f32 %v6767_v54, %v6766_v16  ;;  %v2712_v33 = vpack.c.bf16 %v6759_v55, %v2689_v42  ;;  %vm375_vm6 = vcmp.gt.f32.partialorder %v4341_v7, 0.0 }
 0x213   : > { %v2429_v56 = vpack.c.bf16 %v2407_v9, %v2407_v9  ;;  %v412_v9 = vmul.f32 0.2, %v4341_v7 }
 0x214   : > { %4108 = vmatmul.msk.bf16.gmra.mxu1 %vm1279_vm5, %v2477_v57  ;;  %v3141_v57 = vrot.slane %v3100_v40, 1 }
 0x215   : > { %v2478_v31 = vrot.slane %v2429_v56, 1 }
 0x216   : > { %v5850_v47 = vpop.f32.mrf.mxu2  ;;  %v2335_v25 = vpop.f32.mrf.mxu0 }
 0x217   : > { %v2949_v10 = vpop.f32.mrf.mxu3  ;;  %v5854_v46 = vadd.f32 %v2335_v25, %v5747_v32  ;;  %v3142_v32 = vsel %vm1767_vm10, %v3139_v43, %v3141_v57  ;;  %v3073_v43 = vmul.f32 %v6705_v29, %v4529_v2 }
 0x218   : > { %v5857_v36 = vadd.f32 %v2949_v10, %v5704_v39 }
 0x219   : > { %6768 = vst [vmem:[#allocation50_spill] sm:$0xff] %v5854_v46  ;;  %v5859_v15 = vpop.f32.mrf.mxu1 }
 0x21b   : > { %4136 = vmatmul.msk.bf16.gmra.mxu2 %vm1279_vm5, %v2712_v33  ;;  %v2479_v33 = vsel %vm1767_vm10, %v2476_v61, %v2478_v31  ;;  %v3101_v61 = vpack.c.bf16 %v3073_v43, %v3072_v35 }
 0x21c   : > { %4160 = vmatmul.msk.bf16.gmra.mxu3 %vm1279_vm5, %v6769_v26 }
 0x21d   : > { %v3143_v29 = vrot.slane %v3101_v61, 1 }
 0x21e   : > { %v5865_v54 = vpop.f32.mrf.mxu2  ;;  %v2338_v42 = vpop.f32.mrf.mxu0 }
 0x21f   : > { %v2952_v25 = vpop.f32.mrf.mxu3  ;;  %v5869_v39 = vadd.f32 %v2338_v42, %v5760_v53  ;;  %v6772_v53 = vld [vmem:[#allocation14_spill] sm:$0xff] }
 0x220   : > { %v5872_v10 = vadd.f32 %v2952_v25, %v5718_v27  ;;  %v2691_v56 = vmul.f32 %v6772_v53, %v6766_v16  ;;  %v5885_v27 = vsel %vm375_vm6, %v4341_v7, %v412_v9 }
 0x221   : > { %6771 = vst [vmem:[#allocation31_spill] sm:$0xff] %v5869_v39  ;;  %v5874_v40 = vpop.f32.mrf.mxu1  ;;  %4185 = vmatmul.msk.bf16.gmra.mxu0 %vm1279_vm5, %v3142_v32  ;;  %v6781_v39 = vld [vmem:[#allocation85_spill] sm:$0xff] }
 0x222   : > { %v2713_v32 = vpack.c.bf16 %v5885_v27, %v2691_v56  ;;  %v3074_v56 = vmul.f32 %v6712_v59, %v4541_v18  ;;  %v3081_v46 = vmul.f32 %v6781_v39, %v6749_v28 }
 0x224   : > { %4109 = vmatmul.msk.bf16.gmra.mxu1 %vm1279_vm5, %v2479_v33  ;;  %v3144_v33 = vsel %vm1767_vm10, %v3141_v57, %v3143_v29  ;;  %v5917_v57 = vld [vmem:[%s6382_s2] ss:$0 sm:$0xff] }
 0x226   : > { %v5887_v26 = vpop.f32.mrf.mxu2  ;;  %v2340_v42 = vpop.f32.mrf.mxu0 }
 0x227   : > { %v2954_v31 = vpop.f32.mrf.mxu3  ;;  %v5891_v25 = vadd.f32 %v2340_v42, %v5783_v23  ;;  %v3075_v42 = vmul.f32 %v6713_v3, %v4543_v19 }
 0x228   : > { %v5894_v24 = vadd.f32 %v2954_v31, %v5740_v62 }
 0x229   : > { %6773 = vst [vmem:[#allocation76_spill] sm:$0xff] %v5891_v25  ;;  %v5896_v2 = vpop.f32.mrf.mxu1  ;;  %v3102_v61 = vpack.c.bf16 %v3075_v42, %v3074_v56 }
 0x22b   : > { %4137 = vmatmul.msk.bf16.gmra.mxu2 %vm1279_vm5, %v2713_v32  ;;  %v3145_v3 = vrot.slane %v3102_v61, 1  ;;  %v3076_v61 = vmul.f32 %v6717_v50, %v6724_v60  ;;  %v6778_v60 = vld [vmem:[#allocation59_spill] sm:$0xff] }
 0x22c   : > { %4161 = vmatmul.msk.bf16.gmra.mxu3 %vm1279_vm5, %v6774_v4 }
 0x22e   : > { %v5901_v7 = vpop.f32.mrf.mxu2  ;;  %v3228_v9 = vpop.f32.mrf.mxu0 }
 0x22f   : > { %v2957_v35 = vpop.f32.mrf.mxu3  ;;  %v3308_v23 = vadd.f32 %v3228_v9, %v5797_v49  ;;  %v6777_v9 = vld [vmem:[#allocation34_spill] sm:$0xff] }
 0x230   : > { %v5906_v43 = vadd.f32 %v2957_v35, %v5754_v44 }
 0x231   : > { %v2589_v62 = vpop.f32.mrf.mxu1  ;;  %4186 = vmatmul.msk.bf16.gmra.mxu0 %vm1279_vm5, %v3144_v33  ;;  %v5926_v18 = vadd.f32 %v5917_v57, %v3308_v23 }
 0x232   : > { %v2645_v53 = vadd.f32 %v2589_v62, %v5611_v41 }
 0x233   : > { %6775 = vst [vmem:[#allocation40_spill] sm:$0xff] %v5926_v18 }
 0x236   : > { %v5919_v49 = vpop.f32.mrf.mxu2  ;;  %v3230_v44 = vpop.f32.mrf.mxu0 }
 0x237   : > { %v2959_v31 = vpop.f32.mrf.mxu3  ;;  %v3309_v32 = vadd.f32 %v3230_v44, %v5821_v13 }
 0x238   : > { %v5923_v41 = vadd.f32 %v2959_v31, %v5776_v21  ;;  %v3146_v21 = vsel %vm1767_vm10, %v3143_v29, %v3145_v3  ;;  %v3077_v31 = vmul.f32 %v6718_v37, %v6726_v45  ;;  %v2900_v45 = vpack.c.bf16 %v5885_v27, %v6766_v16 }
 0x239   : > { %v5928_v59 = vpop.f32.mrf.mxu1  ;;  %v5931_v19 = vadd.f32 %v5917_v57, %v3309_v32 }
 0x23a   : > { %v3103_v32 = vpack.c.bf16 %v3077_v31, %v3076_v61  ;;  %v302_v61 = vld [vmem:[%s4470_s10 + $0x90] sm:$0x1] }
 0x23b   : > { %6776 = vst [vmem:[#allocation51_spill] sm:$0xff] %v5931_v19 }
 0x23c   : > { %4162 = vmatmul.msk.bf16.gmra.mxu3 %vm1279_vm5, %v6777_v9  ;;  %v3147_v50 = vrot.slane %v3103_v32, 1 }
 0x23e   : > { %v2823_v33 = vpop.f32.mrf.mxu2  ;;  %v3233_v13 = vpop.f32.mrf.mxu0 }
 0x23f   : > { %v5938_v35 = vadd.f32 %v2823_v33, %v2645_v53  ;;  %v2962_v23 = vpop.f32.mrf.mxu3  ;;  %v3310_v62 = vadd.f32 %v3233_v13, %v5835_v1 }
 0x240   : > { %v5942_v56 = vadd.f32 %v2962_v23, %v5791_v58 }
 0x241   : > { %v2594_v42 = vpop.f32.mrf.mxu1  ;;  %4187 = vmatmul.msk.bf16.gmra.mxu0 %vm1279_vm5, %v3146_v21  ;;  %v5956_v9 = vadd.f32 %v5917_v57, %v3310_v62  ;;  %v3148_v21 = vsel %vm1767_vm10, %v3145_v3, %v3147_v50  ;;  %v3079_v3 = vmul.f32 %v6727_v5, %v6738_v12 }
 0x242   : > { %v2647_v44 = vadd.f32 %v2594_v42, %v5649_v38 }
 0x246   : > { %v5950_v29 = vpop.f32.mrf.mxu2  ;;  %v3235_v53 = vpop.f32.mrf.mxu0 }
 0x247   : > { %v5952_v1 = vpop.f32.mrf.mxu3  ;;  %v3311_v58 = vadd.f32 %v3235_v53, %v5857_v36  ;;  %v2903_v53 = vshll.u32 %v2900_v45, 16 }
 0x249   : > { %v5958_v33 = vpop.f32.mrf.mxu1  ;;  %v5961_v38 = vadd.f32 %v5917_v57, %v3311_v58  ;;  %v339_v58 = vunpack.c.l.bf16 %v302_v61 }
 0x24b   : > { %v413_v37 = vmul.f32 0.2, %v339_v58  ;;  %vm376_vm7 = vcmp.gt.f32.partialorder %v339_v58, 0.0 }
 0x24c   : > { %4163 = vmatmul.msk.bf16.gmra.mxu3 %vm1279_vm5, %v6778_v60  ;;  %v3078_v60 = vmul.f32 %v6725_v6, %v6736_v11 }
 0x24d   : > { %v5997_v12 = vsel %vm376_vm7, %v339_v58, %v413_v37  ;;  %v2907_v58 = vshrl.u32 %v2900_v45, 16 }
 0x24e   : > { %v2828_v13 = vpop.f32.mrf.mxu2  ;;  %v3238_v36 = vpop.f32.mrf.mxu0 }
 0x24f   : > { %v5970_v23 = vadd.f32 %v2828_v13, %v2647_v44  ;;  %v5972_v62 = vpop.f32.mrf.mxu3  ;;  %v3312_v42 = vadd.f32 %v3238_v36, %v5872_v10  ;;  %v2905_v44 = vrot.slane %v2903_v53, 1  ;;  %v3104_v10 = vpack.c.bf16 %v3079_v3, %v3078_v60 }
 0x251   : > { %v2599_v31 = vpop.f32.mrf.mxu1  ;;  %4188 = vmatmul.msk.bf16.gmra.mxu0 %vm1279_vm5, %v3148_v21  ;;  %v6779_v21 = vld [vmem:[#allocation64_spill] sm:$0xff]  ;;  %v3149_v61 = vrot.slane %v3104_v10, 1 }
 0x252   : > { %v2649_v32 = vadd.f32 %v2599_v31, %v5685_v14  ;;  %v5988_v14 = vadd.f32 %v5917_v57, %v3312_v42  ;;  %v2906_v6 = vsel %vm1134_vm4, %v6779_v21, %v2905_v44 }
 0x253   : > { %v3150_v53 = vsel %vm1767_vm10, %v3147_v50, %v3149_v61  ;;  %v2909_v50 = vor.u32 %v2907_v58, %v2905_v44 }
 0x256   : > { %v5982_v13 = vpop.f32.mrf.mxu2  ;;  %v3240_v4 = vpop.f32.mrf.mxu0 }
 0x257   : > { %v5984_v36 = vpop.f32.mrf.mxu3  ;;  %v3313_v25 = vadd.f32 %v3240_v4, %v5894_v24  ;;  %v2901_v24 = vpack.c.bf16 %v5997_v12, %v5997_v12 }
 0x259   : > { %v5992_v11 = vpop.f32.mrf.mxu1  ;;  %v5995_v5 = vadd.f32 %v5917_v57, %v3313_v25  ;;  %v2911_v10 = vshll.u32 %v2901_v24, 16 }
 0x25c   : > { %4164 = vmatmul.msk.bf16.gmra.mxu3 %vm1279_vm5, %v2906_v6  ;;  %v6780_v6 = vld [vmem:[#allocation84_spill] sm:$0xff] }
 0x25d   : > { %v3080_v31 = vmul.f32 %v6780_v6, %v6747_v63  ;;  %v6783_v6 = vld [vmem:[#allocation90_spill] sm:$0xff] }
 0x25e   : > { %v2833_v4 = vpop.f32.mrf.mxu2  ;;  %v3243_v42 = vpop.f32.mrf.mxu0 }
 0x25f   : > { %v6005_v60 = vadd.f32 %v2833_v4, %v2649_v32  ;;  %v6007_v3 = vpop.f32.mrf.mxu3  ;;  %v3314_v25 = vadd.f32 %v3243_v42, %v5906_v43  ;;  %v2913_v32 = vrot.slane %v2911_v10, 1  ;;  %v3105_v19 = vpack.c.bf16 %v3081_v46, %v3080_v31 }
 0x260   : > { %v3082_v10 = vmul.f32 %v6748_v51, %v6757_v17 }
 0x261   : > { %v2604_v37 = vpop.f32.mrf.mxu1  ;;  %4189 = vmatmul.msk.bf16.gmra.mxu0 %vm1279_vm5, %v3150_v53  ;;  %v6022_v24 = vadd.f32 %v5917_v57, %v3314_v25  ;;  %v3151_v28 = vrot.slane %v3105_v19, 1  ;;  %v6782_v25 = vld [vmem:[#allocation21_spill] sm:$0xff] }
 0x262   : > { %v2651_v21 = vadd.f32 %v2604_v37, %v5721_v0  ;;  %v2914_v0 = vsel %vm1134_vm4, %v2909_v50, %v2913_v32  ;;  %v2638_v37 = vadd.f32 %v5785_v48, %v6782_v25 }
 0x266   : > { %v6016_v4 = vpop.f32.mrf.mxu2  ;;  %v3245_v18 = vpop.f32.mrf.mxu0 }
 0x267   : > { %v6018_v43 = vpop.f32.mrf.mxu3  ;;  %v3315_v45 = vadd.f32 %v3245_v18, %v5923_v41  ;;  %v3152_v41 = vsel %vm1767_vm10, %v3149_v61, %v3151_v28  ;;  %v3083_v61 = vmul.f32 %v6783_v6, %v6759_v55 }
 0x269   : > { %v6025_v42 = vpop.f32.mrf.mxu1  ;;  %v6028_v63 = vadd.f32 %v5917_v57, %v3315_v45  ;;  %v3106_v45 = vpack.c.bf16 %v3083_v61, %v3082_v10  ;;  %v6785_v10 = vld [vmem:[#allocation24_spill] sm:$0xff]  ;;  %v6786_v61 = vld [vmem:[#allocation93_spill] sm:$0xff] }
 0x26a   : > { %v2640_v6 = vadd.f32 %v5823_v52, %v6785_v10 }
 0x26b   : > { %v3387_v39 = vpack.c.bf16 %v6028_v63, %v6022_v24  ;;  %v3153_v51 = vrot.slane %v3106_v45, 1  ;;  %v6798_v24 = vpack.c.bf16 %v5961_v38, %v5956_v9 }
 0x26c   : > { %4165 = vmatmul.msk.bf16.gmra.mxu3 %vm1279_vm5, %v2914_v0 }
 0x26e   : > { %v2838_v46 = vpop.f32.mrf.mxu2  ;;  %v3248_v44 = vpop.f32.mrf.mxu0 }
 0x26f   : > { %v6034_v18 = vadd.f32 %v2838_v46, %v2651_v21  ;;  %v6036_v31 = vpop.f32.mrf.mxu3  ;;  %v3316_v53 = vadd.f32 %v3248_v44, %v5942_v56  ;;  %v2872_v21 = vadd.f32 %v5814_v8, %v2638_v37  ;;  %v6784_v44 = vld [vmem:[#allocation22_spill] sm:$0xff] }
 0x271   : > { %v2609_v58 = vpop.f32.mrf.mxu1  ;;  %4190 = vmatmul.msk.bf16.gmra.mxu0 %vm1279_vm5, %v3152_v41  ;;  %v3031_v50 = vadd.f32 %v5952_v1, %v2872_v21  ;;  %v6054_v46 = vadd.f32 %v5917_v57, %v3316_v53  ;;  %v3154_v1 = vsel %vm1767_vm10, %v3151_v28, %v3153_v51  ;;  %v2639_v41 = vadd.f32 %v5799_v22, %v6784_v44  ;;  %v6787_v28 = vld [vmem:[#allocation94_spill] sm:$0xff] }
 0x272   : > { %v2653_v19 = vadd.f32 %v2609_v58, %v5757_v34  ;;  %v3084_v21 = vmul.f32 %v6786_v61, %v6766_v16  ;;  %v2874_v22 = vadd.f32 %v5850_v47, %v2640_v6  ;;  %v6790_v6 = vld [vmem:[#allocation32_spill] sm:$0xff] }
 0x273   : > { %v2873_v58 = vadd.f32 %v5828_v20, %v2639_v41  ;;  %v2642_v61 = vadd.f32 %v5859_v15, %v6790_v6 }
 0x274   : > { %v3033_v20 = vadd.f32 %v5984_v36, %v2874_v22  ;;  %v6792_v22 = vld [vmem:[#allocation65_spill] sm:$0xff] }
 0x276   : > { %v6049_v32 = vpop.f32.mrf.mxu2  ;;  %v3250_v56 = vpop.f32.mrf.mxu0 }
 0x277   : > { %v6051_v48 = vpop.f32.mrf.mxu3  ;;  %v3317_v0 = vadd.f32 %v3250_v56, %v3031_v50  ;;  %v3085_v50 = vmul.f32 %v6787_v28, %v5885_v27  ;;  %v6788_v56 = vld [vmem:[#allocation39_spill] sm:$0xff] }
 0x279   : > { %v6057_v34 = vadd.f32 %v5917_v57, %v3317_v0 }
 0x27b   : > { %v3388_v17 = vpack.c.bf16 %v6057_v34, %v6054_v46  ;;  %v4378_v46 = vld [vmem:[%s4470_s10 + $0x40] sm:$0xff]  }
 0x27c   : > { %v3588_v34 = vshll.u32 %v4378_v46, 16 }
 0x27e   : > { %v2843_v55 = vpop.f32.mrf.mxu2  ;;  %v3253_v8 = vpop.f32.mrf.mxu0  ;;  %v3590_v63 = vrot.slane %v3588_v34, 1 }
 0x27f   : > { %v6064_v25 = vadd.f32 %v2843_v55, %v2653_v19  ;;  %v2982_v37 = vpop.f32.mrf.mxu3  ;;  %v3032_v19 = vadd.f32 %v5972_v62, %v2873_v58  ;;  %v3107_v55 = vpack.c.bf16 %v3085_v50, %v3084_v21  ;;  %v6791_v21 = vld [vmem:[#allocation91_spill] sm:$0xff]  ;;  %v2876_v50 = vadd.f32 %v5887_v26, %v2642_v61 }
 0x280   : > { %v6067_v53 = vadd.f32 %v2982_v37, %v5938_v35  ;;  %v2646_v35 = vadd.f32 %v5928_v59, %v6788_v56  ;;  %v6789_v59 = vld [vmem:[#allocation29_spill] sm:$0xff]  ;;  %v3086_v28 = vmul.f32 %v6791_v21, %v5997_v12 }
 0x281   : > { %4191 = vmatmul.msk.bf16.gmra.mxu0 %vm1279_vm5, %v3154_v1  ;;  %v3318_v45 = vadd.f32 %v3253_v8, %v3032_v19  ;;  %v3155_v47 = vrot.slane %v3107_v55, 1  ;;  %v2641_v36 = vadd.f32 %v5837_v30, %v6789_v59  ;;  %v2648_v30 = vadd.f32 %v5958_v33, %v6792_v22  ;;  %v6793_v33 = vld [vmem:[#allocation35_spill] sm:$0xff]  ;;  %v6795_v59 = vld [vmem:[#allocation42_spill] sm:$0xff] }
 0x282   : > { %v2880_v52 = vadd.f32 %v5950_v29, %v2646_v35  ;;  %v3035_v19 = vadd.f32 %v6018_v43, %v2876_v50  ;;  %v3108_v35 = vpack.c.bf16 %v3086_v28, %v3086_v28  ;;  %v2643_v43 = vadd.f32 %v5874_v40, %v6793_v33 }
 0x283   : > { %v3354_v41 = vadd.f32 %v5917_v57, %v3318_v45  ;;  %v3156_v58 = vsel %vm1767_vm10, %v3153_v51, %v3155_v47  ;;  %v2875_v10 = vadd.f32 %v5865_v54, %v2641_v36  ;;  %v2882_v54 = vadd.f32 %v5982_v13, %v2648_v30 }
 0x284   : > { %v3157_v26 = vrot.slane %v3108_v35, 1 }
 0x285   : > { %v3034_v51 = vadd.f32 %v6007_v3, %v2875_v10 }
 0x286   : > { %v3255_v0 = vpop.f32.mrf.mxu0  ;;  %v3158_v55 = vsel %vm1767_vm10, %v3155_v47, %v3157_v26  ;;  %v2650_v47 = vadd.f32 %v5992_v11, %v6795_v59  ;;  %v6799_v26 = vld [vmem:[#allocation51_spill] sm:$0xff] }
 0x287   : > { %v2984_v1 = vpop.f32.mrf.mxu3  ;;  %v3319_v44 = vadd.f32 %v3255_v0, %v3033_v20 }
 0x288   : > { %v3039_v16 = vadd.f32 %v2984_v1, %v2880_v52 }
 0x289   : > { %v3355_v27 = vadd.f32 %v5917_v57, %v3319_v44  ;;  %v2877_v44 = vadd.f32 %v5901_v7, %v2643_v43 }
 0x28b   : > { %v3389_v37 = vpack.c.bf16 %v3355_v27, %v3354_v41  ;;  %v6794_v41 = vld [vmem:[#allocation66_spill] sm:$0xff] }
 0x28c   : > { %v2644_v27 = vadd.f32 %v5896_v2, %v6794_v41 }
 0x28e   : > { %v3258_v62 = vpop.f32.mrf.mxu0 }
 0x28f   : > { %v2987_v8 = vpop.f32.mrf.mxu3 }
 0x290   : > { %v3040_v29 = vadd.f32 %v2987_v8, %v5970_v23  ;;  %v3320_v23 = vadd.f32 %v3258_v62, %v3034_v51  ;;  %v2878_v62 = vadd.f32 %v5919_v49, %v2644_v27 }
 0x291   : > { %4192 = vmatmul.msk.bf16.gmra.mxu0 %vm1279_vm5, %v3156_v58  ;;  %v3036_v58 = vadd.f32 %v6036_v31, %v2877_v44 }
 0x292   : > { %v3356_v52 = vadd.f32 %v5917_v57, %v3320_v23  ;;  %v3037_v40 = vadd.f32 %v6051_v48, %v2878_v62 }
 0x296   : > { %v3260_v56 = vpop.f32.mrf.mxu0 }
 0x297   : > { %v2989_v15 = vpop.f32.mrf.mxu3  ;;  %v3321_v20 = vadd.f32 %v3260_v56, %v3035_v19 }
 0x298   : > { %v3041_v45 = vadd.f32 %v2989_v15, %v2882_v54  ;;  %v6797_v54 = vpack.c.bf16 %v5995_v5, %v5988_v14  ;;  %v4261_v14 = vld [vmem:[%s6383_s3 + $0x4] sm:$0xf0] }
 0x299   : > { %v3357_v12 = vadd.f32 %v5917_v57, %v3321_v20  ;;  %v4380_v20 = vld [vmem:[%s4470_s10 + $0x38] sm:$0xff]  }
 0x29a   : > { %v3584_v33 = vshrl.u32 %v4380_v20, 16 }
 0x29b   : > { %v3390_v0 = vpack.c.bf16 %v3357_v12, %v3356_v52  ;;  %v3580_v52 = vshll.u32 %v4380_v20, 16 }
 0x29e   : > { %v3263_v3 = vpop.f32.mrf.mxu0 }
 0x29f   : > { %v2992_v1 = vpop.f32.mrf.mxu3  ;;  %v3322_v36 = vadd.f32 %v3263_v3, %v3036_v58 }
 0x2a0   : > { %v6107_v13 = vadd.f32 %v2992_v1, %v6005_v60  ;;  %v2884_v60 = vadd.f32 %v6016_v4, %v2650_v47  ;;  %v6796_v4 = vld [vmem:[#allocation67_spill] sm:$0xff]  ;;  %v4381_v1 = vld [vmem:[%s4470_s10 + $0x30] sm:$0xff]  }
 0x2a1   : > { %4193 = vmatmul.msk.bf16.gmra.mxu0 %vm1279_vm5, %v3158_v55  ;;  %v3358_v2 = vadd.f32 %v5917_v57, %v3322_v36  ;;  %v2652_v28 = vadd.f32 %v6025_v42, %v6796_v4  ;;  %v3582_v55 = vrot.slane %v3580_v52, 1  ;;  %v3572_v44 = vshll.u32 %v4381_v1, 16  ;;  %v4382_v36 = vld [vmem:[%s4470_s10 + $0x28] sm:$0xff]  }
 0x2a2   : > { %v3576_v58 = vshrl.u32 %v4381_v1, 16  ;;  %v4388_v1 = vld [vmem:[%s4470_s10 + $0x10] sm:$0xff]  }
 0x2a3   : > { %v2886_v50 = vadd.f32 %v6049_v32, %v2652_v28  ;;  %v3586_v43 = vor.u32 %v3584_v33, %v3582_v55  ;;  %v3574_v62 = vrot.slane %v3572_v44, 1  ;;  %v3540_v44 = vshll.u32 %v4388_v1, 16 }
 0x2a5   : > { %v3591_v27 = vsel %vm1134_vm4, %v3586_v43, %v3590_v63 }
 0x2a6   : > { %v3265_v8 = vpop.f32.mrf.mxu0 }
 0x2a7   : > { %v2994_v10 = vpop.f32.mrf.mxu3  ;;  %v3323_v7 = vadd.f32 %v3265_v8, %v3037_v40  ;;  %v3578_v40 = vor.u32 %v3576_v58, %v3574_v62 }
 0x2a8   : > { %v6119_v6 = vadd.f32 %v2994_v10, %v2884_v60  ;;  %v3564_v60 = vshll.u32 %v4382_v36, 16 }
 0x2a9   : > { %v3359_v61 = vadd.f32 %v5917_v57, %v3323_v7  ;;  %v3583_v8 = vsel %vm1134_vm4, %v3578_v40, %v3582_v55  ;;  %v3568_v7 = vshrl.u32 %v4382_v36, 16  ;;  %v3544_v40 = vshrl.u32 %v4388_v1, 16  ;;  %v4389_v36 = vld [vmem:[%s4470_s10 + $0x68] sm:$0xff]  }
 0x2aa   : > { %v3566_v10 = vrot.slane %v3564_v60, 1  ;;  %v3628_v60 = vshll.u32 %v4389_v36, 16 }
 0x2ab   : > { %v3391_v49 = vpack.c.bf16 %v3359_v61, %v3358_v2  ;;  %v6802_v2 = vld [vmem:[#allocation30_spill] sm:$0xff] }
 0x2ac   : > { %v3531_v61 = vpack.c.bf16 %v6802_v2, %v6802_v2 }
 0x2ad   : > { %3440 = vmatpush.bf16.msrb.mxu1 %v3391_v49  ;;  %v4383_v49 = vld [vmem:[%s4470_s10 + $0x80] sm:$0xff]  }
 0x2ae   : > { %v3268_v31 = vpop.f32.mrf.mxu0  ;;  %v3656_v28 = vshrl.u32 %v4383_v49, 16 }
 0x2af   : > { %v2997_v21 = vpop.f32.mrf.mxu3  ;;  %v3324_v11 = vadd.f32 %v3268_v31, %v6067_v53  ;;  %v3652_v31 = vshll.u32 %v4383_v49, 16  ;;  %v3632_v49 = vshrl.u32 %v4389_v36, 16 }
 0x2b0   : > { %v6125_v48 = vadd.f32 %v2997_v21, %v6034_v18  ;;  %v3570_v21 = vor.u32 %v3568_v7, %v3566_v10 }
 0x2b1   : > { %3441 = vmatpush.bf16.msrb.mxu1 %v3390_v0  ;;  %v6133_v23 = vadd.f32 %v5917_v57, %v3324_v11  ;;  %v6800_v0 = vld [vmem:[#allocation40_spill] sm:$0xff]  ;;  %v4384_v11 = vld [vmem:[%s4470_s10 + $0x20] sm:$0xff]  }
 0x2b2   : > { %v6801_v3 = vpack.c.bf16 %v6799_v26, %v6800_v0  ;;  %v3556_v4 = vshll.u32 %v4384_v11, 16 }
 0x2b5   : > { %3442 = vmatpush.bf16.msrb.mxu1 %v3389_v37 }
 0x2b6   : > { %v3270_v51 = vpop.f32.mrf.mxu0 }
 0x2b7   : > { %v2999_v22 = vpop.f32.mrf.mxu3  ;;  %v3325_v30 = vadd.f32 %v3270_v51, %v3039_v16  ;;  %v3660_v51 = vshll.u32 %v3531_v61, 16  ;;  %v3630_v61 = vrot.slane %v3628_v60, 1 }
 0x2b8   : > { %v6130_v19 = vadd.f32 %v2999_v22, %v2886_v50  ;;  %v3654_v50 = vrot.slane %v3652_v31, 1  ;;  %v3575_v22 = vsel %vm1134_vm4, %v3570_v21, %v3574_v62  ;;  %v4390_v21 = vld [vmem:[%s4470_s10 + $0x8] sm:$0xff]  }
 0x2b9   : > { %v6136_v18 = vadd.f32 %v5917_v57, %v3325_v30  ;;  %3443 = vmatpush.bf16.msrb.mxu1 %v3388_v17  ;;  %v4196_v17 = vld [vmem:[%s6383_s3] sm:$0xf]  ;;  %v3558_v30 = vrot.slane %v3556_v4, 1 }
 0x2ba   : > { %v6172_v38 = vor.u32 %v4261_v14, %v4196_v17  ;;  %v3658_v34 = vor.u32 %v3656_v28, %v3654_v50  ;;  %v3662_v17 = vrot.slane %v3660_v51, 1  ;;  %v3634_v28 = vor.u32 %v3632_v49, %v3630_v61 }
 0x2bb   : > { %v3392_v42 = vpack.c.bf16 %v6136_v18, %v6133_v23  ;;  %v4268_v23 = vld [vmem:[%s6384_s4] sm:$0xff] }
 0x2bd   : > { %3444 = vmatpush.bf16.msrb.mxu1 %v3387_v39  ;;  %v3592_v39 = vshrl.u32 %v4378_v46, 16 }
 0x2be   : > { %v3273_v32 = vpop.f32.mrf.mxu0 }
 0x2bf   : > { %v3002_v53 = vpop.f32.mrf.mxu3  ;;  %v3326_v16 = vadd.f32 %v3273_v32, %v3040_v29  ;;  %v6160_v29 = vld [vmem:[%s4470_s10 + $0x48] sm:$0xff]   ;;  %v3594_v35 = vor.u32 %v3592_v39, %v3590_v63  ;;  %v3560_v32 = vshrl.u32 %v4384_v11, 16  ;;  %v4386_v39 = vld [vmem:[%s4470_s10 + $0x18] sm:$0xff]   ;;  %v3535_v11 = vshll.u32 %v4390_v21, 16 }
 0x2c0   : > { %v6147_v37 = vadd.f32 %v3002_v53, %v6064_v25  ;;  %v3596_v25 = vshll.u32 %v6160_v29, 16  ;;  %v4263_v53 = vld [vmem:[%s6383_s3 + $0x14] sm:$0xf0]  ;;  %v3552_v0 = vshrl.u32 %v4386_v39, 16 }
 0x2c1   : > { %3445 = vmatpush.bf16.msrb.mxu1 %v6797_v54  ;;  %v6170_v9 = vadd.f32 %v5917_v57, %v3326_v16  ;;  %v4385_v16 = vld [vmem:[%s4470_s10 + $0x78] sm:$0xff]   ;;  %v3562_v63 = vor.u32 %v3560_v32, %v3558_v30  ;;  %v3537_v51 = vrot.slane %v3535_v11, 1 }
 0x2c2   : > { %v6166_v15 = vrot.slane %v3596_v25, 1  ;;  %v3644_v54 = vshll.u32 %v4385_v16, 16  ;;  %v3548_v25 = vshll.u32 %v4386_v39, 16  ;;  %v3648_v20 = vshrl.u32 %v4385_v16, 16 }
 0x2c3   : > { %v3567_v26 = vsel %vm1134_vm4, %v3562_v63, %v3566_v10 }
 0x2c4   : > { %v3646_v14 = vrot.slane %v3644_v54, 1 }
 0x2c5   : > { %3446 = vmatpush.bf16.msrb.mxu1 %v6798_v24 }
 0x2c6   : > { %v3275_v5 = vpop.f32.mrf.mxu0 }
 0x2c7   : > { %v3327_v56 = vadd.f32 %v3275_v5, %v3041_v45  ;;  %v3599_v45 = vsel %vm1134_vm4, %v3594_v35, %v6166_v15  ;;  %v3663_v35 = vsel %vm1134_vm4, %v3658_v34, %v3662_v17  ;;  %v4265_v34 = vld [vmem:[%s6383_s3 + $0x24] sm:$0xf0]  ;;  %v4392_v17 = vld [vmem:[%s4470_s10 + $0x58] sm:$0xff]   ;;  %v3004_v63 = vpop.f32.mrf.mxu3 }
 0x2c8   : > { %3680 = vmatpush.bf16.msrb.mxu3 %v3599_v45  ;;  %v4387_v45 = vld [vmem:[%s4470_s10 + $0x70] sm:$0xff]  }
 0x2c9   : > { %v6175_v12 = vadd.f32 %v5917_v57, %v3327_v56  ;;  %3447 = vmatpush.bf16.msrb.mxu1 %v6801_v3  ;;  %v3650_v3 = vor.u32 %v3648_v20, %v3646_v14  ;;  %v3636_v55 = vshll.u32 %v4387_v45, 16 }
 0x2cb   : > { %v3393_v41 = vpack.c.bf16 %v6175_v12, %v6170_v9  ;;  %v3655_v62 = vsel %vm1134_vm4, %v3650_v3, %v3654_v50  ;;  %v3638_v58 = vrot.slane %v3636_v55, 1  ;;  %v2611_v50 = vpop.f32.mrf.mxu1 }
 0x2cc   : > { %3448 = vmatmul.bf16.vlgmr.msrb.gmra.mxu1 %v6172_v38  ;;  %3681 = vmatpush.bf16.msrb.mxu3 %v3591_v27  ;;  %v3640_v27 = vshrl.u32 %v4387_v45, 16 }
 0x2cd   : > { %3709 = vmatpush.bf16.msra.mxu1 %v3663_v35 }
 0x2ce   : > { %v3278_v59 = vpop.f32.mrf.mxu0  ;;  %v3642_v10 = vor.u32 %v3640_v27, %v3638_v58 }
 0x2cf   : > { %v3328_v47 = vadd.f32 %v3278_v59, %v6107_v13  ;;  %v4204_v13 = vld [vmem:[%s6383_s3 + $0x10] sm:$0xf] }
 0x2d0   : > { %3682 = vmatpush.bf16.msrb.mxu3 %v3583_v8  ;;  %v6207_v56 = vor.u32 %v4263_v53, %v4204_v13  ;;  %v3647_v31 = vsel %vm1134_vm4, %v3642_v10, %v3646_v14  ;;  %v3533_v13 = vshrl.u32 %v4390_v21, 16  ;;  %v2845_v53 = vpop.f32.mrf.mxu2  ;;  %v6803_v10 = vld [vmem:[#allocation17_spill] sm:$0xff]  ;;  %v4220_v21 = vld [vmem:[%s6383_s3 + $0x30] sm:$0xf] }
 0x2d1   : > { %v6205_v5 = vadd.f32 %v5917_v57, %v3328_v47  ;;  %v3542_v47 = vrot.slane %v3540_v44, 1  ;;  %3710 = vmatpush.bf16.msra.mxu1 %v3655_v62 }
 0x2d2   : > { %v3538_v16 = vor.u32 %v3537_v51, %v3533_v13 }
 0x2d3   : > { %v3546_v2 = vor.u32 %v3544_v40, %v3542_v47 }
 0x2d4   : > { %3683 = vmatpush.bf16.msrb.mxu3 %v3575_v22  ;;  %v4391_v22 = vld [vmem:[%s4470_s10 + $0x60] sm:$0xff]  }
 0x2d5   : > { %3711 = vmatpush.bf16.msra.mxu1 %v3647_v31  ;;  %v3624_v32 = vshrl.u32 %v4391_v22, 16 }
 0x2d6   : > { %v3280_v46 = vpop.f32.mrf.mxu0 }
 0x2d7   : > { %v3329_v24 = vadd.f32 %v3280_v46, %v6119_v6  ;;  %v3550_v6 = vrot.slane %v3548_v25, 1  ;;  %v4212_v46 = vld [vmem:[%s6383_s3 + $0x20] sm:$0xf]  ;;  %v3543_v25 = vsel %vm1134_vm4, %v3538_v16, %v3542_v47 }
 0x2d8   : > { %3684 = vmatpush.bf16.msrb.mxu3 %v3567_v26  ;;  %v3616_v26 = vshrl.u32 %v4392_v17, 16  ;;  %v2848_v47 = vpop.f32.mrf.mxu2 }
 0x2d9   : > { %v6211_v52 = vadd.f32 %v5917_v57, %v3329_v24  ;;  %v3554_v43 = vor.u32 %v3552_v0, %v3550_v6  ;;  %v3551_v4 = vsel %vm1134_vm4, %v3546_v2, %v3550_v6  ;;  %v3612_v24 = vshll.u32 %v4392_v17, 16 }
 0x2da   : > { %v4213_v6 = vor.u32 %v4265_v34, %v4212_v46 }
 0x2db   : > { %v3394_v33 = vpack.c.bf16 %v6211_v52, %v6205_v5  ;;  %v3559_v59 = vsel %vm1134_vm4, %v3554_v43, %v3558_v30  ;;  %v3620_v30 = vshll.u32 %v4391_v22, 16  ;;  %v3614_v20 = vrot.slane %v3612_v24, 1  ;;  %v4393_v43 = vld [vmem:[%s4470_s10 + $0x50] sm:$0xff]   ;;  %v4269_v5 = vld [vmem:[%s6384_s4 + $0x8] sm:$0xff] }
 0x2dc   : > { %3453 = vmatmul.bf16.gmra.mxu1 %v6207_v56  ;;  %3685 = vmatpush.bf16.msrb.mxu3 %v3559_v59  ;;  %v3604_v1 = vshll.u32 %v4393_v43, 16  ;;  %v3608_v62 = vshrl.u32 %v4393_v43, 16 }
 0x2dd   : > { %v3622_v54 = vrot.slane %v3620_v30, 1  ;;  %v3618_v55 = vor.u32 %v3616_v26, %v3614_v20 }
 0x2de   : > { %v3283_v8 = vpop.f32.mrf.mxu0  ;;  %v3606_v27 = vrot.slane %v3604_v1, 1 }
 0x2df   : > { %v3330_v7 = vadd.f32 %v3283_v8, %v6125_v48  ;;  %v3639_v48 = vsel %vm1134_vm4, %v3634_v28, %v3638_v58  ;;  %v3626_v14 = vor.u32 %v3624_v32, %v3622_v54  ;;  %v3623_v44 = vsel %vm1134_vm4, %v3618_v55, %v3622_v54  ;;  %v2614_v58 = vpop.f32.mrf.mxu1  ;;  %v6805_v54 = vld [vmem:[#allocation47_spill] sm:$0xff] }
 0x2e0   : > { %3686 = vmatpush.bf16.msrb.mxu3 %v3551_v4  ;;  %3712 = vmatpush.bf16.msra.mxu1 %v3639_v48  ;;  %v3610_v59 = vor.u32 %v3608_v62, %v3606_v27  ;;  %v3600_v8 = vshrl.u32 %v6160_v29, 16  ;;  %v2850_v28 = vpop.f32.mrf.mxu2  ;;  %v6804_v48 = vld [vmem:[#allocation71_spill] sm:$0xff] }
 0x2e1   : > { %v3631_v0 = vsel %vm1134_vm4, %v3626_v14, %v3630_v61  ;;  %v6239_v3 = vadd.f32 %v5917_v57, %v3330_v7  ;;  %v2654_v7 = vadd.f32 %v2611_v50, %v6803_v10  ;;  %v2655_v32 = vadd.f32 %v2614_v58, %v6804_v48  ;;  %v4198_v14 = vld [vmem:[%s6383_s3 + $0x8] sm:$0xf0]  ;;  %v6806_v58 = vld [vmem:[#allocation72_spill] sm:$0xff] }
 0x2e2   : > { %v3615_v60 = vsel %vm1134_vm4, %v3610_v59, %v3614_v20  ;;  %v3602_v2 = vor.u32 %v3600_v8, %v6166_v15 }
 0x2e3   : > { %v2888_v61 = vadd.f32 %v2845_v53, %v2654_v7  ;;  %v2889_v16 = vadd.f32 %v2848_v47, %v2655_v32 }
 0x2e4   : > { %3687 = vmatpush.bf16.msrb.mxu3 %v3543_v25  ;;  %3713 = vmatpush.bf16.msra.mxu1 %v3631_v0  ;;  %v3607_v49 = vsel %vm1134_vm4, %v3602_v2, %v3606_v27  ;;  %v4262_v2 = vld [vmem:[%s6383_s3 + $0x14] sm:$0xf]  ;;  %vm3506_vm4 = vcmask 257024  }
 0x2e5   : > { %v3047_v31 = vadd.f32 %v3004_v63, %v2888_v61 }
 0x2e6   : > { %v3285_v39 = vpop.f32.mrf.mxu0 }
 0x2e7   : > { %v3331_v35 = vadd.f32 %v3285_v39, %v6130_v19  ;;  %3688 = vmatmul.bf16.vlgmr.msrb.gmra.mxu3 %v6172_v38  ;;  %v3007_v38 = vpop.f32.mrf.mxu3  ;;  %v2616_v29 = vpop.f32.mrf.mxu1 }
 0x2e8   : > { %3714 = vmatpush.bf16.msra.mxu1 %v3623_v44  ;;  %v2656_v46 = vadd.f32 %v2616_v29, %v6805_v54  ;;  %v2853_v34 = vpop.f32.mrf.mxu2  ;;  %v3048_v24 = vadd.f32 %v3007_v38, %v2889_v16  ;;  %v6809_v16 = vld [vmem:[#allocation76_spill] sm:$0xff] }
 0x2e9   : > { %v6242_v45 = vadd.f32 %v5917_v57, %v3331_v35 }
 0x2ea   : > { %v2890_v17 = vadd.f32 %v2850_v28, %v2656_v46 }
 0x2eb   : > { %v3395_v19 = vpack.c.bf16 %v6242_v45, %v6239_v3 }
 0x2ec   : > { %3458 = vmatmul.bf16.gmra.mxu1 %v4213_v6 }
 0x2ed   : > { %3715 = vmatpush.bf16.msra.mxu1 %v3615_v60 }
 0x2ee   : > { %v3288_v40 = vpop.f32.mrf.mxu0 }
 0x2ef   : > { %v3332_v36 = vadd.f32 %v3288_v40, %v6147_v37  ;;  %v4267_v37 = vld [vmem:[%s6383_s3 + $0x34] sm:$0xf0]  ;;  %v3009_v51 = vpop.f32.mrf.mxu3  ;;  %v2619_v53 = vpop.f32.mrf.mxu1  ;;  %v6807_v40 = vld [vmem:[#allocation50_spill] sm:$0xff] }
 0x2f0   : > { %v4221_v13 = vor.u32 %v4267_v37, %v4220_v21  ;;  %v3049_v39 = vadd.f32 %v3009_v51, %v2890_v17  ;;  %v2855_v44 = vpop.f32.mrf.mxu2  ;;  %v2657_v59 = vadd.f32 %v2619_v53, %v6806_v58 }
 0x2f1   : > { %3716 = vmatpush.bf16.msra.mxu1 %v3607_v49  ;;  %v6262_v15 = vadd.f32 %v5917_v57, %v3332_v36 }
 0x2f2   : > { %v2891_v47 = vadd.f32 %v2853_v34, %v2657_v59 }
 0x2f6   : > { %v3290_v11 = vpop.f32.mrf.mxu0 }
 0x2f7   : > { %v3333_v4 = vadd.f32 %v3290_v11, %v3047_v31  ;;  %3693 = vmatmul.bf16.gmra.mxu3 %v6207_v56  ;;  %v3012_v63 = vpop.f32.mrf.mxu3  ;;  %v4260_v56 = vld [vmem:[%s6383_s3 + $0x4] sm:$0xf]  ;;  %v2621_v43 = vpop.f32.mrf.mxu1 }
 0x2f8   : > { %v4201_v26 = vor.u32 %v4260_v56, %v4198_v14  ;;  %v2658_v36 = vadd.f32 %v2621_v43, %v6807_v40  ;;  %v3050_v8 = vadd.f32 %v3012_v63, %v2891_v47  ;;  %v2858_v61 = vpop.f32.mrf.mxu2  ;;  %v4222_v43 = vld [vmem:[%s6383_s3 + $0x38] sm:$0xf0] }
 0x2f9   : > { %v6265_v50 = vadd.f32 %v5917_v57, %v3333_v4 }
 0x2fa   : > { %v2892_v60 = vadd.f32 %v2855_v44, %v2658_v36 }
 0x2fb   : > { %v3396_v22 = vpack.c.bf16 %v6265_v50, %v6262_v15 }
 0x2fc   : > { %3463 = vmatmul.bf16.gmra.mxu1 %v4221_v13 }
 0x2fe   : > { %v3293_v30 = vpop.f32.mrf.mxu0 }
 0x2ff   : > { %v3334_v25 = vadd.f32 %v3293_v30, %v3048_v24  ;;  %v3014_v27 = vpop.f32.mrf.mxu3  ;;  %v2624_v38 = vpop.f32.mrf.mxu1  ;;  %v6808_v30 = vld [vmem:[#allocation31_spill] sm:$0xff] }
 0x300   : > { %v3051_v10 = vadd.f32 %v3014_v27, %v2892_v60  ;;  %v2659_v48 = vadd.f32 %v2624_v38, %v6808_v30  ;;  %v2860_v32 = vpop.f32.mrf.mxu2 }
 0x301   : > { %v3370_v0 = vadd.f32 %v5917_v57, %v3334_v25 }
 0x302   : > { %v2893_v53 = vadd.f32 %v2858_v61, %v2659_v48 }
 0x306   : > { %v3295_v35 = vpop.f32.mrf.mxu0 }
 0x307   : > { %v3335_v20 = vadd.f32 %v3295_v35, %v3049_v39  ;;  %3698 = vmatmul.bf16.gmra.mxu3 %v4213_v6  ;;  %v4206_v6 = vld [vmem:[%s6383_s3 + $0x18] sm:$0xf0]  ;;  %v3017_v21 = vpop.f32.mrf.mxu3  ;;  %v2626_v28 = vpop.f32.mrf.mxu1  ;;  %v4264_v39 = vld [vmem:[%s6383_s3 + $0x24] sm:$0xf] }
 0x308   : > { %v4209_v37 = vor.u32 %v4262_v2, %v4206_v6  ;;  %v2660_v54 = vadd.f32 %v2626_v28, %v6809_v16  ;;  %v3052_v17 = vadd.f32 %v3017_v21, %v2893_v53 }
 0x309   : > { %v3371_v55 = vadd.f32 %v5917_v57, %v3335_v20 }
 0x30a   : > { %v2894_v34 = vadd.f32 %v2860_v32, %v2660_v54 }
 0x30b   : > { %v3397_v1 = vpack.c.bf16 %v3371_v55, %v3370_v0  ;;  %v4266_v55 = vld [vmem:[%s6383_s3 + $0x34] sm:$0xf] }
 0x30c   : > { %3717 = vmatmul.bf16.vlgmr.msra.gmra.mxu1 %v4201_v26  ;;  %v4225_v44 = vor.u32 %v4266_v55, %v4222_v43 }
 0x30e   : > { %v3298_v62 = vpop.f32.mrf.mxu0 }
 0x30f   : > { %v3336_v7 = vadd.f32 %v3298_v62, %v3050_v8  ;;  %v3019_v46 = vpop.f32.mrf.mxu3 }
 0x310   : > { %v3053_v24 = vadd.f32 %v3019_v46, %v2894_v34 }
 0x311   : > { %v3372_v29 = vadd.f32 %v5917_v57, %v3336_v7 }
 0x316   : > { %v3300_v49 = vpop.f32.mrf.mxu0 }
 0x317   : > { %v3337_v31 = vadd.f32 %v3300_v49, %v3051_v10  ;;  %3703 = vmatmul.bf16.gmra.mxu3 %v4221_v13  ;;  %v4214_v13 = vld [vmem:[%s6383_s3 + $0x28] sm:$0xf0] }
 0x318   : > { %v4217_v14 = vor.u32 %v4264_v39, %v4214_v13 }
 0x319   : > { %v3373_v11 = vadd.f32 %v5917_v57, %v3337_v31 }
 0x31b   : > { %v3398_v4 = vpack.c.bf16 %v3373_v11, %v3372_v29 }
 0x31c   : > { %3722 = vmatmul.bf16.gmra.mxu1 %v4209_v37 }
 0x31e   : > { %v3303_v51 = vpop.f32.mrf.mxu0 }
 0x31f   : > { %v3338_v63 = vadd.f32 %v3303_v51, %v3052_v17 }
 0x321   : > { %v3374_v35 = vadd.f32 %v5917_v57, %v3338_v63 }
 0x326   : > { %v3305_v25 = vpop.f32.mrf.mxu0 }
 0x327   : > { %v3339_v56 = vadd.f32 %v3305_v25, %v3053_v24 }
 0x329   : > { %v3375_v20 = vadd.f32 %v5917_v57, %v3339_v56 }
 0x32b   : > { %v3399_v0 = vpack.c.bf16 %v3375_v20, %v3374_v35 }
 0x32c   : > { %3727 = vmatmul.bf16.gmra.mxu1 %v4217_v14 }
 0x32d   : > { %3469 = vmatpush.bf16.msrb.mxu2 %v3399_v0 }
 0x331   : > { %3470 = vmatpush.bf16.msrb.mxu2 %v3398_v4 }
 0x335   : > { %3471 = vmatpush.bf16.msrb.mxu2 %v3397_v1 }
 0x339   : > { %3472 = vmatpush.bf16.msrb.mxu2 %v3396_v22 }
 0x33c   : > { %3732 = vmatmul.bf16.gmra.mxu1 %v4225_v44 }
 0x33d   : > { %3473 = vmatpush.bf16.msrb.mxu2 %v3395_v19 }
 0x341   : > { %3474 = vmatpush.bf16.msrb.mxu2 %v3394_v33 }
 0x345   : > { %3475 = vmatpush.bf16.msrb.mxu2 %v3393_v41 }
 0x349   : > { %3476 = vmatpush.bf16.msrb.mxu2 %v3392_v42  ;;  %v3449_v57 = vpop.f32.mrf.mxu1 }
 0x34c   : > { %3477 = vmatmul.bf16.vlgmr.msrb.gmra.mxu2 %v4201_v26 }
 0x34d   : > { %3776 = vmatpush.bf16.msra.mxu2 %v4269_v5 }
 0x351   : > { %v3451_v15 = vpop.f32.mrf.mxu1  ;;  %3777 = vmatpush.bf16.msra.mxu2 %v4268_v23 }
 0x359   : > { %v3454_v50 = vpop.f32.mrf.mxu1 }
 0x35c   : > { %3482 = vmatmul.bf16.gmra.mxu2 %v4209_v37 }
 0x361   : > { %v3456_v22 = vpop.f32.mrf.mxu1 }
 0x369   : > { %v3459_v3 = vpop.f32.mrf.mxu1 }
 0x36a   : > { %v3689_v12 = vpop.f32.mrf.mxu3 }
 0x36c   : > { %3487 = vmatmul.bf16.gmra.mxu2 %v4217_v14 }
 0x371   : > { %v6321_v45 = vpop.f32.mrf.mxu1 }
 0x372   : > { %v3691_v42 = vpop.f32.mrf.mxu3 }
 0x379   : > { %v6326_v9 = vpop.f32.mrf.mxu1 }
 0x37a   : > { %v3694_v52 = vpop.f32.mrf.mxu3 }
 0x37c   : > { %3492 = vmatmul.bf16.gmra.mxu2 %v4225_v44 }
 0x381   : > { %v6331_v18 = vpop.f32.mrf.mxu1 }
 0x382   : > { %v3696_v62 = vpop.f32.mrf.mxu3 }
 0x389   : > { %v3718_v41 = vpop.f32.mrf.mxu1 }
 0x38a   : > { %v3719_v19 = vadd.f32 %v3718_v41, %v3689_v12  ;;  %v3699_v40 = vpop.f32.mrf.mxu3 }
 0x391   : > { %v3720_v33 = vpop.f32.mrf.mxu1 }
 0x392   : > { %v3721_v26 = vadd.f32 %v3720_v33, %v3691_v42  ;;  %v3701_v8 = vpop.f32.mrf.mxu3 }
 0x394   : > { %v3738_v1 = vpack.c.bf16 %v3721_v26, %v3719_v19 }
 0x396   : > { %4234 = vmatmul.msk.bf16.vlgmr.msra.gmra.mxu2 %vm1279_vm5, %v3738_v1 }
 0x399   : > { %v3723_v27 = vpop.f32.mrf.mxu1 }
 0x39a   : > { %v3724_v59 = vadd.f32 %v3723_v27, %v3694_v52  ;;  %v3704_v6 = vpop.f32.mrf.mxu3 }
 0x3a1   : > { %v3725_v58 = vpop.f32.mrf.mxu1 }
 0x3a2   : > { %v3726_v47 = vadd.f32 %v3725_v58, %v3696_v62  ;;  %v3706_v49 = vpop.f32.mrf.mxu3 }
 0x3a4   : > { %v3739_v36 = vpack.c.bf16 %v3726_v47, %v3724_v59 }
 0x3a6   : > { %4235 = vmatmul.msk.bf16.gmra.mxu2 %vm1279_vm5, %v3739_v36 }
 0x3a9   : > { %v3728_v60 = vpop.f32.mrf.mxu1 }
 0x3aa   : > { %v3729_v10 = vadd.f32 %v3728_v60, %v3699_v40 }
 0x3b1   : > { %v3730_v38 = vpop.f32.mrf.mxu1 }
 0x3b2   : > { %v3731_v7 = vadd.f32 %v3730_v38, %v3701_v8 }
 0x3b4   : > { %v3740_v2 = vpack.c.bf16 %v3731_v7, %v3729_v10 }
 0x3b6   : > { %4236 = vmatmul.msk.bf16.gmra.mxu2 %vm1279_vm5, %v3740_v2 }
 0x3b9   : > { %v3733_v61 = vpop.f32.mrf.mxu1 }
 0x3ba   : > { %v3734_v21 = vadd.f32 %v3733_v61, %v3704_v6 }
 0x3c1   : > { %v3735_v31 = vpop.f32.mrf.mxu1 }
 0x3c2   : > { %v3736_v37 = vadd.f32 %v3735_v31, %v3706_v49 }
 0x3c4   : > { %v3741_v29 = vpack.c.bf16 %v3736_v37, %v3734_v21 }
 0x3c6   : > { %4237 = vmatmul.msk.bf16.gmra.mxu2 %vm1279_vm5, %v3741_v29  ;;  %vm3807_vm5 = vcmask 519168  }
 0x3cf   : > { %v3478_v11 = vpop.f32.mrf.mxu2 }
 0x3d0   : > { %v3479_v4 = vadd.f32 %v3478_v11, %v3449_v57 }
 0x3d2   : > { %v3498_v28 = vpack.c.bf16 %v3479_v4, %v3479_v4 }
 0x3d4   : > { %3507 = vst.msk [vmem:[%s6343_s15] sm:$0xf] %vm3506_vm4, %v3498_v28 }
 0x3d7   : > { %v3480_v51 = vpop.f32.mrf.mxu2 }
 0x3d8   : > { %v3481_v30 = vadd.f32 %v3480_v51, %v3451_v15 }
 0x3da   : > { %v3499_v48 = vpack.c.bf16 %v3481_v30, %v3481_v30 }
 0x3dc   : > { %3508 = vst.msk [vmem:[%s6343_s15 + $0x4] sm:$0xf] %vm3506_vm4, %v3499_v48 }
 0x3df   : > { %v3483_v32 = vpop.f32.mrf.mxu2 }
 0x3e0   : > { %v3484_v53 = vadd.f32 %v3483_v32, %v3454_v50 }
 0x3e2   : > { %v3500_v16 = vpack.c.bf16 %v3484_v53, %v3484_v53 }
 0x3e4   : > { %3509 = vst.msk [vmem:[%s6343_s15 + $0x8] sm:$0xf] %vm3506_vm4, %v3500_v16 }
 0x3e7   : > { %v3485_v54 = vpop.f32.mrf.mxu2 }
 0x3e8   : > { %v3486_v46 = vadd.f32 %v3485_v54, %v3456_v22 }
 0x3ea   : > { %v3501_v34 = vpack.c.bf16 %v3486_v46, %v3486_v46 }
 0x3ec   : > { %3510 = vst.msk [vmem:[%s6343_s15 + $0xc] sm:$0xf] %vm3506_vm4, %v3501_v34 }
 0x3ef   : > { %v3488_v17 = vpop.f32.mrf.mxu2 }
 0x3f0   : > { %v3489_v24 = vadd.f32 %v3488_v17, %v3459_v3 }
 0x3f2   : > { %v3502_v63 = vpack.c.bf16 %v3489_v24, %v3489_v24 }
 0x3f4   : > { %3511 = vst.msk [vmem:[%s6343_s15 + $0x10] sm:$0xf] %vm3506_vm4, %v3502_v63 }
 0x3f7   : > { %v3490_v39 = vpop.f32.mrf.mxu2 }
 0x3f8   : > { %v3491_v13 = vadd.f32 %v3490_v39, %v6321_v45 }
 0x3fa   : > { %v3503_v25 = vpack.c.bf16 %v3491_v13, %v3491_v13 }
 0x3fc   : > { %3512 = vst.msk [vmem:[%s6343_s15 + $0x14] sm:$0xf] %vm3506_vm4, %v3503_v25 }
 0x3ff   : > { %v3493_v56 = vpop.f32.mrf.mxu2 }
 0x400   : > { %v3494_v14 = vadd.f32 %v3493_v56, %v6326_v9 }
 0x402   : > { %v3504_v35 = vpack.c.bf16 %v3494_v14, %v3494_v14 }
 0x404   : > { %3513 = vst.msk [vmem:[%s6343_s15 + $0x18] sm:$0xf] %vm3506_vm4, %v3504_v35 }
 0x407   : > { %v3495_v20 = vpop.f32.mrf.mxu2 }
 0x408   : > { %v3496_v0 = vadd.f32 %v3495_v20, %v6331_v18 }
 0x40a   : > { %v3505_v55 = vpack.c.bf16 %v3496_v0, %v3496_v0 }
 0x40c   : > { %3514 = vst.msk [vmem:[%s6343_s15 + $0x1c] sm:$0xf] %vm3506_vm4, %v3505_v55 }
 0x419   : > { %v3779_v43 = vpop.f32.mrf.mxu2 }
 0x41a   : > { %v3799_v44 = vpack.c.bf16 %v3779_v43, %v3779_v43 }
 0x41c   : > { %3808 = vst.msk [vmem:[%s264_s18] sm:$0xf] %vm3807_vm5, %v3799_v44 }
 0x421   : > { %v3781_v57 = vpop.f32.mrf.mxu2 }
 0x422   : > { %v3800_v15 = vpack.c.bf16 %v3781_v57, %v3781_v57 }
 0x424   : > { %3809 = vst.msk [vmem:[%s264_s18 + $0x4] sm:$0xf] %vm3807_vm5, %v3800_v15 }
 0x429   : > { %v3784_v50 = vpop.f32.mrf.mxu2 }
 0x42a   : > { %v3801_v22 = vpack.c.bf16 %v3784_v50, %v3784_v50 }
 0x42c   : > { %3810 = vst.msk [vmem:[%s264_s18 + $0x8] sm:$0xf] %vm3807_vm5, %v3801_v22 }
 0x431   : > { %v3786_v3 = vpop.f32.mrf.mxu2 }
 0x432   : > { %v3802_v45 = vpack.c.bf16 %v3786_v3, %v3786_v3 }
 0x434   : > { %3811 = vst.msk [vmem:[%s264_s18 + $0xc] sm:$0xf] %vm3807_vm5, %v3802_v45 }
 0x439   : > { %v3789_v5 = vpop.f32.mrf.mxu2 }
 0x43a   : > { %v3803_v9 = vpack.c.bf16 %v3789_v5, %v3789_v5 }
 0x43c   : > { %3812 = vst.msk [vmem:[%s264_s18 + $0x10] sm:$0xf] %vm3807_vm5, %v3803_v9 }
 0x441   : > { %v3791_v12 = vpop.f32.mrf.mxu2 }
 0x442   : > { %v3804_v23 = vpack.c.bf16 %v3791_v12, %v3791_v12 }
 0x444   : > { %3813 = vst.msk [vmem:[%s264_s18 + $0x14] sm:$0xf] %vm3807_vm5, %v3804_v23 }
 0x449   : > { %v3794_v18 = vpop.f32.mrf.mxu2 }
 0x44a   : > { %v3805_v42 = vpack.c.bf16 %v3794_v18, %v3794_v18 }
 0x44c   : > { %3814 = vst.msk [vmem:[%s264_s18 + $0x18] sm:$0xf] %vm3807_vm5, %v3805_v42 }
 0x451   : > { %v3796_v41 = vpop.f32.mrf.mxu2 }
 0x452   : > { %v3806_v52 = vpack.c.bf16 %v3796_v41, %v3796_v41 }
 0x454   : > { %3815 = vst.msk [vmem:[%s264_s18 + $0x1c] sm:$0xf] %vm3807_vm5, %v3806_v52 }
 0x455 PF: > { %s17_s21 = sadd.s32 1, %s4400_s21  }
 0x456   : > { %p14_p4 = scmp.ge.s32.totalorder %s17_s21, 4  }
 0x458   :  { %16 = sbr.rel (!%p14_p4) target bundleno = 1 (0x1), region = 90 }

// kernel: star_discriminator_forward.10
= control target key start
LH: loop header
LB: loop body
LE: loop exit
PB: predicated region body
PF: predicated region fallthrough
CT: control target
= control target key end

     0   :  { %s1266_s15 = smov 0   ;;  %s1501_s0 = inlined_call_operand.vmem [shape: bf16[2,26,64], index: 0, kind: input, shape index: {}]   ;;  %s1502_s1 = inlined_call_operand.vmem [shape: bf16[9,64,64], index: 1, kind: input, shape index: {}]   ;;  %s1503_s2 = inlined_call_operand.vmem [shape: f32[1,64], index: 2, kind: input, shape index: {}]   ;;  %s1504_s3 = inlined_call_operand.vmem [shape: bf16[2,16,64], index: 3, kind: input, shape index: {}]   ;;  %s1505_s4 = inlined_call_operand.vmem [shape: bf16[2,16,64], index: 4, kind: output, shape index: {}]  }
   0x1 LB: > { %s941_s16 = sadd.s32 4294967295, %s1238_s15   ;;  %p945_p0 = scmp.ge.s32.totalorder %s1238_s15, 1  ;;  %s1238_s15 = sphi %s1266_s15, %s14_s15  }
   0x2   : > { %p172_p1 = scmp.lt.s32.totalorder %s1238_s15, 3 }
   0x4   : > { %p173_p2 = pnand %p945_p0, %p172_p1 }
   0x5   : > { %p203_p3 = scmp.lt.s32.totalorder (!%p173_p2), %s941_s16, 1 }
   0x6   : > { %176 = sbr.rel (%p173_p2) target bundleno = 209 (0xd1), region = 36 }
   0xb   : > { %v1189_v0 = vld [vmem:[%s1502_s1 + $0x58] sm:$0xff]  ;;  %v239_v3 = vlaneseq  ;;  %v1188_v5 = vld [vmem:[%s1502_s1 + $0x50] sm:$0xff]  ;;  %s1507_s16 = smov (!%p203_p3, %s941_s16), 1  ;;  %v1187_v12 = vld [vmem:[%s1502_s1 + $0x48] sm:$0xff]  ;;  %vm398_vm0 = vcmask 1041408   ;;  %vm470_vm1 = vcmask 1043456  }
   0xc   : > { %v1185_v1 = vld [vmem:[%s1502_s1 + $0x38] sm:$0xff]  ;;  %456 = vmatpush.bf16.msra.mxu2 %v1189_v0  ;;  %v1184_v6 = vld [vmem:[%s1502_s1 + $0x30] sm:$0xff]  ;;  %s1175_s7 = sshll.u32 %s1507_s16, 4  ;;  %v1183_v13 = vld [vmem:[%s1502_s1 + $0x28] sm:$0xff]  ;;  %v1240_v22 = vmov 0.0   ;;  %vm337_vm4 = vcmask 523264  }
   0xd   : > { %v1181_v2 = vld [vmem:[%s1502_s1 + $0x18] sm:$0xff]  ;;  %345 = vmatpush.bf16.msra.mxu0 %v1185_v1  ;;  %v240_v7 = vshrl.u32 %v239_v3, 7  ;;  %v1180_v8 = vld [vmem:[%s1502_s1 + $0x10] sm:$0xff]  ;;  %s1310_s14 = scalar_lea.vmem %s1501_s0, %s1175_s7  ;;  %v1179_v17 = vld [vmem:[%s1502_s1 + $0x8] sm:$0xff]  ;;  %vm421_vm10 = vcmask 1046528   ;;  %vm493_vm12 = vcmask 1045504  }
   0xe   : > { %v1193_v4 = vld [vmem:[%s1502_s1 + $0x78] sm:$0xff]  ;;  %386 = vmatpush.bf16.msra.mxu1 %v1181_v2  ;;  %v1192_v9 = vld [vmem:[%s1502_s1 + $0x70] sm:$0xff]  ;;  %v1215_v14 = vld [vmem:[%s1310_s14] sm:$0xff]   ;;  %vm300_vm11 = vsmask.f32 7424  ;;  %vm625_vm14 = vcmask 1044480  }
   0xf   : > { %528 = vmatpush.bf16.msra.mxu3 %v1193_v4  ;;  %v241_v10 = vadd.s32 8, %v240_v7  ;;  %v246_v11 = vand.u32 3, %v240_v7  ;;  %v221_v15 = vld [vmem:[%s1310_s14 + $0x8] sm:$0xf]  ;;  %v1216_v19 = vunpack.c.l.bf16 %v1215_v14  ;;  %v1217_v20 = vunpack.c.h.bf16 %v1215_v14  ;;  %v1186_v24 = vld [vmem:[%s1502_s1 + $0x40] sm:$0xff]  ;;  %v1197_v43 = vld [vmem:[%s1502_s1 + $0x98] sm:$0xff] }
  0x10   : > { %457 = vmatpush.bf16.msra.mxu2 %v1188_v5  ;;  %v1191_v18 = vld [vmem:[%s1502_s1 + $0x68] sm:$0xff]  ;;  %v225_v21 = vunpack.c.l.bf16 %v221_v15  ;;  %v1182_v27 = vld [vmem:[%s1502_s1 + $0x20] sm:$0xff]  ;;  %v1205_v48 = vld [vmem:[%s1502_s1 + $0xd8] sm:$0xff]  ;;  %vm549_vm15 = vsmask.f32 5376  ;;  %s1176_s22 = sshll.u32 %s1507_s16, 3 }
  0x11   : > { %346 = vmatpush.bf16.msra.mxu0 %v1184_v6  ;;  %v253_v16 = vand.u32 3, %v241_v10  ;;  %vm272_vm2 = vcmp.ne.s32.totalorder %v246_v11, 3  ;;  %vm266_vm3 = vcmp.ne.s32.totalorder %v246_v11, 0  ;;  %vm227_vm7 = vcmp.gt.f32.partialorder %v1216_v19, 0.0  ;;  %v1178_v33 = vld [vmem:[%s1502_s1] sm:$0xff]  ;;  %v1209_v49 = vld [vmem:[%s1502_s1 + $0xf8] sm:$0xff]  ;;  %s212_s25 = scalar_lea.vmem %s1504_s3, %s1176_s22  ;;  %s217_s28 = scalar_lea.vmem %s1505_s4, %s1176_s22 }
  0x12   : > { %387 = vmatpush.bf16.msra.mxu1 %v1180_v8  ;;  %v1320_v23 = vsel %vm272_vm2, 1.0, %v1240_v22  ;;  %v1328_v26 = vsel %vm266_vm3, 1.0, %v1240_v22  ;;  %vm228_vm8 = vcmp.gt.f32.partialorder %v1217_v20, 0.0  ;;  %vm229_vm9 = vcmp.gt.f32.partialorder %v225_v21, 0.0  ;;  %v1190_v34 = vld [vmem:[%s1502_s1 + $0x60] sm:$0xff]  ;;  %v1201_v57 = vld [vmem:[%s1502_s1 + $0xb8] sm:$0xff] }
  0x13   : > { %529 = vmatpush.bf16.msra.mxu3 %v1192_v9  ;;  %vm273_vm5 = vcmp.ne.s32.totalorder %v253_v16, 3  ;;  %v1326_v25 = vrot.slane %v1320_v23, 6  ;;  %vm267_vm6 = vcmp.ne.s32.totalorder %v253_v16, 0  ;;  %v231_v28 = vmul.f32 0.2, %v1216_v19  ;;  %v1196_v62 = vld [vmem:[%s1502_s1 + $0x90] sm:$0xff] }
  0x14   : > { %458 = vmatpush.bf16.msra.mxu2 %v1187_v12  ;;  %v232_v29 = vmul.f32 0.2, %v1217_v20  ;;  %v233_v30 = vmul.f32 0.2, %v225_v21  ;;  %v1333_v31 = vsel %vm273_vm5, 1.0, %v1240_v22  ;;  %v1335_v32 = vsel %vm267_vm6, 1.0, %v1240_v22 }
  0x15   : > { %347 = vmatpush.bf16.msra.mxu0 %v1183_v13  ;;  %v1343_v35 = vsel %vm227_vm7, %v1216_v19, %v231_v28  ;;  %v1346_v36 = vrot.slane %v1333_v31, 6  ;;  %v471_v37 = vrot.slane %v1328_v26, 4  ;;  %v472_v38 = vrot.slane %v1335_v32, 4  ;;  %v1208_v3 = vld [vmem:[%s1502_s1 + $0xf0] sm:$0xff]  ;;  %v1195_v14 = vld [vmem:[%s1502_s1 + $0x88] sm:$0xff] }
  0x16   : > { %388 = vmatpush.bf16.msra.mxu1 %v1179_v17  ;;  %v1351_v39 = vsel %vm228_vm8, %v1217_v20, %v232_v29  ;;  %v1354_v40 = vsel %vm229_vm9, %v225_v21, %v233_v30  ;;  %v405_v41 = vmul.f32 %v1326_v25, %v1343_v35  ;;  %v278_v42 = vmul.f32 %v1328_v26, %v1343_v35  ;;  %v1204_v7 = vld [vmem:[%s1502_s1 + $0xd0] sm:$0xff]  ;;  %v222_v15 = vld [vmem:[%s1310_s14 + $0xc] sm:$0x1] }
  0x17   : > { %530 = vmatpush.bf16.msra.mxu3 %v1191_v18  ;;  %v1366_v44 = vsel %vm398_vm0, %v1326_v25, %v1346_v36  ;;  %v407_v45 = vmul.f32 %v1346_v36, %v1354_v40  ;;  %v1372_v46 = vpack.c.bf16 %v1351_v39, %v1343_v35  ;;  %v1376_v47 = vpack.c.bf16 %v1354_v40, %v1354_v40  ;;  %v1200_v10 = vld [vmem:[%s1502_s1 + $0xb0] sm:$0xff]  ;;  %v1203_v20 = vld [vmem:[%s1502_s1 + $0xc8] sm:$0xff] }
  0x18   : > { %459 = vmatpush.bf16.msra.mxu2 %v1186_v24  ;;  %v406_v50 = vmul.f32 %v1366_v44, %v1351_v39  ;;  %v279_v51 = vmul.f32 %v1335_v32, %v1351_v39  ;;  %v603_v52 = vrot.slane %v1320_v23, 2  ;;  %v473_v60 = vsel %vm470_vm1, %v471_v37, %v472_v38  ;;  %v1207_v21 = vld [vmem:[%s1502_s1 + $0xe8] sm:$0xff] }
  0x19   : > { %348 = vmatpush.bf16.msra.mxu0 %v1182_v27  ;;  %v418_v53 = vpack.c.bf16 %v407_v45, %v407_v45  ;;  %v302_v54 = vshrl.u32 %v1372_v46, 16  ;;  %v304_v55 = vshll.u32 %v1372_v46, 16  ;;  %v309_v56 = vshll.u32 %v1376_v47, 16  ;;  %v1199_v23 = vld [vmem:[%s1502_s1 + $0xa8] sm:$0xff]  ;;  %v1198_v45 = vld [vmem:[%s1502_s1 + $0xa0] sm:$0xff]  ;;  %v1212_v46 = vld [vmem:[%s1502_s1 + $0x110] sm:$0xff] }
  0x1a   : > { %389 = vmatpush.bf16.msra.mxu1 %v1178_v33  ;;  %v417_v58 = vpack.c.bf16 %v406_v50, %v405_v41  ;;  %v288_v59 = vpack.c.bf16 %v279_v51, %v278_v42  ;;  %v477_v61 = vmul.f32 %v471_v37, %v1343_v35  ;;  %v478_v2 = vmul.f32 %v473_v60, %v1351_v39  ;;  %v1206_v37 = vld [vmem:[%s1502_s1 + $0xe0] sm:$0xff] }
  0x1b   : > { %531 = vmatpush.bf16.msra.mxu3 %v1190_v34  ;;  %v423_v63 = vrot.slane %v418_v53, 1  ;;  %v306_v0 = vrot.slane %v304_v55, 1  ;;  %v311_v1 = vrot.slane %v309_v56, 1  ;;  %v479_v5 = vmul.f32 %v472_v38, %v1354_v40  ;;  %v1213_v34 = vld [vmem:[%s1502_s1 + $0x118] sm:$0xff] }
  0x1c   : > { %715 = vmatpush.bf16.msrb.mxu2 %v1205_v48  ;;  %v422_v4 = vrot.slane %v417_v58, 1  ;;  %v604_v6 = vrot.slane %v1333_v31, 2  ;;  %v489_v9 = vpack.c.bf16 %v478_v2, %v477_v61  ;;  %v553_v22 = vshrl.u32 %v1376_v47, 16  ;;  %v1194_v31 = vld [vmem:[%s1502_s1 + $0x80] sm:$0xff] }
  0x1d   : > { %590 = vmatpush.bf16.msrb.mxu0 %v1197_v43  ;;  %997 = vmatmul.msk.bf16.vlgmr.msra.gmra.mxu1 %vm337_vm4, %v288_v59  ;;  %v307_v8 = vor.u32 %v306_v0, %v302_v54  ;;  %v490_v12 = vpack.c.bf16 %v479_v5, %v479_v5  ;;  %v226_v24 = vunpack.c.l.bf16 %v222_v15  ;;  %v736_v27 = vpack.c.bf16 %v1354_v40, %v1351_v39 }
  0x1e   : > { %660 = vmatpush.bf16.msrb.mxu1 %v1201_v57  ;;  %v424_v11 = vsel %vm421_vm10, %v422_v4, %v423_v63  ;;  %v605_v13 = vsel %vm493_vm12, %v603_v52, %v604_v6  ;;  %v494_v17 = vrot.slane %v489_v9, 2  ;;  %v609_v28 = vmul.f32 %v603_v52, %v1343_v35  ;;  %v1202_v35 = vld [vmem:[%s1502_s1 + $0xc0] sm:$0xff] }
  0x1f   : > { %781 = vmatpush.bf16.msrb.mxu3 %v1209_v49  ;;  %1022 = vmatmul.msk.bf16.vlgmr.msra.gmra.mxu2 %vm337_vm4, %v424_v11  ;;  %v312_v16 = vsel %vm300_vm11, %v307_v8, %v311_v1  ;;  %v495_v18 = vrot.slane %v490_v12, 2  ;;  %v610_v19 = vmul.f32 %v605_v13, %v1351_v39  ;;  %v611_v29 = vmul.f32 %v604_v6, %v1354_v40  ;;  %v1210_v1 = vld [vmem:[%s1502_s1 + $0x100] sm:$0xff] }
  0x20   : > { %980 = vmatmul.msk.bf16.vlgmr.msra.gmra.mxu0 %vm337_vm4, %v312_v16  ;;  %716 = vmatpush.bf16.msrb.mxu2 %v1204_v7  ;;  %vm230_vm13 = vcmp.gt.f32.partialorder %v226_v24, 0.0  ;;  %v234_v33 = vmul.f32 0.2, %v226_v24  ;;  %v550_v38 = vrot.slane %v302_v54, 2  ;;  %v741_v41 = vshll.u32 %v736_v27, 16 }
  0x21   : > { %591 = vmatpush.bf16.msrb.mxu0 %v1196_v62  ;;  %v496_v30 = vsel %vm493_vm12, %v494_v17, %v495_v18  ;;  %v621_v42 = vpack.c.bf16 %v610_v19, %v609_v28  ;;  %v622_v43 = vpack.c.bf16 %v611_v29, %v611_v29  ;;  %v551_v48 = vrot.slane %v304_v55, 3 }
  0x22   : > { %661 = vmatpush.bf16.msrb.mxu1 %v1200_v10  ;;  %1047 = vmatmul.msk.bf16.vlgmr.msra.gmra.mxu3 %vm337_vm4, %v496_v30  ;;  %v555_v49 = vrot.slane %v553_v22, 2  ;;  %v556_v50 = vrot.slane %v309_v56, 3  ;;  %v238_v51 = vsel %vm230_vm13, %v226_v24, %v234_v33  ;;  %v672_v54 = vmul.f32 %v1328_v26, %v1351_v39  ;;  %v1219_v33 = vld [vmem:[%s212_s25] sm:$0xff]  }
  0x23   : > { %782 = vmatpush.bf16.msrb.mxu3 %v1208_v3  ;;  %v737_v52 = vpack.c.bf16 %v238_v51, %v238_v51  ;;  %v626_v53 = vrot.slane %v621_v42, 3  ;;  %v673_v57 = vmul.f32 %v1335_v32, %v1354_v40  ;;  %v627_v58 = vrot.slane %v622_v43, 3  ;;  %v1211_v32 = vld [vmem:[%s1502_s1 + $0x108] sm:$0xff] }
  0x24   : > { %717 = vmatpush.bf16.msrb.mxu2 %v1203_v20  ;;  %v739_v47 = vshrl.u32 %v736_v27, 16  ;;  %v743_v55 = vrot.slane %v741_v41, 1  ;;  %v552_v59 = vor.u32 %v551_v48, %v550_v38  ;;  %v557_v60 = vor.u32 %v556_v50, %v555_v49 }
  0x25   : > { %592 = vmatpush.bf16.msrb.mxu0 %v1195_v14  ;;  %v746_v56 = vshll.u32 %v737_v52, 16  ;;  %v628_v61 = vsel %vm625_vm14, %v626_v53, %v627_v58  ;;  %v683_v26 = vpack.c.bf16 %v673_v57, %v672_v54  ;;  %v794_v3 = vmul.f32 %v1366_v44, %v1354_v40 }
  0x26   : > { %662 = vmatpush.bf16.msrb.mxu1 %v1199_v23  ;;  %v744_v62 = vor.u32 %v743_v55, %v739_v47  ;;  %v558_v0 = vsel %vm549_vm15, %v552_v59, %v557_v60  ;;  %v795_v4 = vmul.f32 %v1346_v36, %v238_v51  ;;  %v793_v5 = vmul.f32 %v1326_v25, %v1351_v39 }
  0x27   : > { %783 = vmatpush.bf16.msrb.mxu3 %v1207_v21  ;;  %v748_v63 = vrot.slane %v746_v56, 1  ;;  %v1220_v43 = vunpack.c.l.bf16 %v1219_v33  ;;  %vm871_vm0 = vcmask 519168   ;;  %v1221_v58 = vunpack.c.h.bf16 %v1219_v33 }
  0x28   : > { %718 = vmatpush.bf16.msrb.mxu2 %v1202_v35  ;;  %v805_v6 = vpack.c.bf16 %v794_v3, %v793_v5  ;;  %v806_v7 = vpack.c.bf16 %v795_v4, %v795_v4 }
  0x29   : > { %593 = vmatpush.bf16.msrb.mxu0 %v1194_v31  ;;  %v749_v2 = vsel %vm300_vm11, %v744_v62, %v748_v63 }
  0x2a   : > { %663 = vmatpush.bf16.msrb.mxu1 %v1198_v45  ;;  %v809_v8 = vrot.slane %v805_v6, 1  ;;  %v810_v9 = vrot.slane %v806_v7, 1 }
  0x2b   : > { %784 = vmatpush.bf16.msrb.mxu3 %v1206_v37  ;;  %v1231_v37 = vld [vmem:[%s1503_s2] ss:$0 sm:$0xff] }
  0x2c   : > { %v811_v10 = vsel %vm421_vm10, %v809_v8, %v810_v9 }
  0x2d   : > { %843 = vmatpush.bf16.msra.mxu0 %v1213_v34  ;;  %1097 = vmatmul.msk.bf16.vlgmr.msrb.gmra.mxu1 %vm337_vm4, %v628_v61 }
  0x2f   : > { %1122 = vmatmul.msk.bf16.vlgmr.msrb.gmra.mxu2 %vm337_vm4, %v683_v26 }
  0x30   : > { %1072 = vmatmul.msk.bf16.vlgmr.msrb.gmra.mxu0 %vm337_vm4, %v558_v0 }
  0x31   : > { %844 = vmatpush.bf16.msra.mxu0 %v1212_v46 }
  0x32   : > { %1147 = vmatmul.msk.bf16.vlgmr.msrb.gmra.mxu3 %vm337_vm4, %v749_v2 }
  0x35   : > { %845 = vmatpush.bf16.msra.mxu0 %v1211_v32 }
  0x39   : > { %846 = vmatpush.bf16.msra.mxu0 %v1210_v1 }
  0x40   : > { %1172 = vmatmul.msk.bf16.vlgmr.msra.gmra.mxu0 %vm337_vm4, %v811_v10 }
  0x9a   : > { %v391_v12 = vpop.f32.mrf.mxu1 }
  0x9d   : > { %v350_v11 = vpop.f32.mrf.mxu0 }
  0x9e   : > { %v392_v14 = vadd.f32 %v391_v12, %v350_v11 }
  0xa2   : > { %v461_v13 = vpop.f32.mrf.mxu2  ;;  %v393_v44 = vpop.f32.mrf.mxu1 }
  0xa3   : > { %v466_v25 = vadd.f32 %v461_v13, %v392_v14 }
  0xa5   : > { %v352_v40 = vpop.f32.mrf.mxu0  ;;  %v533_v36 = vpop.f32.mrf.mxu3 }
  0xa6   : > { %v538_v16 = vadd.f32 %v533_v36, %v466_v25  ;;  %v394_v19 = vadd.f32 %v393_v44, %v352_v40 }
  0xaa   : > { %v463_v39 = vpop.f32.mrf.mxu2  ;;  %v665_v18 = vpop.f32.mrf.mxu1 }
  0xab   : > { %v467_v21 = vadd.f32 %v463_v39, %v394_v19 }
  0xad   : > { %v595_v15 = vpop.f32.mrf.mxu0  ;;  %v535_v17 = vpop.f32.mrf.mxu3 }
  0xae   : > { %v600_v20 = vadd.f32 %v595_v15, %v538_v16  ;;  %v539_v27 = vadd.f32 %v535_v17, %v467_v21 }
  0xb0   : > { %v670_v23 = vadd.f32 %v665_v18, %v600_v20 }
  0xb2   : > { %v720_v22 = vpop.f32.mrf.mxu2  ;;  %v667_v31 = vpop.f32.mrf.mxu1 }
  0xb3   : > { %v725_v29 = vadd.f32 %v720_v22, %v670_v23 }
  0xb5   : > { %v597_v24 = vpop.f32.mrf.mxu0  ;;  %v786_v28 = vpop.f32.mrf.mxu3 }
  0xb6   : > { %v601_v30 = vadd.f32 %v597_v24, %v539_v27  ;;  %v791_v34 = vadd.f32 %v786_v28, %v725_v29 }
  0xb8   : > { %v671_v35 = vadd.f32 %v667_v31, %v601_v30 }
  0xba   : > { %v722_v38 = vpop.f32.mrf.mxu2 }
  0xbb   : > { %v726_v45 = vadd.f32 %v722_v38, %v671_v35 }
  0xbd   : > { %v848_v41 = vpop.f32.mrf.mxu0  ;;  %v788_v49 = vpop.f32.mrf.mxu3 }
  0xbe   : > { %v853_v42 = vadd.f32 %v848_v41, %v791_v34  ;;  %v792_v51 = vadd.f32 %v788_v49, %v726_v45 }
  0xc0   : > { %v859_v48 = vadd.f32 %v1231_v37, %v853_v42 }
  0xc2   : > { %v865_v50 = vadd.f32 %v1220_v43, %v859_v48 }
  0xc4   : > { %v867_v52 = vmul.f32 0.70710677, %v865_v50 }
  0xc5   : > { %v850_v53 = vpop.f32.mrf.mxu0 }
  0xc6   : > { %v869_v54 = vpack.c.bf16 %v867_v52, %v867_v52  ;;  %v854_v57 = vadd.f32 %v850_v53, %v792_v51 }
  0xc8   : > { %872 = vst.msk [vmem:[%s217_s28] sm:$0xf] %vm871_vm0, %v869_v54  ;;  %v860_v46 = vadd.f32 %v1231_v37, %v854_v57 }
  0xca   : > { %v866_v47 = vadd.f32 %v1221_v58, %v860_v46 }
  0xcc   : > { %v868_v55 = vmul.f32 0.70710677, %v866_v47 }
  0xce   : > { %v870_v56 = vpack.c.bf16 %v868_v55, %v868_v55 }
  0xd0   : > { %873 = vst.msk [vmem:[%s217_s28 + $0x4] sm:$0xf] %vm871_vm0, %v870_v56 }
  0xd1 PF: > { %s14_s15 = sadd.s32 1, %s1238_s15  }
  0xd2   : > { %p11_p4 = scmp.ge.s32.totalorder %s14_s15, 4  }
  0xd4   :  { %13 = sbr.rel (!%p11_p4) target bundleno = 1 (0x1), region = 77 }

// kernel: star_discriminator_forward.11
= control target key start
LH: loop header
LB: loop body
LE: loop exit
PB: predicated region body
PF: predicated region fallthrough
CT: control target
= control target key end

     0   :  { %vm721_vm3 = vcmask 523264   ;;  %vm738_vm4 = vcmask 1024   ;;  %s1333_s1 = inlined_call_operand.vmem [shape: bf16[1024,64], index: 1, kind: input, shape index: {}]   ;;  %s1334_s0 = inlined_call_operand.vmem [shape: bf16[2,1024], index: 0, kind: input, shape index: {}]   ;;  %s1335_s2 = inlined_call_operand.vmem [shape: f32[1,64], index: 2, kind: input, shape index: {}]   ;;  %s1336_s3 = inlined_call_operand.vmem [shape: bf16[64,1], index: 3, kind: input, shape index: {}]   ;;  %s1337_s4 = inlined_call_operand.<no memory space> [shape: f32[1,1], index: 4, kind: input, shape index: {}]   ;;  %s1338_s5 = inlined_call_operand.vmem [shape: f32[2,1], index: 5, kind: output, shape index: {}]  }
   0x1   :  { %v1024_v0 = vld [vmem:[%s1333_s1 + $0x38] sm:$0xff]  ;;  %v1023_v4 = vld [vmem:[%s1333_s1 + $0x30] sm:$0xff]  ;;  %v1022_v8 = vld [vmem:[%s1333_s1 + $0x28] sm:$0xff] }
   0x2   :  { %v1032_v1 = vld [vmem:[%s1333_s1 + $0x78] sm:$0xff]  ;;  %577 = vmatpush.bf16.msra.mxu0 %v1024_v0  ;;  %v1031_v5 = vld [vmem:[%s1333_s1 + $0x70] sm:$0xff]  ;;  %v1030_v9 = vld [vmem:[%s1333_s1 + $0x68] sm:$0xff] }
   0x3   :  { %v1040_v2 = vld [vmem:[%s1333_s1 + $0xb8] sm:$0xff]  ;;  %590 = vmatpush.bf16.msra.mxu1 %v1032_v1  ;;  %v1039_v6 = vld [vmem:[%s1333_s1 + $0xb0] sm:$0xff]  ;;  %v1038_v10 = vld [vmem:[%s1333_s1 + $0xa8] sm:$0xff] }
   0x4   :  { %v1048_v3 = vld [vmem:[%s1333_s1 + $0xf8] sm:$0xff]  ;;  %603 = vmatpush.bf16.msra.mxu2 %v1040_v2  ;;  %v1047_v7 = vld [vmem:[%s1333_s1 + $0xf0] sm:$0xff]  ;;  %v1046_v11 = vld [vmem:[%s1333_s1 + $0xe8] sm:$0xff] }
   0x5   :  { %616 = vmatpush.bf16.msra.mxu3 %v1048_v3  ;;  %v1021_v12 = vld [vmem:[%s1333_s1 + $0x20] sm:$0xff]  ;;  %v1020_v17 = vld [vmem:[%s1333_s1 + $0x18] sm:$0xff]  ;;  %v1019_v24 = vld [vmem:[%s1333_s1 + $0x10] sm:$0xff] }
   0x6   :  { %578 = vmatpush.bf16.msra.mxu0 %v1023_v4  ;;  %v1029_v13 = vld [vmem:[%s1333_s1 + $0x60] sm:$0xff]  ;;  %v1028_v18 = vld [vmem:[%s1333_s1 + $0x58] sm:$0xff]  ;;  %v1027_v25 = vld [vmem:[%s1333_s1 + $0x50] sm:$0xff] }
   0x7   :  { %591 = vmatpush.bf16.msra.mxu1 %v1031_v5  ;;  %v1037_v14 = vld [vmem:[%s1333_s1 + $0xa0] sm:$0xff]  ;;  %v1036_v20 = vld [vmem:[%s1333_s1 + $0x98] sm:$0xff]  ;;  %v1035_v27 = vld [vmem:[%s1333_s1 + $0x90] sm:$0xff] }
   0x8   :  { %604 = vmatpush.bf16.msra.mxu2 %v1039_v6  ;;  %v1045_v15 = vld [vmem:[%s1333_s1 + $0xe0] sm:$0xff]  ;;  %v1044_v21 = vld [vmem:[%s1333_s1 + $0xd8] sm:$0xff]  ;;  %v1043_v28 = vld [vmem:[%s1333_s1 + $0xd0] sm:$0xff] }
   0x9   :  { %617 = vmatpush.bf16.msra.mxu3 %v1047_v7  ;;  %v23_v16 = vld [vmem:[%s1334_s0] sm:$0xff]  ;;  %v1018_v30 = vld [vmem:[%s1333_s1 + $0x8] sm:$0xff]  ;;  %v1056_v39 = vld [vmem:[%s1333_s1 + $0x138] sm:$0xff] }
   0xa   :  { %579 = vmatpush.bf16.msra.mxu0 %v1022_v8  ;;  %v24_v19 = vunpack.c.l.bf16 %v23_v16  ;;  %v25_v22 = vunpack.c.h.bf16 %v23_v16  ;;  %v1026_v31 = vld [vmem:[%s1333_s1 + $0x48] sm:$0xff]  ;;  %v1017_v35 = vld [vmem:[%s1333_s1] sm:$0xff]  ;;  %v1064_v40 = vld [vmem:[%s1333_s1 + $0x178] sm:$0xff] }
   0xb   :  { %592 = vmatpush.bf16.msra.mxu1 %v1030_v9  ;;  %v1034_v33 = vld [vmem:[%s1333_s1 + $0x88] sm:$0xff]  ;;  %v1025_v36 = vld [vmem:[%s1333_s1 + $0x40] sm:$0xff]  ;;  %v1072_v45 = vld [vmem:[%s1333_s1 + $0x1b8] sm:$0xff] }
   0xc   :  { %605 = vmatpush.bf16.msra.mxu2 %v1038_v10  ;;  %vm26_vm0 = vcmp.gt.f32.partialorder %v24_v19, 0.0  ;;  %v28_v23 = vmul.f32 0.2, %v24_v19  ;;  %vm27_vm1 = vcmp.gt.f32.partialorder %v25_v22, 0.0  ;;  %v29_v29 = vmul.f32 0.2, %v25_v22 }
   0xd   :  { %618 = vmatpush.bf16.msra.mxu3 %v1046_v11  ;;  %v1042_v34 = vld [vmem:[%s1333_s1 + $0xc8] sm:$0xff]  ;;  %v1033_v37 = vld [vmem:[%s1333_s1 + $0x80] sm:$0xff]  ;;  %v1080_v46 = vld [vmem:[%s1333_s1 + $0x1f8] sm:$0xff] }
   0xe   :  { %580 = vmatpush.bf16.msra.mxu0 %v1021_v12  ;;  %v30_v26 = vsel %vm26_vm0, %v24_v19, %v28_v23  ;;  %v31_v32 = vsel %vm27_vm1, %v25_v22, %v29_v29  ;;  %v1041_v38 = vld [vmem:[%s1333_s1 + $0xc0] sm:$0xff]  ;;  %v1055_v51 = vld [vmem:[%s1333_s1 + $0x130] sm:$0xff]  ;;  %v1054_v55 = vld [vmem:[%s1333_s1 + $0x128] sm:$0xff] }
   0xf   :  { %593 = vmatpush.bf16.msra.mxu1 %v1029_v13  ;;  %34 = vst [vmem:[#allocation1] ss:$4 sm:$0xff] %v30_v26  ;;  %v1063_v52 = vld [vmem:[%s1333_s1 + $0x170] sm:$0xff]  ;;  %v1062_v56 = vld [vmem:[%s1333_s1 + $0x168] sm:$0xff]  ;;  %v1053_v59 = vld [vmem:[%s1333_s1 + $0x120] sm:$0xff] }
  0x10   :  { %606 = vmatpush.bf16.msra.mxu2 %v1037_v14  ;;  %36 = vst [vmem:[#allocation1 + $0x20] ss:$4 sm:$0xff] %v31_v32  ;;  %v1071_v53 = vld [vmem:[%s1333_s1 + $0x1b0] sm:$0xff]  ;;  %v1070_v57 = vld [vmem:[%s1333_s1 + $0x1a8] sm:$0xff]  ;;  %v1061_v60 = vld [vmem:[%s1333_s1 + $0x160] sm:$0xff] }
  0x11   :  { %619 = vmatpush.bf16.msra.mxu3 %v1045_v15  ;;  %v1079_v54 = vld [vmem:[%s1333_s1 + $0x1f0] sm:$0xff]  ;;  %v1078_v58 = vld [vmem:[%s1333_s1 + $0x1e8] sm:$0xff]  ;;  %v1069_v61 = vld [vmem:[%s1333_s1 + $0x1a0] sm:$0xff] }
  0x12   :  { %581 = vmatpush.bf16.msra.mxu0 %v1020_v17  ;;  %v1077_v62 = vld [vmem:[%s1333_s1 + $0x1e0] sm:$0xff]  ;;  %v1052_v63 = vld [vmem:[%s1333_s1 + $0x118] sm:$0xff]  ;;  %v1051_v3 = vld [vmem:[%s1333_s1 + $0x110] sm:$0xff] }
  0x13   :  { %594 = vmatpush.bf16.msra.mxu1 %v1028_v18  ;;  %v1060_v0 = vld [vmem:[%s1333_s1 + $0x158] sm:$0xff]  ;;  %v1059_v4 = vld [vmem:[%s1333_s1 + $0x150] sm:$0xff]  ;;  %v1050_v7 = vld [vmem:[%s1333_s1 + $0x108] sm:$0xff] }
  0x14   :  { %607 = vmatpush.bf16.msra.mxu2 %v1036_v20  ;;  %v1068_v1 = vld [vmem:[%s1333_s1 + $0x198] sm:$0xff]  ;;  %v1067_v5 = vld [vmem:[%s1333_s1 + $0x190] sm:$0xff]  ;;  %v1058_v8 = vld [vmem:[%s1333_s1 + $0x148] sm:$0xff] }
  0x15   :  { %620 = vmatpush.bf16.msra.mxu3 %v1044_v21  ;;  %v1076_v2 = vld [vmem:[%s1333_s1 + $0x1d8] sm:$0xff]  ;;  %v1075_v6 = vld [vmem:[%s1333_s1 + $0x1d0] sm:$0xff]  ;;  %v1066_v9 = vld [vmem:[%s1333_s1 + $0x188] sm:$0xff] }
  0x16   :  { %582 = vmatpush.bf16.msra.mxu0 %v1019_v24  ;;  %v39_v41 = vld.sshfl [vmem:[#allocation1 + $0x10] sm:$0xff pattern:$0x73625140]  ;;  %v37_v42 = vld.sshfl [vmem:[#allocation1] sm:$0xff pattern:$0x73625140] }
  0x17   :  { %595 = vmatpush.bf16.msra.mxu1 %v1027_v25  ;;  %v40_v43 = vld.sshfl [vmem:[#allocation1 + $0x18] sm:$0xff pattern:$0x73625140]  ;;  %v38_v44 = vld.sshfl [vmem:[#allocation1 + $0x8] sm:$0xff pattern:$0x73625140]  ;;  %v55_v47 = vpack.c.bf16 %v39_v41, %v39_v41  ;;  %v53_v48 = vpack.c.bf16 %v37_v42, %v37_v42 }
  0x18   :  { %608 = vmatpush.bf16.msra.mxu2 %v1035_v27  ;;  %v56_v49 = vpack.c.bf16 %v40_v43, %v40_v43  ;;  %v54_v50 = vpack.c.bf16 %v38_v44, %v38_v44  ;;  %v1074_v10 = vld [vmem:[%s1333_s1 + $0x1c8] sm:$0xff]  ;;  %v1049_v11 = vld [vmem:[%s1333_s1 + $0x100] sm:$0xff]  ;;  %v43_v17 = vld.sshfl [vmem:[#allocation1 + $0x30] sm:$0xff pattern:$0x73625140] }
  0x19   :  { %621 = vmatpush.bf16.msra.mxu3 %v1043_v28  ;;  %v1057_v12 = vld [vmem:[%s1333_s1 + $0x140] sm:$0xff]  ;;  %v42_v16 = vld.sshfl [vmem:[#allocation1 + $0x28] sm:$0xff pattern:$0x73625140]  ;;  %v59_v21 = vpack.c.bf16 %v43_v17, %v43_v17  ;;  %v1084_v23 = vld [vmem:[%s1336_s3 + $0x18] sm:$0xff] }
  0x1a   :  { %583 = vmatpush.bf16.msra.mxu0 %v1018_v30  ;;  %v1065_v13 = vld [vmem:[%s1333_s1 + $0x180] sm:$0xff]  ;;  %v44_v18 = vld.sshfl [vmem:[#allocation1 + $0x38] sm:$0xff pattern:$0x73625140]  ;;  %v58_v20 = vpack.c.bf16 %v42_v16, %v42_v16  ;;  %v1083_v25 = vld [vmem:[%s1336_s3 + $0x10] sm:$0xff] }
  0x1b   :  { %596 = vmatpush.bf16.msra.mxu1 %v1026_v31  ;;  %v1073_v14 = vld [vmem:[%s1333_s1 + $0x1c0] sm:$0xff]  ;;  %v60_v22 = vpack.c.bf16 %v44_v18, %v44_v18  ;;  %v1082_v27 = vld [vmem:[%s1336_s3 + $0x8] sm:$0xff] }
  0x1c   :  { %609 = vmatpush.bf16.msra.mxu2 %v1034_v33  ;;  %v41_v15 = vld.sshfl [vmem:[#allocation1 + $0x20] sm:$0xff pattern:$0x73625140] }
  0x1d   :  { %622 = vmatpush.bf16.msra.mxu3 %v1042_v34  ;;  %v57_v19 = vpack.c.bf16 %v41_v15, %v41_v15  ;;  %v1081_v32 = vld [vmem:[%s1336_s3] sm:$0xff] }
  0x1e   :  { %584 = vmatpush.bf16.msra.mxu0 %v1017_v35  ;;  %v1085_v33 = vld [vmem:[%s1335_s2] ss:$0 sm:$0xff]  ;;  %v10_v35 = vstv %s1337_s4 }
  0x1f   :  { %597 = vmatpush.bf16.msra.mxu1 %v1025_v36  ;;  %11 = vst [vmem:[#allocation2] sm:$0x1] %v10_v35 }
  0x20   :  { %610 = vmatpush.bf16.msra.mxu2 %v1033_v37 }
  0x21   :  { %623 = vmatpush.bf16.msra.mxu3 %v1041_v38  ;;  %585 = vmatmul.bf16.vlgmr.msra.gmra.mxu0 %v53_v48 }
  0x22   :  { %629 = vmatpush.bf16.msrb.mxu0 %v1056_v39  ;;  %598 = vmatmul.bf16.vlgmr.msra.gmra.mxu1 %v54_v50 }
  0x23   :  { %642 = vmatpush.bf16.msrb.mxu1 %v1064_v40  ;;  %611 = vmatmul.bf16.vlgmr.msra.gmra.mxu2 %v55_v47 }
  0x24   :  { %655 = vmatpush.bf16.msrb.mxu2 %v1072_v45  ;;  %624 = vmatmul.bf16.vlgmr.msra.gmra.mxu3 %v56_v49 }
  0x25   :  { %668 = vmatpush.bf16.msrb.mxu3 %v1080_v46 }
  0x26   :  { %630 = vmatpush.bf16.msrb.mxu0 %v1055_v51 }
  0x27   :  { %643 = vmatpush.bf16.msrb.mxu1 %v1063_v52 }
  0x28   :  { %656 = vmatpush.bf16.msrb.mxu2 %v1071_v53 }
  0x29   :  { %669 = vmatpush.bf16.msrb.mxu3 %v1079_v54 }
  0x2a   :  { %631 = vmatpush.bf16.msrb.mxu0 %v1054_v55 }
  0x2b   :  { %644 = vmatpush.bf16.msrb.mxu1 %v1062_v56  ;;  %v1086_v56 = vld [vmem:[#allocation2] ss:$0 sm:$0xff] }
  0x2c   :  { %657 = vmatpush.bf16.msrb.mxu2 %v1070_v57 }
  0x2d   :  { %670 = vmatpush.bf16.msrb.mxu3 %v1078_v58 }
  0x2e   :  { %632 = vmatpush.bf16.msrb.mxu0 %v1053_v59 }
  0x2f   :  { %645 = vmatpush.bf16.msrb.mxu1 %v1061_v60 }
  0x30   :  { %658 = vmatpush.bf16.msrb.mxu2 %v1069_v61 }
  0x31   :  { %671 = vmatpush.bf16.msrb.mxu3 %v1077_v62 }
  0x32   :  { %633 = vmatpush.bf16.msrb.mxu0 %v1052_v63 }
  0x33   :  { %646 = vmatpush.bf16.msrb.mxu1 %v1060_v0 }
  0x34   :  { %659 = vmatpush.bf16.msrb.mxu2 %v1068_v1 }
  0x35   :  { %672 = vmatpush.bf16.msrb.mxu3 %v1076_v2 }
  0x36   :  { %634 = vmatpush.bf16.msrb.mxu0 %v1051_v3 }
  0x37   :  { %647 = vmatpush.bf16.msrb.mxu1 %v1059_v4 }
  0x38   :  { %660 = vmatpush.bf16.msrb.mxu2 %v1067_v5 }
  0x39   :  { %673 = vmatpush.bf16.msrb.mxu3 %v1075_v6 }
  0x3a   :  { %635 = vmatpush.bf16.msrb.mxu0 %v1050_v7 }
  0x3b   :  { %648 = vmatpush.bf16.msrb.mxu1 %v1058_v8 }
  0x3c   :  { %661 = vmatpush.bf16.msrb.mxu2 %v1066_v9 }
  0x3d   :  { %674 = vmatpush.bf16.msrb.mxu3 %v1074_v10 }
  0x3e   :  { %636 = vmatpush.bf16.msrb.mxu0 %v1049_v11 }
  0x3f   :  { %649 = vmatpush.bf16.msrb.mxu1 %v1057_v12 }
  0x40   :  { %662 = vmatpush.bf16.msrb.mxu2 %v1065_v13 }
  0x41   :  { %675 = vmatpush.bf16.msrb.mxu3 %v1073_v14  ;;  %637 = vmatmul.bf16.vlgmr.msrb.gmra.mxu0 %v57_v19 }
  0x42   :  { %650 = vmatmul.bf16.vlgmr.msrb.gmra.mxu1 %v58_v20  ;;  %729 = vmatpush.bf16.msra.mxu0 %v1084_v23 }
  0x43   :  { %663 = vmatmul.bf16.vlgmr.msrb.gmra.mxu2 %v59_v21 }
  0x44   :  { %676 = vmatmul.bf16.vlgmr.msrb.gmra.mxu3 %v60_v22 }
  0x46   :  { %730 = vmatpush.bf16.msra.mxu0 %v1083_v25 }
  0x4a   :  { %731 = vmatpush.bf16.msra.mxu0 %v1082_v27 }
  0x4e   :  { %732 = vmatpush.bf16.msra.mxu0 %v1081_v32 }
  0x9e   :  { %v586_v24 = vpop.f32.mrf.mxu0 }
  0x9f   :  { %v599_v26 = vpop.f32.mrf.mxu1  ;;  %v587_v37 = vadd.f32 %v1085_v33, %v586_v24 }
  0xa1   :  { %v600_v38 = vadd.f32 %v599_v26, %v587_v37 }
  0xa6   :  { %v612_v28 = vpop.f32.mrf.mxu2  ;;  %v588_v30 = vpop.f32.mrf.mxu0 }
  0xa7   :  { %v625_v29 = vpop.f32.mrf.mxu3  ;;  %v601_v31 = vpop.f32.mrf.mxu1  ;;  %v613_v39 = vadd.f32 %v612_v28, %v600_v38 }
  0xa9   :  { %v626_v40 = vadd.f32 %v625_v29, %v613_v39 }
  0xae   :  { %v614_v34 = vpop.f32.mrf.mxu2 }
  0xaf   :  { %v627_v36 = vpop.f32.mrf.mxu3 }
  0xbe   :  { %v638_v41 = vpop.f32.mrf.mxu0 }
  0xbf   :  { %v651_v42 = vpop.f32.mrf.mxu1  ;;  %v639_v43 = vadd.f32 %v638_v41, %v626_v40 }
  0xc1   :  { %v652_v44 = vadd.f32 %v651_v42, %v639_v43 }
  0xc6   :  { %v664_v45 = vpop.f32.mrf.mxu2  ;;  %v640_v48 = vpop.f32.mrf.mxu0 }
  0xc7   :  { %v677_v46 = vpop.f32.mrf.mxu3  ;;  %v665_v47 = vadd.f32 %v664_v45, %v652_v44  ;;  %v653_v49 = vpop.f32.mrf.mxu1 }
  0xc9   :  { %v678_v50 = vadd.f32 %v677_v46, %v665_v47 }
  0xcb   :  { %vm681_vm2 = vcmp.gt.f32.partialorder %v678_v50, 0.0  ;;  %v682_v51 = vmul.f32 0.2, %v678_v50 }
  0xcd   :  { %v683_v52 = vsel %vm681_vm2, %v678_v50, %v682_v51 }
  0xce   :  { %v684_v53 = vpack.c.bf16 %v683_v52, %v683_v52  ;;  %v666_v54 = vpop.f32.mrf.mxu2 }
  0xcf   :  { %v679_v55 = vpop.f32.mrf.mxu3 }
  0xd0   :  { %1016 = vmatmul.msk.bf16.vlgmr.msra.gmra.mxu0 %vm721_vm3, %v684_v53 }
 0x14d   :  { %v734_v57 = vpop.f32.mrf.mxu0 }
 0x14e   :  { %v735_v58 = vadd.f32 %v1086_v56, %v734_v57 }
 0x150   :  { %739 = vst.msk [vmem:[%s1338_s5] sm:$0x3] %vm738_vm4, %v735_v58 }
 0x155   :  { %v736_v59 = vpop.f32.mrf.mxu0 }

</bundles_post_ra>
